<compile_context>
chip_gen: v5e
topology: v5e:2x2
jax: 0.10.0
libtpu: 0.0.40
codegen_flags: <defaults>
</compile_context>

<pallas_src>
import jax
import jax.numpy as jnp
from jax.experimental import pallas as pl
from jax.experimental.pallas import tpu as pltpu

DIM_EMB = 96
N_HEAD = 6
HEAD_SIZE = DIM_EMB // N_HEAD  # 16


def mha_kernel(x_ref, a_ref, c_ref, bp_ref, o_ref):
    # x_ref : (bblk, T, E) f32
    # a_ref : (N_HEAD, E, E) bf16, A_h = scale * Wq_h @ Wk_h^T
    # c_ref : (N_HEAD, E, E) bf16, C_h = Wv_h @ Wp_h
    # bp_ref: (1, E) f32
    # o_ref : (bblk, T, E)
    bblk, T, E = x_ref.shape
    M = bblk * T

    xb = x_ref[...].astype(jnp.bfloat16)          # (bblk, T, E) bf16 (reused by all heads)
    xm = xb.reshape(M, E)                          # batch folded into matmul rows

    # Causal additive bias, computed once per grid step (shared by all heads).
    row = jax.lax.broadcasted_iota(jnp.int32, (T, T), 0)
    col = jax.lax.broadcasted_iota(jnp.int32, (T, T), 1)
    bias = jnp.where(row >= col, 0.0, -1e30).astype(jnp.float32)   # (T, T)

    y = jnp.zeros((M, E), jnp.float32)

    for h in range(N_HEAD):  # unrolled at trace time (6 heads)
        # Folded per-head projections: well-shaped (M,96)x(96,96) MXU matmuls.
        xa = jnp.dot(xm, a_ref[h], preferred_element_type=jnp.float32)   # (M, E) f32
        xc = jnp.dot(xm, c_ref[h], preferred_element_type=jnp.float32)   # (M, E) f32

        # scores[b,t,s] = xa[b,t,:] . x[b,s,:]   (contraction dim = 96)
        s = jnp.einsum("btd,bsd->bts",
                       xa.reshape(bblk, T, E).astype(jnp.bfloat16), xb,
                       preferred_element_type=jnp.float32)               # (bblk, T, T)
        s = s + bias[None, :, :]

        # Softmax in f32 (v5e has no bf16 VPU/EUP path).
        m = jnp.max(s, axis=-1, keepdims=True)
        e = jnp.exp(s - m)
        denom = jnp.sum(e, axis=-1, keepdims=True)
        p = e * pl.reciprocal(denom, approx=True)

        # p @ (x @ C_h) lands directly in output-embedding space: no concat,
        # no separate output projection matmul.
        o_h = jnp.einsum("bts,bsd->btd",
                         p.astype(jnp.bfloat16),
                         xc.reshape(bblk, T, E).astype(jnp.bfloat16),
                         preferred_element_type=jnp.float32)              # (bblk, T, E)
        y = y + o_h.reshape(M, E)

    y = y + bp_ref[0]
    o_ref[...] = y.reshape(bblk, T, E).astype(o_ref.dtype)


def _fold_weights(wq_all, wk_all, wv_all, wp_t):
    """Fold per-head weight pairs into (N_HEAD, E, E) stacks (exact algebra).

    wq_all/wk_all/wv_all: (E, N_HEAD*HEAD_SIZE) input-major (q = x @ wq_all).
    wp_t: (N_HEAD*HEAD_SIZE, E) with y = concat_heads @ wp_t + b.
    """
    E = DIM_EMB
    scale = jnp.float32(HEAD_SIZE ** -0.5)
    wq3 = wq_all.reshape(E, N_HEAD, HEAD_SIZE).transpose(1, 0, 2)   # (H, E, d)
    wk3 = wk_all.reshape(E, N_HEAD, HEAD_SIZE).transpose(1, 0, 2)   # (H, E, d)
    wv3 = wv_all.reshape(E, N_HEAD, HEAD_SIZE).transpose(1, 0, 2)   # (H, E, d)
    wp3 = wp_t.reshape(N_HEAD, HEAD_SIZE, E)                        # (H, d, E)
    a = (scale * jnp.einsum("hik,hjk->hij", wq3, wk3)).astype(jnp.bfloat16)  # (H,E,E)
    c = jnp.einsum("hik,hkj->hij", wv3, wp3).astype(jnp.bfloat16)            # (H,E,E)
    return a, c


def multi_head_attention(x, wq_all, wk_all, wv_all, wp_t, bp):
    """x: (B, T, E); w*_all: (E, E) input-major; wp_t: (E, E); bp: (E,)."""
    B, T, E = x.shape
    assert E == DIM_EMB

    a, c = _fold_weights(wq_all, wk_all, wv_all, wp_t)     # (H, E, E) bf16 each
    bp2 = bp.reshape(1, E).astype(jnp.float32)

    # Fold batches into the matmul M dimension (~256 rows per grid step).
    bblk = max(1, min(B, 256 // max(T, 1)))
    if B > 1:
        bblk = min(bblk, -(-B // 2))   # keep >= 2 grid steps (v7x: 2 TensorCores)
    n_blk = -(-B // bblk)
    Bp = n_blk * bblk
    xp = x if Bp == B else jnp.pad(x, ((0, Bp - B), (0, 0), (0, 0)))

    M_total = Bp * T
    cost = pl.CostEstimate(
        flops=(2 * 2 * N_HEAD * M_total * E * E           # xa + xc projections
               + 2 * 2 * N_HEAD * Bp * T * T * E),        # scores + p @ xc
        transcendentals=N_HEAD * Bp * T * T,
        bytes_accessed=(int(xp.size) + M_total * E) * 4
                       + int(a.size) * 2 + int(c.size) * 2 + int(bp2.size) * 4,
    )

    out = pl.pallas_call(
        mha_kernel,
        out_shape=jax.ShapeDtypeStruct((Bp, T, E), x.dtype),
        grid_spec=pltpu.PrefetchScalarGridSpec(
            num_scalar_prefetch=0,
            grid=(n_blk,),
            in_specs=[
                pl.BlockSpec((bblk, T, E), lambda i: (i, 0, 0)),          # x block
                pl.BlockSpec((N_HEAD, E, E), lambda i: (0, 0, 0)),        # A (const idx)
                pl.BlockSpec((N_HEAD, E, E), lambda i: (0, 0, 0)),        # C (const idx)
                pl.BlockSpec((1, E), lambda i: (0, 0)),                   # proj bias
            ],
            out_specs=pl.BlockSpec((bblk, T, E), lambda i: (i, 0, 0)),
        ),
        compiler_params=pltpu.CompilerParams(
            dimension_semantics=("parallel",),
        ),
        cost_estimate=cost,
    )(xp, a, c, bp2)

    return out[:B]


def reference_mha(x, wq_all, wk_all, wv_all, wp_t, bp):
    """Pure-JAX f32 reference matching the PyTorch forward (eval mode)."""
    B, T, E = x.shape
    q = x @ wq_all
    k = x @ wk_all
    v = x @ wv_all
    q = q.reshape(B, T, N_HEAD, HEAD_SIZE)
    k = k.reshape(B, T, N_HEAD, HEAD_SIZE)
    v = v.reshape(B, T, N_HEAD, HEAD_SIZE)
    s = jnp.einsum("bqhd,bkhd->bhqk", q, k) * (HEAD_SIZE ** -0.5)
    mask = jnp.tril(jnp.ones((T, T), dtype=bool))
    s = jnp.where(mask[None, None], s, -jnp.inf)
    p = jax.nn.softmax(s, axis=-1)
    o = jnp.einsum("bhqk,bkhd->bqhd", p, v).reshape(B, T, E)
    return o @ wp_t + bp


if __name__ == "__main__":
    key = jax.random.PRNGKey(0)
    B, T = 64, 8   # 64 sequences -> 2 grid steps of 32 (256 matmul rows each)

    keys = jax.random.split(key, 6)
    x = jax.random.normal(keys[0], (B, T, DIM_EMB), dtype=jnp.float32)

    # Per-head Linear weights (PyTorch shape (head_size, dim_emb)), stacked and
    # transposed into (dim_emb, n_head*head_size) for x @ W usage.
    def make_all(k):
        w = jax.random.normal(k, (N_HEAD, HEAD_SIZE, DIM_EMB), dtype=jnp.float32) * 0.05
        return jnp.transpose(w.reshape(N_HEAD * HEAD_SIZE, DIM_EMB))

    wq_all = make_all(keys[1])
    wk_all = make_all(keys[2])
    wv_all = make_all(keys[3])

    # Output projection Linear(96, 96): weight (out, in), bias (out,)
    wp = jax.random.normal(keys[4], (DIM_EMB, DIM_EMB), dtype=jnp.float32) * 0.05
    bp = jax.random.normal(keys[5], (DIM_EMB,), dtype=jnp.float32) * 0.05
    wp_t = wp.T  # (in, out)

    out = multi_head_attention(x, wq_all, wk_all, wv_all, wp_t, bp)
    out = jax.block_until_ready(out)

    ref = reference_mha(x, wq_all, wk_all, wv_all, wp_t, bp)
    assert out.shape == (B, T, DIM_EMB)
    max_err = float(jnp.max(jnp.abs(out - ref)))
    # bf16 MXU operands (f32 accumulation) -> relaxed tolerance vs f32 reference.
    assert jnp.allclose(out, ref, atol=3e-2, rtol=3e-2), f"mismatch vs reference (max abs err {max_err})"

    print("KERNEL_OK")
</pallas_src>

<mosaic_0001>
module attributes {stable_mosaic.version = 11 : i64} {
  func.func @mha_kernel(%arg0: i32, %arg1: memref<32x8x96xf32, #tpu.memory_space<vmem>>, %arg2: memref<6x96x96xbf16, #tpu.memory_space<vmem>>, %arg3: memref<6x96x96xbf16, #tpu.memory_space<vmem>>, %arg4: memref<1x96xf32, #tpu.memory_space<vmem>>, %arg5: memref<32x8x96xf32, #tpu.memory_space<vmem>>) attributes {dimension_semantics = [#tpu.dimension_semantics<parallel>], iteration_bounds = array<i64: 2>, scalar_prefetch = 0 : i64, scratch_operands = 0 : i64, tpu.core_type = #tpu.core_type<tc>, window_params = [{transform_indices = @transform_0, window_bounds = array<i64: 32, 8, 96>}, {pipeline_mode = #tpu.pipeline_mode<synchronous>, transform_indices = @transform_1, window_bounds = array<i64: 6, 96, 96>}, {pipeline_mode = #tpu.pipeline_mode<synchronous>, transform_indices = @transform_2, window_bounds = array<i64: 6, 96, 96>}, {pipeline_mode = #tpu.pipeline_mode<synchronous>, transform_indices = @transform_3, window_bounds = array<i64: 1, 96>}, {transform_indices = @transform_4, window_bounds = array<i64: 32, 8, 96>}]} {
    %c0 = arith.constant 0 : index
    %c0_0 = arith.constant 0 : index
    %c0_1 = arith.constant 0 : index
    %0 = vector.load %arg1[%c0, %c0_0, %c0_1] : memref<32x8x96xf32, #tpu.memory_space<vmem>>, vector<32x8x96xf32>
    %1 = arith.truncf %0 : vector<32x8x96xf32> to vector<32x8x96xbf16>
    %2 = vector.shape_cast %1 : vector<32x8x96xbf16> to vector<256x96xbf16>
    %3 = tpu.iota {dimensions = array<i32: 0>} : vector<8x8xi32>
    %4 = tpu.iota {dimensions = array<i32: 1>} : vector<8x8xi32>
    %5 = arith.cmpi sge, %3, %4 : vector<8x8xi32>
    %cst = arith.constant 0.000000e+00 : f32
    %cst_2 = arith.constant -1.000000e+30 : f32
    %6 = vector.broadcast %cst : f32 to vector<8x8xf32>
    %7 = vector.broadcast %cst_2 : f32 to vector<8x8xf32>
    %8 = arith.select %5, %6, %7 : vector<8x8xi1>, vector<8x8xf32>
    %cst_3 = arith.constant 0.000000e+00 : f32
    %9 = vector.broadcast %cst_3 : f32 to vector<256x96xf32>
    %c0_4 = arith.constant 0 : index
    %c0_5 = arith.constant 0 : index
    %c0_6 = arith.constant 0 : index
    %10 = vector.load %arg2[%c0_4, %c0_5, %c0_6] : memref<6x96x96xbf16, #tpu.memory_space<vmem>>, vector<1x96x96xbf16>
    %11 = vector.shape_cast %10 : vector<1x96x96xbf16> to vector<96x96xbf16>
    %cst_7 = arith.constant dense<0.000000e+00> : vector<256x96xf32>
    %12 = tpu.matmul %2, %11, %cst_7 {dimension_numbers = #tpu.dot_dimension_numbers<[1], [0], [0], [1], [0, 0, 1, 1], [], []>} : vector<256x96xbf16>, vector<96x96xbf16>, vector<256x96xf32> -> vector<256x96xf32>
    %c0_8 = arith.constant 0 : index
    %c0_9 = arith.constant 0 : index
    %c0_10 = arith.constant 0 : index
    %13 = vector.load %arg3[%c0_8, %c0_9, %c0_10] : memref<6x96x96xbf16, #tpu.memory_space<vmem>>, vector<1x96x96xbf16>
    %14 = vector.shape_cast %13 : vector<1x96x96xbf16> to vector<96x96xbf16>
    %cst_11 = arith.constant dense<0.000000e+00> : vector<256x96xf32>
    %15 = tpu.matmul %2, %14, %cst_11 {dimension_numbers = #tpu.dot_dimension_numbers<[1], [0], [0], [1], [0, 0, 1, 1], [], []>} : vector<256x96xbf16>, vector<96x96xbf16>, vector<256x96xf32> -> vector<256x96xf32>
    %16 = vector.shape_cast %12 : vector<256x96xf32> to vector<32x8x96xf32>
    %17 = arith.truncf %16 : vector<32x8x96xf32> to vector<32x8x96xbf16>
    "tpu.trace_start"() <{level = 10 : i32, message = "btd,bsd->bts"}> : () -> ()
    %cst_12 = arith.constant dense<0.000000e+00> : vector<32x8x8xf32>
    %18 = tpu.matmul %17, %1, %cst_12 {dimension_numbers = #tpu.dot_dimension_numbers<[2], [2], [1], [1], [0, 0, 0, 1, 1, 1], [0], [0]>} : vector<32x8x96xbf16>, vector<32x8x96xbf16>, vector<32x8x8xf32> -> vector<32x8x8xf32>
    "tpu.trace_stop"() : () -> ()
    %19 = vector.shape_cast %8 : vector<8x8xf32> to vector<1x8x8xf32>
    %20 = vector.broadcast %19 : vector<1x8x8xf32> to vector<32x8x8xf32>
    %21 = arith.addf %18, %20 : vector<32x8x8xf32>
    %cst_13 = arith.constant dense<0xFF800000> : vector<32x8xf32>
    %22 = vector.multi_reduction <maximumf>, %21, %cst_13 [2] : vector<32x8x8xf32> to vector<32x8xf32>
    %23 = vector.shape_cast %22 : vector<32x8xf32> to vector<32x8x1xf32>
    %24 = vector.broadcast %23 : vector<32x8x1xf32> to vector<32x8x8xf32>
    %25 = arith.subf %21, %24 : vector<32x8x8xf32>
    %26 = math.exp %25 : vector<32x8x8xf32>
    %cst_14 = arith.constant dense<0.000000e+00> : vector<32x8xf32>
    %27 = vector.multi_reduction <add>, %26, %cst_14 [2] : vector<32x8x8xf32> to vector<32x8xf32>
    %28 = vector.shape_cast %27 : vector<32x8xf32> to vector<32x8x1xf32>
    %29 = tpu.reciprocal %28 {approx = true} : vector<32x8x1xf32> -> vector<32x8x1xf32>
    %30 = vector.broadcast %29 : vector<32x8x1xf32> to vector<32x8x8xf32>
    %31 = arith.mulf %26, %30 : vector<32x8x8xf32>
    %32 = arith.truncf %31 : vector<32x8x8xf32> to vector<32x8x8xbf16>
    %33 = vector.shape_cast %15 : vector<256x96xf32> to vector<32x8x96xf32>
    %34 = arith.truncf %33 : vector<32x8x96xf32> to vector<32x8x96xbf16>
    "tpu.trace_start"() <{level = 10 : i32, message = "bts,bsd->btd"}> : () -> ()
    %cst_15 = arith.constant dense<0.000000e+00> : vector<32x8x96xf32>
    %35 = tpu.matmul %32, %34, %cst_15 {dimension_numbers = #tpu.dot_dimension_numbers<[2], [1], [1], [2], [0, 0, 0, 1, 1, 2], [0], [0]>} : vector<32x8x8xbf16>, vector<32x8x96xbf16>, vector<32x8x96xf32> -> vector<32x8x96xf32>
    "tpu.trace_stop"() : () -> ()
    %36 = vector.shape_cast %35 : vector<32x8x96xf32> to vector<256x96xf32>
    %37 = arith.addf %9, %36 : vector<256x96xf32>
    %c1 = arith.constant 1 : index
    %c0_16 = arith.constant 0 : index
    %c0_17 = arith.constant 0 : index
    %38 = vector.load %arg2[%c1, %c0_16, %c0_17] : memref<6x96x96xbf16, #tpu.memory_space<vmem>>, vector<1x96x96xbf16>
    %39 = vector.shape_cast %38 : vector<1x96x96xbf16> to vector<96x96xbf16>
    %cst_18 = arith.constant dense<0.000000e+00> : vector<256x96xf32>
    %40 = tpu.matmul %2, %39, %cst_18 {dimension_numbers = #tpu.dot_dimension_numbers<[1], [0], [0], [1], [0, 0, 1, 1], [], []>} : vector<256x96xbf16>, vector<96x96xbf16>, vector<256x96xf32> -> vector<256x96xf32>
    %c1_19 = arith.constant 1 : index
    %c0_20 = arith.constant 0 : index
    %c0_21 = arith.constant 0 : index
    %41 = vector.load %arg3[%c1_19, %c0_20, %c0_21] : memref<6x96x96xbf16, #tpu.memory_space<vmem>>, vector<1x96x96xbf16>
    %42 = vector.shape_cast %41 : vector<1x96x96xbf16> to vector<96x96xbf16>
    %cst_22 = arith.constant dense<0.000000e+00> : vector<256x96xf32>
    %43 = tpu.matmul %2, %42, %cst_22 {dimension_numbers = #tpu.dot_dimension_numbers<[1], [0], [0], [1], [0, 0, 1, 1], [], []>} : vector<256x96xbf16>, vector<96x96xbf16>, vector<256x96xf32> -> vector<256x96xf32>
    %44 = vector.shape_cast %40 : vector<256x96xf32> to vector<32x8x96xf32>
    %45 = arith.truncf %44 : vector<32x8x96xf32> to vector<32x8x96xbf16>
    "tpu.trace_start"() <{level = 10 : i32, message = "btd,bsd->bts"}> : () -> ()
    %cst_23 = arith.constant dense<0.000000e+00> : vector<32x8x8xf32>
    %46 = tpu.matmul %45, %1, %cst_23 {dimension_numbers = #tpu.dot_dimension_numbers<[2], [2], [1], [1], [0, 0, 0, 1, 1, 1], [0], [0]>} : vector<32x8x96xbf16>, vector<32x8x96xbf16>, vector<32x8x8xf32> -> vector<32x8x8xf32>
    "tpu.trace_stop"() : () -> ()
    %47 = vector.shape_cast %8 : vector<8x8xf32> to vector<1x8x8xf32>
    %48 = vector.broadcast %47 : vector<1x8x8xf32> to vector<32x8x8xf32>
    %49 = arith.addf %46, %48 : vector<32x8x8xf32>
    %cst_24 = arith.constant dense<0xFF800000> : vector<32x8xf32>
    %50 = vector.multi_reduction <maximumf>, %49, %cst_24 [2] : vector<32x8x8xf32> to vector<32x8xf32>
    %51 = vector.shape_cast %50 : vector<32x8xf32> to vector<32x8x1xf32>
    %52 = vector.broadcast %51 : vector<32x8x1xf32> to vector<32x8x8xf32>
    %53 = arith.subf %49, %52 : vector<32x8x8xf32>
    %54 = math.exp %53 : vector<32x8x8xf32>
    %cst_25 = arith.constant dense<0.000000e+00> : vector<32x8xf32>
    %55 = vector.multi_reduction <add>, %54, %cst_25 [2] : vector<32x8x8xf32> to vector<32x8xf32>
    %56 = vector.shape_cast %55 : vector<32x8xf32> to vector<32x8x1xf32>
    %57 = tpu.reciprocal %56 {approx = true} : vector<32x8x1xf32> -> vector<32x8x1xf32>
    %58 = vector.broadcast %57 : vector<32x8x1xf32> to vector<32x8x8xf32>
    %59 = arith.mulf %54, %58 : vector<32x8x8xf32>
    %60 = arith.truncf %59 : vector<32x8x8xf32> to vector<32x8x8xbf16>
    %61 = vector.shape_cast %43 : vector<256x96xf32> to vector<32x8x96xf32>
    %62 = arith.truncf %61 : vector<32x8x96xf32> to vector<32x8x96xbf16>
    "tpu.trace_start"() <{level = 10 : i32, message = "bts,bsd->btd"}> : () -> ()
    %cst_26 = arith.constant dense<0.000000e+00> : vector<32x8x96xf32>
    %63 = tpu.matmul %60, %62, %cst_26 {dimension_numbers = #tpu.dot_dimension_numbers<[2], [1], [1], [2], [0, 0, 0, 1, 1, 2], [0], [0]>} : vector<32x8x8xbf16>, vector<32x8x96xbf16>, vector<32x8x96xf32> -> vector<32x8x96xf32>
    "tpu.trace_stop"() : () -> ()
    %64 = vector.shape_cast %63 : vector<32x8x96xf32> to vector<256x96xf32>
    %65 = arith.addf %37, %64 : vector<256x96xf32>
    %c2 = arith.constant 2 : index
    %c0_27 = arith.constant 0 : index
    %c0_28 = arith.constant 0 : index
    %66 = vector.load %arg2[%c2, %c0_27, %c0_28] : memref<6x96x96xbf16, #tpu.memory_space<vmem>>, vector<1x96x96xbf16>
    %67 = vector.shape_cast %66 : vector<1x96x96xbf16> to vector<96x96xbf16>
    %cst_29 = arith.constant dense<0.000000e+00> : vector<256x96xf32>
    %68 = tpu.matmul %2, %67, %cst_29 {dimension_numbers = #tpu.dot_dimension_numbers<[1], [0], [0], [1], [0, 0, 1, 1], [], []>} : vector<256x96xbf16>, vector<96x96xbf16>, vector<256x96xf32> -> vector<256x96xf32>
    %c2_30 = arith.constant 2 : index
    %c0_31 = arith.constant 0 : index
    %c0_32 = arith.constant 0 : index
    %69 = vector.load %arg3[%c2_30, %c0_31, %c0_32] : memref<6x96x96xbf16, #tpu.memory_space<vmem>>, vector<1x96x96xbf16>
    %70 = vector.shape_cast %69 : vector<1x96x96xbf16> to vector<96x96xbf16>
    %cst_33 = arith.constant dense<0.000000e+00> : vector<256x96xf32>
    %71 = tpu.matmul %2, %70, %cst_33 {dimension_numbers = #tpu.dot_dimension_numbers<[1], [0], [0], [1], [0, 0, 1, 1], [], []>} : vector<256x96xbf16>, vector<96x96xbf16>, vector<256x96xf32> -> vector<256x96xf32>
    %72 = vector.shape_cast %68 : vector<256x96xf32> to vector<32x8x96xf32>
    %73 = arith.truncf %72 : vector<32x8x96xf32> to vector<32x8x96xbf16>
    "tpu.trace_start"() <{level = 10 : i32, message = "btd,bsd->bts"}> : () -> ()
    %cst_34 = arith.constant dense<0.000000e+00> : vector<32x8x8xf32>
    %74 = tpu.matmul %73, %1, %cst_34 {dimension_numbers = #tpu.dot_dimension_numbers<[2], [2], [1], [1], [0, 0, 0, 1, 1, 1], [0], [0]>} : vector<32x8x96xbf16>, vector<32x8x96xbf16>, vector<32x8x8xf32> -> vector<32x8x8xf32>
    "tpu.trace_stop"() : () -> ()
    %75 = vector.shape_cast %8 : vector<8x8xf32> to vector<1x8x8xf32>
    %76 = vector.broadcast %75 : vector<1x8x8xf32> to vector<32x8x8xf32>
    %77 = arith.addf %74, %76 : vector<32x8x8xf32>
    %cst_35 = arith.constant dense<0xFF800000> : vector<32x8xf32>
    %78 = vector.multi_reduction <maximumf>, %77, %cst_35 [2] : vector<32x8x8xf32> to vector<32x8xf32>
    %79 = vector.shape_cast %78 : vector<32x8xf32> to vector<32x8x1xf32>
    %80 = vector.broadcast %79 : vector<32x8x1xf32> to vector<32x8x8xf32>
    %81 = arith.subf %77, %80 : vector<32x8x8xf32>
    %82 = math.exp %81 : vector<32x8x8xf32>
    %cst_36 = arith.constant dense<0.000000e+00> : vector<32x8xf32>
    %83 = vector.multi_reduction <add>, %82, %cst_36 [2] : vector<32x8x8xf32> to vector<32x8xf32>
    %84 = vector.shape_cast %83 : vector<32x8xf32> to vector<32x8x1xf32>
    %85 = tpu.reciprocal %84 {approx = true} : vector<32x8x1xf32> -> vector<32x8x1xf32>
    %86 = vector.broadcast %85 : vector<32x8x1xf32> to vector<32x8x8xf32>
    %87 = arith.mulf %82, %86 : vector<32x8x8xf32>
    %88 = arith.truncf %87 : vector<32x8x8xf32> to vector<32x8x8xbf16>
    %89 = vector.shape_cast %71 : vector<256x96xf32> to vector<32x8x96xf32>
    %90 = arith.truncf %89 : vector<32x8x96xf32> to vector<32x8x96xbf16>
    "tpu.trace_start"() <{level = 10 : i32, message = "bts,bsd->btd"}> : () -> ()
    %cst_37 = arith.constant dense<0.000000e+00> : vector<32x8x96xf32>
    %91 = tpu.matmul %88, %90, %cst_37 {dimension_numbers = #tpu.dot_dimension_numbers<[2], [1], [1], [2], [0, 0, 0, 1, 1, 2], [0], [0]>} : vector<32x8x8xbf16>, vector<32x8x96xbf16>, vector<32x8x96xf32> -> vector<32x8x96xf32>
    "tpu.trace_stop"() : () -> ()
    %92 = vector.shape_cast %91 : vector<32x8x96xf32> to vector<256x96xf32>
    %93 = arith.addf %65, %92 : vector<256x96xf32>
    %c3 = arith.constant 3 : index
    %c0_38 = arith.constant 0 : index
    %c0_39 = arith.constant 0 : index
    %94 = vector.load %arg2[%c3, %c0_38, %c0_39] : memref<6x96x96xbf16, #tpu.memory_space<vmem>>, vector<1x96x96xbf16>
    %95 = vector.shape_cast %94 : vector<1x96x96xbf16> to vector<96x96xbf16>
    %cst_40 = arith.constant dense<0.000000e+00> : vector<256x96xf32>
    %96 = tpu.matmul %2, %95, %cst_40 {dimension_numbers = #tpu.dot_dimension_numbers<[1], [0], [0], [1], [0, 0, 1, 1], [], []>} : vector<256x96xbf16>, vector<96x96xbf16>, vector<256x96xf32> -> vector<256x96xf32>
    %c3_41 = arith.constant 3 : index
    %c0_42 = arith.constant 0 : index
    %c0_43 = arith.constant 0 : index
    %97 = vector.load %arg3[%c3_41, %c0_42, %c0_43] : memref<6x96x96xbf16, #tpu.memory_space<vmem>>, vector<1x96x96xbf16>
    %98 = vector.shape_cast %97 : vector<1x96x96xbf16> to vector<96x96xbf16>
    %cst_44 = arith.constant dense<0.000000e+00> : vector<256x96xf32>
    %99 = tpu.matmul %2, %98, %cst_44 {dimension_numbers = #tpu.dot_dimension_numbers<[1], [0], [0], [1], [0, 0, 1, 1], [], []>} : vector<256x96xbf16>, vector<96x96xbf16>, vector<256x96xf32> -> vector<256x96xf32>
    %100 = vector.shape_cast %96 : vector<256x96xf32> to vector<32x8x96xf32>
    %101 = arith.truncf %100 : vector<32x8x96xf32> to vector<32x8x96xbf16>
    "tpu.trace_start"() <{level = 10 : i32, message = "btd,bsd->bts"}> : () -> ()
    %cst_45 = arith.constant dense<0.000000e+00> : vector<32x8x8xf32>
    %102 = tpu.matmul %101, %1, %cst_45 {dimension_numbers = #tpu.dot_dimension_numbers<[2], [2], [1], [1], [0, 0, 0, 1, 1, 1], [0], [0]>} : vector<32x8x96xbf16>, vector<32x8x96xbf16>, vector<32x8x8xf32> -> vector<32x8x8xf32>
    "tpu.trace_stop"() : () -> ()
    %103 = vector.shape_cast %8 : vector<8x8xf32> to vector<1x8x8xf32>
    %104 = vector.broadcast %103 : vector<1x8x8xf32> to vector<32x8x8xf32>
    %105 = arith.addf %102, %104 : vector<32x8x8xf32>
    %cst_46 = arith.constant dense<0xFF800000> : vector<32x8xf32>
    %106 = vector.multi_reduction <maximumf>, %105, %cst_46 [2] : vector<32x8x8xf32> to vector<32x8xf32>
    %107 = vector.shape_cast %106 : vector<32x8xf32> to vector<32x8x1xf32>
    %108 = vector.broadcast %107 : vector<32x8x1xf32> to vector<32x8x8xf32>
    %109 = arith.subf %105, %108 : vector<32x8x8xf32>
    %110 = math.exp %109 : vector<32x8x8xf32>
    %cst_47 = arith.constant dense<0.000000e+00> : vector<32x8xf32>
    %111 = vector.multi_reduction <add>, %110, %cst_47 [2] : vector<32x8x8xf32> to vector<32x8xf32>
    %112 = vector.shape_cast %111 : vector<32x8xf32> to vector<32x8x1xf32>
    %113 = tpu.reciprocal %112 {approx = true} : vector<32x8x1xf32> -> vector<32x8x1xf32>
    %114 = vector.broadcast %113 : vector<32x8x1xf32> to vector<32x8x8xf32>
    %115 = arith.mulf %110, %114 : vector<32x8x8xf32>
    %116 = arith.truncf %115 : vector<32x8x8xf32> to vector<32x8x8xbf16>
    %117 = vector.shape_cast %99 : vector<256x96xf32> to vector<32x8x96xf32>
    %118 = arith.truncf %117 : vector<32x8x96xf32> to vector<32x8x96xbf16>
    "tpu.trace_start"() <{level = 10 : i32, message = "bts,bsd->btd"}> : () -> ()
    %cst_48 = arith.constant dense<0.000000e+00> : vector<32x8x96xf32>
    %119 = tpu.matmul %116, %118, %cst_48 {dimension_numbers = #tpu.dot_dimension_numbers<[2], [1], [1], [2], [0, 0, 0, 1, 1, 2], [0], [0]>} : vector<32x8x8xbf16>, vector<32x8x96xbf16>, vector<32x8x96xf32> -> vector<32x8x96xf32>
    "tpu.trace_stop"() : () -> ()
    %120 = vector.shape_cast %119 : vector<32x8x96xf32> to vector<256x96xf32>
    %121 = arith.addf %93, %120 : vector<256x96xf32>
    %c4 = arith.constant 4 : index
    %c0_49 = arith.constant 0 : index
    %c0_50 = arith.constant 0 : index
    %122 = vector.load %arg2[%c4, %c0_49, %c0_50] : memref<6x96x96xbf16, #tpu.memory_space<vmem>>, vector<1x96x96xbf16>
    %123 = vector.shape_cast %122 : vector<1x96x96xbf16> to vector<96x96xbf16>
    %cst_51 = arith.constant dense<0.000000e+00> : vector<256x96xf32>
    %124 = tpu.matmul %2, %123, %cst_51 {dimension_numbers = #tpu.dot_dimension_numbers<[1], [0], [0], [1], [0, 0, 1, 1], [], []>} : vector<256x96xbf16>, vector<96x96xbf16>, vector<256x96xf32> -> vector<256x96xf32>
    %c4_52 = arith.constant 4 : index
    %c0_53 = arith.constant 0 : index
    %c0_54 = arith.constant 0 : index
    %125 = vector.load %arg3[%c4_52, %c0_53, %c0_54] : memref<6x96x96xbf16, #tpu.memory_space<vmem>>, vector<1x96x96xbf16>
    %126 = vector.shape_cast %125 : vector<1x96x96xbf16> to vector<96x96xbf16>
    %cst_55 = arith.constant dense<0.000000e+00> : vector<256x96xf32>
    %127 = tpu.matmul %2, %126, %cst_55 {dimension_numbers = #tpu.dot_dimension_numbers<[1], [0], [0], [1], [0, 0, 1, 1], [], []>} : vector<256x96xbf16>, vector<96x96xbf16>, vector<256x96xf32> -> vector<256x96xf32>
    %128 = vector.shape_cast %124 : vector<256x96xf32> to vector<32x8x96xf32>
    %129 = arith.truncf %128 : vector<32x8x96xf32> to vector<32x8x96xbf16>
    "tpu.trace_start"() <{level = 10 : i32, message = "btd,bsd->bts"}> : () -> ()
    %cst_56 = arith.constant dense<0.000000e+00> : vector<32x8x8xf32>
    %130 = tpu.matmul %129, %1, %cst_56 {dimension_numbers = #tpu.dot_dimension_numbers<[2], [2], [1], [1], [0, 0, 0, 1, 1, 1], [0], [0]>} : vector<32x8x96xbf16>, vector<32x8x96xbf16>, vector<32x8x8xf32> -> vector<32x8x8xf32>
    "tpu.trace_stop"() : () -> ()
    %131 = vector.shape_cast %8 : vector<8x8xf32> to vector<1x8x8xf32>
    %132 = vector.broadcast %131 : vector<1x8x8xf32> to vector<32x8x8xf32>
    %133 = arith.addf %130, %132 : vector<32x8x8xf32>
    %cst_57 = arith.constant dense<0xFF800000> : vector<32x8xf32>
    %134 = vector.multi_reduction <maximumf>, %133, %cst_57 [2] : vector<32x8x8xf32> to vector<32x8xf32>
    %135 = vector.shape_cast %134 : vector<32x8xf32> to vector<32x8x1xf32>
    %136 = vector.broadcast %135 : vector<32x8x1xf32> to vector<32x8x8xf32>
    %137 = arith.subf %133, %136 : vector<32x8x8xf32>
    %138 = math.exp %137 : vector<32x8x8xf32>
    %cst_58 = arith.constant dense<0.000000e+00> : vector<32x8xf32>
    %139 = vector.multi_reduction <add>, %138, %cst_58 [2] : vector<32x8x8xf32> to vector<32x8xf32>
    %140 = vector.shape_cast %139 : vector<32x8xf32> to vector<32x8x1xf32>
    %141 = tpu.reciprocal %140 {approx = true} : vector<32x8x1xf32> -> vector<32x8x1xf32>
    %142 = vector.broadcast %141 : vector<32x8x1xf32> to vector<32x8x8xf32>
    %143 = arith.mulf %138, %142 : vector<32x8x8xf32>
    %144 = arith.truncf %143 : vector<32x8x8xf32> to vector<32x8x8xbf16>
    %145 = vector.shape_cast %127 : vector<256x96xf32> to vector<32x8x96xf32>
    %146 = arith.truncf %145 : vector<32x8x96xf32> to vector<32x8x96xbf16>
    "tpu.trace_start"() <{level = 10 : i32, message = "bts,bsd->btd"}> : () -> ()
    %cst_59 = arith.constant dense<0.000000e+00> : vector<32x8x96xf32>
    %147 = tpu.matmul %144, %146, %cst_59 {dimension_numbers = #tpu.dot_dimension_numbers<[2], [1], [1], [2], [0, 0, 0, 1, 1, 2], [0], [0]>} : vector<32x8x8xbf16>, vector<32x8x96xbf16>, vector<32x8x96xf32> -> vector<32x8x96xf32>
    "tpu.trace_stop"() : () -> ()
    %148 = vector.shape_cast %147 : vector<32x8x96xf32> to vector<256x96xf32>
    %149 = arith.addf %121, %148 : vector<256x96xf32>
    %c5 = arith.constant 5 : index
    %c0_60 = arith.constant 0 : index
    %c0_61 = arith.constant 0 : index
    %150 = vector.load %arg2[%c5, %c0_60, %c0_61] : memref<6x96x96xbf16, #tpu.memory_space<vmem>>, vector<1x96x96xbf16>
    %151 = vector.shape_cast %150 : vector<1x96x96xbf16> to vector<96x96xbf16>
    %cst_62 = arith.constant dense<0.000000e+00> : vector<256x96xf32>
    %152 = tpu.matmul %2, %151, %cst_62 {dimension_numbers = #tpu.dot_dimension_numbers<[1], [0], [0], [1], [0, 0, 1, 1], [], []>} : vector<256x96xbf16>, vector<96x96xbf16>, vector<256x96xf32> -> vector<256x96xf32>
    %c5_63 = arith.constant 5 : index
    %c0_64 = arith.constant 0 : index
    %c0_65 = arith.constant 0 : index
    %153 = vector.load %arg3[%c5_63, %c0_64, %c0_65] : memref<6x96x96xbf16, #tpu.memory_space<vmem>>, vector<1x96x96xbf16>
    %154 = vector.shape_cast %153 : vector<1x96x96xbf16> to vector<96x96xbf16>
    %cst_66 = arith.constant dense<0.000000e+00> : vector<256x96xf32>
    %155 = tpu.matmul %2, %154, %cst_66 {dimension_numbers = #tpu.dot_dimension_numbers<[1], [0], [0], [1], [0, 0, 1, 1], [], []>} : vector<256x96xbf16>, vector<96x96xbf16>, vector<256x96xf32> -> vector<256x96xf32>
    %156 = vector.shape_cast %152 : vector<256x96xf32> to vector<32x8x96xf32>
    %157 = arith.truncf %156 : vector<32x8x96xf32> to vector<32x8x96xbf16>
    "tpu.trace_start"() <{level = 10 : i32, message = "btd,bsd->bts"}> : () -> ()
    %cst_67 = arith.constant dense<0.000000e+00> : vector<32x8x8xf32>
    %158 = tpu.matmul %157, %1, %cst_67 {dimension_numbers = #tpu.dot_dimension_numbers<[2], [2], [1], [1], [0, 0, 0, 1, 1, 1], [0], [0]>} : vector<32x8x96xbf16>, vector<32x8x96xbf16>, vector<32x8x8xf32> -> vector<32x8x8xf32>
    "tpu.trace_stop"() : () -> ()
    %159 = vector.shape_cast %8 : vector<8x8xf32> to vector<1x8x8xf32>
    %160 = vector.broadcast %159 : vector<1x8x8xf32> to vector<32x8x8xf32>
    %161 = arith.addf %158, %160 : vector<32x8x8xf32>
    %cst_68 = arith.constant dense<0xFF800000> : vector<32x8xf32>
    %162 = vector.multi_reduction <maximumf>, %161, %cst_68 [2] : vector<32x8x8xf32> to vector<32x8xf32>
    %163 = vector.shape_cast %162 : vector<32x8xf32> to vector<32x8x1xf32>
    %164 = vector.broadcast %163 : vector<32x8x1xf32> to vector<32x8x8xf32>
    %165 = arith.subf %161, %164 : vector<32x8x8xf32>
    %166 = math.exp %165 : vector<32x8x8xf32>
    %cst_69 = arith.constant dense<0.000000e+00> : vector<32x8xf32>
    %167 = vector.multi_reduction <add>, %166, %cst_69 [2] : vector<32x8x8xf32> to vector<32x8xf32>
    %168 = vector.shape_cast %167 : vector<32x8xf32> to vector<32x8x1xf32>
    %169 = tpu.reciprocal %168 {approx = true} : vector<32x8x1xf32> -> vector<32x8x1xf32>
    %170 = vector.broadcast %169 : vector<32x8x1xf32> to vector<32x8x8xf32>
    %171 = arith.mulf %166, %170 : vector<32x8x8xf32>
    %172 = arith.truncf %171 : vector<32x8x8xf32> to vector<32x8x8xbf16>
    %173 = vector.shape_cast %155 : vector<256x96xf32> to vector<32x8x96xf32>
    %174 = arith.truncf %173 : vector<32x8x96xf32> to vector<32x8x96xbf16>
    "tpu.trace_start"() <{level = 10 : i32, message = "bts,bsd->btd"}> : () -> ()
    %cst_70 = arith.constant dense<0.000000e+00> : vector<32x8x96xf32>
    %175 = tpu.matmul %172, %174, %cst_70 {dimension_numbers = #tpu.dot_dimension_numbers<[2], [1], [1], [2], [0, 0, 0, 1, 1, 2], [0], [0]>} : vector<32x8x8xbf16>, vector<32x8x96xbf16>, vector<32x8x96xf32> -> vector<32x8x96xf32>
    "tpu.trace_stop"() : () -> ()
    %176 = vector.shape_cast %175 : vector<32x8x96xf32> to vector<256x96xf32>
    %177 = arith.addf %149, %176 : vector<256x96xf32>
    %c0_71 = arith.constant 0 : index
    %c0_72 = arith.constant 0 : index
    %178 = vector.load %arg4[%c0_71, %c0_72] : memref<1x96xf32, #tpu.memory_space<vmem>>, vector<1x96xf32>
    %179 = vector.shape_cast %178 : vector<1x96xf32> to vector<96xf32>
    %180 = vector.shape_cast %179 : vector<96xf32> to vector<1x96xf32>
    %181 = vector.broadcast %180 : vector<1x96xf32> to vector<256x96xf32>
    %182 = arith.addf %177, %181 : vector<256x96xf32>
    %183 = vector.shape_cast %182 : vector<256x96xf32> to vector<32x8x96xf32>
    %c0_73 = arith.constant 0 : index
    %c0_74 = arith.constant 0 : index
    %c0_75 = arith.constant 0 : index
    %184 = vector.load %arg5[%c0_73, %c0_74, %c0_75] : memref<32x8x96xf32, #tpu.memory_space<vmem>>, vector<32x8x96xf32>
    tpu.vector_store %arg5[%c0_73, %c0_74, %c0_75], %183 {strides = array<i32>} : memref<32x8x96xf32, #tpu.memory_space<vmem>>, vector<32x8x96xf32>,
    return
  }
  func.func @transform_0(%arg0: i32) -> (i32, i32, i32) {
    %c0_i32 = arith.constant 0 : i32
    %c0_i32_0 = arith.constant 0 : i32
    %c0_i32_1 = arith.constant 0 : i32
    return %arg0, %c0_i32, %c0_i32_0 : i32, i32, i32
  }
  func.func @transform_1(%arg0: i32) -> (i32, i32, i32) {
    %c0_i32 = arith.constant 0 : i32
    %c0_i32_0 = arith.constant 0 : i32
    %c0_i32_1 = arith.constant 0 : i32
    %c0_i32_2 = arith.constant 0 : i32
    return %c0_i32, %c0_i32_0, %c0_i32_1 : i32, i32, i32
  }
  func.func @transform_2(%arg0: i32) -> (i32, i32, i32) {
    %c0_i32 = arith.constant 0 : i32
    %c0_i32_0 = arith.constant 0 : i32
    %c0_i32_1 = arith.constant 0 : i32
    %c0_i32_2 = arith.constant 0 : i32
    return %c0_i32, %c0_i32_0, %c0_i32_1 : i32, i32, i32
  }
  func.func @transform_3(%arg0: i32) -> (i32, i32) {
    %c0_i32 = arith.constant 0 : i32
    %c0_i32_0 = arith.constant 0 : i32
    %c0_i32_1 = arith.constant 0 : i32
    return %c0_i32, %c0_i32_0 : i32, i32
  }
  func.func @transform_4(%arg0: i32) -> (i32, i32, i32) {
    %c0_i32 = arith.constant 0 : i32
    %c0_i32_0 = arith.constant 0 : i32
    %c0_i32_1 = arith.constant 0 : i32
    return %arg0, %c0_i32, %c0_i32_0 : i32, i32, i32
  }
}

</mosaic_0001>

<bundles_post_ra>
// kernel: tpu_custom_call.1
= control target key start
LH: loop header
LB: loop body
LE: loop exit
PB: predicated region body
PF: predicated region fallthrough
CT: control target
= control target key end

     0   :  { %9 = vsyncpa [#allocation3], 0  ;;  %s19297_s0 = inlined_call_operand.hbm [shape: f32[64,8,96], index: 0, kind: input, shape index: {}]   ;;  %s19298_s1 = inlined_call_operand.hbm [shape: bf16[6,96,96], index: 1, kind: input, shape index: {}]   ;;  %s19299_s2 = inlined_call_operand.hbm [shape: bf16[6,96,96], index: 2, kind: input, shape index: {}]   ;;  %s19300_s3 = inlined_call_operand.vmem [shape: f32[1,96], index: 3, kind: input, shape index: {}]   ;;  %s19301_s4 = inlined_call_operand.hbm [shape: f32[64,8,96], index: 4, kind: output, shape index: {}]  }
   0x1   :  { %11 = vsyncpa [#allocation3 + $0x1], 0 }
   0x2   :  { %12 = vsyncpa [#allocation6], 0 }
   0x3   :  { %13 = vsyncpa [#allocation4], 0 }
   0x4   :  { %15 = vsyncpa [#allocation4 + $0x1], 0  ;;  %s13976_s15 = smov 0   ;;  %s13978_s16 = smov 0  }
   0x5   :  { %s13980_s17 = smov 0   ;;  %s13982_s18 = smov 0  }
   0x6 LB: > { %s13997_s19 = sadd.s32 4294967295, %s13940_s18   ;;  %s11981_s20 = sadd.s32 4294967294, %s13940_s18   ;;  %s13940_s18 = sphi %s13982_s18, %s19948_s18   ;;  %s13936_s17 = sphi %s13980_s17, %s19947_s17   ;;  %s13932_s16 = sphi %s13978_s16, %s19946_s16   ;;  %s13928_s15 = sphi %s13976_s15, %s19945_s15  }
   0x7   : > { %p41_p0 = scmp.ne.s32.totalorder %s13932_s16, %s13928_s15  ;;  %p42_p1 = scmp.eq.s32.totalorder %s13997_s19, 0 }
   0x8   : > { %p128_p2 = scmp.eq.s32.totalorder %s13997_s19, 1  ;;  %p134_p3 = scmp.eq.s32.totalorder %s11981_s20, 1 }
   0x9   : > { %p14006_p4 = por %p42_p1, %p41_p0  ;;  %p11982_p5 = scmp.ge.s32.totalorder %s13940_s18, 1 }
   0xa   : > { %p14011_p6 = por %p134_p3, %p41_p0  ;;  %p141_p7 = scmp.lt.s32.totalorder %s13940_s18, 3 }
   0xb   : > { %s152_s25 = sshll.u32 %s19298_s1, 4  ;;  %s13942_s27 = smov [#allocation5]   ;;  %s153_s25 = int_to_ptr.hbm [resolvable:$true] %s152_s25 }
   0xc   : > { %p14019_p8 = pnand %p11982_p5, %p141_p7  ;;  %s154_s28 = sshll.u32 %s13942_s27, 4  ;;  %s155_s28 = int_to_ptr.vmem [resolvable:$true] %s154_s28 }
   0xd   : > { %s166_s5 = sshll.u32 %s19299_s2, 4  ;;  %s13943_s6 = smov 64   ;;  %s167_s5 = int_to_ptr.hbm [resolvable:$true] %s166_s5 }
   0xe   : > { %p12949_p9 = pneg %p14019_p8  ;;  %s13944_s7 = smov 4  }
   0xf   : > { %s13945_s8 = smov [#allocation7]   ;;  %s14032_s10 = sadd.s32 1, %s13940_s18  }
  0x10   : > { %p12950_p10 = pnand %p12949_p9, %p42_p1  ;;  %s168_s9 = sshll.u32 %s13945_s8, 4  ;;  %s169_s9 = int_to_ptr.vmem [resolvable:$true] %s168_s9 }
  0x11   : > { %s28_s11 = sadd.s32 1, %s13936_s17  ;;  %s25_s12 = ssub.s32 %s13940_s18, %s14032_s10 }
  0x12   : > { %12952 = dma.hbm_to_vmem [thread:$0]  (!%p12950_p10), %s153_s25, 4608, %s155_s28, [#allocation6], %s13943_s6, %s13943_s6, %s13944_s7  }
  0x13   : > { %12955 = dma.hbm_to_vmem [thread:$0]  (!%p12950_p10), %s167_s5, 4608, %s169_s9, [#allocation6], %s13943_s6, %s13943_s6, %s13944_s7  }
  0x14   : > { %p35_p12 = scmp.ne.s32.totalorder %s13936_s17, %s13932_s16  ;;  %p26_p13 = scmp.eq.s32.totalorder %s25_s12, 0 }
  0x15   : > { %p36_p0 = scmp.eq.s32.totalorder %s13940_s18, 0  ;;  %p12966_p5 = scmp.lt.s32.totalorder %s13940_s18, 2 }
  0x16   : > { %p14042_p3 = por %p128_p2, %p35_p12  ;;  %s185_s20 = sand.u32 1, %s13936_s17  }
  0x17   : > { %s14048_s14 = scalar_select %p26_p13, %s13936_s17, %s28_s11  }
  0x18   : > { %p37_p7 = por %p36_p0, %p35_p12  ;;  %s11986_s23 = sshll.u32 %s185_s20, 8 }
  0x19   : > { %s12863_s24 = sshll.u32 %s13940_s18, 8  ;;  %s189_s29 = scalar_lea.vmem [#allocation2], %s11986_s23 }
  0x1a   : > { %s194_s28 = scalar_lea.hbm %s19297_s0, %s12863_s24  ;;  %s197_s30 = sshll.u32 %s189_s29, 4  ;;  %s198_s30 = int_to_ptr.vmem [resolvable:$true] %s197_s30 }
  0x1b   : > { %s195_s5 = sshll.u32 %s194_s28, 4  ;;  %p14055_p2 = pnand %p12966_p5, %p37_p7  ;;  %s196_s5 = int_to_ptr.hbm [resolvable:$true] %s195_s5 }
  0x1c   : > { %s186_s7 = scalar_lea.sflag [#allocation3], %s185_s20  ;;  %s13840_s8 = sshra.s32 %s196_s5, 4  ;;  %s13841_s8 = int_to_ptr.hbm [resolvable:$true] %s13840_s8 }
  0x1d   : > { %s13842_s9 = scalar_lea.hbm %s13841_s8, 256  ;;  %p13844_p10 = pneg %p14055_p2 }
  0x1e   : > { %p13843_p9 = scmp.ne.s32.totalorder %s13841_s8, %s13842_s9  ;;  %s13847_s23 = scalar_lea.hbm %s19297_s0, 512 }
  0x1f   : > { %p13848_p0 = scmp.lt.s32.totalorder %s13841_s8, %s19297_s0  ;;  %p13849_p5 = scmp.lt.s32.totalorder %s13847_s23, %s13842_s9 }
  0x20   : > { %p13845_p12 = pnand %p13844_p10, %p13843_p9 }
  0x21   : > { %p13850_p7 = por %p13849_p5, %p13848_p0 }
  0x22   : > { %p13846_p13 = pneg %p13845_p12 }
  0x24   : > { %p13851_p11 = pnand %p13850_p7, %p13846_p13 }
  0x26   : > { %13854 = shalt.err (!%p13851_p11)
}
  0x27   : > { %s13946_s20 = smov 128   ;;  %s13947_s27 = smov 8  }
  0x28   : > { %12959 = dma.hbm_to_vmem [thread:$0]  (!%p14055_p2), %s196_s5, 4096, %s198_s30, %s186_s7, %s13946_s20, %s13946_s20, %s13947_s27  }
  0x29   : > { %209 = sbr.rel (%p14019_p8) target bundleno = 5241 (0x1479), region = 36 }
  0x2e   : > { %s14072_s28 = sand.u32 1, %s13932_s16  }
  0x2f   : > { %s11990_s29 = sshll.u32 %s14072_s28, 8  ;;  %s212_s8 = scalar_lea.sflag [#allocation3], %s14072_s28 }
  0x30   : > { %s14078_s9 = scalar_lea.vmem [#allocation2], %s11990_s29 }
  0x31   : > { %13915 = dma.done.wait (%p14006_p4), %s212_s8, 4096  }
  0x32   : > { %13917 = vsyncadd (%p14006_p4), %s212_s8, 4294963200 }
  0x33   : > { %13919 = dma.done.wait (%p42_p1), [#allocation6], 9216  }
  0x34   : > { %13921 = vsyncadd (%p42_p1), [#allocation6], 4294958080  ;;  %v12869_v0 = vld [vmem:[#allocation5 + $0x28] sm:$0xff]  ;;  %v12868_v1 = vld [vmem:[#allocation5 + $0x20] sm:$0xff]  ;;  %vm452_vm0 = vcmask 785408   ;;  %vm1367_vm2 = vcmask 64512  }
  0x35   : > { %503 = vmatpush.bf16.msra.mxu0 %v12869_v0  ;;  %v12867_v2 = vld [vmem:[#allocation5 + $0x18] sm:$0xff]  ;;  %v12866_v3 = vld [vmem:[#allocation5 + $0x10] sm:$0xff]  ;;  %v254_v4 = vld [vmem:[%s14078_s9] sm:$0xff]  ;;  %vm1787_vm3 = vcmask 1043456   ;;  %s19071_s30 = scalar_lea.vmem [#allocation8], %s11990_s29  ;;  %s12936_s5 = sshll.u32 %s13997_s19, 8 }
  0x36   : > { %v255_v5 = vld [vmem:[%s14078_s9 + $0x8] sm:$0xff]  ;;  %v286_v6 = vpack.c.bf16 %v254_v4, %v254_v4  ;;  %v12864_v11 = vld [vmem:[#allocation5] sm:$0xff]  ;;  %v256_v13 = vld [vmem:[%s14078_s9 + $0x10] sm:$0xff]  ;;  %s11885_s11 = scalar_lea.hbm %s19301_s4, %s12936_s5  ;;  %s11886_s12 = sshll.u32 %s19071_s30, 4  ;;  %s11887_s12 = int_to_ptr.vmem [resolvable:$true] %s11886_s12 }
  0x37   : > { %v287_v7 = vpack.c.bf16 %v255_v5, %v255_v5  ;;  %v12865_v8 = vld [vmem:[#allocation5 + $0x8] sm:$0xff]  ;;  %v257_v14 = vld [vmem:[%s14078_s9 + $0x18] sm:$0xff]  ;;  %v288_v15 = vpack.c.bf16 %v256_v13, %v256_v13  ;;  %v258_v20 = vld [vmem:[%s14078_s9 + $0x20] sm:$0xff]  ;;  %s11888_s23 = sshll.u32 %s11885_s11, 4  ;;  %s11874_s24 = scalar_lea.sflag [#allocation4], %s14072_s28  ;;  %s11889_s23 = int_to_ptr.hbm [resolvable:$true] %s11888_s23 }
  0x38   : > { %v368_v9 = vunpack.c.l.b16 %v286_v6  ;;  %v289_v16 = vpack.c.bf16 %v257_v14, %v257_v14  ;;  %v259_v21 = vld [vmem:[%s14078_s9 + $0x28] sm:$0xff]  ;;  %v14102_v22 = vpack.c.bf16 %v258_v20, %v258_v20  ;;  %v260_v27 = vld [vmem:[%s14078_s9 + $0x30] sm:$0xff]  ;;  %v261_v28 = vld [vmem:[%s14078_s9 + $0x38] sm:$0xff]  ;;  %v14149_v48 = vsel %vm452_vm0, %v286_v6, 0  ;;  %s13884_s25 = sshra.s32 %s11889_s23, 4  ;;  %s13890_s29 = scalar_lea.hbm %s19301_s4, 512  ;;  %s13885_s25 = int_to_ptr.hbm [resolvable:$true] %s13884_s25 }
  0x39   : > { %504 = vmatpush.bf16.msra.mxu0 %v12868_v1  ;;  %v369_v10 = vunpack.c.l.b16 %v287_v7  ;;  %v370_v17 = vunpack.c.l.b16 %v288_v15  ;;  %v14104_v23 = vpack.c.bf16 %v259_v21, %v259_v21  ;;  %v14114_v29 = vpack.c.bf16 %v260_v27, %v260_v27  ;;  %v262_v34 = vld [vmem:[%s14078_s9 + $0x40] sm:$0xff]  ;;  %v263_v35 = vld [vmem:[%s14078_s9 + $0x48] sm:$0xff]  ;;  %v264_v41 = vld [vmem:[%s14078_s9 + $0x50] sm:$0xff]  ;;  %19412 = vst [vmem:[#allocation18_spill] sm:$0xff] %v14149_v48  ;;  %772 = vmatpush.bf16.xpose.msra.mxu2 %v14149_v48  ;;  %s13886_s20 = scalar_lea.hbm %s13885_s25, 256  ;;  %p13891_p11 = scmp.lt.s32.totalorder %s13885_s25, %s19301_s4 }
  0x3a   : > { %v371_v18 = vunpack.c.l.b16 %v289_v16  ;;  %v372_v24 = vunpack.c.l.b16 %v14102_v22  ;;  %v14116_v30 = vpack.c.bf16 %v261_v28, %v261_v28  ;;  %v14126_v36 = vpack.c.bf16 %v262_v34, %v262_v34  ;;  %v265_v42 = vld [vmem:[%s14078_s9 + $0x58] sm:$0xff]  ;;  %v266_v49 = vld [vmem:[%s14078_s9 + $0x60] sm:$0xff]  ;;  %v267_v50 = vld [vmem:[%s14078_s9 + $0x68] sm:$0xff]  ;;  %p13887_p1 = scmp.ne.s32.totalorder %s13885_s25, %s13886_s20  ;;  %p13892_p2 = scmp.lt.s32.totalorder %s13890_s29, %s13886_s20 }
  0x3b   : > { %v14090_v12 = vpack.c.b16 %v369_v10, %v368_v9  ;;  %v373_v25 = vunpack.c.l.b16 %v14104_v23  ;;  %v374_v31 = vunpack.c.l.b16 %v14114_v29  ;;  %v14128_v37 = vpack.c.bf16 %v263_v35, %v263_v35  ;;  %v268_v57 = vld [vmem:[%s14078_s9 + $0x70] sm:$0xff]  ;;  %v269_v58 = vld [vmem:[%s14078_s9 + $0x78] sm:$0xff] }
  0x3c   : > { %v14096_v19 = vpack.c.b16 %v371_v18, %v370_v17  ;;  %v375_v32 = vunpack.c.l.b16 %v14116_v30  ;;  %v376_v38 = vunpack.c.l.b16 %v14126_v36  ;;  %v14138_v43 = vpack.c.bf16 %v264_v41, %v264_v41  ;;  %v272_v13 = vld [vmem:[%s14078_s9 + $0x90] sm:$0xff]  ;;  %v273_v14 = vld [vmem:[%s14078_s9 + $0x98] sm:$0xff]  ;;  %p13888_p4 = pnand %p13887_p1, %p14042_p3  ;;  %p13893_p9 = por %p13892_p2, %p13891_p11 }
  0x3d   : > { %505 = vmatpush.bf16.msra.mxu0 %v12867_v2  ;;  %19406 = vst [vmem:[#allocation12_spill] sm:$0xff] %v14090_v12  ;;  %v14108_v26 = vpack.c.b16 %v373_v25, %v372_v24  ;;  %v377_v39 = vunpack.c.l.b16 %v14128_v37  ;;  %v14140_v44 = vpack.c.bf16 %v265_v42, %v265_v42  ;;  %v14154_v51 = vpack.c.bf16 %v266_v49, %v266_v49  ;;  %v270_v2 = vld [vmem:[%s14078_s9 + $0x80] sm:$0xff] }
  0x3e   : > { %19407 = vst [vmem:[#allocation13_spill] sm:$0xff] %v14096_v19  ;;  %v14120_v33 = vpack.c.b16 %v375_v32, %v374_v31  ;;  %v378_v45 = vunpack.c.l.b16 %v14138_v43  ;;  %v14156_v52 = vpack.c.bf16 %v267_v50, %v267_v50  ;;  %v14165_v56 = vsel %vm452_vm0, %v287_v7, 0  ;;  %v275_v31 = vld [vmem:[%s14078_s9 + $0xa8] sm:$0xff]  ;;  %v277_v50 = vld [vmem:[%s14078_s9 + $0xb8] sm:$0xff]  ;;  %p13889_p8 = pneg %p13888_p4 }
  0x3f   : > { %19408 = vst [vmem:[#allocation14_spill] sm:$0xff] %v14108_v26  ;;  %v14132_v40 = vpack.c.b16 %v377_v39, %v376_v38  ;;  %v379_v46 = vunpack.c.l.b16 %v14140_v44  ;;  %v380_v53 = vunpack.c.l.b16 %v14154_v51  ;;  %791 = vmatpush.bf16.xpose.msra.mxu3 %v14165_v56  ;;  %v14170_v59 = vpack.c.bf16 %v268_v57, %v268_v57 }
  0x40   : > { %19409 = vst [vmem:[#allocation15_spill] sm:$0xff] %v14120_v33  ;;  %v381_v54 = vunpack.c.l.b16 %v14156_v52  ;;  %v14172_v60 = vpack.c.bf16 %v269_v58, %v269_v58  ;;  %v14177_v63 = vsel %vm452_vm0, %v288_v15, 0  ;;  %v14185_v1 = vsel %vm452_vm0, %v289_v16, 0  ;;  %p13894_p10 = pnand %p13893_p9, %p13889_p8 }
  0x41   : > { %506 = vmatpush.bf16.msra.mxu0 %v12866_v3  ;;  %19410 = vst [vmem:[#allocation16_spill] sm:$0xff] %v14132_v40  ;;  %v14144_v47 = vpack.c.b16 %v379_v46, %v378_v45  ;;  %v382_v61 = vunpack.c.l.b16 %v14170_v59  ;;  %810 = vmatpush.bf16.xpose.msrb.mxu2 %v14177_v63  ;;  %v271_v3 = vld [vmem:[%s14078_s9 + $0x88] sm:$0xff]  ;;  %v14190_v4 = vpack.c.bf16 %v270_v2, %v270_v2  ;;  %v14214_v20 = vsel %vm452_vm0, %v14104_v23, 0  ;;  %v274_v23 = vld [vmem:[%s14078_s9 + $0xa0] sm:$0xff] }
  0x42   : > { %v14160_v55 = vpack.c.b16 %v381_v54, %v380_v53  ;;  %19414 = vst [vmem:[#allocation20_spill] sm:$0xff] %v14165_v56  ;;  %v383_v62 = vunpack.c.l.b16 %v14172_v60  ;;  %v14192_v5 = vpack.c.bf16 %v271_v3, %v271_v3  ;;  %v14208_v15 = vpack.c.bf16 %v272_v13, %v272_v13 }
  0x43   : > { %19411 = vst [vmem:[#allocation17_spill] sm:$0xff] %v14144_v47  ;;  %v384_v6 = vunpack.c.l.b16 %v14190_v4  ;;  %v14210_v16 = vpack.c.bf16 %v273_v14, %v273_v14  ;;  %v14224_v28 = vsel %vm452_vm0, %v14114_v29, 0  ;;  %v14232_v32 = vpack.c.bf16 %v274_v23, %v274_v23 }
  0x44   : > { %19413 = vst [vmem:[#allocation19_spill] sm:$0xff] %v14160_v55  ;;  %v14180_v0 = vpack.c.b16 %v383_v62, %v382_v61  ;;  %v385_v7 = vunpack.c.l.b16 %v14192_v5  ;;  %v386_v21 = vunpack.c.l.b16 %v14208_v15  ;;  %v14234_v34 = vpack.c.bf16 %v275_v31, %v275_v31  ;;  %v281_v31 = vld [vmem:[%s14078_s9 + $0xd8] sm:$0xff] }
  0x45   : > { %507 = vmatpush.bf16.msra.mxu0 %v12865_v8  ;;  %19415 = vst [vmem:[#allocation21_spill] sm:$0xff] %v14177_v63  ;;  %v14238_v29 = vsel %vm452_vm0, %v14116_v30, 0  ;;  %v388_v39 = vunpack.c.l.b16 %v14232_v32  ;;  %v14248_v49 = vsel %vm452_vm0, %v14126_v36, 0  ;;  %v276_v30 = vld [vmem:[%s14078_s9 + $0xb0] sm:$0xff]  ;;  %v14258_v54 = vpack.c.bf16 %v277_v50, %v277_v50 }
  0x46   : > { %19416 = vst [vmem:[#allocation22_spill] sm:$0xff] %v14180_v0  ;;  %v14196_v8 = vpack.c.b16 %v385_v7, %v384_v6  ;;  %v389_v41 = vunpack.c.l.b16 %v14234_v34  ;;  %v14256_v53 = vpack.c.bf16 %v276_v30, %v276_v30  ;;  %v14262_v36 = vsel %vm452_vm0, %v14128_v37, 0  ;;  %v278_v37 = vld [vmem:[%s14078_s9 + $0xc0] sm:$0xff] }
  0x47   : > { %19417 = vst [vmem:[#allocation23_spill] sm:$0xff] %v14185_v1  ;;  %829 = vmatpush.bf16.xpose.msrb.mxu3 %v14185_v1  ;;  %v391_v62 = vunpack.c.l.b16 %v14258_v54  ;;  %v14272_v7 = vsel %vm452_vm0, %v14138_v43, 0  ;;  %v14286_v43 = vsel %vm452_vm0, %v14140_v44, 0  ;;  %v14296_v23 = vsel %vm452_vm0, %v14154_v51, 0  ;;  %v280_v44 = vld [vmem:[%s14078_s9 + $0xd0] sm:$0xff] }
  0x48   : > { %19418 = vst [vmem:[#allocation24_spill] sm:$0xff] %v14196_v8  ;;  %v14244_v42 = vpack.c.b16 %v389_v41, %v388_v39  ;;  %v390_v61 = vunpack.c.l.b16 %v14256_v53  ;;  %v14310_v51 = vsel %vm452_vm0, %v14156_v52, 0  ;;  %v282_v52 = vld [vmem:[%s14078_s9 + $0xe0] sm:$0xff] }
  0x49   : > { %508 = vmatpush.bf16.msra.mxu0 %v12864_v11  ;;  %v14200_v11 = vsel %vm452_vm0, %v14102_v22, 0  ;;  %19420 = vst [vmem:[#allocation26_spill] sm:$0xff] %v14214_v20  ;;  %v387_v22 = vunpack.c.l.b16 %v14210_v16 }
  0x4a   : > { %19419 = vst [vmem:[#allocation25_spill] sm:$0xff] %v14200_v11  ;;  %v14268_v2 = vpack.c.b16 %v391_v62, %v390_v61  ;;  %v283_v61 = vld [vmem:[%s14078_s9 + $0xe8] sm:$0xff]  ;;  %v14328_v62 = vpack.c.bf16 %v282_v52, %v282_v52 }
  0x4b   : > { %v14220_v24 = vpack.c.b16 %v387_v22, %v386_v21  ;;  %19422 = vst [vmem:[#allocation28_spill] sm:$0xff] %v14224_v28 }
  0x4c   : > { %12018 = vmatmul.msk.bf16.vlgmr.msra.gmra.mxu0 %vm452_vm0, %v14090_v12  ;;  %19423 = vst [vmem:[#allocation29_spill] sm:$0xff] %v14238_v29 }
  0x4d   : > { %19421 = vst [vmem:[#allocation27_spill] sm:$0xff] %v14220_v24 }
  0x4e   : > { %19424 = vst [vmem:[#allocation30_spill] sm:$0xff] %v14244_v42 }
  0x4f   : > { %19425 = vst [vmem:[#allocation31_spill] sm:$0xff] %v14248_v49 }
  0x50   : > { %19426 = vst [vmem:[#allocation32_spill] sm:$0xff] %v14262_v36 }
  0x51   : > { %19427 = vst [vmem:[#allocation33_spill] sm:$0xff] %v14268_v2 }
  0x52   : > { %19428 = vst [vmem:[#allocation34_spill] sm:$0xff] %v14272_v7 }
  0x53   : > { %19429 = vst [vmem:[#allocation35_spill] sm:$0xff] %v14286_v43 }
  0x54   : > { %19431 = vst [vmem:[#allocation37_spill] sm:$0xff] %v14296_v23 }
  0x55   : > { %19432 = vst [vmem:[#allocation38_spill] sm:$0xff] %v14310_v51 }
  0x5c   : > { %12019 = vmatmul.msk.bf16.gmra.mxu0 %vm452_vm0, %v14096_v19 }
  0x6c   : > { %12020 = vmatmul.msk.bf16.gmra.mxu0 %vm452_vm0, %v14108_v26 }
  0x7c   : > { %12021 = vmatmul.msk.bf16.gmra.mxu0 %vm452_vm0, %v14120_v33 }
  0x8c   : > { %12022 = vmatmul.msk.bf16.gmra.mxu0 %vm452_vm0, %v14132_v40 }
  0x9c   : > { %12023 = vmatmul.msk.bf16.gmra.mxu0 %vm452_vm0, %v14144_v47 }
  0xac   : > { %12024 = vmatmul.msk.bf16.gmra.mxu0 %vm452_vm0, %v14160_v55 }
  0xbc   : > { %12025 = vmatmul.msk.bf16.gmra.mxu0 %vm452_vm0, %v14180_v0 }
  0xc9   : > { %v510_v9 = vpop.f32.mrf.mxu0 }
  0xca   : > { %v727_v10 = vpack.c.bf16 %v510_v9, %v510_v9  ;;  %v279_v9 = vld [vmem:[%s14078_s9 + $0xc8] sm:$0xff] }
  0xcb   : > { %v14282_v13 = vpack.c.bf16 %v279_v9, %v279_v9  ;;  %v14334_v9 = vsel %vm452_vm0, %v14172_v60, 0 }
  0xcc   : > { %12026 = vmatmul.msk.bf16.gmra.mxu0 %vm452_vm0, %v14196_v8  ;;  %12074 = vmatmul.msk.bf16.vlgmr.msra.gmra.mxu2 %vm452_vm0, %v727_v10  ;;  %v14280_v10 = vpack.c.bf16 %v278_v37, %v278_v37  ;;  %19435 = vst [vmem:[#allocation41_spill] sm:$0xff] %v14334_v9 }
  0xcd   : > { %848 = vmatpush.bf16.xpose.msra.mxu2 %v14200_v11  ;;  %v393_v21 = vunpack.c.l.b16 %v14282_v13 }
  0xd1   : > { %v512_v17 = vpop.f32.mrf.mxu0 }
  0xd2   : > { %v728_v18 = vpack.c.bf16 %v512_v17, %v512_v17 }
  0xd4   : > { %12075 = vmatmul.msk.bf16.vlgmr.msra.gmra.mxu3 %vm452_vm0, %v728_v18  ;;  %v392_v18 = vunpack.c.l.b16 %v14280_v10 }
  0xd5   : > { %867 = vmatpush.bf16.xpose.msra.mxu3 %v14214_v20 }
  0xd6   : > { %v14292_v22 = vpack.c.b16 %v393_v21, %v392_v18 }
  0xd8   : > { %19430 = vst [vmem:[#allocation36_spill] sm:$0xff] %v14292_v22 }
  0xd9   : > { %v515_v25 = vpop.f32.mrf.mxu0 }
  0xda   : > { %v729_v27 = vpack.c.bf16 %v515_v25, %v515_v25 }
  0xdc   : > { %12027 = vmatmul.msk.bf16.gmra.mxu0 %vm452_vm0, %v14220_v24  ;;  %12076 = vmatmul.msk.bf16.vlgmr.msrb.gmra.mxu2 %vm452_vm0, %v729_v27 }
  0xdd   : > { %886 = vmatpush.bf16.xpose.msrb.mxu2 %v14224_v28 }
  0xe1   : > { %v517_v35 = vpop.f32.mrf.mxu0 }
  0xe2   : > { %v730_v38 = vpack.c.bf16 %v517_v35, %v517_v35  ;;  %v14304_v35 = vpack.c.bf16 %v280_v44, %v280_v44  ;;  %v14352_v44 = vsel %vm452_vm0, %v14192_v5, 0  ;;  %v14364_v5 = vsel %vm452_vm0, %v14210_v16, 0 }
  0xe3   : > { %19438 = vst [vmem:[#allocation44_spill] sm:$0xff] %v14352_v44 }
  0xe4   : > { %12077 = vmatmul.msk.bf16.vlgmr.msrb.gmra.mxu3 %vm452_vm0, %v730_v38  ;;  %v14306_v38 = vpack.c.bf16 %v281_v31, %v281_v31  ;;  %19440 = vst [vmem:[#allocation46_spill] sm:$0xff] %v14364_v5 }
  0xe5   : > { %905 = vmatpush.bf16.xpose.msrb.mxu3 %v14238_v29 }
  0xe9   : > { %v520_v45 = vpop.f32.mrf.mxu0 }
  0xea   : > { %v731_v46 = vpack.c.bf16 %v520_v45, %v520_v45  ;;  %v394_v45 = vunpack.c.l.b16 %v14304_v35 }
  0xec   : > { %12028 = vmatmul.msk.bf16.gmra.mxu0 %vm452_vm0, %v14244_v42  ;;  %12078 = vmatmul.msk.bf16.vlgmr.msra.gmra.mxu2 %vm452_vm0, %v731_v46  ;;  %v395_v46 = vunpack.c.l.b16 %v14306_v38 }
  0xed   : > { %924 = vmatpush.bf16.xpose.msra.mxu2 %v14248_v49 }
  0xee   : > { %v14316_v30 = vpack.c.b16 %v395_v46, %v394_v45  ;;  %v318_v46 = vlaneseq }
  0xf0   : > { %19433 = vst [vmem:[#allocation39_spill] sm:$0xff] %v14316_v30 }
  0xf1   : > { %v522_v57 = vpop.f32.mrf.mxu0 }
  0xf2   : > { %v732_v58 = vpack.c.bf16 %v522_v57, %v522_v57 }
  0xf4   : > { %12079 = vmatmul.msk.bf16.vlgmr.msra.gmra.mxu3 %vm452_vm0, %v732_v58  ;;  %v14320_v58 = vsel %vm452_vm0, %v14170_v59, 0  ;;  %v396_v59 = vunpack.c.l.b16 %v14328_v62 }
  0xf5   : > { %943 = vmatpush.bf16.xpose.msra.mxu3 %v14262_v36  ;;  %19434 = vst [vmem:[#allocation40_spill] sm:$0xff] %v14320_v58 }
  0xf9   : > { %v525_v3 = vpop.f32.mrf.mxu0 }
  0xfa   : > { %v733_v6 = vpack.c.bf16 %v525_v3, %v525_v3  ;;  %v14330_v3 = vpack.c.bf16 %v283_v61, %v283_v61  ;;  %v14370_v61 = vsel %vm452_vm0, %v14232_v32, 0  ;;  %v14383_v32 = vsel %vm452_vm0, %v14234_v34, 0 }
  0xfb   : > { %19441 = vst [vmem:[#allocation47_spill] sm:$0xff] %v14370_v61 }
  0xfc   : > { %12029 = vmatmul.msk.bf16.gmra.mxu0 %vm452_vm0, %v14268_v2  ;;  %12080 = vmatmul.msk.bf16.vlgmr.msrb.gmra.mxu2 %vm452_vm0, %v733_v6  ;;  %19442 = vst [vmem:[#allocation48_spill] sm:$0xff] %v14383_v32 }
  0xfd   : > { %962 = vmatpush.bf16.xpose.msrb.mxu2 %v14272_v7 }
 0x101   : > { %v527_v14 = vpop.f32.mrf.mxu0 }
 0x102   : > { %v734_v17 = vpack.c.bf16 %v527_v14, %v527_v14  ;;  %v397_v14 = vunpack.c.l.b16 %v14330_v3 }
 0x104   : > { %12081 = vmatmul.msk.bf16.vlgmr.msrb.gmra.mxu3 %vm452_vm0, %v734_v17  ;;  %v14340_v17 = vpack.c.b16 %v397_v14, %v396_v59 }
 0x105   : > { %981 = vmatpush.bf16.xpose.msrb.mxu3 %v14286_v43 }
 0x106   : > { %19436 = vst [vmem:[#allocation42_spill] sm:$0xff] %v14340_v17 }
 0x109   : > { %v530_v25 = vpop.f32.mrf.mxu0 }
 0x10a   : > { %v735_v27 = vpack.c.bf16 %v530_v25, %v530_v25  ;;  %v14344_v25 = vsel %vm452_vm0, %v14190_v4, 0 }
 0x10b   : > { %19437 = vst [vmem:[#allocation43_spill] sm:$0xff] %v14344_v25 }
 0x10c   : > { %12030 = vmatmul.msk.bf16.gmra.mxu0 %vm452_vm0, %v14292_v22  ;;  %12082 = vmatmul.msk.bf16.vlgmr.msra.gmra.mxu2 %vm452_vm0, %v735_v27 }
 0x10d   : > { %1000 = vmatpush.bf16.xpose.msra.mxu2 %v14296_v23 }
 0x111   : > { %v532_v39 = vpop.f32.mrf.mxu0 }
 0x112   : > { %v736_v41 = vpack.c.bf16 %v532_v39, %v532_v39  ;;  %v14358_v39 = vsel %vm452_vm0, %v14208_v15, 0 }
 0x113   : > { %19439 = vst [vmem:[#allocation45_spill] sm:$0xff] %v14358_v39 }
 0x114   : > { %12083 = vmatmul.msk.bf16.vlgmr.msra.gmra.mxu3 %vm452_vm0, %v736_v41 }
 0x115   : > { %1019 = vmatpush.bf16.xpose.msra.mxu3 %v14310_v51 }
 0x119   : > { %v535_v50 = vpop.f32.mrf.mxu0 }
 0x11a   : > { %v737_v57 = vpack.c.bf16 %v535_v50, %v535_v50  ;;  %v319_v50 = vshrl.u32 %v318_v46, 7 }
 0x11c   : > { %12031 = vmatmul.msk.bf16.gmra.mxu0 %vm452_vm0, %v14316_v30  ;;  %12084 = vmatmul.msk.bf16.vlgmr.msrb.gmra.mxu2 %vm452_vm0, %v737_v57  ;;  %v321_v57 = vand.u32 127, %v318_v46 }
 0x11d   : > { %1038 = vmatpush.bf16.xpose.msrb.mxu2 %v14320_v58 }
 0x11e   : > { %vm322_vm1 = vcmp.ge.s32.totalorder %v319_v50, %v321_v57  ;;  %v14399_v57 = vsel %vm452_vm0, %v14258_v54, 0 }
 0x11f   : > { %19444 = vst [vmem:[#allocation50_spill] sm:$0xff] %v14399_v57 }
 0x121   : > { %v537_v6 = vpop.f32.mrf.mxu0 }
 0x122   : > { %v738_v37 = vpack.c.bf16 %v537_v6, %v537_v6  ;;  %v13948_v6 = vmov -1e+30  }
 0x124   : > { %12085 = vmatmul.msk.bf16.vlgmr.msrb.gmra.mxu3 %vm452_vm0, %v738_v37  ;;  %v14373_v37 = vsel %vm322_vm1, 0.0, %v13948_v6 }
 0x125   : > { %1057 = vmatpush.bf16.xpose.msrb.mxu3 %v14334_v9 }
 0x129   : > { %v540_v18 = vpop.f32.mrf.mxu0 }
 0x12a   : > { %v739_v21 = vpack.c.bf16 %v540_v18, %v540_v18 }
 0x12c   : > { %12032 = vmatmul.msk.bf16.gmra.mxu0 %vm452_vm0, %v14340_v17  ;;  %12086 = vmatmul.msk.bf16.vlgmr.msra.gmra.mxu2 %vm452_vm0, %v739_v21 }
 0x12d   : > { %1076 = vmatpush.bf16.xpose.msra.mxu2 %v14344_v25 }
 0x131   : > { %v542_v60 = vpop.f32.mrf.mxu0 }
 0x132   : > { %v740_v27 = vpack.c.bf16 %v542_v60, %v542_v60 }
 0x134   : > { %12087 = vmatmul.msk.bf16.vlgmr.msra.gmra.mxu3 %vm452_vm0, %v740_v27 }
 0x135   : > { %1095 = vmatpush.bf16.xpose.msra.mxu3 %v14352_v44 }
 0x139   : > { %v545_v31 = vpop.f32.mrf.mxu0 }
 0x13a   : > { %v741_v4 = vpack.c.bf16 %v545_v31, %v545_v31 }
 0x13c   : > { %12088 = vmatmul.msk.bf16.vlgmr.msrb.gmra.mxu2 %vm452_vm0, %v741_v4 }
 0x13d   : > { %1114 = vmatpush.bf16.xpose.msrb.mxu2 %v14358_v39 }
 0x141   : > { %v547_v41 = vpop.f32.mrf.mxu0 }
 0x142   : > { %v742_v45 = vpack.c.bf16 %v547_v41, %v547_v41  ;;  %v14391_v41 = vsel %vm452_vm0, %v14256_v53, 0 }
 0x143   : > { %19443 = vst [vmem:[#allocation49_spill] sm:$0xff] %v14391_v41 }
 0x144   : > { %12089 = vmatmul.msk.bf16.vlgmr.msrb.gmra.mxu3 %vm452_vm0, %v742_v45 }
 0x145   : > { %1133 = vmatpush.bf16.xpose.msrb.mxu3 %v14364_v5 }
 0x149   : > { %v550_v52 = vpop.f32.mrf.mxu0 }
 0x14a   : > { %v743_v15 = vpack.c.bf16 %v550_v52, %v550_v52 }
 0x14c   : > { %12090 = vmatmul.msk.bf16.vlgmr.msra.gmra.mxu2 %vm452_vm0, %v743_v15 }
 0x14d   : > { %1152 = vmatpush.bf16.xpose.msra.mxu2 %v14370_v61 }
 0x14f   : > { %v774_v16 = vpop.f32.mrf.mxu2 }
 0x150   : > { %v14377_v59 = vadd.f32 %v774_v16, %v14373_v37  ;;  %v14407_v16 = vsel %vm452_vm0, %v14280_v10, 0 }
 0x151   : > { %v552_v14 = vpop.f32.mrf.mxu0  ;;  %19445 = vst [vmem:[#allocation51_spill] sm:$0xff] %v14407_v16 }
 0x152   : > { %v744_v18 = vpack.c.bf16 %v552_v14, %v552_v14  ;;  %v1368_v21 = vsel %vm1367_vm2, %v14377_v59, -inf }
 0x153   : > { %1369 = vmax.xlane.f32.xlu0 %v1368_v21 }
 0x154   : > { %12091 = vmatmul.msk.bf16.vlgmr.msra.gmra.mxu3 %vm452_vm0, %v744_v18 }
 0x155   : > { %1171 = vmatpush.bf16.xpose.msra.mxu3 %v14383_v32 }
 0x157   : > { %v776_v60 = vpop.f32.mrf.mxu2  ;;  %v14387_v27 = vpop.f32.mrf.mxu3 }
 0x159   : > { %v555_v31 = vpop.f32.mrf.mxu0 }
 0x15a   : > { %v745_v4 = vpack.c.bf16 %v555_v31, %v555_v31 }
 0x15c   : > { %12092 = vmatmul.msk.bf16.vlgmr.msrb.gmra.mxu2 %vm452_vm0, %v745_v4  ;;  %v14418_v4 = vsel %vm452_vm0, %v14282_v13, 0 }
 0x15d   : > { %1190 = vmatpush.bf16.xpose.msrb.mxu2 %v14391_v41  ;;  %19446 = vst [vmem:[#allocation52_spill] sm:$0xff] %v14418_v4 }
 0x15f   : > { %v795_v34 = vpop.f32.mrf.mxu3  ;;  %v14395_v45 = vpop.f32.mrf.mxu2 }
 0x161   : > { %v557_v46 = vpop.f32.mrf.mxu0 }
 0x162   : > { %v746_v50 = vpack.c.bf16 %v557_v46, %v557_v46 }
 0x164   : > { %12093 = vmatmul.msk.bf16.vlgmr.msrb.gmra.mxu3 %vm452_vm0, %v746_v50 }
 0x165   : > { %1209 = vmatpush.bf16.xpose.msrb.mxu3 %v14399_v57 }
 0x167   : > { %v814_v52 = vpop.f32.mrf.mxu2  ;;  %v14403_v53 = vpop.f32.mrf.mxu3 }
 0x168   : > { %v14426_v52 = vsel %vm452_vm0, %v14304_v35, 0 }
 0x169   : > { %v560_v15 = vpop.f32.mrf.mxu0  ;;  %19447 = vst [vmem:[#allocation53_spill] sm:$0xff] %v14426_v52 }
 0x16a   : > { %v747_v6 = vpack.c.bf16 %v560_v15, %v560_v15 }
 0x16c   : > { %12094 = vmatmul.msk.bf16.vlgmr.msra.gmra.mxu2 %vm452_vm0, %v747_v6 }
 0x16d   : > { %1228 = vmatpush.bf16.xpose.msra.mxu2 %v14407_v16 }
 0x16f   : > { %v833_v14 = vpop.f32.mrf.mxu3  ;;  %v850_v54 = vpop.f32.mrf.mxu2 }
 0x170   : > { %v14412_v18 = vadd.f32 %v850_v54, %v14373_v37  ;;  %v14434_v54 = vsel %vm452_vm0, %v14306_v38, 0 }
 0x171   : > { %v562_v21 = vpop.f32.mrf.mxu0  ;;  %19448 = vst [vmem:[#allocation54_spill] sm:$0xff] %v14434_v54 }
 0x172   : > { %v748_v60 = vpack.c.bf16 %v562_v21, %v562_v21  ;;  %v1380_v31 = vsel %vm1367_vm2, %v14412_v18, -inf }
 0x173   : > { %1381 = vmax.xlane.f32.xlu0 %v1380_v31 }
 0x174   : > { %12095 = vmatmul.msk.bf16.vlgmr.msra.gmra.mxu3 %vm452_vm0, %v748_v60 }
 0x175   : > { %1247 = vmatpush.bf16.xpose.msra.mxu3 %v14418_v4  ;;  %v12874_v4 = vld [vmem:[#allocation7 + $0x20] sm:$0xff] }
 0x177   : > { %v852_v10 = vpop.f32.mrf.mxu2  ;;  %v14422_v34 = vpop.f32.mrf.mxu3 }
 0x178   : > { %v14442_v10 = vsel %vm452_vm0, %v14328_v62, 0  ;;  %v12875_v62 = vld [vmem:[#allocation7 + $0x28] sm:$0xff] }
 0x179   : > { %v565_v46 = vpop.f32.mrf.mxu0  ;;  %19449 = vst [vmem:[#allocation55_spill] sm:$0xff] %v14442_v10  ;;  %640 = vmatpush.bf16.msra.mxu1 %v12875_v62 }
 0x17a   : > { %v749_v50 = vpack.c.bf16 %v565_v46, %v565_v46 }
 0x17c   : > { %12096 = vmatmul.msk.bf16.vlgmr.msrb.gmra.mxu2 %vm452_vm0, %v749_v50 }
 0x17d   : > { %1266 = vmatpush.bf16.xpose.msrb.mxu2 %v14426_v52  ;;  %641 = vmatpush.bf16.msra.mxu1 %v12874_v4 }
 0x17f   : > { %v871_v13 = vpop.f32.mrf.mxu3  ;;  %v14430_v15 = vpop.f32.mrf.mxu2 }
 0x181   : > { %v567_v6 = vpop.f32.mrf.mxu0 }
 0x182   : > { %v750_v14 = vpack.c.bf16 %v567_v6, %v567_v6 }
 0x184   : > { %12097 = vmatmul.msk.bf16.vlgmr.msrb.gmra.mxu3 %vm452_vm0, %v750_v14 }
 0x185   : > { %1285 = vmatpush.bf16.xpose.msrb.mxu3 %v14434_v54 }
 0x187   : > { %v890_v21 = vpop.f32.mrf.mxu2  ;;  %v14438_v35 = vpop.f32.mrf.mxu3 }
 0x188   : > { %v14453_v21 = vsel %vm452_vm0, %v14330_v3, 0 }
 0x189   : > { %v570_v60 = vpop.f32.mrf.mxu0  ;;  %19450 = vst [vmem:[#allocation56_spill] sm:$0xff] %v14453_v21 }
 0x18a   : > { %v751_v31 = vpack.c.bf16 %v570_v60, %v570_v60  ;;  %v284_v60 = vld [vmem:[%s14078_s9 + $0xf0] sm:$0xff] }
 0x18c   : > { %12098 = vmatmul.msk.bf16.vlgmr.msra.gmra.mxu2 %vm452_vm0, %v751_v31  ;;  %v285_v31 = vld [vmem:[%s14078_s9 + $0xf8] sm:$0xff] }
 0x18d   : > { %1304 = vmatpush.bf16.xpose.msra.mxu2 %v14442_v10 }
 0x18f   : > { %v909_v38 = vpop.f32.mrf.mxu3  ;;  %v926_v46 = vpop.f32.mrf.mxu2 }
 0x190   : > { %v14447_v50 = vadd.f32 %v926_v46, %v14373_v37  ;;  %v14459_v38 = vpack.c.bf16 %v284_v60, %v284_v60  ;;  %v14461_v46 = vpack.c.bf16 %v285_v31, %v285_v31  ;;  %v12872_v31 = vld [vmem:[#allocation7 + $0x10] sm:$0xff] }
 0x191   : > { %v572_v13 = vpop.f32.mrf.mxu0 }
 0x192   : > { %v752_v6 = vpack.c.bf16 %v572_v13, %v572_v13  ;;  %v1392_v14 = vsel %vm1367_vm2, %v14447_v50, -inf  ;;  %v398_v3 = vunpack.c.l.b16 %v14459_v38 }
 0x193   : > { %1393 = vmax.xlane.f32.xlu1 %v1392_v14  ;;  %v399_v14 = vunpack.c.l.b16 %v14461_v46 }
 0x194   : > { %12099 = vmatmul.msk.bf16.vlgmr.msra.gmra.mxu3 %vm452_vm0, %v752_v6 }
 0x195   : > { %1323 = vmatpush.bf16.xpose.msra.mxu3 %v14453_v21  ;;  %v14467_v32 = vpack.c.b16 %v399_v14, %v398_v3  ;;  %v12873_v21 = vld [vmem:[#allocation7 + $0x18] sm:$0xff] }
 0x196   : > { %642 = vmatpush.bf16.msra.mxu1 %v12873_v21 }
 0x197   : > { %v928_v13 = vpop.f32.mrf.mxu2  ;;  %v14463_v54 = vpop.f32.mrf.mxu3  ;;  %19451 = vst [vmem:[#allocation57_spill] sm:$0xff] %v14467_v32  ;;  %12033 = vmatmul.msk.bf16.gmra.mxu0 %vm452_vm0, %v14467_v32 }
 0x199   : > { %v575_v57 = vpop.f32.mrf.mxu0 }
 0x19a   : > { %v753_v6 = vpack.c.bf16 %v575_v57, %v575_v57  ;;  %643 = vmatpush.bf16.msra.mxu1 %v12872_v31  ;;  %v12871_v57 = vld [vmem:[#allocation7 + $0x8] sm:$0xff] }
 0x19c   : > { %12100 = vmatmul.msk.bf16.vlgmr.msrb.gmra.mxu2 %vm452_vm0, %v753_v6  ;;  %v12870_v6 = vld [vmem:[#allocation7] sm:$0xff] }
 0x19e   : > { %644 = vmatpush.bf16.msra.mxu1 %v12871_v57 }
 0x19f   : > { %v947_v62 = vpop.f32.mrf.mxu3  ;;  %v14472_v60 = vpop.f32.mrf.mxu2 }
 0x1a1   : > { %v577_v13 = vpop.f32.mrf.mxu0 }
 0x1a2   : > { %v754_v5 = vpack.c.bf16 %v577_v13, %v577_v13  ;;  %645 = vmatpush.bf16.msra.mxu1 %v12870_v6 }
 0x1a4   : > { %12101 = vmatmul.msk.bf16.vlgmr.msrb.gmra.mxu3 %vm452_vm0, %v754_v5 }
 0x1a5   : > { %12058 = vmatmul.msk.bf16.vlgmr.msra.gmra.mxu1 %vm452_vm0, %v14090_v12 }
 0x1a7   : > { %v966_v4 = vpop.f32.mrf.mxu2  ;;  %v14475_v3 = vpop.f32.mrf.mxu3 }
 0x1a9   : > { %v580_v14 = vpop.f32.mrf.mxu0 }
 0x1aa   : > { %v755_v44 = vpack.c.bf16 %v580_v14, %v580_v14 }
 0x1ac   : > { %12102 = vmatmul.msk.bf16.vlgmr.msra.gmra.mxu2 %vm452_vm0, %v755_v44 }
 0x1af   : > { %v985_v21 = vpop.f32.mrf.mxu3  ;;  %v1002_v62 = vpop.f32.mrf.mxu2 }
 0x1b0   : > { %v14481_v31 = vadd.f32 %v1002_v62, %v14373_v37 }
 0x1b1   : > { %v582_v5 = vpop.f32.mrf.mxu0 }
 0x1b2   : > { %v756_v13 = vpack.c.bf16 %v582_v5, %v582_v5  ;;  %v1404_v4 = vsel %vm1367_vm2, %v14481_v31, -inf }
 0x1b3   : > { %1405 = vmax.xlane.f32.xlu1 %v1404_v4 }
 0x1b4   : > { %12103 = vmatmul.msk.bf16.vlgmr.msra.gmra.mxu3 %vm452_vm0, %v756_v13 }
 0x1b5   : > { %12059 = vmatmul.msk.bf16.gmra.mxu1 %vm452_vm0, %v14096_v19 }
 0x1b7   : > { %v1004_v57 = vpop.f32.mrf.mxu2  ;;  %v14486_v14 = vpop.f32.mrf.mxu3 }
 0x1bf   : > { %v1023_v44 = vpop.f32.mrf.mxu3  ;;  %v14490_v6 = vpop.f32.mrf.mxu2 }
 0x1c5   : > { %12060 = vmatmul.msk.bf16.gmra.mxu1 %vm452_vm0, %v14108_v26 }
 0x1c6   : > { %v1370_v21 = vpop.xlane.xlu0 %1369 }
 0x1c7   : > { %v1464_v62 = vsub.f32 %v14377_v59, %v1370_v21  ;;  %v1042_v9 = vpop.f32.mrf.mxu2  ;;  %v14493_v5 = vpop.f32.mrf.mxu3 }
 0x1c9   : > { %v1496_v51 = vmul.f32 1.442695, %v1464_v62 }
 0x1cb   : > { %13012 = vpow2.f32 %v1496_v51 }
 0x1cf   : > { %v1061_v13 = vpop.f32.mrf.mxu3  ;;  %v1078_v4 = vpop.f32.mrf.mxu2 }
 0x1d0   : > { %v14502_v43 = vadd.f32 %v1078_v4, %v14373_v37 }
 0x1d1   : > { %v14497_v57 = vpop.eup %13012 }
 0x1d2   : > { %v1560_v44 = vsel %vm1367_vm2, %v14497_v57, 0.0  ;;  %v1416_v51 = vsel %vm1367_vm2, %v14502_v43, -inf }
 0x1d3   : > { %1561 = vadd.xlane.f32.xlu2 %v1560_v44 }
 0x1d5   : > { %12061 = vmatmul.msk.bf16.gmra.mxu1 %vm452_vm0, %v14120_v33 }
 0x1d7   : > { %v1080_v59 = vpop.f32.mrf.mxu2  ;;  %v14504_v9 = vpop.f32.mrf.mxu3 }
 0x1db   : > { %1417 = vmax.xlane.f32.xlu2 %v1416_v51 }
 0x1df   : > { %v1099_v21 = vpop.f32.mrf.mxu3  ;;  %v14510_v62 = vpop.f32.mrf.mxu2 }
 0x1e5   : > { %12062 = vmatmul.msk.bf16.gmra.mxu1 %vm452_vm0, %v14132_v40 }
 0x1e6   : > { %v1382_v13 = vpop.xlane.xlu0 %1381 }
 0x1e7   : > { %v1468_v36 = vsub.f32 %v14412_v18, %v1382_v13  ;;  %v1118_v44 = vpop.f32.mrf.mxu2  ;;  %v14513_v29 = vpop.f32.mrf.mxu3 }
 0x1e9   : > { %v1504_v4 = vmul.f32 1.442695, %v1468_v36 }
 0x1eb   : > { %13014 = vpow2.f32 %v1504_v4 }
 0x1ef   : > { %v1137_v59 = vpop.f32.mrf.mxu3  ;;  %v1154_v20 = vpop.f32.mrf.mxu2 }
 0x1f0   : > { %v14518_v51 = vadd.f32 %v1154_v20, %v14373_v37 }
 0x1f1   : > { %v14520_v1 = vpop.eup %13014 }
 0x1f2   : > { %v1572_v21 = vsel %vm1367_vm2, %v14520_v1, 0.0  ;;  %v1428_v18 = vsel %vm1367_vm2, %v14518_v51, -inf }
 0x1f3   : > { %1573 = vadd.xlane.f32.xlu0 %v1572_v21  ;;  %1429 = vmax.xlane.f32.xlu1 %v1428_v18 }
 0x1f5   : > { %12063 = vmatmul.msk.bf16.gmra.mxu1 %vm452_vm0, %v14144_v47 }
 0x1f7   : > { %v1156_v36 = vpop.f32.mrf.mxu2  ;;  %v14526_v13 = vpop.f32.mrf.mxu3 }
 0x1ff   : > { %v1175_v44 = vpop.f32.mrf.mxu3  ;;  %v14530_v4 = vpop.f32.mrf.mxu2 }
 0x205   : > { %12064 = vmatmul.msk.bf16.gmra.mxu1 %vm452_vm0, %v14160_v55 }
 0x206   : > { %v1394_v20 = vpop.xlane.xlu1 %1393 }
 0x207   : > { %v1472_v59 = vsub.f32 %v14447_v50, %v1394_v20  ;;  %v1194_v56 = vpop.f32.mrf.mxu2  ;;  %v14533_v10 = vpop.f32.mrf.mxu3  ;;  %v14550_v20 = vsel %vm452_vm0, %v14459_v38, 0 }
 0x208   : > { %19452 = vst [vmem:[#allocation58_spill] sm:$0xff] %v14533_v10  ;;  %1342 = vmatpush.bf16.xpose.msrb.mxu2 %v14550_v20 }
 0x209   : > { %v1512_v52 = vmul.f32 1.442695, %v1472_v59  ;;  %19453 = vst [vmem:[#allocation59_spill] sm:$0xff] %v14550_v20 }
 0x20b   : > { %13016 = vpow2.f32 %v1512_v52 }
 0x20f   : > { %v1213_v21 = vpop.f32.mrf.mxu3  ;;  %v1230_v18 = vpop.f32.mrf.mxu2 }
 0x210   : > { %v14538_v36 = vadd.f32 %v1230_v18, %v14373_v37  ;;  %v14555_v21 = vsel %vm452_vm0, %v14461_v46, 0 }
 0x211   : > { %v14540_v16 = vpop.eup %13016  ;;  %19454 = vst [vmem:[#allocation60_spill] sm:$0xff] %v14555_v21  ;;  %1361 = vmatpush.bf16.xpose.msrb.mxu3 %v14555_v21 }
 0x212   : > { %v1584_v44 = vsel %vm1367_vm2, %v14540_v16, 0.0  ;;  %v1440_v56 = vsel %vm1367_vm2, %v14538_v36, -inf }
 0x213   : > { %1585 = vadd.xlane.f32.xlu2 %v1584_v44  ;;  %1441 = vmax.xlane.f32.xlu0 %v1440_v56 }
 0x214   : > { %v585_v59 = vpop.f32.mrf.mxu0 }
 0x215   : > { %v757_v18 = vpack.c.bf16 %v585_v59, %v585_v59  ;;  %12065 = vmatmul.msk.bf16.gmra.mxu1 %vm452_vm0, %v14180_v0 }
 0x217   : > { %v1232_v50 = vpop.f32.mrf.mxu2  ;;  %v14546_v52 = vpop.f32.mrf.mxu3  ;;  %12104 = vmatmul.msk.bf16.vlgmr.msrb.gmra.mxu2 %vm452_vm0, %v757_v18 }
 0x21c   : > { %v587_v38 = vpop.f32.mrf.mxu0 }
 0x21d   : > { %v758_v50 = vpack.c.bf16 %v587_v38, %v587_v38 }
 0x21f   : > { %v1251_v44 = vpop.f32.mrf.mxu3  ;;  %v14560_v56 = vpop.f32.mrf.mxu2  ;;  %12105 = vmatmul.msk.bf16.vlgmr.msrb.gmra.mxu3 %vm452_vm0, %v758_v50 }
 0x222   : > { %v647_v21 = vpop.f32.mrf.mxu1 }
 0x223   : > { %v1752_v39 = vpack.c.bf16 %v647_v21, %v647_v21  ;;  %v14581_v21 = vadd.f32 %v14395_v45, %v14373_v37 }
 0x225   : > { %v1789_v44 = vsel %vm1787_vm3, %v1752_v39, 0  ;;  %12066 = vmatmul.msk.bf16.gmra.mxu1 %vm452_vm0, %v14196_v8 }
 0x226   : > { %v1406_v20 = vpop.xlane.xlu1 %1405  ;;  %1798 = vmatpush.bf16.msra.mxu2 %v1789_v44  ;;  %v1374_v44 = vsel %vm1367_vm2, %v14581_v21, -inf }
 0x227   : > { %v1476_v41 = vsub.f32 %v14481_v31, %v1406_v20  ;;  %v1270_v46 = vpop.f32.mrf.mxu2  ;;  %v14565_v61 = vpop.f32.mrf.mxu3 }
 0x228   : > { %19455 = vst [vmem:[#allocation61_spill] sm:$0xff] %v14565_v61 }
 0x229   : > { %v1520_v59 = vmul.f32 1.442695, %v1476_v41 }
 0x22a   : > { %v649_v39 = vpop.f32.mrf.mxu1 }
 0x22b   : > { %13018 = vpow2.f32 %v1520_v59 }
 0x22f   : > { %v1289_v18 = vpop.f32.mrf.mxu3  ;;  %v1306_v38 = vpop.f32.mrf.mxu2 }
 0x230   : > { %v14571_v50 = vadd.f32 %v1306_v38, %v14373_v37 }
 0x231   : > { %v14573_v31 = vpop.eup %13018 }
 0x232   : > { %v1596_v41 = vsel %vm1367_vm2, %v14573_v31, 0.0  ;;  %v1452_v20 = vsel %vm1367_vm2, %v14571_v50, -inf  ;;  %v14587_v18 = vpop.f32.mrf.mxu1 }
 0x233   : > { %1597 = vadd.xlane.f32.xlu1 %v1596_v41  ;;  %1453 = vmax.xlane.f32.xlu2 %v1452_v20 }
 0x235   : > { %12067 = vmatmul.msk.bf16.gmra.mxu1 %vm452_vm0, %v14220_v24 }
 0x237   : > { %v1308_v46 = vpop.f32.mrf.mxu2  ;;  %v14583_v59 = vpop.f32.mrf.mxu3 }
 0x23a   : > { %v14591_v41 = vpop.f32.mrf.mxu1 }
 0x23b   : > { %1375 = vmax.xlane.f32.xlu2 %v1374_v44 }
 0x23f   : > { %v1327_v38 = vpop.f32.mrf.mxu3 }
 0x242   : > { %v657_v25 = vpop.f32.mrf.mxu1 }
 0x243   : > { %v1756_v45 = vpack.c.bf16 %v657_v25, %v657_v25 }
 0x245   : > { %v1865_v23 = vsel %vm1787_vm3, %v1756_v45, 0  ;;  %12068 = vmatmul.msk.bf16.gmra.mxu1 %vm452_vm0, %v14244_v42 }
 0x246   : > { %v1562_v20 = vpop.xlane.xlu2 %1561  ;;  %1874 = vmatpush.bf16.msrb.mxu2 %v1865_v23 }
 0x247   : > { %13020 = vrcp.f32 %v1562_v20 }
 0x24a   : > { %v14599_v20 = vpop.f32.mrf.mxu1 }
 0x24d   : > { %v13021_v61 = vpop.eup %13020 }
 0x24e   : > { %v1688_v46 = vmul.f32 %v13021_v61, %v14497_v57  ;;  %v1418_v58 = vpop.xlane.xlu2 %1417 }
 0x24f   : > { %v1480_v44 = vsub.f32 %v14502_v43, %v1418_v58 }
 0x250   : > { %v1720_v7 = vpack.c.bf16 %v1688_v46, %v1688_v46 }
 0x251   : > { %v1528_v38 = vmul.f32 1.442695, %v1480_v44 }
 0x252   : > { %12106 = vmatmul.msk.bf16.vlgmr.msra.gmra.mxu2 %vm1367_vm2, %v1720_v7  ;;  %v662_v57 = vpop.f32.mrf.mxu1 }
 0x253   : > { %13022 = vpow2.f32 %v1528_v38 }
 0x255   : > { %12069 = vmatmul.msk.bf16.gmra.mxu1 %vm452_vm0, %v14268_v2 }
 0x259   : > { %v14601_v25 = vpop.eup %13022 }
 0x25a   : > { %v1608_v61 = vsel %vm1367_vm2, %v14601_v25, 0.0  ;;  %v14607_v45 = vpop.f32.mrf.mxu1 }
 0x25b   : > { %1609 = vadd.xlane.f32.xlu0 %v1608_v61 }
 0x262   : > { %v667_v46 = vpop.f32.mrf.mxu1 }
 0x263   : > { %v1760_v44 = vpack.c.bf16 %v667_v46, %v667_v46 }
 0x265   : > { %v1941_v61 = vsel %vm1787_vm3, %v1760_v44, 0  ;;  %12070 = vmatmul.msk.bf16.gmra.mxu1 %vm452_vm0, %v14292_v22 }
 0x266   : > { %v1574_v43 = vpop.xlane.xlu0 %1573  ;;  %v1430_v23 = vpop.xlane.xlu1 %1429  ;;  %1950 = vmatpush.bf16.msra.mxu2 %v1941_v61 }
 0x267   : > { %13024 = vrcp.f32 %v1574_v43  ;;  %v1484_v7 = vsub.f32 %v14518_v51, %v1430_v23 }
 0x269   : > { %v1536_v58 = vmul.f32 1.442695, %v1484_v7 }
 0x26a   : > { %v14619_v43 = vpop.f32.mrf.mxu1 }
 0x26b   : > { %13026 = vpow2.f32 %v1536_v58 }
 0x26d   : > { %v13025_v38 = vpop.eup %13024 }
 0x26e   : > { %v1692_v10 = vmul.f32 %v13025_v38, %v14520_v1  ;;  %v14623_v1 = vadd.f32 %v14430_v15, %v14373_v37 }
 0x270   : > { %v1724_v49 = vpack.c.bf16 %v1692_v10, %v1692_v10  ;;  %v1386_v23 = vsel %vm1367_vm2, %v14623_v1, -inf  ;;  %v14631_v10 = vadd.f32 %v14490_v6, %v14373_v37 }
 0x271   : > { %v14614_v28 = vpop.eup %13026 }
 0x272   : > { %12110 = vmatmul.msk.bf16.vlgmr.msrb.gmra.mxu2 %vm1367_vm2, %v1724_v49  ;;  %v1620_v51 = vsel %vm1367_vm2, %v14614_v28, 0.0  ;;  %v14627_v7 = vpop.f32.mrf.mxu1  ;;  %v1753_v49 = vpack.c.bf16 %v649_v39, %v649_v39  ;;  %v1410_v58 = vsel %vm1367_vm2, %v14631_v10, -inf  ;;  %v1758_v39 = vpack.c.bf16 %v662_v57, %v662_v57 }
 0x273   : > { %1621 = vadd.xlane.f32.xlu1 %v1620_v51 }
 0x274   : > { %v1808_v46 = vsel %vm1787_vm3, %v1753_v49, 0  ;;  %v1754_v49 = vpack.c.bf16 %v14587_v18, %v14587_v18 }
 0x275   : > { %12071 = vmatmul.msk.bf16.gmra.mxu1 %vm452_vm0, %v14316_v30  ;;  %1817 = vmatpush.bf16.msra.mxu3 %v1808_v46  ;;  %v1755_v46 = vpack.c.bf16 %v14591_v41, %v14591_v41 }
 0x276   : > { %v1827_v57 = vsel %vm1787_vm3, %v1754_v49, 0 }
 0x277   : > { %v1846_v18 = vsel %vm1787_vm3, %v1755_v46, 0  ;;  %1836 = vmatpush.bf16.msrb.mxu0 %v1827_v57 }
 0x278   : > { %1855 = vmatpush.bf16.msrb.mxu1 %v1846_v18 }
 0x27a   : > { %v14637_v15 = vpop.f32.mrf.mxu1 }
 0x27b   : > { %1387 = vmax.xlane.f32.xlu1 %v1386_v23  ;;  %19456 = vst [vmem:[#allocation62_spill] sm:$0xff] %v14637_v15 }
 0x282   : > { %v677_v51 = vpop.f32.mrf.mxu1 }
 0x283   : > { %1411 = vmax.xlane.f32.xlu1 %v1410_v58  ;;  %v1764_v23 = vpack.c.bf16 %v677_v51, %v677_v51  ;;  %v1757_v51 = vpack.c.bf16 %v14599_v20, %v14599_v20 }
 0x285   : > { %v2017_v58 = vsel %vm1787_vm3, %v1764_v23, 0  ;;  %12072 = vmatmul.msk.bf16.gmra.mxu1 %vm452_vm0, %v14340_v17 }
 0x286   : > { %v1586_v44 = vpop.xlane.xlu2 %1585  ;;  %v1442_v38 = vpop.xlane.xlu0 %1441  ;;  %2026 = vmatpush.bf16.msrb.mxu2 %v2017_v58 }
 0x287   : > { %13028 = vrcp.f32 %v1586_v44  ;;  %v1488_v61 = vsub.f32 %v14538_v36, %v1442_v38  ;;  %v1903_v38 = vsel %vm1787_vm3, %v1758_v39, 0  ;;  %v1884_v39 = vsel %vm1787_vm3, %v1757_v51, 0 }
 0x288   : > { %1912 = vmatpush.bf16.msra.mxu0 %v1903_v38  ;;  %1893 = vmatpush.bf16.msrb.mxu3 %v1884_v39 }
 0x289   : > { %v1544_v6 = vmul.f32 1.442695, %v1488_v61 }
 0x28b   : > { %13030 = vpow2.f32 %v1544_v6  ;;  %v14669_v6 = vadd.f32 %v14510_v62, %v14373_v37 }
 0x28d   : > { %v13029_v30 = vpop.eup %13028 }
 0x28e   : > { %v1696_v22 = vmul.f32 %v13029_v30, %v14540_v16  ;;  %v14655_v16 = vpop.f32.mrf.mxu1 }
 0x290   : > { %v1728_v36 = vpack.c.bf16 %v1696_v22, %v1696_v22  ;;  %v14661_v22 = vadd.f32 %v14472_v60, %v14373_v37  ;;  %v1422_v60 = vsel %vm1367_vm2, %v14669_v6, -inf }
 0x291   : > { %v14649_v44 = vpop.eup %13030 }
 0x292   : > { %12114 = vmatmul.msk.bf16.vlgmr.msra.gmra.mxu2 %vm1367_vm2, %v1728_v36  ;;  %v1632_v30 = vsel %vm1367_vm2, %v14649_v44, 0.0  ;;  %v1398_v41 = vsel %vm1367_vm2, %v14661_v22, -inf }
 0x293   : > { %1633 = vadd.xlane.f32.xlu0 %v1632_v30 }
 0x295   : > { %12073 = vmatmul.msk.bf16.gmra.mxu1 %vm452_vm0, %v14467_v32 }
 0x296   : > { %v14665_v61 = vpop.f32.mrf.mxu1 }
 0x29a   : > { %v1344_v58 = vpop.f32.mrf.mxu2 }
 0x29b   : > { %1399 = vmax.xlane.f32.xlu0 %v1398_v41 }
 0x29e   : > { %v14677_v23 = vpop.f32.mrf.mxu1 }
 0x29f   : > { %19457 = vst [vmem:[#allocation63_spill] sm:$0xff] %v14677_v23 }
 0x2a2   : > { %v14681_v36 = vpop.f32.mrf.mxu3  ;;  %v1346_v30 = vpop.f32.mrf.mxu2 }
 0x2a3   : > { %1423 = vmax.xlane.f32.xlu0 %v1422_v60  ;;  %19458 = vst [vmem:[#allocation64_spill] sm:$0xff] %v14681_v36  ;;  %v14704_v30 = vadd.f32 %v14530_v4, %v14373_v37 }
 0x2a6   : > { %v1598_v49 = vpop.xlane.xlu1 %1597  ;;  %v1454_v46 = vpop.xlane.xlu2 %1453 }
 0x2a7   : > { %13032 = vrcp.f32 %v1598_v49  ;;  %v1492_v62 = vsub.f32 %v14571_v50, %v1454_v46  ;;  %v687_v20 = vpop.f32.mrf.mxu1 }
 0x2a8   : > { %v1768_v57 = vpack.c.bf16 %v687_v20, %v687_v20 }
 0x2a9   : > { %v1552_v38 = vmul.f32 1.442695, %v1492_v62 }
 0x2aa   : > { %v2093_v51 = vsel %vm1787_vm3, %v1768_v57, 0  ;;  %v1365_v23 = vpop.f32.mrf.mxu3  ;;  %v1434_v57 = vsel %vm1367_vm2, %v14704_v30, -inf }
 0x2ab   : > { %13034 = vpow2.f32 %v1552_v38  ;;  %2102 = vmatpush.bf16.msra.mxu2 %v2093_v51  ;;  %v14717_v51 = vadd.f32 %v1344_v58, %v14373_v37 }
 0x2ad   : > { %v13033_v18 = vpop.eup %13032 }
 0x2ae   : > { %v1700_v41 = vmul.f32 %v13033_v18, %v14573_v31  ;;  %v1376_v60 = vpop.xlane.xlu2 %1375  ;;  %v1759_v31 = vpack.c.bf16 %v14607_v45, %v14607_v45  ;;  %v14712_v18 = vadd.f32 %v14560_v56, %v14373_v37 }
 0x2af   : > { %v1466_v39 = vsub.f32 %v14581_v21, %v1376_v60  ;;  %v14691_v62 = vpop.f32.mrf.mxu1 }
 0x2b0   : > { %v1732_v49 = vpack.c.bf16 %v1700_v41, %v1700_v41  ;;  %v1922_v21 = vsel %vm1787_vm3, %v1759_v31, 0  ;;  %v1446_v41 = vsel %vm1367_vm2, %v14712_v18, -inf }
 0x2b1   : > { %v14686_v15 = vpop.eup %13034  ;;  %v1500_v50 = vmul.f32 1.442695, %v1466_v39  ;;  %1931 = vmatpush.bf16.msra.mxu1 %v1922_v21 }
 0x2b2   : > { %12118 = vmatmul.msk.bf16.vlgmr.msrb.gmra.mxu2 %vm1367_vm2, %v1732_v49  ;;  %v1644_v46 = vsel %vm1367_vm2, %v14686_v15, 0.0 }
 0x2b3   : > { %13036 = vpow2.f32 %v1500_v50  ;;  %1645 = vadd.xlane.f32.xlu2 %v1644_v46  ;;  %v1458_v50 = vsel %vm1367_vm2, %v14717_v51, -inf }
 0x2b7   : > { %v14700_v20 = vpop.f32.mrf.mxu1 }
 0x2b9   : > { %v14696_v23 = vpop.eup %13036 }
 0x2ba   : > { %v1566_v38 = vsel %vm1367_vm2, %v14696_v23, 0.0 }
 0x2bb   : > { %1567 = vadd.xlane.f32.xlu2 %v1566_v38 }
 0x2bf   : > { %v14708_v45 = vpop.f32.mrf.mxu1 }
 0x2c0   : > { %19459 = vst [vmem:[#allocation65_spill] sm:$0xff] %v14708_v45 }
 0x2c3   : > { %1435 = vmax.xlane.f32.xlu2 %v1434_v57 }
 0x2c7   : > { %v697_v60 = vpop.f32.mrf.mxu1 }
 0x2c8   : > { %v1772_v4 = vpack.c.bf16 %v697_v60, %v697_v60 }
 0x2ca   : > { %v2169_v49 = vsel %vm1787_vm3, %v1772_v4, 0 }
 0x2cb   : > { %1447 = vmax.xlane.f32.xlu2 %v1446_v41  ;;  %2178 = vmatpush.bf16.msrb.mxu2 %v2169_v49 }
 0x2ce   : > { %v1610_v39 = vpop.xlane.xlu0 %1609 }
 0x2cf   : > { %13038 = vrcp.f32 %v1610_v39  ;;  %v14722_v56 = vpop.f32.mrf.mxu1 }
 0x2d3   : > { %1459 = vmax.xlane.f32.xlu2 %v1458_v50 }
 0x2d5   : > { %v13039_v46 = vpop.eup %13038  ;;  %v14724_v31 = vpop.f32.mrf.mxu2 }
 0x2d6   : > { %19460 = vst [vmem:[#allocation66_spill] sm:$0xff] %v14724_v31  ;;  %v1704_v21 = vmul.f32 %v13039_v46, %v14601_v25 }
 0x2d7   : > { %v14728_v58 = vpop.f32.mrf.mxu1 }
 0x2d8   : > { %v1736_v38 = vpack.c.bf16 %v1704_v21, %v1704_v21 }
 0x2da   : > { %12122 = vmatmul.msk.bf16.vlgmr.msra.gmra.mxu2 %vm1367_vm2, %v1736_v38 }
 0x2dd   : > { %v1802_v57 = vpop.f32.mrf.mxu2 }
 0x2df   : > { %v14730_v41 = vpop.f32.mrf.mxu1 }
 0x2e0   : > { %19461 = vst [vmem:[#allocation67_spill] sm:$0xff] %v14730_v41 }
 0x2e6   : > { %v1622_v60 = vpop.xlane.xlu1 %1621 }
 0x2e7   : > { %13040 = vrcp.f32 %v1622_v60  ;;  %v707_v4 = vpop.f32.mrf.mxu1 }
 0x2e8   : > { %v1776_v39 = vpack.c.bf16 %v707_v4, %v707_v4 }
 0x2ea   : > { %v2245_v31 = vsel %vm1787_vm3, %v1776_v39, 0 }
 0x2eb   : > { %2254 = vmatpush.bf16.msra.mxu2 %v2245_v31 }
 0x2ed   : > { %v13041_v49 = vpop.eup %13040 }
 0x2ee   : > { %v1708_v50 = vmul.f32 %v13041_v49, %v14614_v28  ;;  %v1388_v45 = vpop.xlane.xlu1 %1387  ;;  %v14756_v49 = vadd.f32 %v14422_v34, %v14373_v37 }
 0x2ef   : > { %v1470_v25 = vsub.f32 %v14623_v1, %v1388_v45  ;;  %v14736_v38 = vpop.f32.mrf.mxu1  ;;  %v14748_v1 = vadd.f32 %v14387_v27, %v14373_v37 }
 0x2f0   : > { %v1740_v46 = vpack.c.bf16 %v1708_v50, %v1708_v50 }
 0x2f1   : > { %v1508_v21 = vmul.f32 1.442695, %v1470_v25  ;;  %v1371_v45 = vsel %vm1367_vm2, %v14748_v1, -inf  ;;  %v1383_v25 = vsel %vm1367_vm2, %v14756_v49, -inf }
 0x2f2   : > { %12126 = vmatmul.msk.bf16.vlgmr.msrb.gmra.mxu2 %vm1367_vm2, %v1740_v46 }
 0x2f3   : > { %13042 = vpow2.f32 %v1508_v21 }
 0x2f5   : > { %v14738_v57 = vpop.f32.mrf.mxu2 }
 0x2f6   : > { %19462 = vst [vmem:[#allocation68_spill] sm:$0xff] %v14738_v57 }
 0x2f7   : > { %v14744_v4 = vpop.f32.mrf.mxu1 }
 0x2f9   : > { %v14740_v60 = vpop.eup %13042 }
 0x2fa   : > { %v1578_v28 = vsel %vm1367_vm2, %v14740_v60, 0.0 }
 0x2fb   : > { %1579 = vadd.xlane.f32.xlu1 %v1578_v28  ;;  %v14762_v28 = vadd.f32 %v14463_v54, %v14373_v37 }
 0x2fd   : > { %v1878_v39 = vpop.f32.mrf.mxu2 }
 0x2fe   : > { %v1412_v39 = vpop.xlane.xlu1 %1411 }
 0x2ff   : > { %v14752_v31 = vpop.f32.mrf.mxu1  ;;  %v1478_v41 = vsub.f32 %v14631_v10, %v1412_v39 }
 0x300   : > { %19463 = vst [vmem:[#allocation69_spill] sm:$0xff] %v14752_v31 }
 0x301   : > { %v1524_v54 = vmul.f32 1.442695, %v1478_v41 }
 0x303   : > { %1372 = vmax.xlane.f32.xlu1 %v1371_v45 }
 0x306   : > { %v1634_v50 = vpop.xlane.xlu0 %1633 }
 0x307   : > { %13044 = vrcp.f32 %v1634_v50  ;;  %v717_v46 = vpop.f32.mrf.mxu1 }
 0x308   : > { %v1780_v21 = vpack.c.bf16 %v717_v46, %v717_v46  ;;  %v1395_v46 = vsel %vm1367_vm2, %v14762_v28, -inf }
 0x30a   : > { %v2321_v34 = vsel %vm1787_vm3, %v1780_v21, 0 }
 0x30b   : > { %1384 = vmax.xlane.f32.xlu1 %v1383_v25  ;;  %2330 = vmatpush.bf16.msrb.mxu2 %v2321_v34 }
 0x30d   : > { %v13045_v27 = vpop.eup %13044 }
 0x30e   : > { %v1712_v45 = vmul.f32 %v13045_v27, %v14649_v44  ;;  %v1400_v57 = vpop.xlane.xlu0 %1399 }
 0x30f   : > { %v1474_v31 = vsub.f32 %v14661_v22, %v1400_v57 }
 0x310   : > { %v1744_v50 = vpack.c.bf16 %v1712_v45, %v1712_v45 }
 0x311   : > { %v1516_v25 = vmul.f32 1.442695, %v1474_v31 }
 0x312   : > { %12130 = vmatmul.msk.bf16.vlgmr.msra.gmra.mxu2 %vm1367_vm2, %v1744_v50  ;;  %v14788_v50 = vadd.f32 %v14486_v14, %v14373_v37  ;;  %v1762_v14 = vpack.c.bf16 %v14627_v7, %v14627_v7  ;;  %v14810_v7 = vadd.f32 %v14526_v13, %v14373_v37  ;;  %v12879_v13 = vld [vmem:[#allocation5 + $0x48] sm:$0xff] }
 0x313   : > { %13046 = vpow2.f32 %v1516_v25  ;;  %1396 = vmax.xlane.f32.xlu1 %v1395_v46 }
 0x314   : > { %13048 = vpow2.f32 %v1524_v54 }
 0x315   : > { %v14771_v36 = vpop.f32.mrf.mxu2 }
 0x316   : > { %19464 = vst [vmem:[#allocation70_spill] sm:$0xff] %v14771_v36  ;;  %v1424_v44 = vpop.xlane.xlu0 %1423 }
 0x317   : > { %v1482_v22 = vsub.f32 %v14669_v6, %v1424_v44  ;;  %v1407_v44 = vsel %vm1367_vm2, %v14788_v50, -inf }
 0x319   : > { %v14773_v27 = vpop.eup %13046  ;;  %v1532_v57 = vmul.f32 1.442695, %v1482_v22 }
 0x31a   : > { %v1590_v10 = vsel %vm1367_vm2, %v14773_v27, 0.0  ;;  %v14778_v21 = vpop.eup %13048 }
 0x31b   : > { %1591 = vadd.xlane.f32.xlu0 %v1590_v10  ;;  %13050 = vpow2.f32 %v1532_v57  ;;  %v1602_v41 = vsel %vm1367_vm2, %v14778_v21, 0.0  ;;  %v14798_v57 = vadd.f32 %v14504_v9, %v14373_v37  ;;  %v12881_v9 = vld [vmem:[#allocation5 + $0x58] sm:$0xff] }
 0x31c   : > { %2476 = vmatpush.bf16.msra.mxu2 %v12881_v9  ;;  %v12876_v9 = vld [vmem:[#allocation5 + $0x30] sm:$0xff] }
 0x31d   : > { %v1954_v31 = vpop.f32.mrf.mxu2 }
 0x321   : > { %v14782_v45 = vpop.eup %13050 }
 0x322   : > { %v1614_v6 = vsel %vm1367_vm2, %v14782_v45, 0.0 }
 0x323   : > { %1603 = vadd.xlane.f32.xlu0 %v1602_v41 }
 0x326   : > { %v1646_v39 = vpop.xlane.xlu2 %1645 }
 0x327   : > { %13052 = vrcp.f32 %v1646_v39 }
 0x32b   : > { %1615 = vadd.xlane.f32.xlu0 %v1614_v6 }
 0x32d   : > { %v13053_v34 = vpop.eup %13052 }
 0x32e   : > { %v1716_v25 = vmul.f32 %v13053_v34, %v14686_v15  ;;  %v1568_v46 = vpop.xlane.xlu2 %1567  ;;  %v1979_v34 = vsel %vm1787_vm3, %v1762_v14, 0  ;;  %v1431_v14 = vsel %vm1367_vm2, %v14810_v7, -inf }
 0x32f   : > { %13054 = vrcp.f32 %v1568_v46 }
 0x330   : > { %v1748_v54 = vpack.c.bf16 %v1716_v25, %v1716_v25  ;;  %v1419_v25 = vsel %vm1367_vm2, %v14798_v57, -inf }
 0x332   : > { %12134 = vmatmul.msk.bf16.vlgmr.msrb.gmra.mxu2 %vm1367_vm2, %v1748_v54 }
 0x333   : > { %1408 = vmax.xlane.f32.xlu0 %v1407_v44 }
 0x335   : > { %v13055_v22 = vpop.eup %13054  ;;  %v14794_v10 = vpop.f32.mrf.mxu2 }
 0x336   : > { %19465 = vst [vmem:[#allocation71_spill] sm:$0xff] %v14794_v10  ;;  %v1690_v15 = vmul.f32 %v13055_v22, %v14696_v23  ;;  %v1436_v31 = vpop.xlane.xlu2 %1435  ;;  %v12884_v10 = vld [vmem:[#allocation7 + $0x40] sm:$0xff] }
 0x337   : > { %v1486_v41 = vsub.f32 %v14704_v30, %v1436_v31  ;;  %v12880_v30 = vld [vmem:[#allocation5 + $0x50] sm:$0xff] }
 0x338   : > { %v1722_v39 = vpack.c.bf16 %v1690_v15, %v1690_v15  ;;  %2477 = vmatpush.bf16.msra.mxu2 %v12880_v30 }
 0x339   : > { %v1540_v6 = vmul.f32 1.442695, %v1486_v41  ;;  %v12878_v41 = vld [vmem:[#allocation5 + $0x40] sm:$0xff] }
 0x33a   : > { %12108 = vmatmul.msk.bf16.vlgmr.msrb.gmra.mxu0 %vm1367_vm2, %v1722_v39 }
 0x33b   : > { %13056 = vpow2.f32 %v1540_v6  ;;  %1988 = vmatpush.bf16.msrb.mxu0 %v1979_v34  ;;  %1420 = vmax.xlane.f32.xlu0 %v1419_v25  ;;  %v12877_v25 = vld [vmem:[#allocation5 + $0x38] sm:$0xff] }
 0x33c   : > { %2478 = vmatpush.bf16.msra.mxu2 %v12879_v13 }
 0x33d   : > { %v2030_v46 = vpop.f32.mrf.mxu2 }
 0x33e   : > { %v1448_v23 = vpop.xlane.xlu2 %1447 }
 0x33f   : > { %v1490_v54 = vsub.f32 %v14712_v18, %v1448_v23 }
 0x340   : > { %2479 = vmatpush.bf16.msra.mxu2 %v12878_v41 }
 0x341   : > { %v14813_v44 = vpop.eup %13056  ;;  %v1548_v22 = vmul.f32 1.442695, %v1490_v54 }
 0x342   : > { %v1626_v15 = vsel %vm1367_vm2, %v14813_v44, 0.0 }
 0x343   : > { %13058 = vpow2.f32 %v1548_v22  ;;  %1432 = vmax.xlane.f32.xlu0 %v1431_v14  ;;  %1627 = vadd.xlane.f32.xlu2 %v1626_v15 }
 0x344   : > { %2480 = vmatpush.bf16.msra.mxu2 %v12877_v25 }
 0x346   : > { %v1460_v31 = vpop.xlane.xlu2 %1459 }
 0x347   : > { %v1494_v39 = vsub.f32 %v14717_v51, %v1460_v31  ;;  %v14832_v51 = vadd.f32 %v14546_v52, %v14373_v37  ;;  %v1766_v52 = vpack.c.bf16 %v14665_v61, %v14665_v61 }
 0x348   : > { %2481 = vmatpush.bf16.msra.mxu2 %v12876_v9 }
 0x349   : > { %v14820_v18 = vpop.eup %13058  ;;  %v1556_v6 = vmul.f32 1.442695, %v1494_v39  ;;  %v1443_v30 = vsel %vm1367_vm2, %v14832_v51, -inf  ;;  %v2055_v25 = vsel %vm1787_vm3, %v1766_v52, 0 }
 0x34a   : > { %v1638_v34 = vsel %vm1367_vm2, %v14820_v18, 0.0 }
 0x34b   : > { %13060 = vpow2.f32 %v1556_v6  ;;  %1639 = vadd.xlane.f32.xlu2 %v1638_v34  ;;  %12162 = vmatmul.msk.bf16.vlgmr.msra.gmra.mxu2 %vm452_vm0, %v14090_v12 }
 0x351   : > { %v14824_v46 = vpop.eup %13060 }
 0x352   : > { %v1650_v23 = vsel %vm1367_vm2, %v14824_v46, 0.0 }
 0x353   : > { %1651 = vadd.xlane.f32.xlu2 %v1650_v23 }
 0x35b   : > { %1444 = vmax.xlane.f32.xlu2 %v1443_v30  ;;  %12163 = vmatmul.msk.bf16.gmra.mxu2 %vm452_vm0, %v14096_v19 }
 0x35d   : > { %v14836_v54 = vpop.f32.mrf.mxu2 }
 0x35e   : > { %19466 = vst [vmem:[#allocation72_spill] sm:$0xff] %v14836_v54  ;;  %v12885_v54 = vld [vmem:[#allocation7 + $0x48] sm:$0xff] }
 0x365   : > { %v2106_v22 = vpop.f32.mrf.mxu2 }
 0x36b   : > { %12164 = vmatmul.msk.bf16.gmra.mxu2 %vm452_vm0, %v14108_v26 }
 0x36e   : > { %v1580_v14 = vpop.xlane.xlu1 %1579 }
 0x36f   : > { %13062 = vrcp.f32 %v1580_v14 }
 0x375   : > { %v13063_v15 = vpop.eup %13062  ;;  %v14840_v13 = vpop.f32.mrf.mxu2 }
 0x376   : > { %19467 = vst [vmem:[#allocation73_spill] sm:$0xff] %v14840_v13  ;;  %v1694_v31 = vmul.f32 %v13063_v15, %v14740_v60  ;;  %v1373_v41 = vpop.xlane.xlu1 %1372 }
 0x377   : > { %v1465_v39 = vsub.f32 %v14748_v1, %v1373_v41 }
 0x378   : > { %v1726_v6 = vpack.c.bf16 %v1694_v31, %v1694_v31 }
 0x379   : > { %v1498_v34 = vmul.f32 1.442695, %v1465_v39 }
 0x37a   : > { %12112 = vmatmul.msk.bf16.vlgmr.msra.gmra.mxu0 %vm1367_vm2, %v1726_v6 }
 0x37b   : > { %13064 = vpow2.f32 %v1498_v34  ;;  %2064 = vmatpush.bf16.msra.mxu0 %v2055_v25  ;;  %12165 = vmatmul.msk.bf16.gmra.mxu2 %vm452_vm0, %v14120_v33  ;;  %v1770_v25 = vpack.c.bf16 %v14700_v20, %v14700_v20 }
 0x37d   : > { %v2182_v9 = vpop.f32.mrf.mxu2 }
 0x37e   : > { %v1385_v23 = vpop.xlane.xlu1 %1384 }
 0x37f   : > { %v1469_v30 = vsub.f32 %v14756_v49, %v1385_v23 }
 0x381   : > { %v14851_v22 = vpop.eup %13064  ;;  %v1506_v61 = vmul.f32 1.442695, %v1469_v30 }
 0x382   : > { %v1563_v60 = vsel %vm1367_vm2, %v14851_v22, 0.0 }
 0x383   : > { %13066 = vpow2.f32 %v1506_v61  ;;  %1564 = vadd.xlane.f32.xlu1 %v1563_v60  ;;  %v2131_v61 = vsel %vm1787_vm3, %v1770_v25, 0 }
 0x386   : > { %v1397_v1 = vpop.xlane.xlu1 %1396 }
 0x387   : > { %v1473_v14 = vsub.f32 %v14762_v28, %v1397_v1  ;;  %v14872_v28 = vadd.f32 %v14583_v59, %v14373_v37  ;;  %v14883_v59 = vadd.f32 %v14403_v53, %v14373_v37 }
 0x389   : > { %v14858_v15 = vpop.eup %13066  ;;  %v1514_v52 = vmul.f32 1.442695, %v1473_v14  ;;  %v1455_v60 = vsel %vm1367_vm2, %v14872_v28, -inf }
 0x38a   : > { %v1575_v49 = vsel %vm1367_vm2, %v14858_v15, 0.0 }
 0x38b   : > { %13068 = vpow2.f32 %v1514_v52  ;;  %1576 = vadd.xlane.f32.xlu1 %v1575_v49  ;;  %12166 = vmatmul.msk.bf16.gmra.mxu2 %vm452_vm0, %v14132_v40  ;;  %v1774_v49 = vpack.c.bf16 %v14728_v58, %v14728_v58 }
 0x38d   : > { %v2207_v25 = vsel %vm1787_vm3, %v1774_v49, 0 }
 0x38e   : > { %v1592_v31 = vpop.xlane.xlu0 %1591 }
 0x38f   : > { %13070 = vrcp.f32 %v1592_v31 }
 0x391   : > { %v14862_v41 = vpop.eup %13068 }
 0x392   : > { %v1587_v39 = vsel %vm1367_vm2, %v14862_v41, 0.0 }
 0x393   : > { %1588 = vadd.xlane.f32.xlu1 %v1587_v39 }
 0x395   : > { %v13071_v6 = vpop.eup %13070  ;;  %v14866_v34 = vpop.f32.mrf.mxu2 }
 0x396   : > { %19468 = vst [vmem:[#allocation74_spill] sm:$0xff] %v14866_v34  ;;  %v1698_v9 = vmul.f32 %v13071_v6, %v14773_v27  ;;  %v1604_v23 = vpop.xlane.xlu0 %1603  ;;  %v1377_v27 = vsel %vm1367_vm2, %v14883_v59, -inf }
 0x397   : > { %13072 = vrcp.f32 %v1604_v23 }
 0x398   : > { %v1730_v30 = vpack.c.bf16 %v1698_v9, %v1698_v9 }
 0x39a   : > { %12116 = vmatmul.msk.bf16.vlgmr.msrb.gmra.mxu0 %vm1367_vm2, %v1730_v30 }
 0x39b   : > { %2140 = vmatpush.bf16.msrb.mxu0 %v2131_v61  ;;  %1456 = vmax.xlane.f32.xlu1 %v1455_v60 }
 0x39c   : > { %12167 = vmatmul.msk.bf16.gmra.mxu2 %vm452_vm0, %v14144_v47 }
 0x39d   : > { %v2258_v1 = vpop.f32.mrf.mxu2  ;;  %v13073_v14 = vpop.eup %13072 }
 0x39e   : > { %v1616_v20 = vpop.xlane.xlu0 %1615  ;;  %v1702_v52 = vmul.f32 %v13073_v14, %v14778_v21  ;;  %v1778_v1 = vpack.c.bf16 %v14744_v4, %v14744_v4 }
 0x39f   : > { %13074 = vrcp.f32 %v1616_v20 }
 0x3a0   : > { %v1734_v6 = vpack.c.bf16 %v1702_v52, %v1702_v52 }
 0x3a3   : > { %1378 = vmax.xlane.f32.xlu1 %v1377_v27 }
 0x3a5   : > { %v13075_v23 = vpop.eup %13074 }
 0x3a6   : > { %v1409_v31 = vpop.xlane.xlu0 %1408 }
 0x3a7   : > { %v1477_v39 = vsub.f32 %v14788_v50, %v1409_v31  ;;  %v1706_v50 = vmul.f32 %v13075_v23, %v14782_v45  ;;  %v14912_v31 = vpop.f32.mrf.mxu1 }
 0x3a9   : > { %v1522_v53 = vmul.f32 1.442695, %v1477_v39  ;;  %v1738_v52 = vpack.c.bf16 %v1706_v50, %v1706_v50  ;;  %v2283_v39 = vsel %vm1787_vm3, %v1778_v1, 0  ;;  %v14927_v50 = vadd.f32 %v14438_v35, %v14373_v37 }
 0x3aa   : > { %12120 = vmatmul.msk.bf16.vlgmr.msra.gmra.mxu0 %vm1367_vm2, %v1734_v6 }
 0x3ab   : > { %13076 = vpow2.f32 %v1522_v53  ;;  %2216 = vmatpush.bf16.msra.mxu0 %v2207_v25 }
 0x3ac   : > { %12168 = vmatmul.msk.bf16.gmra.mxu2 %vm452_vm0, %v14160_v55 }
 0x3ae   : > { %v1421_v9 = vpop.xlane.xlu0 %1420 }
 0x3af   : > { %v1481_v21 = vsub.f32 %v14798_v57, %v1421_v9 }
 0x3b1   : > { %v14896_v30 = vpop.eup %13076  ;;  %v1530_v61 = vmul.f32 1.442695, %v1481_v21  ;;  %v722_v21 = vpop.f32.mrf.mxu1 }
 0x3b2   : > { %v1599_v58 = vsel %vm1367_vm2, %v14896_v30, 0.0 }
 0x3b3   : > { %13078 = vpow2.f32 %v1530_v61  ;;  %1600 = vadd.xlane.f32.xlu0 %v1599_v58  ;;  %v1782_v58 = vpack.c.bf16 %v722_v21, %v722_v21 }
 0x3b5   : > { %v14901_v60 = vpop.f32.mrf.mxu2 }
 0x3b6   : > { %19469 = vst [vmem:[#allocation75_spill] sm:$0xff] %v14901_v60  ;;  %v1433_v57 = vpop.xlane.xlu0 %1432  ;;  %v1628_v20 = vpop.xlane.xlu2 %1627 }
 0x3b7   : > { %v1485_v14 = vsub.f32 %v14810_v7, %v1433_v57  ;;  %v14908_v27 = vpop.f32.mrf.mxu0  ;;  %13080 = vrcp.f32 %v1628_v20  ;;  %v2359_v20 = vsel %vm1787_vm3, %v1782_v58, 0  ;;  %v14962_v58 = vadd.f32 %v14513_v29, %v14373_v37 }
 0x3b8   : > { %19470 = vst [vmem:[#allocation76_spill] sm:$0xff] %v14908_v27 }
 0x3b9   : > { %v14910_v49 = vpop.eup %13078  ;;  %v1538_v45 = vmul.f32 1.442695, %v1485_v14  ;;  %v1389_v14 = vsel %vm1367_vm2, %v14927_v50, -inf }
 0x3ba   : > { %12124 = vmatmul.msk.bf16.vlgmr.msrb.gmra.mxu0 %vm1367_vm2, %v1738_v52  ;;  %v1611_v4 = vsel %vm1367_vm2, %v14910_v49, 0.0 }
 0x3bb   : > { %13082 = vpow2.f32 %v1538_v45  ;;  %2292 = vmatpush.bf16.msrb.mxu0 %v2283_v39  ;;  %1612 = vadd.xlane.f32.xlu2 %v1611_v4 }
 0x3bc   : > { %12169 = vmatmul.msk.bf16.gmra.mxu2 %vm452_vm0, %v14180_v0 }
 0x3bd   : > { %v2334_v7 = vpop.f32.mrf.mxu2  ;;  %v13081_v25 = vpop.eup %13080 }
 0x3be   : > { %v1640_v6 = vpop.xlane.xlu2 %1639  ;;  %v1710_v61 = vmul.f32 %v13081_v25, %v14813_v44  ;;  %v14935_v44 = vadd.f32 %v14493_v5, %v14373_v37 }
 0x3bf   : > { %v1840_v53 = vpop.f32.mrf.mxu0  ;;  %13084 = vrcp.f32 %v1640_v6 }
 0x3c0   : > { %v1742_v57 = vpack.c.bf16 %v1710_v61, %v1710_v61  ;;  %v1413_v4 = vsel %vm1367_vm2, %v14935_v44, -inf }
 0x3c1   : > { %v14918_v9 = vpop.eup %13082 }
 0x3c2   : > { %v1623_v23 = vsel %vm1367_vm2, %v14918_v9, 0.0 }
 0x3c3   : > { %1624 = vadd.xlane.f32.xlu0 %v1623_v23 }
 0x3c5   : > { %v13085_v45 = vpop.eup %13084 }
 0x3c6   : > { %v1652_v1 = vpop.xlane.xlu2 %1651  ;;  %v1714_v7 = vmul.f32 %v13085_v45, %v14820_v18  ;;  %v1761_v45 = vpack.c.bf16 %v14619_v43, %v14619_v43  ;;  %v19472_v43 = vld [vmem:[#allocation28_spill] sm:$0xff] }
 0x3c8   : > { %v1746_v6 = vpack.c.bf16 %v1714_v7, %v1714_v7 }
 0x3ca   : > { %12128 = vmatmul.msk.bf16.vlgmr.msra.gmra.mxu0 %vm1367_vm2, %v1742_v57 }
 0x3cb   : > { %1390 = vmax.xlane.f32.xlu0 %v1389_v14  ;;  %2368 = vmatpush.bf16.msra.mxu0 %v2359_v20 }
 0x3cc   : > { %12170 = vmatmul.msk.bf16.gmra.mxu2 %vm452_vm0, %v14196_v8 }
 0x3ce   : > { %v1445_v52 = vpop.xlane.xlu2 %1444  ;;  %v2483_v53 = vpop.f32.mrf.mxu2 }
 0x3cf   : > { %v1489_v35 = vsub.f32 %v14832_v51, %v1445_v52  ;;  %v14951_v51 = vadd.f32 %v14475_v3, %v14373_v37  ;;  %v1425_v3 = vsel %vm1367_vm2, %v14962_v58, -inf  ;;  %v2701_v14 = vpack.c.bf16 %v2483_v53, %v2483_v53 }
 0x3d0   : > { %v1960_v53 = vsel %vm1787_vm3, %v1761_v45, 0 }
 0x3d1   : > { %v1546_v39 = vmul.f32 1.442695, %v1489_v35  ;;  %v1401_v23 = vsel %vm1367_vm2, %v14951_v51, -inf }
 0x3d3   : > { %13086 = vpow2.f32 %v1546_v39  ;;  %1414 = vmax.xlane.f32.xlu0 %v1413_v4 }
 0x3d4   : > { %13088 = vrcp.f32 %v1652_v1 }
 0x3d6   : > { %v14953_v18 = vpop.f32.mrf.mxu2 }
 0x3d9   : > { %v14943_v25 = vpop.eup %13086 }
 0x3da   : > { %12132 = vmatmul.msk.bf16.vlgmr.msrb.gmra.mxu0 %vm1367_vm2, %v1746_v6  ;;  %v1635_v5 = vsel %vm1367_vm2, %v14943_v25, 0.0  ;;  %v13089_v21 = vpop.eup %13088 }
 0x3db   : > { %1636 = vadd.xlane.f32.xlu2 %v1635_v5  ;;  %2743 = vmatpush.bf16.xpose.msrb.mxu0 %v14149_v48  ;;  %v1718_v61 = vmul.f32 %v13089_v21, %v14824_v46 }
 0x3dc   : > { %12171 = vmatmul.msk.bf16.gmra.mxu2 %vm452_vm0, %v14220_v24 }
 0x3dd   : > { %v1750_v1 = vpack.c.bf16 %v1718_v61, %v1718_v61 }
 0x3de   : > { %v2488_v57 = vpop.f32.mrf.mxu2 }
 0x3e3   : > { %1402 = vmax.xlane.f32.xlu2 %v1401_v23  ;;  %v2703_v23 = vpack.c.bf16 %v2488_v57, %v2488_v57 }
 0x3e6   : > { %v14968_v20 = vpop.f32.mrf.mxu2 }
 0x3ea   : > { %12136 = vmatmul.msk.bf16.vlgmr.msra.gmra.mxu0 %vm1367_vm2, %v1750_v1  ;;  %v1765_v1 = vpack.c.bf16 %v14655_v16, %v14655_v16 }
 0x3eb   : > { %1426 = vmax.xlane.f32.xlu2 %v1425_v3  ;;  %2775 = vmatpush.bf16.xpose.msra.mxu0 %v14177_v63 }
 0x3ec   : > { %12172 = vmatmul.msk.bf16.gmra.mxu2 %vm452_vm0, %v14244_v42  ;;  %v2036_v57 = vsel %vm1787_vm3, %v1765_v1, 0 }
 0x3ee   : > { %v2493_v52 = vpop.f32.mrf.mxu2 }
 0x3f6   : > { %v1565_v46 = vpop.xlane.xlu1 %1564  ;;  %v14981_v5 = vpop.f32.mrf.mxu2 }
 0x3f7   : > { %13090 = vrcp.f32 %v1565_v46  ;;  %v14972_v29 = vpop.f32.mrf.mxu0 }
 0x3f8   : > { %19471 = vst [vmem:[#allocation77_spill] sm:$0xff] %v14972_v29 }
 0x3fa   : > { %12218 = vmatmul.msk.bf16.vlgmr.msrb.gmra.mxu0 %vm452_vm0, %v2701_v14 }
 0x3fb   : > { %2807 = vmatpush.bf16.xpose.msrb.mxu0 %v14200_v11 }
 0x3fc   : > { %12173 = vmatmul.msk.bf16.gmra.mxu2 %vm452_vm0, %v14268_v2 }
 0x3fd   : > { %v13091_v35 = vpop.eup %13090 }
 0x3fe   : > { %v1689_v39 = vmul.f32 %v13091_v35, %v14851_v22  ;;  %v1577_v4 = vpop.xlane.xlu1 %1576  ;;  %v2498_v14 = vpop.f32.mrf.mxu2 }
 0x3ff   : > { %v1916_v7 = vpop.f32.mrf.mxu0  ;;  %13092 = vrcp.f32 %v1577_v4  ;;  %v2705_v4 = vpack.c.bf16 %v2493_v52, %v2493_v52 }
 0x400   : > { %v1721_v6 = vpack.c.bf16 %v1689_v39, %v1689_v39  ;;  %v19473_v39 = vld [vmem:[#allocation36_spill] sm:$0xff] }
 0x402   : > { %12107 = vmatmul.msk.bf16.vlgmr.msra.gmra.mxu3 %vm1367_vm2, %v1721_v6 }
 0x403   : > { %1969 = vmatpush.bf16.msra.mxu3 %v1960_v53 }
 0x405   : > { %v13093_v61 = vpop.eup %13092 }
 0x406   : > { %v1589_v21 = vpop.xlane.xlu1 %1588  ;;  %v1693_v22 = vmul.f32 %v13093_v61, %v14858_v15  ;;  %v19475_v61 = vld [vmem:[#allocation31_spill] sm:$0xff] }
 0x407   : > { %13094 = vrcp.f32 %v1589_v21  ;;  %v15000_v21 = vpop.f32.mrf.mxu2 }
 0x408   : > { %v1725_v35 = vpack.c.bf16 %v1693_v22, %v1693_v22 }
 0x40a   : > { %12220 = vmatmul.msk.bf16.vlgmr.msra.gmra.mxu0 %vm452_vm0, %v2703_v23 }
 0x40b   : > { %2839 = vmatpush.bf16.xpose.msra.mxu0 %v19472_v43 }
 0x40c   : > { %12174 = vmatmul.msk.bf16.gmra.mxu2 %vm452_vm0, %v19473_v39 }
 0x40e   : > { %v1457_v3 = vpop.xlane.xlu1 %1456 }
 0x40f   : > { %v1493_v46 = vsub.f32 %v14872_v28, %v1457_v3  ;;  %v13095_v28 = vpop.eup %13094 }
 0x410   : > { %v1697_v52 = vmul.f32 %v13095_v28, %v14862_v41  ;;  %v19477_v41 = vld [vmem:[#allocation58_spill] sm:$0xff] }
 0x411   : > { %v1554_v45 = vmul.f32 1.442695, %v1493_v46 }
 0x412   : > { %12111 = vmatmul.msk.bf16.vlgmr.msrb.gmra.mxu3 %vm1367_vm2, %v1725_v35  ;;  %v1729_v1 = vpack.c.bf16 %v1697_v52, %v1697_v52 }
 0x413   : > { %13096 = vpow2.f32 %v1554_v45  ;;  %2045 = vmatpush.bf16.msrb.mxu3 %v2036_v57  ;;  %v2503_v45 = vpop.f32.mrf.mxu2  ;;  %v19476_v57 = vld [vmem:[#allocation39_spill] sm:$0xff] }
 0x416   : > { %v1379_v15 = vpop.xlane.xlu1 %1378 }
 0x417   : > { %v1467_v16 = vsub.f32 %v14883_v59, %v1379_v15  ;;  %v14996_v7 = vpop.f32.mrf.mxu0  ;;  %v1769_v59 = vpack.c.bf16 %v14691_v62, %v14691_v62  ;;  %v15019_v62 = vadd.f32 %v19477_v41, %v14373_v37 }
 0x418   : > { %19474 = vst [vmem:[#allocation78_spill] sm:$0xff] %v14996_v7 }
 0x419   : > { %v14998_v6 = vpop.eup %13096  ;;  %v1502_v53 = vmul.f32 1.442695, %v1467_v16  ;;  %v2112_v46 = vsel %vm1787_vm3, %v1769_v59, 0  ;;  %v1437_v28 = vsel %vm1367_vm2, %v15019_v62, -inf  ;;  %v1773_v59 = vpack.c.bf16 %v14722_v56, %v14722_v56 }
 0x41a   : > { %12222 = vmatmul.msk.bf16.vlgmr.msrb.gmra.mxu0 %vm452_vm0, %v2705_v4  ;;  %v1647_v23 = vsel %vm1367_vm2, %v14998_v6, 0.0  ;;  %v2707_v4 = vpack.c.bf16 %v2498_v14, %v2498_v14 }
 0x41b   : > { %13098 = vpow2.f32 %v1502_v53  ;;  %1648 = vadd.xlane.f32.xlu1 %v1647_v23  ;;  %2871 = vmatpush.bf16.xpose.msrb.mxu0 %v19475_v61  ;;  %v19479_v53 = vld [vmem:[#allocation34_spill] sm:$0xff]  ;;  %v15027_v52 = vpop.f32.mrf.mxu2 }
 0x41c   : > { %12175 = vmatmul.msk.bf16.gmra.mxu2 %vm452_vm0, %v19476_v57 }
 0x41f   : > { %v1992_v22 = vpop.f32.mrf.mxu0 }
 0x421   : > { %v15009_v3 = vpop.eup %13098 }
 0x422   : > { %12115 = vmatmul.msk.bf16.vlgmr.msra.gmra.mxu3 %vm1367_vm2, %v1729_v1  ;;  %v1569_v35 = vsel %vm1367_vm2, %v15009_v3, 0.0 }
 0x423   : > { %2121 = vmatpush.bf16.msra.mxu3 %v2112_v46  ;;  %1570 = vadd.xlane.f32.xlu1 %v1569_v35  ;;  %v2188_v35 = vsel %vm1787_vm3, %v1773_v59, 0  ;;  %v1777_v59 = vpack.c.bf16 %v14736_v38, %v14736_v38 }
 0x426   : > { %v1601_v15 = vpop.xlane.xlu0 %1600 }
 0x427   : > { %13100 = vrcp.f32 %v1601_v15  ;;  %v15021_v16 = vpop.f32.mrf.mxu0  ;;  %v2709_v15 = vpack.c.bf16 %v2503_v45, %v2503_v45 }
 0x428   : > { %19478 = vst [vmem:[#allocation58_spill] sm:$0xff] %v15021_v16 }
 0x42a   : > { %12224 = vmatmul.msk.bf16.vlgmr.msra.gmra.mxu0 %vm452_vm0, %v2707_v4 }
 0x42b   : > { %1438 = vmax.xlane.f32.xlu1 %v1437_v28  ;;  %2903 = vmatpush.bf16.xpose.msra.mxu0 %v19479_v53  ;;  %v2508_v28 = vpop.f32.mrf.mxu2 }
 0x42c   : > { %12176 = vmatmul.msk.bf16.gmra.mxu2 %vm452_vm0, %v14340_v17  ;;  %v2711_v38 = vpack.c.bf16 %v2508_v28, %v2508_v28 }
 0x42d   : > { %v13101_v23 = vpop.eup %13100 }
 0x42e   : > { %v1701_v22 = vmul.f32 %v13101_v23, %v14896_v30  ;;  %v1613_v46 = vpop.xlane.xlu2 %1612  ;;  %v19481_v30 = vld [vmem:[#allocation37_spill] sm:$0xff] }
 0x42f   : > { %v2068_v14 = vpop.f32.mrf.mxu0  ;;  %13102 = vrcp.f32 %v1613_v46 }
 0x430   : > { %v1733_v1 = vpack.c.bf16 %v1701_v22, %v1701_v22 }
 0x432   : > { %12119 = vmatmul.msk.bf16.vlgmr.msrb.gmra.mxu3 %vm1367_vm2, %v1733_v1 }
 0x433   : > { %2197 = vmatpush.bf16.msrb.mxu3 %v2188_v35  ;;  %v15044_v45 = vpop.f32.mrf.mxu2 }
 0x435   : > { %v13103_v56 = vpop.eup %13102 }
 0x436   : > { %v1625_v41 = vpop.xlane.xlu0 %1624  ;;  %v1705_v23 = vmul.f32 %v13103_v56, %v14910_v49 }
 0x437   : > { %v15036_v4 = vpop.f32.mrf.mxu0  ;;  %13104 = vrcp.f32 %v1625_v41 }
 0x438   : > { %19480 = vst [vmem:[#allocation79_spill] sm:$0xff] %v15036_v4  ;;  %v1737_v46 = vpack.c.bf16 %v1705_v23, %v1705_v23 }
 0x43a   : > { %12226 = vmatmul.msk.bf16.vlgmr.msrb.gmra.mxu0 %vm452_vm0, %v2709_v15  ;;  %v2264_v15 = vsel %vm1787_vm3, %v1777_v59, 0 }
 0x43b   : > { %2935 = vmatpush.bf16.xpose.msrb.mxu0 %v19481_v30  ;;  %v2513_v59 = vpop.f32.mrf.mxu2 }
 0x43c   : > { %12177 = vmatmul.msk.bf16.gmra.mxu2 %vm452_vm0, %v14467_v32 }
 0x43d   : > { %v13105_v23 = vpop.eup %13104 }
 0x43e   : > { %v1391_v22 = vpop.xlane.xlu0 %1390  ;;  %v1709_v28 = vmul.f32 %v13105_v23, %v14918_v9 }
 0x43f   : > { %v1471_v14 = vsub.f32 %v14927_v50, %v1391_v22  ;;  %v2144_v1 = vpop.f32.mrf.mxu0 }
 0x440   : > { %v19483_v1 = vld [vmem:[#allocation40_spill] sm:$0xff] }
 0x441   : > { %v1510_v35 = vmul.f32 1.442695, %v1471_v14 }
 0x442   : > { %12123 = vmatmul.msk.bf16.vlgmr.msra.gmra.mxu3 %vm1367_vm2, %v1737_v46 }
 0x443   : > { %13106 = vpow2.f32 %v1510_v35  ;;  %2273 = vmatpush.bf16.msra.mxu3 %v2264_v15  ;;  %v1781_v35 = vpack.c.bf16 %v14912_v31, %v14912_v31  ;;  %v15074_v31 = vpop.f32.mrf.mxu2 }
 0x446   : > { %v1415_v49 = vpop.xlane.xlu0 %1414 }
 0x447   : > { %v1479_v56 = vsub.f32 %v14935_v44, %v1415_v49  ;;  %v15051_v50 = vpop.f32.mrf.mxu0  ;;  %v19484_v44 = vld [vmem:[#allocation61_spill] sm:$0xff] }
 0x448   : > { %19482 = vst [vmem:[#allocation80_spill] sm:$0xff] %v15051_v50  ;;  %v15062_v46 = vadd.f32 %v19484_v44, %v14373_v37  ;;  %v19486_v50 = vld [vmem:[#allocation43_spill] sm:$0xff] }
 0x449   : > { %v15053_v22 = vpop.eup %13106  ;;  %v1526_v14 = vmul.f32 1.442695, %v1479_v56 }
 0x44a   : > { %12228 = vmatmul.msk.bf16.vlgmr.msra.gmra.mxu0 %vm452_vm0, %v2711_v38  ;;  %v1581_v41 = vsel %vm1367_vm2, %v15053_v22, 0.0  ;;  %v1741_v38 = vpack.c.bf16 %v1709_v28, %v1709_v28  ;;  %v2713_v28 = vpack.c.bf16 %v2513_v59, %v2513_v59 }
 0x44b   : > { %13108 = vpow2.f32 %v1526_v14  ;;  %1582 = vadd.xlane.f32.xlu0 %v1581_v41  ;;  %2967 = vmatpush.bf16.xpose.msra.mxu0 %v19483_v1  ;;  %v2340_v14 = vsel %vm1787_vm3, %v1781_v35, 0  ;;  %v1449_v41 = vsel %vm1367_vm2, %v15062_v46, -inf  ;;  %v2518_v4 = vpop.f32.mrf.mxu2 }
 0x44e   : > { %v1637_v15 = vpop.xlane.xlu2 %1636 }
 0x44f   : > { %v2220_v49 = vpop.f32.mrf.mxu0  ;;  %13110 = vrcp.f32 %v1637_v15 }
 0x451   : > { %v15066_v56 = vpop.eup %13108 }
 0x452   : > { %12127 = vmatmul.msk.bf16.vlgmr.msrb.gmra.mxu3 %vm1367_vm2, %v1741_v38  ;;  %v1605_v9 = vsel %vm1367_vm2, %v15066_v56, 0.0 }
 0x453   : > { %2349 = vmatpush.bf16.msrb.mxu3 %v2340_v14  ;;  %1450 = vmax.xlane.f32.xlu0 %v1449_v41 }
 0x454   : > { %1606 = vadd.xlane.f32.xlu1 %v1605_v9 }
 0x455   : > { %v13111_v38 = vpop.eup %13110 }
 0x456   : > { %v1403_v23 = vpop.xlane.xlu2 %1402  ;;  %v1713_v15 = vmul.f32 %v13111_v38, %v14943_v25  ;;  %v2715_v25 = vpack.c.bf16 %v2518_v4, %v2518_v4 }
 0x457   : > { %v1475_v44 = vsub.f32 %v14951_v51, %v1403_v23  ;;  %v15077_v49 = vpop.f32.mrf.mxu0 }
 0x458   : > { %19485 = vst [vmem:[#allocation61_spill] sm:$0xff] %v15077_v49  ;;  %v1745_v16 = vpack.c.bf16 %v1713_v15, %v1713_v15 }
 0x459   : > { %v1518_v35 = vmul.f32 1.442695, %v1475_v44 }
 0x45a   : > { %12230 = vmatmul.msk.bf16.vlgmr.msrb.gmra.mxu0 %vm452_vm0, %v2713_v28  ;;  %v19487_v28 = vld [vmem:[#allocation64_spill] sm:$0xff] }
 0x45b   : > { %13112 = vpow2.f32 %v1518_v35  ;;  %2999 = vmatpush.bf16.xpose.msrb.mxu0 %v19486_v50  ;;  %v15090_v44 = vadd.f32 %v19487_v28, %v14373_v37  ;;  %v15096_v35 = vpop.f32.mrf.mxu2 }
 0x45d   : > { %v1461_v15 = vsel %vm1367_vm2, %v15090_v44, -inf }
 0x45e   : > { %v1427_v14 = vpop.xlane.xlu2 %1426 }
 0x45f   : > { %v1483_v41 = vsub.f32 %v14962_v58, %v1427_v14  ;;  %v2296_v9 = vpop.f32.mrf.mxu0  ;;  %v19489_v14 = vld [vmem:[#allocation45_spill] sm:$0xff] }
 0x461   : > { %v15083_v59 = vpop.eup %13112  ;;  %v1534_v51 = vmul.f32 1.442695, %v1483_v41 }
 0x462   : > { %12131 = vmatmul.msk.bf16.vlgmr.msra.gmra.mxu3 %vm1367_vm2, %v1745_v16  ;;  %v1593_v23 = vsel %vm1367_vm2, %v15083_v59, 0.0 }
 0x463   : > { %13114 = vpow2.f32 %v1534_v51  ;;  %1594 = vadd.xlane.f32.xlu2 %v1593_v23  ;;  %v2523_v4 = vpop.f32.mrf.mxu2  ;;  %v19490_v23 = vld [vmem:[#allocation47_spill] sm:$0xff] }
 0x464   : > { %v2717_v9 = vpack.c.bf16 %v2523_v4, %v2523_v4 }
 0x467   : > { %v15092_v38 = vpop.f32.mrf.mxu0 }
 0x468   : > { %19488 = vst [vmem:[#allocation64_spill] sm:$0xff] %v15092_v38 }
 0x469   : > { %v15094_v58 = vpop.eup %13114 }
 0x46a   : > { %12232 = vmatmul.msk.bf16.vlgmr.msra.gmra.mxu0 %vm452_vm0, %v2715_v25  ;;  %v1617_v16 = vsel %vm1367_vm2, %v15094_v58, 0.0 }
 0x46b   : > { %1618 = vadd.xlane.f32.xlu0 %v1617_v16  ;;  %1462 = vmax.xlane.f32.xlu2 %v1461_v15  ;;  %v15108_v25 = vpop.f32.mrf.mxu2 }
 0x46c   : > { %3031 = vmatpush.bf16.xpose.msra.mxu0 %v19489_v14 }
 0x46f   : > { %v2372_v41 = vpop.f32.mrf.mxu0 }
 0x470   : > { %v19492_v41 = vld [vmem:[#allocation49_spill] sm:$0xff] }
 0x473   : > { %v2528_v16 = vpop.f32.mrf.mxu2 }
 0x474   : > { %v2719_v15 = vpack.c.bf16 %v2528_v16, %v2528_v16 }
 0x477   : > { %v15104_v51 = vpop.f32.mrf.mxu0 }
 0x47a   : > { %12234 = vmatmul.msk.bf16.vlgmr.msrb.gmra.mxu0 %vm452_vm0, %v2717_v9  ;;  %v12887_v9 = vld [vmem:[#allocation7 + $0x58] sm:$0xff] }
 0x47b   : > { %3063 = vmatpush.bf16.xpose.msrb.mxu0 %v19490_v23  ;;  %v15116_v60 = vpop.f32.mrf.mxu2  ;;  %2614 = vmatpush.bf16.msra.mxu3 %v12887_v9 }
 0x47f   : > { %v2747_v28 = vpop.f32.mrf.mxu0 }
 0x485   : > { %v15110_v38 = vpop.f32.mrf.mxu3 }
 0x486   : > { %19491 = vst [vmem:[#allocation81_spill] sm:$0xff] %v15110_v38  ;;  %v12886_v38 = vld [vmem:[#allocation7 + $0x50] sm:$0xff] }
 0x487   : > { %v15112_v49 = vpop.f32.mrf.mxu0  ;;  %2615 = vmatpush.bf16.msra.mxu3 %v12886_v38 }
 0x48a   : > { %12236 = vmatmul.msk.bf16.vlgmr.msra.gmra.mxu0 %vm452_vm0, %v2719_v15 }
 0x48b   : > { %3095 = vmatpush.bf16.xpose.msra.mxu0 %v19492_v41  ;;  %2616 = vmatpush.bf16.msra.mxu3 %v12885_v54 }
 0x48d   : > { %v1821_v4 = vpop.f32.mrf.mxu3 }
 0x48e   : > { %v1649_v7 = vpop.xlane.xlu1 %1648  ;;  %v2533_v4 = vpop.f32.mrf.mxu2 }
 0x48f   : > { %13116 = vrcp.f32 %v1649_v7  ;;  %v2779_v29 = vpop.f32.mrf.mxu0  ;;  %v2721_v7 = vpack.c.bf16 %v2533_v4, %v2533_v4  ;;  %2617 = vmatpush.bf16.msra.mxu3 %v12884_v10 }
 0x490   : > { %v19494_v29 = vld [vmem:[#allocation51_spill] sm:$0xff] }
 0x495   : > { %v13117_v28 = vpop.eup %13116  ;;  %v15118_v34 = vpop.f32.mrf.mxu3 }
 0x496   : > { %19493 = vst [vmem:[#allocation82_spill] sm:$0xff] %v15118_v34  ;;  %v1717_v27 = vmul.f32 %v13117_v28, %v14998_v6  ;;  %v1571_v13 = vpop.xlane.xlu1 %1570  ;;  %v19495_v6 = vld [vmem:[#allocation62_spill] sm:$0xff] }
 0x497   : > { %13118 = vrcp.f32 %v1571_v13  ;;  %v15121_v16 = vpop.f32.mrf.mxu0  ;;  %v1763_v13 = vpack.c.bf16 %v19495_v6, %v19495_v6 }
 0x498   : > { %v1749_v15 = vpack.c.bf16 %v1717_v27, %v1717_v27 }
 0x49a   : > { %12135 = vmatmul.msk.bf16.vlgmr.msrb.gmra.mxu3 %vm1367_vm2, %v1749_v15  ;;  %12238 = vmatmul.msk.bf16.vlgmr.msrb.gmra.mxu0 %vm452_vm0, %v2721_v7  ;;  %v15130_v15 = vpop.f32.mrf.mxu2  ;;  %v1998_v7 = vsel %vm1787_vm3, %v1763_v13, 0  ;;  %v19497_v13 = vld [vmem:[#allocation53_spill] sm:$0xff] }
 0x49b   : > { %3127 = vmatpush.bf16.xpose.msrb.mxu0 %v19494_v29 }
 0x49d   : > { %v13119_v9 = vpop.eup %13118  ;;  %v1897_v34 = vpop.f32.mrf.mxu3 }
 0x49e   : > { %v1691_v28 = vmul.f32 %v13119_v9, %v15009_v3  ;;  %v1439_v38 = vpop.xlane.xlu1 %1438  ;;  %v12883_v3 = vld [vmem:[#allocation7 + $0x38] sm:$0xff] }
 0x49f   : > { %v1487_v27 = vsub.f32 %v15019_v62, %v1439_v38  ;;  %v2811_v36 = vpop.f32.mrf.mxu0  ;;  %2618 = vmatpush.bf16.msra.mxu3 %v12883_v3  ;;  %v12882_v62 = vld [vmem:[#allocation7 + $0x30] sm:$0xff]  ;;  %v15146_v38 = vadd.f32 %v15104_v51, %v14373_v37  ;;  %v19499_v51 = vld [vmem:[#allocation55_spill] sm:$0xff] }
 0x4a0   : > { %v1723_v4 = vpack.c.bf16 %v1691_v28, %v1691_v28 }
 0x4a1   : > { %v1542_v54 = vmul.f32 1.442695, %v1487_v27 }
 0x4a2   : > { %12109 = vmatmul.msk.bf16.vlgmr.msrb.gmra.mxu1 %vm1367_vm2, %v1723_v4  ;;  %v2538_v9 = vpop.f32.mrf.mxu2 }
 0x4a3   : > { %13120 = vpow2.f32 %v1542_v54  ;;  %2007 = vmatpush.bf16.msrb.mxu1 %v1998_v7  ;;  %v2723_v36 = vpack.c.bf16 %v2538_v9, %v2538_v9  ;;  %2619 = vmatpush.bf16.msra.mxu3 %v12882_v62  ;;  %v3245_v54 = vsel %vm1367_vm2, %v15146_v38, -inf }
 0x4a5   : > { %v15134_v34 = vpop.f32.mrf.mxu3 }
 0x4a6   : > { %19496 = vst [vmem:[#allocation62_spill] sm:$0xff] %v15134_v34 }
 0x4a7   : > { %v15136_v6 = vpop.f32.mrf.mxu0 }
 0x4a9   : > { %v15138_v29 = vpop.eup %13120 }
 0x4aa   : > { %v1629_v10 = vsel %vm1367_vm2, %v15138_v29, 0.0  ;;  %12240 = vmatmul.msk.bf16.vlgmr.msra.gmra.mxu0 %vm452_vm0, %v2723_v36  ;;  %v15148_v4 = vpop.f32.mrf.mxu2  ;;  %12202 = vmatmul.msk.bf16.vlgmr.msra.gmra.mxu3 %vm452_vm0, %v14090_v12 }
 0x4ab   : > { %1630 = vadd.xlane.f32.xlu1 %v1629_v10  ;;  %3159 = vmatpush.bf16.xpose.msra.mxu0 %v19497_v13 }
 0x4ad   : > { %v1973_v28 = vpop.f32.mrf.mxu3 }
 0x4af   : > { %v2843_v27 = vpop.f32.mrf.mxu0 }
 0x4b2   : > { %v2543_v9 = vpop.f32.mrf.mxu2 }
 0x4b3   : > { %3246 = vmax.xlane.f32.xlu1 %v3245_v54  ;;  %v2725_v36 = vpack.c.bf16 %v2543_v9, %v2543_v9 }
 0x4b5   : > { %v15154_v7 = vpop.f32.mrf.mxu3 }
 0x4b6   : > { %19498 = vst [vmem:[#allocation83_spill] sm:$0xff] %v15154_v7  ;;  %v19501_v7 = vld [vmem:[#allocation63_spill] sm:$0xff] }
 0x4b7   : > { %v15156_v3 = vpop.f32.mrf.mxu0  ;;  %v1767_v13 = vpack.c.bf16 %v19501_v7, %v19501_v7  ;;  %v19502_v7 = vld [vmem:[#allocation59_spill] sm:$0xff] }
 0x4b9   : > { %v2074_v14 = vsel %vm1787_vm3, %v1767_v13, 0 }
 0x4ba   : > { %12242 = vmatmul.msk.bf16.vlgmr.msrb.gmra.mxu0 %vm452_vm0, %v2725_v36  ;;  %v15160_v27 = vpop.f32.mrf.mxu2  ;;  %12203 = vmatmul.msk.bf16.gmra.mxu3 %vm452_vm0, %v14096_v19 }
 0x4bb   : > { %3191 = vmatpush.bf16.xpose.msrb.mxu0 %v19499_v51 }
 0x4bd   : > { %v2049_v10 = vpop.f32.mrf.mxu3 }
 0x4be   : > { %v1583_v62 = vpop.xlane.xlu0 %1582 }
 0x4bf   : > { %13122 = vrcp.f32 %v1583_v62  ;;  %v2875_v28 = vpop.f32.mrf.mxu0 }
 0x4c2   : > { %v2548_v28 = vpop.f32.mrf.mxu2 }
 0x4c3   : > { %v2727_v23 = vpack.c.bf16 %v2548_v28, %v2548_v28 }
 0x4c5   : > { %v13123_v54 = vpop.eup %13122  ;;  %v15164_v34 = vpop.f32.mrf.mxu3 }
 0x4c6   : > { %19500 = vst [vmem:[#allocation84_spill] sm:$0xff] %v15164_v34  ;;  %v1695_v9 = vmul.f32 %v13123_v54, %v15053_v22  ;;  %v1451_v36 = vpop.xlane.xlu0 %1450 }
 0x4c7   : > { %v1491_v51 = vsub.f32 %v15062_v46, %v1451_v36  ;;  %v15170_v10 = vpop.f32.mrf.mxu0 }
 0x4c8   : > { %v1727_v62 = vpack.c.bf16 %v1695_v9, %v1695_v9 }
 0x4c9   : > { %v1550_v41 = vmul.f32 1.442695, %v1491_v51 }
 0x4ca   : > { %12113 = vmatmul.msk.bf16.vlgmr.msra.gmra.mxu1 %vm1367_vm2, %v1727_v62  ;;  %12244 = vmatmul.msk.bf16.vlgmr.msra.gmra.mxu0 %vm452_vm0, %v2727_v23  ;;  %v15176_v34 = vpop.f32.mrf.mxu2 }
 0x4cb   : > { %13124 = vpow2.f32 %v1550_v41  ;;  %2083 = vmatpush.bf16.msra.mxu1 %v2074_v14  ;;  %3223 = vmatpush.bf16.xpose.msra.mxu0 %v19502_v7  ;;  %v15188_v14 = vadd.f32 %v15121_v16, %v14373_v37  ;;  %v1607_v7 = vpop.xlane.xlu1 %1606 }
 0x4cc   : > { %12204 = vmatmul.msk.bf16.gmra.mxu3 %vm452_vm0, %v14108_v26 }
 0x4cd   : > { %v2125_v22 = vpop.f32.mrf.mxu3 }
 0x4ce   : > { %v3257_v22 = vsel %vm1367_vm2, %v15188_v14, -inf }
 0x4cf   : > { %v2907_v54 = vpop.f32.mrf.mxu0 }
 0x4d1   : > { %v15178_v46 = vpop.eup %13124 }
 0x4d2   : > { %v1641_v51 = vsel %vm1367_vm2, %v15178_v46, 0.0  ;;  %v2553_v36 = vpop.f32.mrf.mxu2 }
 0x4d3   : > { %1642 = vadd.xlane.f32.xlu2 %v1641_v51  ;;  %v2729_v62 = vpack.c.bf16 %v2553_v36, %v2553_v36  ;;  %v19504_v51 = vld [vmem:[#allocation65_spill] sm:$0xff] }
 0x4d5   : > { %v15184_v13 = vpop.f32.mrf.mxu3 }
 0x4d6   : > { %19503 = vst [vmem:[#allocation63_spill] sm:$0xff] %v15184_v13  ;;  %v1595_v23 = vpop.xlane.xlu2 %1594 }
 0x4d7   : > { %13126 = vrcp.f32 %v1595_v23  ;;  %v2937_v41 = vpop.f32.mrf.mxu0  ;;  %v1771_v23 = vpack.c.bf16 %v19504_v51, %v19504_v51 }
 0x4d8   : > { %v15191_v9 = vadd.f32 %v2937_v41, %v14373_v37  ;;  %13128 = vrcp.f32 %v1607_v7 }
 0x4da   : > { %v3281_v28 = vsel %vm1367_vm2, %v15191_v9, -inf  ;;  %12246 = vmatmul.msk.bf16.vlgmr.msrb.gmra.mxu0 %vm452_vm0, %v2729_v62  ;;  %v2150_v62 = vsel %vm1787_vm3, %v1771_v23, 0 }
 0x4db   : > { %3282 = vmax.xlane.f32.xlu1 %v3281_v28  ;;  %3258 = vmax.xlane.f32.xlu2 %v3257_v22 }
 0x4dc   : > { %12205 = vmatmul.msk.bf16.gmra.mxu3 %vm452_vm0, %v14120_v33 }
 0x4dd   : > { %v13127_v16 = vpop.eup %13126  ;;  %v2201_v54 = vpop.f32.mrf.mxu3 }
 0x4de   : > { %v1699_v41 = vmul.f32 %v13127_v16, %v15083_v59  ;;  %v1463_v13 = vpop.xlane.xlu2 %1462  ;;  %v13129_v22 = vpop.eup %13128 }
 0x4df   : > { %v1495_v36 = vsub.f32 %v15090_v44, %v1463_v13  ;;  %v2939_v50 = vpop.f32.mrf.mxu0  ;;  %v1703_v44 = vmul.f32 %v13129_v22, %v15066_v56  ;;  %v19506_v13 = vld [vmem:[#allocation67_spill] sm:$0xff]  ;;  %v1619_v23 = vpop.xlane.xlu0 %1618 }
 0x4e0   : > { %v1731_v1 = vpack.c.bf16 %v1699_v41, %v1699_v41 }
 0x4e1   : > { %v1558_v30 = vmul.f32 1.442695, %v1495_v36  ;;  %v1735_v51 = vpack.c.bf16 %v1703_v44, %v1703_v44  ;;  %v19507_v44 = vld [vmem:[#allocation69_spill] sm:$0xff] }
 0x4e2   : > { %12117 = vmatmul.msk.bf16.vlgmr.msrb.gmra.mxu1 %vm1367_vm2, %v1731_v1  ;;  %v1775_v1 = vpack.c.bf16 %v19506_v13, %v19506_v13 }
 0x4e3   : > { %13130 = vpow2.f32 %v1558_v30  ;;  %2159 = vmatpush.bf16.msrb.mxu1 %v2150_v62  ;;  %v15219_v30 = vadd.f32 %v15156_v3, %v14373_v37 }
 0x4e4   : > { %v2226_v41 = vsel %vm1787_vm3, %v1775_v1, 0  ;;  %13132 = vrcp.f32 %v1619_v23 }
 0x4e5   : > { %v15206_v28 = vpop.f32.mrf.mxu3  ;;  %v3269_v56 = vsel %vm1367_vm2, %v15219_v30, -inf }
 0x4e6   : > { %19505 = vst [vmem:[#allocation65_spill] sm:$0xff] %v15206_v28 }
 0x4e7   : > { %v15208_v59 = vpop.f32.mrf.mxu0 }
 0x4e9   : > { %v15210_v16 = vpop.eup %13130 }
 0x4ea   : > { %v1653_v50 = vsel %vm1367_vm2, %v15210_v16, 0.0  ;;  %v13133_v62 = vpop.eup %13132 }
 0x4eb   : > { %1654 = vadd.xlane.f32.xlu0 %v1653_v50  ;;  %v1707_v50 = vmul.f32 %v13133_v62, %v15094_v58  ;;  %v724_v58 = vpop.f32.mrf.mxu1 }
 0x4ec   : > { %12206 = vmatmul.msk.bf16.gmra.mxu3 %vm452_vm0, %v14132_v40 }
 0x4ed   : > { %v2277_v7 = vpop.f32.mrf.mxu3  ;;  %v1739_v1 = vpack.c.bf16 %v1707_v50, %v1707_v50 }
 0x4ee   : > { %v1779_v7 = vpack.c.bf16 %v19507_v44, %v19507_v44 }
 0x4ef   : > { %v2971_v54 = vpop.f32.mrf.mxu0 }
 0x4f0   : > { %v2302_v54 = vsel %vm1787_vm3, %v1779_v7, 0  ;;  %v1783_v7 = vpack.c.bf16 %v724_v58, %v724_v58 }
 0x4f2   : > { %12121 = vmatmul.msk.bf16.vlgmr.msra.gmra.mxu1 %vm1367_vm2, %v1735_v51 }
 0x4f3   : > { %2235 = vmatpush.bf16.msra.mxu1 %v2226_v41  ;;  %3270 = vmax.xlane.f32.xlu0 %v3269_v56 }
 0x4f7   : > { %v3001_v36 = vpop.f32.mrf.mxu0 }
 0x4f8   : > { %v15228_v3 = vadd.f32 %v3001_v36, %v14373_v37 }
 0x4fa   : > { %v3293_v22 = vsel %vm1367_vm2, %v15228_v3, -inf }
 0x4fb   : > { %3294 = vmax.xlane.f32.xlu0 %v3293_v22 }
 0x4fc   : > { %12207 = vmatmul.msk.bf16.gmra.mxu3 %vm452_vm0, %v14144_v47 }
 0x4ff   : > { %v3003_v13 = vpop.f32.mrf.mxu0 }
 0x502   : > { %12125 = vmatmul.msk.bf16.vlgmr.msrb.gmra.mxu1 %vm1367_vm2, %v1739_v1 }
 0x503   : > { %2311 = vmatpush.bf16.msrb.mxu1 %v2302_v54 }
 0x507   : > { %v15239_v51 = vpop.f32.mrf.mxu0 }
 0x50c   : > { %12208 = vmatmul.msk.bf16.gmra.mxu3 %vm452_vm0, %v14160_v55 }
 0x50f   : > { %v3035_v23 = vpop.f32.mrf.mxu0 }
 0x517   : > { %v3065_v41 = vpop.f32.mrf.mxu0 }
 0x51c   : > { %12209 = vmatmul.msk.bf16.gmra.mxu3 %vm452_vm0, %v14180_v0 }
 0x51d   : > { %v15243_v56 = vpop.f32.mrf.mxu3 }
 0x51e   : > { %19508 = vst [vmem:[#allocation67_spill] sm:$0xff] %v15243_v56  ;;  %v1631_v36 = vpop.xlane.xlu1 %1630 }
 0x51f   : > { %13134 = vrcp.f32 %v1631_v36  ;;  %v15245_v62 = vpop.f32.mrf.mxu1  ;;  %v3067_v22 = vpop.f32.mrf.mxu0  ;;  %v2378_v36 = vsel %vm1787_vm3, %v1783_v7, 0 }
 0x520   : > { %19509 = vst [vmem:[#allocation69_spill] sm:$0xff] %v15245_v62 }
 0x525   : > { %v13135_v50 = vpop.eup %13134  ;;  %v2353_v44 = vpop.f32.mrf.mxu3 }
 0x526   : > { %v1711_v13 = vmul.f32 %v13135_v50, %v15138_v29  ;;  %v3247_v1 = vpop.xlane.xlu1 %3246 }
 0x527   : > { %v3341_v54 = vsub.f32 %v15146_v38, %v3247_v1  ;;  %v1859_v23 = vpop.f32.mrf.mxu1  ;;  %v15251_v53 = vpop.f32.mrf.mxu0  ;;  %v15262_v38 = vadd.f32 %v3065_v41, %v14373_v37 }
 0x528   : > { %v1743_v28 = vpack.c.bf16 %v1711_v13, %v1711_v13 }
 0x529   : > { %v3373_v56 = vmul.f32 1.442695, %v3341_v54 }
 0x52a   : > { %12129 = vmatmul.msk.bf16.vlgmr.msra.gmra.mxu1 %vm1367_vm2, %v1743_v28 }
 0x52b   : > { %13136 = vpow2.f32 %v3373_v56  ;;  %2387 = vmatpush.bf16.msra.mxu1 %v2378_v36  ;;  %v3305_v56 = vsel %vm1367_vm2, %v15262_v38, -inf }
 0x52c   : > { %12210 = vmatmul.msk.bf16.gmra.mxu3 %vm452_vm0, %v14196_v8 }
 0x52d   : > { %v2621_v58 = vpop.f32.mrf.mxu3 }
 0x52e   : > { %v3629_v50 = vpack.c.bf16 %v2621_v58, %v2621_v58 }
 0x52f   : > { %v3099_v22 = vpop.f32.mrf.mxu0 }
 0x530   : > { %v3665_v28 = vsel %vm1787_vm3, %v3629_v50, 0 }
 0x531   : > { %v15255_v62 = vpop.eup %13136  ;;  %3674 = vmatpush.bf16.msrb.mxu2 %v3665_v28 }
 0x532   : > { %v3437_v29 = vsel %vm1367_vm2, %v15255_v62, 0.0 }
 0x533   : > { %3438 = vadd.xlane.f32.xlu2 %v3437_v29 }
 0x535   : > { %v2623_v7 = vpop.f32.mrf.mxu3 }
 0x536   : > { %v3630_v13 = vpack.c.bf16 %v2623_v7, %v2623_v7 }
 0x537   : > { %v3129_v44 = vpop.f32.mrf.mxu0 }
 0x538   : > { %v3684_v1 = vsel %vm1787_vm3, %v3630_v13, 0 }
 0x539   : > { %3693 = vmatpush.bf16.msrb.mxu3 %v3684_v1 }
 0x53b   : > { %3306 = vmax.xlane.f32.xlu2 %v3305_v56 }
 0x53c   : > { %12211 = vmatmul.msk.bf16.gmra.mxu3 %vm452_vm0, %v14220_v24 }
 0x53f   : > { %v3131_v54 = vpop.f32.mrf.mxu0 }
 0x546   : > { %v1643_v41 = vpop.xlane.xlu2 %1642 }
 0x547   : > { %13138 = vrcp.f32 %v1643_v41  ;;  %v15270_v23 = vpop.f32.mrf.mxu1  ;;  %v15272_v36 = vpop.f32.mrf.mxu0  ;;  %v19511_v41 = vld [vmem:[#allocation20_spill] sm:$0xff] }
 0x548   : > { %19510 = vst [vmem:[#allocation85_spill] sm:$0xff] %v15270_v23 }
 0x54c   : > { %12212 = vmatmul.msk.bf16.gmra.mxu3 %vm452_vm0, %v14244_v42 }
 0x54d   : > { %v13139_v22 = vpop.eup %13138 }
 0x54e   : > { %v1715_v29 = vmul.f32 %v13139_v22, %v15178_v46  ;;  %v3283_v58 = vpop.xlane.xlu1 %3282  ;;  %v3259_v50 = vpop.xlane.xlu2 %3258 }
 0x54f   : > { %v3353_v28 = vsub.f32 %v15191_v9, %v3283_v58  ;;  %v3345_v56 = vsub.f32 %v15188_v14, %v3259_v50  ;;  %v1935_v7 = vpop.f32.mrf.mxu1  ;;  %v3163_v1 = vpop.f32.mrf.mxu0  ;;  %v15290_v58 = vadd.f32 %v3129_v44, %v14373_v37 }
 0x550   : > { %v1747_v13 = vpack.c.bf16 %v1715_v29, %v1715_v29  ;;  %v15298_v7 = vpop.f32.mrf.mxu2 }
 0x551   : > { %v3397_v54 = vmul.f32 1.442695, %v3353_v28  ;;  %v3381_v61 = vmul.f32 1.442695, %v3345_v56 }
 0x552   : > { %12133 = vmatmul.msk.bf16.vlgmr.msrb.gmra.mxu1 %vm1367_vm2, %v1747_v13 }
 0x553   : > { %13140 = vpow2.f32 %v3397_v54  ;;  %2759 = vmatpush.bf16.xpose.msrb.mxu1 %v19511_v41 }
 0x554   : > { %13142 = vpow2.f32 %v3381_v61  ;;  %v3317_v61 = vsel %vm1367_vm2, %v15290_v58, -inf }
 0x557   : > { %v3193_v22 = vpop.f32.mrf.mxu0 }
 0x559   : > { %v15281_v46 = vpop.eup %13140 }
 0x55a   : > { %v15283_v9 = vpop.eup %13142  ;;  %v3473_v14 = vsel %vm1367_vm2, %v15281_v46, 0.0 }
 0x55b   : > { %3474 = vadd.xlane.f32.xlu2 %v3473_v14  ;;  %v3449_v29 = vsel %vm1367_vm2, %v15283_v9, 0.0 }
 0x55c   : > { %3450 = vadd.xlane.f32.xlu1 %v3449_v29  ;;  %12213 = vmatmul.msk.bf16.gmra.mxu3 %vm452_vm0, %v14268_v2 }
 0x55e   : > { %v1655_v50 = vpop.xlane.xlu0 %1654 }
 0x55f   : > { %13144 = vrcp.f32 %v1655_v50  ;;  %v15292_v28 = vpop.f32.mrf.mxu1  ;;  %v3195_v56 = vpop.f32.mrf.mxu0 }
 0x560   : > { %19512 = vst [vmem:[#allocation86_spill] sm:$0xff] %v15292_v28  ;;  %v2558_v28 = vpop.f32.mrf.mxu2  ;;  %v19513_v56 = vld [vmem:[#allocation23_spill] sm:$0xff] }
 0x561   : > { %v2731_v23 = vpack.c.bf16 %v2558_v28, %v2558_v28  ;;  %v15315_v28 = vadd.f32 %v3193_v22, %v14373_v37  ;;  %v19515_v22 = vld [vmem:[#allocation26_spill] sm:$0xff] }
 0x563   : > { %12248 = vmatmul.msk.bf16.vlgmr.msra.gmra.mxu0 %vm452_vm0, %v2731_v23 }
 0x564   : > { %3318 = vmax.xlane.f32.xlu1 %v3317_v61 }
 0x565   : > { %v13145_v13 = vpop.eup %13144 }
 0x566   : > { %v1719_v1 = vmul.f32 %v13145_v13, %v15210_v16  ;;  %v3271_v54 = vpop.xlane.xlu0 %3270 }
 0x567   : > { %v3349_v44 = vsub.f32 %v15219_v30, %v3271_v54  ;;  %v2011_v14 = vpop.f32.mrf.mxu1 }
 0x568   : > { %v1751_v29 = vpack.c.bf16 %v1719_v1, %v1719_v1 }
 0x569   : > { %v3389_v50 = vmul.f32 1.442695, %v3349_v44  ;;  %v2626_v44 = vpop.f32.mrf.mxu3 }
 0x56a   : > { %12137 = vmatmul.msk.bf16.vlgmr.msra.gmra.mxu1 %vm1367_vm2, %v1751_v29  ;;  %v3631_v14 = vpack.c.bf16 %v2626_v44, %v2626_v44 }
 0x56b   : > { %13146 = vpow2.f32 %v3389_v50  ;;  %2791 = vmatpush.bf16.xpose.msra.mxu1 %v19513_v56 }
 0x56c   : > { %12214 = vmatmul.msk.bf16.gmra.mxu3 %vm452_vm0, %v19473_v39  ;;  %v3703_v29 = vsel %vm1787_vm3, %v3631_v14, 0  ;;  %v2706_v14 = vpack.c.bf16 %v14981_v5, %v14981_v5  ;;  %v2708_v5 = vpack.c.bf16 %v15000_v21, %v15000_v21 }
 0x56d   : > { %3712 = vmatpush.bf16.msrb.mxu0 %v3703_v29  ;;  %v19518_v29 = vld [vmem:[#allocation32_spill] sm:$0xff] }
 0x56e   : > { %v3295_v41 = vpop.xlane.xlu0 %3294 }
 0x56f   : > { %v3357_v61 = vsub.f32 %v15228_v3, %v3295_v41  ;;  %v15306_v43 = vpop.f32.mrf.mxu1  ;;  %v2702_v3 = vpack.c.bf16 %v14953_v18, %v14953_v18  ;;  %v3329_v41 = vsel %vm1367_vm2, %v15315_v28, -inf  ;;  %v15330_v18 = vadd.f32 %v15112_v49, %v14373_v37  ;;  %v19517_v49 = vld [vmem:[#allocation29_spill] sm:$0xff] }
 0x570   : > { %19514 = vst [vmem:[#allocation87_spill] sm:$0xff] %v15306_v43 }
 0x571   : > { %v15308_v16 = vpop.eup %13146  ;;  %v3405_v30 = vmul.f32 1.442695, %v3357_v61  ;;  %v3251_v61 = vsel %vm1367_vm2, %v15330_v18, -inf }
 0x572   : > { %v3461_v13 = vsel %vm1367_vm2, %v15308_v16, 0.0 }
 0x573   : > { %13148 = vpow2.f32 %v3405_v30  ;;  %3462 = vadd.xlane.f32.xlu0 %v3461_v13  ;;  %v15336_v30 = vpop.f32.mrf.mxu3 }
 0x577   : > { %v2087_v23 = vpop.f32.mrf.mxu1 }
 0x578   : > { %v2704_v23 = vpack.c.bf16 %v14968_v20, %v14968_v20 }
 0x579   : > { %v15321_v1 = vpop.eup %13148 }
 0x57a   : > { %12219 = vmatmul.msk.bf16.vlgmr.msrb.gmra.mxu1 %vm452_vm0, %v2702_v3  ;;  %v3485_v54 = vsel %vm1367_vm2, %v15321_v1, 0.0 }
 0x57b   : > { %3330 = vmax.xlane.f32.xlu0 %v3329_v41  ;;  %3486 = vadd.xlane.f32.xlu1 %v3485_v54  ;;  %v2631_v3 = vpop.f32.mrf.mxu3 }
 0x57c   : > { %2823 = vmatpush.bf16.xpose.msrb.mxu1 %v19515_v22  ;;  %12215 = vmatmul.msk.bf16.gmra.mxu3 %vm452_vm0, %v19476_v57  ;;  %v3633_v41 = vpack.c.bf16 %v2631_v3, %v2631_v3 }
 0x57e   : > { %v3741_v54 = vsel %vm1787_vm3, %v3633_v41, 0 }
 0x57f   : > { %v15332_v50 = vpop.f32.mrf.mxu1  ;;  %3750 = vmatpush.bf16.msra.mxu2 %v3741_v54  ;;  %v19520_v54 = vld [vmem:[#allocation35_spill] sm:$0xff] }
 0x580   : > { %19516 = vst [vmem:[#allocation88_spill] sm:$0xff] %v15332_v50 }
 0x583   : > { %3252 = vmax.xlane.f32.xlu0 %v3251_v61  ;;  %v2633_v44 = vpop.f32.mrf.mxu3 }
 0x587   : > { %v2163_v13 = vpop.f32.mrf.mxu1 }
 0x58a   : > { %12221 = vmatmul.msk.bf16.vlgmr.msra.gmra.mxu1 %vm452_vm0, %v2704_v23 }
 0x58b   : > { %2855 = vmatpush.bf16.xpose.msra.mxu1 %v19517_v49  ;;  %v2636_v20 = vpop.f32.mrf.mxu3 }
 0x58c   : > { %12216 = vmatmul.msk.bf16.gmra.mxu3 %vm452_vm0, %v14340_v17  ;;  %v3635_v61 = vpack.c.bf16 %v2636_v20, %v2636_v20 }
 0x58e   : > { %v3779_v13 = vsel %vm1787_vm3, %v3635_v61, 0 }
 0x58f   : > { %3788 = vmatpush.bf16.msra.mxu0 %v3779_v13 }
 0x593   : > { %v15352_v23 = vpop.f32.mrf.mxu3 }
 0x59a   : > { %12223 = vmatmul.msk.bf16.vlgmr.msrb.gmra.mxu1 %vm452_vm0, %v2706_v14 }
 0x59b   : > { %2887 = vmatpush.bf16.xpose.msrb.mxu1 %v19518_v29  ;;  %v2641_v14 = vpop.f32.mrf.mxu3 }
 0x59c   : > { %12217 = vmatmul.msk.bf16.gmra.mxu3 %vm452_vm0, %v14467_v32  ;;  %v3637_v61 = vpack.c.bf16 %v2641_v14, %v2641_v14 }
 0x5a3   : > { %v15366_v21 = vpop.f32.mrf.mxu3 }
 0x5a6   : > { %v3439_v3 = vpop.xlane.xlu2 %3438 }
 0x5a7   : > { %13150 = vrcp.f32 %v3439_v3  ;;  %v15356_v41 = vpop.f32.mrf.mxu1  ;;  %v3817_v3 = vsel %vm1787_vm3, %v3637_v61, 0  ;;  %v3634_v61 = vpack.c.bf16 %v2633_v44, %v2633_v44 }
 0x5a8   : > { %19519 = vst [vmem:[#allocation89_spill] sm:$0xff] %v15356_v41 }
 0x5aa   : > { %12225 = vmatmul.msk.bf16.vlgmr.msra.gmra.mxu1 %vm452_vm0, %v2708_v5  ;;  %v2710_v5 = vpack.c.bf16 %v15027_v52, %v15027_v52 }
 0x5ab   : > { %2919 = vmatpush.bf16.xpose.msra.mxu1 %v19520_v54 }
 0x5ad   : > { %v13151_v20 = vpop.eup %13150 }
 0x5ae   : > { %v3565_v13 = vmul.f32 %v13151_v20, %v15255_v62  ;;  %v3307_v50 = vpop.xlane.xlu2 %3306 }
 0x5af   : > { %v3361_v43 = vsub.f32 %v15262_v38, %v3307_v50  ;;  %v2239_v29 = vpop.f32.mrf.mxu1  ;;  %v19521_v38 = vld [vmem:[#allocation38_spill] sm:$0xff]  ;;  %v15380_v50 = vadd.f32 %v15136_v6, %v14373_v37  ;;  %v19522_v6 = vld [vmem:[#allocation41_spill] sm:$0xff] }
 0x5b0   : > { %v3597_v49 = vpack.c.bf16 %v3565_v13, %v3565_v13  ;;  %v15388_v29 = vadd.f32 %v15208_v59, %v14373_v37  ;;  %v3760_v59 = vsel %vm1787_vm3, %v3634_v61, 0  ;;  %v19524_v61 = vld [vmem:[#allocation44_spill] sm:$0xff] }
 0x5b1   : > { %v3413_v41 = vmul.f32 1.442695, %v3361_v43  ;;  %v15376_v43 = vpop.f32.mrf.mxu3  ;;  %3769 = vmatpush.bf16.msra.mxu3 %v3760_v59  ;;  %v2716_v59 = vpack.c.bf16 %v15096_v35, %v15096_v35 }
 0x5b2   : > { %12250 = vmatmul.msk.bf16.vlgmr.msrb.gmra.mxu2 %vm1367_vm2, %v3597_v49  ;;  %v3263_v49 = vsel %vm1367_vm2, %v15380_v50, -inf  ;;  %v3287_v20 = vsel %vm1367_vm2, %v15388_v29, -inf }
 0x5b3   : > { %13152 = vpow2.f32 %v3413_v41  ;;  %3826 = vmatpush.bf16.msrb.mxu2 %v3817_v3  ;;  %v2712_v41 = vpack.c.bf16 %v15044_v45, %v15044_v45 }
 0x5b9   : > { %v15370_v14 = vpop.eup %13152  ;;  %v15384_v52 = vpop.f32.mrf.mxu3 }
 0x5ba   : > { %12227 = vmatmul.msk.bf16.vlgmr.msrb.gmra.mxu1 %vm452_vm0, %v2710_v5  ;;  %v3497_v62 = vsel %vm1367_vm2, %v15370_v14, 0.0 }
 0x5bb   : > { %3498 = vadd.xlane.f32.xlu2 %v3497_v62  ;;  %2951 = vmatpush.bf16.xpose.msrb.mxu1 %v19521_v38 }
 0x5c1   : > { %v2651_v13 = vpop.f32.mrf.mxu3 }
 0x5c2   : > { %v3641_v45 = vpack.c.bf16 %v2651_v13, %v2651_v13 }
 0x5c3   : > { %3264 = vmax.xlane.f32.xlu2 %v3263_v49 }
 0x5c9   : > { %v15399_v62 = vpop.f32.mrf.mxu3 }
 0x5ca   : > { %12229 = vmatmul.msk.bf16.vlgmr.msra.gmra.mxu1 %vm452_vm0, %v2712_v41 }
 0x5cb   : > { %3288 = vmax.xlane.f32.xlu2 %v3287_v20  ;;  %2983 = vmatpush.bf16.xpose.msra.mxu1 %v19522_v6  ;;  %v2714_v20 = vpack.c.bf16 %v15074_v31, %v15074_v31 }
 0x5cf   : > { %v3451_v3 = vpop.xlane.xlu1 %3450  ;;  %v15396_v5 = vpop.f32.mrf.mxu1 }
 0x5d0   : > { %19523 = vst [vmem:[#allocation90_spill] sm:$0xff] %v15396_v5  ;;  %13154 = vrcp.f32 %v3451_v3  ;;  %v3893_v5 = vsel %vm1787_vm3, %v3641_v45, 0  ;;  %v19527_v45 = vld [vmem:[#allocation46_spill] sm:$0xff] }
 0x5d1   : > { %v15409_v13 = vpop.f32.mrf.mxu3 }
 0x5d6   : > { %v13155_v49 = vpop.eup %13154 }
 0x5d7   : > { %v3569_v41 = vmul.f32 %v13155_v49, %v15283_v9  ;;  %v3319_v38 = vpop.xlane.xlu1 %3318  ;;  %v2315_v54 = vpop.f32.mrf.mxu1 }
 0x5d8   : > { %v3365_v44 = vsub.f32 %v15290_v58, %v3319_v38  ;;  %v15419_v38 = vadd.f32 %v15170_v10, %v14373_v37 }
 0x5d9   : > { %v3601_v6 = vpack.c.bf16 %v3569_v41, %v3569_v41  ;;  %v15415_v58 = vpop.f32.mrf.mxu3 }
 0x5da   : > { %v3421_v3 = vmul.f32 1.442695, %v3365_v44  ;;  %12231 = vmatmul.msk.bf16.vlgmr.msrb.gmra.mxu1 %vm452_vm0, %v2714_v20  ;;  %19525 = vst [vmem:[#allocation91_spill] sm:$0xff] %v15415_v58 }
 0x5db   : > { %12254 = vmatmul.msk.bf16.vlgmr.msra.gmra.mxu2 %vm1367_vm2, %v3601_v6  ;;  %3015 = vmatpush.bf16.xpose.msrb.mxu1 %v19524_v61 }
 0x5dc   : > { %13156 = vpow2.f32 %v3421_v3  ;;  %3902 = vmatpush.bf16.msra.mxu2 %v3893_v5  ;;  %v3275_v5 = vsel %vm1367_vm2, %v15419_v38, -inf  ;;  %v15432_v3 = vadd.f32 %v15239_v51, %v14373_v37 }
 0x5e1   : > { %v2661_v49 = vpop.f32.mrf.mxu3 }
 0x5e2   : > { %v15411_v9 = vpop.eup %13156  ;;  %v3645_v20 = vpack.c.bf16 %v2661_v49, %v2661_v49 }
 0x5e3   : > { %v3509_v31 = vsel %vm1367_vm2, %v15411_v9, 0.0 }
 0x5e4   : > { %3510 = vadd.xlane.f32.xlu1 %v3509_v31  ;;  %v3475_v31 = vpop.xlane.xlu2 %3474 }
 0x5e6   : > { %v3463_v54 = vpop.xlane.xlu0 %3462 }
 0x5e7   : > { %13158 = vrcp.f32 %v3463_v54  ;;  %v15421_v6 = vpop.f32.mrf.mxu1 }
 0x5e8   : > { %19526 = vst [vmem:[#allocation92_spill] sm:$0xff] %v15421_v6  ;;  %v3969_v6 = vsel %vm1787_vm3, %v3645_v20, 0  ;;  %13160 = vrcp.f32 %v3475_v31  ;;  %v3225_v20 = vpop.f32.mrf.mxu0 }
 0x5ea   : > { %12233 = vmatmul.msk.bf16.vlgmr.msra.gmra.mxu1 %vm452_vm0, %v2716_v59 }
 0x5eb   : > { %3047 = vmatpush.bf16.xpose.msra.mxu1 %v19527_v45 }
 0x5ec   : > { %3276 = vmax.xlane.f32.xlu1 %v3275_v5 }
 0x5ed   : > { %v13159_v41 = vpop.eup %13158 }
 0x5ee   : > { %v3573_v10 = vmul.f32 %v13159_v41, %v15308_v16  ;;  %v3331_v44 = vpop.xlane.xlu0 %3330  ;;  %v3299_v16 = vsel %vm1367_vm2, %v15432_v3, -inf  ;;  %v2718_v41 = vpack.c.bf16 %v15108_v25, %v15108_v25  ;;  %v3487_v25 = vpop.xlane.xlu1 %3486 }
 0x5ef   : > { %v3369_v35 = vsub.f32 %v15315_v28, %v3331_v44  ;;  %v2391_v54 = vpop.f32.mrf.mxu1  ;;  %v13161_v28 = vpop.eup %13160 }
 0x5f0   : > { %v3605_v59 = vpack.c.bf16 %v3573_v10, %v3573_v10  ;;  %v3577_v31 = vmul.f32 %v13161_v28, %v15281_v46  ;;  %v2720_v28 = vpack.c.bf16 %v15116_v60, %v15116_v60 }
 0x5f1   : > { %v3429_v61 = vmul.f32 1.442695, %v3369_v35 }
 0x5f2   : > { %12258 = vmatmul.msk.bf16.vlgmr.msrb.gmra.mxu2 %vm1367_vm2, %v3605_v59  ;;  %v3609_v54 = vpack.c.bf16 %v3577_v31, %v3577_v31  ;;  %v3227_v59 = vpop.f32.mrf.mxu0 }
 0x5f3   : > { %13162 = vpow2.f32 %v3429_v61  ;;  %3978 = vmatpush.bf16.msrb.mxu2 %v3969_v6  ;;  %v15449_v6 = vpop.f32.mrf.mxu3 }
 0x5f4   : > { %3300 = vmax.xlane.f32.xlu1 %v3299_v16 }
 0x5f6   : > { %v3253_v5 = vpop.xlane.xlu0 %3252 }
 0x5f7   : > { %v3343_v51 = vsub.f32 %v15330_v18, %v3253_v5  ;;  %v15440_v49 = vpop.f32.mrf.mxu1  ;;  %v19528_v18 = vld [vmem:[#allocation48_spill] sm:$0xff] }
 0x5f9   : > { %v15444_v10 = vpop.eup %13162  ;;  %v3377_v44 = vmul.f32 1.442695, %v3343_v51 }
 0x5fa   : > { %12235 = vmatmul.msk.bf16.vlgmr.msrb.gmra.mxu1 %vm452_vm0, %v2718_v41  ;;  %v3521_v61 = vsel %vm1367_vm2, %v15444_v10, 0.0  ;;  %v15462_v41 = vadd.f32 %v15251_v53, %v14373_v37  ;;  %v15477_v53 = vadd.f32 %v15272_v36, %v14373_v37  ;;  %v2722_v36 = vpack.c.bf16 %v15130_v15, %v15130_v15  ;;  %v19532_v15 = vld [vmem:[#allocation54_spill] sm:$0xff] }
 0x5fb   : > { %13164 = vpow2.f32 %v3377_v44  ;;  %3522 = vadd.xlane.f32.xlu0 %v3521_v61  ;;  %3079 = vmatpush.bf16.xpose.msrb.mxu1 %v19528_v18  ;;  %v15458_v51 = vpop.f32.mrf.mxu3 }
 0x5fc   : > { %13166 = vrcp.f32 %v3487_v25  ;;  %v3311_v61 = vsel %vm1367_vm2, %v15462_v41, -inf  ;;  %v3323_v60 = vsel %vm1367_vm2, %v15477_v53, -inf }
 0x5ff   : > { %v2763_v35 = vpop.f32.mrf.mxu1 }
 0x600   : > { %v19530_v35 = vld [vmem:[#allocation50_spill] sm:$0xff] }
 0x601   : > { %v15453_v16 = vpop.eup %13164 }
 0x602   : > { %12262 = vmatmul.msk.bf16.vlgmr.msra.gmra.mxu2 %vm1367_vm2, %v3609_v54  ;;  %v3443_v5 = vsel %vm1367_vm2, %v15453_v16, 0.0  ;;  %v13167_v44 = vpop.eup %13166 }
 0x603   : > { %3444 = vadd.xlane.f32.xlu0 %v3443_v5  ;;  %v15471_v31 = vpop.f32.mrf.mxu3  ;;  %v3581_v54 = vmul.f32 %v13167_v44, %v15321_v1  ;;  %v15483_v5 = vadd.f32 %v3225_v20, %v14373_v37 }
 0x604   : > { %19529 = vst [vmem:[#allocation93_spill] sm:$0xff] %v15471_v31 }
 0x605   : > { %v3613_v59 = vpack.c.bf16 %v3581_v54, %v3581_v54  ;;  %v3335_v44 = vsel %vm1367_vm2, %v15483_v5, -inf  ;;  %v19531_v54 = vld [vmem:[#allocation52_spill] sm:$0xff] }
 0x607   : > { %v15464_v46 = vpop.f32.mrf.mxu1 }
 0x60a   : > { %12237 = vmatmul.msk.bf16.vlgmr.msra.gmra.mxu1 %vm452_vm0, %v2720_v28 }
 0x60b   : > { %3312 = vmax.xlane.f32.xlu0 %v3311_v61  ;;  %3111 = vmatpush.bf16.xpose.msra.mxu1 %v19530_v35  ;;  %v2671_v28 = vpop.f32.mrf.mxu3 }
 0x60c   : > { %v3649_v61 = vpack.c.bf16 %v2671_v28, %v2671_v28  ;;  %v2724_v28 = vpack.c.bf16 %v15148_v4, %v15148_v4 }
 0x60e   : > { %v4045_v1 = vsel %vm1787_vm3, %v3649_v61, 0 }
 0x60f   : > { %v2795_v25 = vpop.f32.mrf.mxu1  ;;  %4054 = vmatpush.bf16.msra.mxu2 %v4045_v1  ;;  %v15504_v1 = vpop.f32.mrf.mxu2 }
 0x612   : > { %12266 = vmatmul.msk.bf16.vlgmr.msrb.gmra.mxu2 %vm1367_vm2, %v3613_v59 }
 0x613   : > { %3324 = vmax.xlane.f32.xlu0 %v3323_v60  ;;  %v15492_v25 = vpop.f32.mrf.mxu3 }
 0x617   : > { %v2825_v35 = vpop.f32.mrf.mxu1 }
 0x61a   : > { %12239 = vmatmul.msk.bf16.vlgmr.msrb.gmra.mxu1 %vm452_vm0, %v2722_v36 }
 0x61b   : > { %3336 = vmax.xlane.f32.xlu0 %v3335_v44  ;;  %3143 = vmatpush.bf16.xpose.msrb.mxu1 %v19531_v54  ;;  %v15494_v59 = vpop.f32.mrf.mxu3 }
 0x61f   : > { %v2827_v20 = vpop.f32.mrf.mxu1 }
 0x623   : > { %v15502_v61 = vpop.f32.mrf.mxu3 }
 0x624   : > { %19533 = vst [vmem:[#allocation94_spill] sm:$0xff] %v15502_v61  ;;  %v2726_v61 = vpack.c.bf16 %v15160_v27, %v15160_v27 }
 0x627   : > { %v15496_v60 = vpop.f32.mrf.mxu1 }
 0x62a   : > { %12241 = vmatmul.msk.bf16.vlgmr.msra.gmra.mxu1 %vm452_vm0, %v2724_v28 }
 0x62b   : > { %3175 = vmatpush.bf16.xpose.msra.mxu1 %v19532_v15  ;;  %v2681_v54 = vpop.f32.mrf.mxu3 }
 0x62c   : > { %v3653_v45 = vpack.c.bf16 %v2681_v54, %v2681_v54  ;;  %v19535_v54 = vld [vmem:[#allocation56_spill] sm:$0xff] }
 0x62e   : > { %v3499_v36 = vpop.xlane.xlu2 %3498  ;;  %v4121_v15 = vsel %vm1787_vm3, %v3653_v45, 0 }
 0x62f   : > { %13168 = vrcp.f32 %v3499_v36  ;;  %v2859_v44 = vpop.f32.mrf.mxu1  ;;  %4130 = vmatpush.bf16.msrb.mxu2 %v4121_v15  ;;  %v2728_v15 = vpack.c.bf16 %v15176_v34, %v15176_v34 }
 0x635   : > { %v13169_v20 = vpop.eup %13168  ;;  %v15506_v18 = vpop.f32.mrf.mxu2 }
 0x636   : > { %19534 = vst [vmem:[#allocation95_spill] sm:$0xff] %v15506_v18  ;;  %v3585_v22 = vmul.f32 %v13169_v20, %v15370_v14  ;;  %v3265_v56 = vpop.xlane.xlu2 %3264  ;;  %v15516_v14 = vpop.f32.mrf.mxu3  ;;  %v19536_v20 = vld [vmem:[#allocation60_spill] sm:$0xff] }
 0x637   : > { %v3347_v4 = vsub.f32 %v15380_v50, %v3265_v56  ;;  %v2889_v28 = vpop.f32.mrf.mxu1 }
 0x638   : > { %v3617_v31 = vpack.c.bf16 %v3585_v22, %v3585_v22  ;;  %v15526_v22 = vadd.f32 %v15440_v49, %v14373_v37 }
 0x639   : > { %v3385_v36 = vmul.f32 1.442695, %v3347_v4 }
 0x63a   : > { %12243 = vmatmul.msk.bf16.vlgmr.msrb.gmra.mxu1 %vm452_vm0, %v2726_v61  ;;  %12270 = vmatmul.msk.bf16.vlgmr.msra.gmra.mxu2 %vm1367_vm2, %v3617_v31  ;;  %v3248_v61 = vsel %vm1367_vm2, %v15526_v22, -inf }
 0x63b   : > { %13170 = vpow2.f32 %v3385_v36  ;;  %3207 = vmatpush.bf16.xpose.msrb.mxu1 %v19535_v54  ;;  %v15539_v36 = vadd.f32 %v2825_v35, %v14373_v37  ;;  %v2730_v35 = vpack.c.bf16 %v15298_v7, %v15298_v7 }
 0x63d   : > { %v3678_v44 = vpop.f32.mrf.mxu2 }
 0x63e   : > { %v15522_v27 = vpop.f32.mrf.mxu3  ;;  %v3260_v44 = vsel %vm1367_vm2, %v15539_v36, -inf }
 0x63f   : > { %v2891_v56 = vpop.f32.mrf.mxu1 }
 0x641   : > { %v15518_v50 = vpop.eup %13170 }
 0x642   : > { %v3455_v45 = vsel %vm1367_vm2, %v15518_v50, 0.0 }
 0x643   : > { %3456 = vadd.xlane.f32.xlu2 %v3455_v45  ;;  %v3632_v45 = vpack.c.bf16 %v15336_v30, %v15336_v30 }
 0x646   : > { %v15536_v4 = vpop.f32.mrf.mxu3 }
 0x647   : > { %v15528_v31 = vpop.f32.mrf.mxu1  ;;  %19537 = vst [vmem:[#allocation96_spill] sm:$0xff] %v15536_v4 }
 0x64a   : > { %12245 = vmatmul.msk.bf16.vlgmr.msra.gmra.mxu1 %vm452_vm0, %v2728_v15  ;;  %v15546_v15 = vadd.f32 %v2889_v28, %v14373_v37  ;;  %v3289_v28 = vpop.xlane.xlu2 %3288 }
 0x64b   : > { %3249 = vmax.xlane.f32.xlu2 %v3248_v61  ;;  %3239 = vmatpush.bf16.xpose.msra.mxu1 %v19536_v20 }
 0x64e   : > { %v2691_v56 = vpop.f32.mrf.mxu3 }
 0x64f   : > { %v2923_v49 = vpop.f32.mrf.mxu1  ;;  %v3657_v34 = vpack.c.bf16 %v2691_v56, %v2691_v56 }
 0x650   : > { %v3722_v49 = vsel %vm1787_vm3, %v3632_v45, 0  ;;  %v3636_v45 = vpack.c.bf16 %v15352_v23, %v15352_v23 }
 0x651   : > { %v4197_v54 = vsel %vm1787_vm3, %v3657_v34, 0 }
 0x652   : > { %4206 = vmatpush.bf16.msra.mxu2 %v4197_v54 }
 0x653   : > { %3261 = vmax.xlane.f32.xlu2 %v3260_v44  ;;  %v3272_v44 = vsel %vm1367_vm2, %v15546_v15, -inf }
 0x657   : > { %v3511_v61 = vpop.xlane.xlu1 %3510  ;;  %v2953_v20 = vpop.f32.mrf.mxu1 }
 0x658   : > { %13172 = vrcp.f32 %v3511_v61  ;;  %v3355_v61 = vsub.f32 %v15388_v29, %v3289_v28 }
 0x65a   : > { %12247 = vmatmul.msk.bf16.vlgmr.msrb.gmra.mxu1 %vm452_vm0, %v2730_v35 }
 0x65b   : > { %3731 = vmatpush.bf16.msrb.mxu1 %v3722_v49  ;;  %3273 = vmax.xlane.f32.xlu2 %v3272_v44  ;;  %v3401_v49 = vmul.f32 1.442695, %v3355_v61 }
 0x65e   : > { %v13173_v30 = vpop.eup %13172  ;;  %v15555_v56 = vpop.f32.mrf.mxu2 }
 0x65f   : > { %19538 = vst [vmem:[#allocation97_spill] sm:$0xff] %v15555_v56  ;;  %v3589_v34 = vmul.f32 %v13173_v30, %v15411_v9  ;;  %v3277_v18 = vpop.xlane.xlu1 %3276  ;;  %v2955_v4 = vpop.f32.mrf.mxu1  ;;  %v2732_v9 = vpack.c.bf16 %v15504_v1, %v15504_v1 }
 0x660   : > { %v3351_v7 = vsub.f32 %v15419_v38, %v3277_v18  ;;  %v3798_v38 = vsel %vm1787_vm3, %v3636_v45, 0 }
 0x661   : > { %v3621_v54 = vpack.c.bf16 %v3589_v34, %v3589_v34 }
 0x662   : > { %v3393_v35 = vmul.f32 1.442695, %v3351_v7 }
 0x663   : > { %12274 = vmatmul.msk.bf16.vlgmr.msrb.gmra.mxu2 %vm1367_vm2, %v3621_v54 }
 0x664   : > { %13174 = vpow2.f32 %v3393_v35 }
 0x665   : > { %13176 = vpow2.f32 %v3401_v49 }
 0x666   : > { %v3754_v44 = vpop.f32.mrf.mxu2 }
 0x667   : > { %v3301_v58 = vpop.xlane.xlu1 %3300  ;;  %v15563_v56 = vpop.f32.mrf.mxu1 }
 0x668   : > { %v3359_v29 = vsub.f32 %v15432_v3, %v3301_v58 }
 0x66a   : > { %v15567_v4 = vpop.eup %13174  ;;  %12249 = vmatmul.msk.bf16.vlgmr.msra.gmra.mxu1 %vm452_vm0, %v2732_v9  ;;  %v3409_v18 = vmul.f32 1.442695, %v3359_v29  ;;  %v3639_v29 = vpack.c.bf16 %v15376_v43, %v15376_v43 }
 0x66b   : > { %3807 = vmatpush.bf16.msra.mxu1 %v3798_v38  ;;  %v3467_v23 = vsel %vm1367_vm2, %v15567_v4, 0.0  ;;  %v15574_v34 = vpop.eup %13176 }
 0x66c   : > { %3468 = vadd.xlane.f32.xlu1 %v3467_v23  ;;  %v3479_v1 = vsel %vm1367_vm2, %v15574_v34, 0.0  ;;  %v15590_v23 = vadd.f32 %v2953_v20, %v14373_v37 }
 0x66e   : > { %v3523_v30 = vpop.xlane.xlu0 %3522  ;;  %v3284_v43 = vsel %vm1367_vm2, %v15590_v23, -inf }
 0x66f   : > { %13178 = vrcp.f32 %v3523_v30  ;;  %v2987_v28 = vpop.f32.mrf.mxu1 }
 0x670   : > { %13180 = vpow2.f32 %v3409_v18  ;;  %v12893_v28 = vld [vmem:[#allocation5 + $0x88] sm:$0xff] }
 0x671   : > { %4352 = vmatpush.bf16.msrb.mxu2 %v12893_v28  ;;  %v12890_v28 = vld [vmem:[#allocation5 + $0x70] sm:$0xff] }
 0x674   : > { %3480 = vadd.xlane.f32.xlu1 %v3479_v1 }
 0x675   : > { %v13179_v58 = vpop.eup %13178  ;;  %v15578_v3 = vpop.f32.mrf.mxu2 }
 0x676   : > { %v3593_v7 = vmul.f32 %v13179_v58, %v15444_v10  ;;  %v3445_v54 = vpop.xlane.xlu0 %3444  ;;  %v15581_v35 = vpop.eup %13180 }
 0x677   : > { %13182 = vrcp.f32 %v3445_v54  ;;  %v3017_v61 = vpop.f32.mrf.mxu1  ;;  %v3491_v49 = vsel %vm1367_vm2, %v15581_v35, 0.0 }
 0x678   : > { %v3625_v45 = vpack.c.bf16 %v3593_v7, %v3593_v7  ;;  %v3855_v7 = vsel %vm1787_vm3, %v3639_v29, 0 }
 0x67a   : > { %12278 = vmatmul.msk.bf16.vlgmr.msra.gmra.mxu2 %vm1367_vm2, %v3625_v45 }
 0x67c   : > { %3492 = vadd.xlane.f32.xlu1 %v3491_v49  ;;  %v12892_v49 = vld [vmem:[#allocation5 + $0x80] sm:$0xff] }
 0x67d   : > { %v13183_v44 = vpop.eup %13182  ;;  %v3830_v9 = vpop.f32.mrf.mxu2  ;;  %4353 = vmatpush.bf16.msrb.mxu2 %v12892_v49 }
 0x67e   : > { %v3567_v38 = vmul.f32 %v13183_v44, %v15453_v16  ;;  %v3313_v10 = vpop.xlane.xlu0 %3312 }
 0x67f   : > { %v3363_v18 = vsub.f32 %v15462_v41, %v3313_v10  ;;  %v3019_v30 = vpop.f32.mrf.mxu1  ;;  %v15600_v41 = vadd.f32 %v3017_v61, %v14373_v37 }
 0x680   : > { %v3599_v1 = vpack.c.bf16 %v3567_v38, %v3567_v38  ;;  %v12891_v38 = vld [vmem:[#allocation5 + $0x78] sm:$0xff] }
 0x681   : > { %v3417_v58 = vmul.f32 1.442695, %v3363_v18  ;;  %v3296_v10 = vsel %vm1367_vm2, %v15600_v41, -inf  ;;  %4354 = vmatpush.bf16.msrb.mxu2 %v12891_v38 }
 0x682   : > { %12252 = vmatmul.msk.bf16.vlgmr.msrb.gmra.mxu0 %vm1367_vm2, %v3599_v1 }
 0x683   : > { %13184 = vpow2.f32 %v3417_v58  ;;  %3864 = vmatpush.bf16.msrb.mxu0 %v3855_v7 }
 0x684   : > { %3285 = vmax.xlane.f32.xlu1 %v3284_v43  ;;  %v12889_v43 = vld [vmem:[#allocation5 + $0x68] sm:$0xff] }
 0x685   : > { %v15597_v16 = vpop.f32.mrf.mxu2  ;;  %4355 = vmatpush.bf16.msrb.mxu2 %v12890_v28 }
 0x686   : > { %v3325_v20 = vpop.xlane.xlu0 %3324 }
 0x687   : > { %v3367_v54 = vsub.f32 %v15477_v53, %v3325_v20  ;;  %v15603_v45 = vpop.f32.mrf.mxu1 }
 0x689   : > { %v15605_v44 = vpop.eup %13184  ;;  %v3425_v9 = vmul.f32 1.442695, %v3367_v54  ;;  %4356 = vmatpush.bf16.msrb.mxu2 %v12889_v43 }
 0x68a   : > { %v3503_v29 = vsel %vm1367_vm2, %v15605_v44, 0.0 }
 0x68b   : > { %13186 = vpow2.f32 %v3425_v9  ;;  %3504 = vadd.xlane.f32.xlu0 %v3503_v29 }
 0x68c   : > { %3297 = vmax.xlane.f32.xlu1 %v3296_v10 }
 0x68d   : > { %v3906_v61 = vpop.f32.mrf.mxu2 }
 0x68e   : > { %v3337_v18 = vpop.xlane.xlu0 %3336  ;;  %v12888_v61 = vld [vmem:[#allocation5 + $0x60] sm:$0xff] }
 0x68f   : > { %v3371_v53 = vsub.f32 %v15483_v5, %v3337_v18  ;;  %v3051_v30 = vpop.f32.mrf.mxu1  ;;  %4357 = vmatpush.bf16.msrb.mxu2 %v12888_v61 }
 0x691   : > { %v15612_v1 = vpop.eup %13186  ;;  %v3433_v58 = vmul.f32 1.442695, %v3371_v53 }
 0x692   : > { %v3515_v7 = vsel %vm1367_vm2, %v15612_v1, 0.0  ;;  %12306 = vmatmul.msk.bf16.vlgmr.msrb.gmra.mxu2 %vm452_vm0, %v14090_v12 }
 0x693   : > { %13188 = vpow2.f32 %v3433_v58  ;;  %3516 = vadd.xlane.f32.xlu0 %v3515_v7 }
 0x695   : > { %v15616_v20 = vpop.f32.mrf.mxu2 }
 0x696   : > { %19539 = vst [vmem:[#allocation98_spill] sm:$0xff] %v15616_v20 }
 0x697   : > { %v3081_v54 = vpop.f32.mrf.mxu1 }
 0x698   : > { %v15619_v49 = vadd.f32 %v3081_v54, %v14373_v37 }
 0x699   : > { %v15621_v5 = vpop.eup %13188 }
 0x69a   : > { %v3527_v9 = vsel %vm1367_vm2, %v15621_v5, 0.0  ;;  %v3308_v29 = vsel %vm1367_vm2, %v15619_v49, -inf }
 0x69b   : > { %3528 = vadd.xlane.f32.xlu0 %v3527_v9  ;;  %3309 = vmax.xlane.f32.xlu1 %v3308_v29  ;;  %v3643_v9 = vpack.c.bf16 %v15409_v13, %v15409_v13 }
 0x69d   : > { %v3982_v38 = vpop.f32.mrf.mxu2 }
 0x69f   : > { %v3083_v10 = vpop.f32.mrf.mxu1 }
 0x6a2   : > { %12307 = vmatmul.msk.bf16.gmra.mxu2 %vm452_vm0, %v14096_v19 }
 0x6a7   : > { %v15629_v18 = vpop.f32.mrf.mxu1 }
 0x6af   : > { %v3115_v53 = vpop.f32.mrf.mxu1 }
 0x6b2   : > { %12308 = vmatmul.msk.bf16.gmra.mxu2 %vm452_vm0, %v14108_v26 }
 0x6b6   : > { %v3457_v30 = vpop.xlane.xlu2 %3456 }
 0x6b7   : > { %13190 = vrcp.f32 %v3457_v30  ;;  %v3145_v28 = vpop.f32.mrf.mxu1 }
 0x6b8   : > { %v15634_v58 = vadd.f32 %v3145_v28, %v14373_v37  ;;  %v3931_v28 = vsel %vm1787_vm3, %v3643_v9, 0 }
 0x6ba   : > { %v3320_v7 = vsel %vm1367_vm2, %v15634_v58, -inf }
 0x6bb   : > { %3321 = vmax.xlane.f32.xlu0 %v3320_v7 }
 0x6bd   : > { %v13191_v43 = vpop.eup %13190  ;;  %v15638_v54 = vpop.f32.mrf.mxu2 }
 0x6be   : > { %19540 = vst [vmem:[#allocation99_spill] sm:$0xff] %v15638_v54  ;;  %v3571_v29 = vmul.f32 %v13191_v43, %v15518_v50  ;;  %v3250_v38 = vpop.xlane.xlu2 %3249 }
 0x6bf   : > { %v3342_v10 = vsub.f32 %v15526_v22, %v3250_v38  ;;  %v3147_v61 = vpop.f32.mrf.mxu1 }
 0x6c0   : > { %v3603_v53 = vpack.c.bf16 %v3571_v29, %v3571_v29 }
 0x6c1   : > { %v3375_v30 = vmul.f32 1.442695, %v3342_v10 }
 0x6c2   : > { %12256 = vmatmul.msk.bf16.vlgmr.msra.gmra.mxu0 %vm1367_vm2, %v3603_v53  ;;  %12309 = vmatmul.msk.bf16.gmra.mxu2 %vm452_vm0, %v14120_v33 }
 0x6c3   : > { %13192 = vpow2.f32 %v3375_v30  ;;  %3940 = vmatpush.bf16.msra.mxu0 %v3931_v28 }
 0x6c5   : > { %v4058_v7 = vpop.f32.mrf.mxu2 }
 0x6c6   : > { %v3262_v54 = vpop.xlane.xlu2 %3261 }
 0x6c7   : > { %v3346_v13 = vsub.f32 %v15539_v36, %v3262_v54  ;;  %v15649_v50 = vpop.f32.mrf.mxu1 }
 0x6c9   : > { %v15651_v43 = vpop.eup %13192  ;;  %v3383_v22 = vmul.f32 1.442695, %v3346_v13 }
 0x6ca   : > { %v3440_v29 = vsel %vm1367_vm2, %v15651_v43, 0.0 }
 0x6cb   : > { %13194 = vpow2.f32 %v3383_v22  ;;  %3441 = vadd.xlane.f32.xlu2 %v3440_v29 }
 0x6ce   : > { %v3274_v9 = vpop.xlane.xlu2 %3273 }
 0x6cf   : > { %v3350_v38 = vsub.f32 %v15546_v15, %v3274_v9  ;;  %v3179_v10 = vpop.f32.mrf.mxu1  ;;  %v15675_v9 = vadd.f32 %v15464_v46, %v14373_v37 }
 0x6d0   : > { %v3647_v10 = vpack.c.bf16 %v15458_v51, %v15458_v51 }
 0x6d1   : > { %v15656_v61 = vpop.eup %13194  ;;  %v3391_v53 = vmul.f32 1.442695, %v3350_v38 }
 0x6d2   : > { %v3452_v36 = vsel %vm1367_vm2, %v15656_v61, 0.0  ;;  %12310 = vmatmul.msk.bf16.gmra.mxu2 %vm452_vm0, %v14132_v40 }
 0x6d3   : > { %13196 = vpow2.f32 %v3391_v53  ;;  %3453 = vadd.xlane.f32.xlu2 %v3452_v36 }
 0x6d7   : > { %v3209_v54 = vpop.f32.mrf.mxu1 }
 0x6d8   : > { %v15667_v15 = vadd.f32 %v3209_v54, %v14373_v37 }
 0x6d9   : > { %v15662_v30 = vpop.eup %13196 }
 0x6da   : > { %v3464_v28 = vsel %vm1367_vm2, %v15662_v30, 0.0  ;;  %v3332_v22 = vsel %vm1367_vm2, %v15667_v15, -inf }
 0x6db   : > { %3465 = vadd.xlane.f32.xlu2 %v3464_v28 }
 0x6df   : > { %v3469_v7 = vpop.xlane.xlu1 %3468  ;;  %v3211_v13 = vpop.f32.mrf.mxu1 }
 0x6e0   : > { %13198 = vrcp.f32 %v3469_v7  ;;  %v3254_v7 = vsel %vm1367_vm2, %v15675_v9, -inf  ;;  %v4007_v13 = vsel %vm1787_vm3, %v3647_v10, 0 }
 0x6e2   : > { %12311 = vmatmul.msk.bf16.gmra.mxu2 %vm452_vm0, %v14144_v47 }
 0x6e3   : > { %3333 = vmax.xlane.f32.xlu2 %v3332_v22 }
 0x6e6   : > { %v13199_v29 = vpop.eup %13198  ;;  %v15677_v38 = vpop.f32.mrf.mxu2 }
 0x6e7   : > { %19541 = vst [vmem:[#allocation100_spill] sm:$0xff] %v15677_v38  ;;  %v3575_v53 = vmul.f32 %v13199_v29, %v15567_v4  ;;  %v3481_v36 = vpop.xlane.xlu1 %3480  ;;  %v15682_v54 = vpop.f32.mrf.mxu1  ;;  %v3651_v29 = vpack.c.bf16 %v15494_v59, %v15494_v59 }
 0x6e8   : > { %13200 = vrcp.f32 %v3481_v36 }
 0x6e9   : > { %v3607_v28 = vpack.c.bf16 %v3575_v53, %v3575_v53  ;;  %v4083_v36 = vsel %vm1787_vm3, %v3651_v29, 0 }
 0x6eb   : > { %12260 = vmatmul.msk.bf16.vlgmr.msrb.gmra.mxu0 %vm1367_vm2, %v3607_v28  ;;  %3255 = vmax.xlane.f32.xlu2 %v3254_v7 }
 0x6ec   : > { %4016 = vmatpush.bf16.msrb.mxu0 %v4007_v13 }
 0x6ee   : > { %v4134_v46 = vpop.f32.mrf.mxu2  ;;  %v13201_v51 = vpop.eup %13200 }
 0x6ef   : > { %v3493_v22 = vpop.xlane.xlu1 %3492  ;;  %v3243_v38 = vpop.f32.mrf.mxu1  ;;  %v3579_v4 = vmul.f32 %v13201_v51, %v15574_v34 }
 0x6f0   : > { %13202 = vrcp.f32 %v3493_v22 }
 0x6f1   : > { %v3611_v20 = vpack.c.bf16 %v3579_v4, %v3579_v4  ;;  %v3655_v4 = vpack.c.bf16 %v15522_v27, %v15522_v27 }
 0x6f2   : > { %12312 = vmatmul.msk.bf16.gmra.mxu2 %vm452_vm0, %v14160_v55 }
 0x6f6   : > { %v13203_v59 = vpop.eup %13202 }
 0x6f7   : > { %v3286_v53 = vpop.xlane.xlu1 %3285 }
 0x6f8   : > { %v3354_v10 = vsub.f32 %v15590_v23, %v3286_v53 }
 0x6fa   : > { %v3399_v28 = vmul.f32 1.442695, %v3354_v10 }
 0x6fb   : > { %12264 = vmatmul.msk.bf16.vlgmr.msra.gmra.mxu0 %vm1367_vm2, %v3611_v20  ;;  %v3583_v20 = vmul.f32 %v13203_v59, %v15581_v35 }
 0x6fc   : > { %13204 = vpow2.f32 %v3399_v28  ;;  %4092 = vmatpush.bf16.msra.mxu0 %v4083_v36  ;;  %v15712_v28 = vpop.f32.mrf.mxu3  ;;  %v4159_v36 = vsel %vm1787_vm3, %v3655_v4, 0 }
 0x6fd   : > { %v15696_v38 = vpop.f32.mrf.mxu2 }
 0x6fe   : > { %v3505_v53 = vpop.xlane.xlu0 %3504 }
 0x6ff   : > { %v3298_v34 = vpop.xlane.xlu1 %3297  ;;  %v15698_v7 = vpop.f32.mrf.mxu0 }
 0x700   : > { %v3358_v13 = vsub.f32 %v15600_v41, %v3298_v34  ;;  %v3615_v41 = vpack.c.bf16 %v3583_v20, %v3583_v20 }
 0x702   : > { %v15701_v46 = vpop.eup %13204  ;;  %v3407_v23 = vmul.f32 1.442695, %v3358_v13  ;;  %12313 = vmatmul.msk.bf16.gmra.mxu2 %vm452_vm0, %v14180_v0 }
 0x703   : > { %v3476_v51 = vsel %vm1367_vm2, %v15701_v46, 0.0 }
 0x704   : > { %13206 = vpow2.f32 %v3407_v23  ;;  %3477 = vadd.xlane.f32.xlu1 %v3476_v51  ;;  %v2696_v23 = vpop.f32.mrf.mxu3 }
 0x705   : > { %v4210_v22 = vpop.f32.mrf.mxu2  ;;  %13208 = vrcp.f32 %v3505_v53  ;;  %v3659_v20 = vpack.c.bf16 %v2696_v23, %v2696_v23 }
 0x707   : > { %v3716_v29 = vpop.f32.mrf.mxu0 }
 0x708   : > { %v3517_v29 = vpop.xlane.xlu0 %3516 }
 0x70a   : > { %v15710_v10 = vpop.eup %13206 }
 0x70b   : > { %12268 = vmatmul.msk.bf16.vlgmr.msrb.gmra.mxu0 %vm1367_vm2, %v3615_v41  ;;  %v3488_v35 = vsel %vm1367_vm2, %v15710_v10, 0.0  ;;  %v13209_v59 = vpop.eup %13208  ;;  %v4235_v41 = vsel %vm1787_vm3, %v3659_v20, 0 }
 0x70c   : > { %4168 = vmatpush.bf16.msrb.mxu0 %v4159_v36  ;;  %3489 = vadd.xlane.f32.xlu0 %v3488_v35  ;;  %v3587_v51 = vmul.f32 %v13209_v59, %v15605_v44  ;;  %v15730_v44 = vadd.f32 %v15496_v60, %v14373_v37 }
 0x70e   : > { %v3310_v34 = vpop.xlane.xlu1 %3309  ;;  %v3619_v4 = vpack.c.bf16 %v3587_v51, %v3587_v51  ;;  %v3266_v36 = vsel %vm1367_vm2, %v15730_v44, -inf }
 0x70f   : > { %v3362_v27 = vsub.f32 %v15619_v49, %v3310_v34  ;;  %v15739_v34 = vadd.f32 %v15563_v56, %v14373_v37 }
 0x711   : > { %v3415_v13 = vmul.f32 1.442695, %v3362_v27  ;;  %v3529_v27 = vpop.xlane.xlu0 %3528  ;;  %v3290_v60 = vsel %vm1367_vm2, %v15739_v34, -inf }
 0x712   : > { %12314 = vmatmul.msk.bf16.gmra.mxu2 %vm452_vm0, %v14196_v8 }
 0x713   : > { %13210 = vpow2.f32 %v3415_v13 }
 0x714   : > { %13212 = vrcp.f32 %v3517_v29 }
 0x715   : > { %v4359_v13 = vpop.f32.mrf.mxu2  ;;  %13214 = vrcp.f32 %v3529_v27 }
 0x719   : > { %v15722_v22 = vpop.eup %13210 }
 0x71a   : > { %v3500_v53 = vsel %vm1367_vm2, %v15722_v22, 0.0  ;;  %v13213_v49 = vpop.eup %13212 }
 0x71b   : > { %12272 = vmatmul.msk.bf16.vlgmr.msra.gmra.mxu0 %vm1367_vm2, %v3619_v4  ;;  %3501 = vadd.xlane.f32.xlu1 %v3500_v53  ;;  %v3591_v35 = vmul.f32 %v13213_v49, %v15612_v1  ;;  %v13215_v56 = vpop.eup %13214 }
 0x71c   : > { %4244 = vmatpush.bf16.msra.mxu0 %v4235_v41  ;;  %v3595_v4 = vmul.f32 %v13215_v56, %v15621_v5 }
 0x71d   : > { %v3623_v59 = vpack.c.bf16 %v3591_v35, %v3591_v35  ;;  %v15746_v51 = vpop.f32.mrf.mxu2 }
 0x71e   : > { %v3627_v53 = vpack.c.bf16 %v3595_v4, %v3595_v4 }
 0x722   : > { %12315 = vmatmul.msk.bf16.gmra.mxu2 %vm452_vm0, %v14220_v24 }
 0x723   : > { %3267 = vmax.xlane.f32.xlu1 %v3266_v36 }
 0x725   : > { %v4364_v29 = vpop.f32.mrf.mxu2 }
 0x72b   : > { %12276 = vmatmul.msk.bf16.vlgmr.msrb.gmra.mxu0 %vm1367_vm2, %v3623_v59  ;;  %3291 = vmax.xlane.f32.xlu1 %v3290_v60  ;;  %v3638_v60 = vpack.c.bf16 %v15366_v21, %v15366_v21 }
 0x72c   : > { %4619 = vmatpush.bf16.xpose.msrb.mxu0 %v14149_v48 }
 0x72d   : > { %v15763_v35 = vpop.f32.mrf.mxu2 }
 0x72e   : > { %v3322_v1 = vpop.xlane.xlu0 %3321 }
 0x72f   : > { %v3366_v23 = vsub.f32 %v15634_v58, %v3322_v1  ;;  %v15759_v58 = vadd.f32 %v15528_v31, %v14373_v37 }
 0x731   : > { %v3423_v20 = vmul.f32 1.442695, %v3366_v23  ;;  %v3278_v27 = vsel %vm1367_vm2, %v15759_v58, -inf  ;;  %v15774_v23 = vadd.f32 %v15603_v45, %v14373_v37 }
 0x732   : > { %12316 = vmatmul.msk.bf16.gmra.mxu2 %vm452_vm0, %v14244_v42 }
 0x733   : > { %13216 = vpow2.f32 %v3423_v20  ;;  %v4577_v20 = vpack.c.bf16 %v4359_v13, %v4359_v13  ;;  %v3302_v21 = vsel %vm1367_vm2, %v15774_v23, -inf }
 0x739   : > { %v15751_v41 = vpop.eup %13216 }
 0x73a   : > { %v3512_v49 = vsel %vm1367_vm2, %v15751_v41, 0.0 }
 0x73b   : > { %12280 = vmatmul.msk.bf16.vlgmr.msra.gmra.mxu0 %vm1367_vm2, %v3627_v53  ;;  %3513 = vadd.xlane.f32.xlu0 %v3512_v49  ;;  %v4369_v53 = vpop.f32.mrf.mxu2  ;;  %v3836_v49 = vsel %vm1787_vm3, %v3638_v60, 0  ;;  %v4579_v60 = vpack.c.bf16 %v4364_v29, %v4364_v29 }
 0x73c   : > { %4651 = vmatpush.bf16.xpose.msra.mxu0 %v14177_v63 }
 0x73e   : > { %v3442_v5 = vpop.xlane.xlu2 %3441 }
 0x73f   : > { %13218 = vrcp.f32 %v3442_v5  ;;  %v15761_v36 = vpop.f32.mrf.mxu0 }
 0x740   : > { %19542 = vst [vmem:[#allocation101_spill] sm:$0xff] %v15761_v36 }
 0x742   : > { %12317 = vmatmul.msk.bf16.gmra.mxu2 %vm452_vm0, %v14268_v2 }
 0x743   : > { %3279 = vmax.xlane.f32.xlu0 %v3278_v27  ;;  %v15782_v13 = vpop.f32.mrf.mxu2  ;;  %v3642_v27 = vpack.c.bf16 %v15399_v62, %v15399_v62 }
 0x745   : > { %v13219_v59 = vpop.eup %13218 }
 0x746   : > { %v3566_v31 = vmul.f32 %v13219_v59, %v15651_v43  ;;  %v3454_v1 = vpop.xlane.xlu2 %3453 }
 0x747   : > { %v3792_v56 = vpop.f32.mrf.mxu0  ;;  %13220 = vrcp.f32 %v3454_v1 }
 0x748   : > { %v3598_v4 = vpack.c.bf16 %v3566_v31, %v3566_v31  ;;  %v3912_v56 = vsel %vm1787_vm3, %v3642_v27, 0 }
 0x74a   : > { %12251 = vmatmul.msk.bf16.vlgmr.msrb.gmra.mxu3 %vm1367_vm2, %v3598_v4  ;;  %v19543_v4 = vld [vmem:[#allocation28_spill] sm:$0xff] }
 0x74b   : > { %3845 = vmatpush.bf16.msrb.mxu3 %v3836_v49  ;;  %12362 = vmatmul.msk.bf16.vlgmr.msrb.gmra.mxu0 %vm452_vm0, %v4577_v20 }
 0x74c   : > { %3303 = vmax.xlane.f32.xlu0 %v3302_v21  ;;  %4683 = vmatpush.bf16.xpose.msrb.mxu0 %v14200_v11 }
 0x74d   : > { %v13221_v43 = vpop.eup %13220 }
 0x74e   : > { %v3466_v45 = vpop.xlane.xlu2 %3465  ;;  %v3570_v5 = vmul.f32 %v13221_v43, %v15656_v61  ;;  %v4374_v61 = vpop.f32.mrf.mxu2 }
 0x74f   : > { %13222 = vrcp.f32 %v3466_v45 }
 0x750   : > { %v3602_v1 = vpack.c.bf16 %v3570_v5, %v3570_v5  ;;  %v3646_v5 = vpack.c.bf16 %v15449_v6, %v15449_v6  ;;  %v19545_v6 = vld [vmem:[#allocation31_spill] sm:$0xff] }
 0x752   : > { %12318 = vmatmul.msk.bf16.gmra.mxu2 %vm452_vm0, %v19473_v39 }
 0x755   : > { %v13223_v29 = vpop.eup %13222 }
 0x756   : > { %v3334_v59 = vpop.xlane.xlu2 %3333  ;;  %v3574_v43 = vmul.f32 %v13223_v29, %v15662_v30  ;;  %v15804_v27 = vpop.f32.mrf.mxu2 }
 0x757   : > { %v3370_v31 = vsub.f32 %v15667_v15, %v3334_v59 }
 0x758   : > { %v3606_v59 = vpack.c.bf16 %v3574_v43, %v3574_v43 }
 0x759   : > { %v3431_v20 = vmul.f32 1.442695, %v3370_v31 }
 0x75a   : > { %12255 = vmatmul.msk.bf16.vlgmr.msra.gmra.mxu3 %vm1367_vm2, %v3602_v1  ;;  %v3988_v1 = vsel %vm1787_vm3, %v3646_v5, 0  ;;  %v3650_v5 = vpack.c.bf16 %v15492_v25, %v15492_v25  ;;  %v19549_v25 = vld [vmem:[#allocation37_spill] sm:$0xff] }
 0x75b   : > { %13224 = vpow2.f32 %v3431_v20  ;;  %3921 = vmatpush.bf16.msra.mxu3 %v3912_v56  ;;  %12364 = vmatmul.msk.bf16.vlgmr.msra.gmra.mxu0 %vm452_vm0, %v4579_v60 }
 0x75c   : > { %4715 = vmatpush.bf16.xpose.msra.mxu0 %v19543_v4 }
 0x75e   : > { %v3256_v49 = vpop.xlane.xlu2 %3255  ;;  %v4379_v56 = vpop.f32.mrf.mxu2 }
 0x75f   : > { %v3344_v62 = vsub.f32 %v15675_v9, %v3256_v49  ;;  %v4581_v9 = vpack.c.bf16 %v4369_v53, %v4369_v53  ;;  %v15818_v53 = vadd.f32 %v15629_v18, %v14373_v37  ;;  %v19547_v18 = vld [vmem:[#allocation34_spill] sm:$0xff] }
 0x761   : > { %v15795_v21 = vpop.eup %13224  ;;  %v3379_v15 = vmul.f32 1.442695, %v3344_v62  ;;  %v3314_v49 = vsel %vm1367_vm2, %v15818_v53, -inf  ;;  %v4583_v62 = vpack.c.bf16 %v4374_v61, %v4374_v61  ;;  %v4064_v61 = vsel %vm1787_vm3, %v3650_v5, 0 }
 0x762   : > { %v3524_v45 = vsel %vm1367_vm2, %v15795_v21, 0.0  ;;  %12319 = vmatmul.msk.bf16.gmra.mxu2 %vm452_vm0, %v19476_v57  ;;  %v3654_v5 = vpack.c.bf16 %v15516_v14, %v15516_v14 }
 0x763   : > { %13226 = vpow2.f32 %v3379_v15  ;;  %3525 = vadd.xlane.f32.xlu2 %v3524_v45 }
 0x766   : > { %v15826_v45 = vpop.f32.mrf.mxu2 }
 0x768   : > { %v15806_v60 = vpop.f32.mrf.mxu0 }
 0x769   : > { %19544 = vst [vmem:[#allocation102_spill] sm:$0xff] %v15806_v60  ;;  %v15808_v31 = vpop.eup %13226 }
 0x76a   : > { %12259 = vmatmul.msk.bf16.vlgmr.msrb.gmra.mxu3 %vm1367_vm2, %v3606_v59  ;;  %v3446_v30 = vsel %vm1367_vm2, %v15808_v31, 0.0 }
 0x76b   : > { %3997 = vmatpush.bf16.msrb.mxu3 %v3988_v1  ;;  %12366 = vmatmul.msk.bf16.vlgmr.msrb.gmra.mxu0 %vm452_vm0, %v4581_v9 }
 0x76c   : > { %3447 = vadd.xlane.f32.xlu2 %v3446_v30  ;;  %4747 = vmatpush.bf16.xpose.msrb.mxu0 %v19545_v6 }
 0x770   : > { %v3868_v20 = vpop.f32.mrf.mxu0 }
 0x771   : > { %v4384_v20 = vpop.f32.mrf.mxu2 }
 0x772   : > { %12320 = vmatmul.msk.bf16.gmra.mxu2 %vm452_vm0, %v14340_v17 }
 0x774   : > { %3315 = vmax.xlane.f32.xlu2 %v3314_v49  ;;  %v4585_v49 = vpack.c.bf16 %v4379_v56, %v4379_v56  ;;  %v4140_v56 = vsel %vm1787_vm3, %v3654_v5, 0 }
 0x777   : > { %v3478_v29 = vpop.xlane.xlu1 %3477 }
 0x778   : > { %13228 = vrcp.f32 %v3478_v29  ;;  %v15824_v15 = vpop.f32.mrf.mxu0 }
 0x779   : > { %19546 = vst [vmem:[#allocation103_spill] sm:$0xff] %v15824_v15 }
 0x77b   : > { %12368 = vmatmul.msk.bf16.vlgmr.msra.gmra.mxu0 %vm452_vm0, %v4583_v62 }
 0x77c   : > { %4779 = vmatpush.bf16.xpose.msra.mxu0 %v19547_v18  ;;  %v3640_v18 = vpack.c.bf16 %v15384_v52, %v15384_v52 }
 0x77e   : > { %v13229_v43 = vpop.eup %13228 }
 0x77f   : > { %v3578_v9 = vmul.f32 %v13229_v43, %v15701_v46  ;;  %v3490_v30 = vpop.xlane.xlu0 %3489 }
 0x780   : > { %v3944_v59 = vpop.f32.mrf.mxu0  ;;  %13230 = vrcp.f32 %v3490_v30 }
 0x781   : > { %v3610_v1 = vpack.c.bf16 %v3578_v9, %v3578_v9  ;;  %v15842_v9 = vpop.f32.mrf.mxu2 }
 0x782   : > { %12321 = vmatmul.msk.bf16.gmra.mxu2 %vm452_vm0, %v14467_v32 }
 0x783   : > { %12263 = vmatmul.msk.bf16.vlgmr.msra.gmra.mxu3 %vm1367_vm2, %v3610_v1 }
 0x784   : > { %4073 = vmatpush.bf16.msra.mxu3 %v4064_v61  ;;  %v4587_v61 = vpack.c.bf16 %v4384_v20, %v4384_v20 }
 0x786   : > { %v13231_v29 = vpop.eup %13230 }
 0x787   : > { %v3582_v46 = vmul.f32 %v13231_v29, %v15710_v10 }
 0x788   : > { %v15837_v62 = vpop.f32.mrf.mxu0 }
 0x789   : > { %19548 = vst [vmem:[#allocation104_spill] sm:$0xff] %v15837_v62  ;;  %v3614_v1 = vpack.c.bf16 %v3582_v46, %v3582_v46  ;;  %v4389_v29 = vpop.f32.mrf.mxu2  ;;  %v19551_v46 = vld [vmem:[#allocation40_spill] sm:$0xff] }
 0x78b   : > { %12370 = vmatmul.msk.bf16.vlgmr.msrb.gmra.mxu0 %vm452_vm0, %v4585_v49 }
 0x78c   : > { %4811 = vmatpush.bf16.xpose.msrb.mxu0 %v19549_v25 }
 0x78e   : > { %v3502_v43 = vpop.xlane.xlu1 %3501 }
 0x78f   : > { %13232 = vrcp.f32 %v3502_v43 }
 0x790   : > { %v4020_v59 = vpop.f32.mrf.mxu0 }
 0x791   : > { %v3658_v59 = vpack.c.bf16 %v15712_v28, %v15712_v28  ;;  %v15869_v28 = vadd.f32 %v15649_v50, %v14373_v37 }
 0x793   : > { %12267 = vmatmul.msk.bf16.vlgmr.msrb.gmra.mxu3 %vm1367_vm2, %v3614_v1 }
 0x794   : > { %4149 = vmatpush.bf16.msrb.mxu3 %v4140_v56 }
 0x795   : > { %v13233_v14 = vpop.eup %13232 }
 0x796   : > { %v3268_v30 = vpop.xlane.xlu1 %3267  ;;  %v3586_v43 = vmul.f32 %v13233_v14, %v15722_v22  ;;  %v4216_v22 = vsel %vm1787_vm3, %v3658_v59, 0  ;;  %v19553_v59 = vld [vmem:[#allocation43_spill] sm:$0xff] }
 0x797   : > { %v3348_v10 = vsub.f32 %v15730_v44, %v3268_v30 }
 0x798   : > { %v15851_v49 = vpop.f32.mrf.mxu0  ;;  %v3618_v56 = vpack.c.bf16 %v3586_v43, %v3586_v43  ;;  %v3326_v43 = vsel %vm1367_vm2, %v15869_v28, -inf }
 0x799   : > { %19550 = vst [vmem:[#allocation105_spill] sm:$0xff] %v15851_v49  ;;  %v3387_v62 = vmul.f32 1.442695, %v3348_v10  ;;  %v15863_v10 = vpop.f32.mrf.mxu2 }
 0x79b   : > { %13234 = vpow2.f32 %v3387_v62  ;;  %12372 = vmatmul.msk.bf16.vlgmr.msra.gmra.mxu0 %vm452_vm0, %v4587_v61 }
 0x79c   : > { %4843 = vmatpush.bf16.xpose.msra.mxu0 %v19551_v46 }
 0x79e   : > { %v3292_v5 = vpop.xlane.xlu1 %3291 }
 0x79f   : > { %v3356_v20 = vsub.f32 %v15739_v34, %v3292_v5  ;;  %v4589_v34 = vpack.c.bf16 %v4389_v29, %v4389_v29 }
 0x7a0   : > { %v4096_v1 = vpop.f32.mrf.mxu0 }
 0x7a1   : > { %v15859_v44 = vpop.eup %13234  ;;  %v3403_v30 = vmul.f32 1.442695, %v3356_v20  ;;  %v4394_v20 = vpop.f32.mrf.mxu2 }
 0x7a2   : > { %v3458_v62 = vsel %vm1367_vm2, %v15859_v44, 0.0 }
 0x7a3   : > { %13236 = vpow2.f32 %v3403_v30  ;;  %12271 = vmatmul.msk.bf16.vlgmr.msra.gmra.mxu3 %vm1367_vm2, %v3618_v56  ;;  %3459 = vadd.xlane.f32.xlu1 %v3458_v62 }
 0x7a4   : > { %4225 = vmatpush.bf16.msra.mxu3 %v4216_v22 }
 0x7a8   : > { %v15871_v61 = vpop.f32.mrf.mxu0 }
 0x7a9   : > { %19552 = vst [vmem:[#allocation106_spill] sm:$0xff] %v15871_v61  ;;  %v15873_v14 = vpop.eup %13236  ;;  %v15881_v1 = vpop.f32.mrf.mxu2  ;;  %v4591_v61 = vpack.c.bf16 %v4394_v20, %v4394_v20 }
 0x7aa   : > { %v3482_v5 = vsel %vm1367_vm2, %v15873_v14, 0.0 }
 0x7ab   : > { %12374 = vmatmul.msk.bf16.vlgmr.msrb.gmra.mxu0 %vm452_vm0, %v4589_v34  ;;  %3327 = vmax.xlane.f32.xlu1 %v3326_v43  ;;  %v19555_v43 = vld [vmem:[#allocation45_spill] sm:$0xff] }
 0x7ac   : > { %3483 = vadd.xlane.f32.xlu2 %v3482_v5  ;;  %4875 = vmatpush.bf16.xpose.msrb.mxu0 %v19553_v59 }
 0x7ae   : > { %v3514_v50 = vpop.xlane.xlu0 %3513 }
 0x7af   : > { %13238 = vrcp.f32 %v3514_v50 }
 0x7b0   : > { %v4172_v29 = vpop.f32.mrf.mxu0 }
 0x7b1   : > { %v4399_v5 = vpop.f32.mrf.mxu2 }
 0x7b5   : > { %v13239_v56 = vpop.eup %13238 }
 0x7b6   : > { %v3590_v30 = vmul.f32 %v13239_v56, %v15751_v41  ;;  %v3280_v62 = vpop.xlane.xlu0 %3279 }
 0x7b7   : > { %v3352_v22 = vsub.f32 %v15759_v58, %v3280_v62 }
 0x7b8   : > { %v3622_v49 = vpack.c.bf16 %v3590_v30, %v3590_v30  ;;  %v15885_v46 = vpop.f32.mrf.mxu0  ;;  %v15895_v30 = vpop.f32.mrf.mxu3 }
 0x7b9   : > { %19554 = vst [vmem:[#allocation107_spill] sm:$0xff] %v15885_v46  ;;  %v3395_v34 = vmul.f32 1.442695, %v3352_v22  ;;  %v15901_v22 = vpop.f32.mrf.mxu2 }
 0x7ba   : > { %12275 = vmatmul.msk.bf16.vlgmr.msrb.gmra.mxu3 %vm1367_vm2, %v3622_v49  ;;  %v15899_v49 = vadd.f32 %v15682_v54, %v14373_v37 }
 0x7bb   : > { %13240 = vpow2.f32 %v3395_v34  ;;  %12376 = vmatmul.msk.bf16.vlgmr.msra.gmra.mxu0 %vm452_vm0, %v4591_v61  ;;  %v4593_v61 = vpack.c.bf16 %v4399_v5, %v4399_v5 }
 0x7bc   : > { %4907 = vmatpush.bf16.xpose.msra.mxu0 %v19555_v43  ;;  %v3338_v34 = vsel %vm1367_vm2, %v15899_v49, -inf }
 0x7bf   : > { %v3304_v50 = vpop.xlane.xlu0 %3303 }
 0x7c0   : > { %v3360_v29 = vsub.f32 %v15774_v23, %v3304_v50  ;;  %v4248_v41 = vpop.f32.mrf.mxu0 }
 0x7c1   : > { %v15891_v56 = vpop.eup %13240  ;;  %v4404_v41 = vpop.f32.mrf.mxu2 }
 0x7c2   : > { %v3411_v58 = vmul.f32 1.442695, %v3360_v29  ;;  %v3470_v20 = vsel %vm1367_vm2, %v15891_v56, 0.0  ;;  %v19556_v29 = vld [vmem:[#allocation47_spill] sm:$0xff]  ;;  %v4595_v46 = vpack.c.bf16 %v4404_v41, %v4404_v41 }
 0x7c3   : > { %3471 = vadd.xlane.f32.xlu0 %v3470_v20 }
 0x7c4   : > { %13242 = vpow2.f32 %v3411_v58 }
 0x7c8   : > { %v4621_v62 = vpop.f32.mrf.mxu0 }
 0x7c9   : > { %v15915_v59 = vpop.f32.mrf.mxu2 }
 0x7ca   : > { %v15903_v23 = vpop.eup %13242 }
 0x7cb   : > { %3339 = vmax.xlane.f32.xlu0 %v3338_v34  ;;  %v3494_v50 = vsel %vm1367_vm2, %v15903_v23, 0.0  ;;  %12378 = vmatmul.msk.bf16.vlgmr.msrb.gmra.mxu0 %vm452_vm0, %v4593_v61  ;;  %v19558_v34 = vld [vmem:[#allocation49_spill] sm:$0xff] }
 0x7cc   : > { %3495 = vadd.xlane.f32.xlu1 %v3494_v50  ;;  %4939 = vmatpush.bf16.xpose.msrb.mxu0 %v19556_v29 }
 0x7cd   : > { %v15911_v54 = vpop.f32.mrf.mxu3 }
 0x7ce   : > { %19557 = vst [vmem:[#allocation108_spill] sm:$0xff] %v15911_v54 }
 0x7d0   : > { %v4623_v5 = vpop.f32.mrf.mxu0 }
 0x7d1   : > { %v4409_v41 = vpop.f32.mrf.mxu2 }
 0x7d2   : > { %v4597_v15 = vpack.c.bf16 %v4409_v41, %v4409_v41 }
 0x7d5   : > { %v3697_v58 = vpop.f32.mrf.mxu3 }
 0x7d6   : > { %v3526_v20 = vpop.xlane.xlu2 %3525 }
 0x7d7   : > { %13244 = vrcp.f32 %v3526_v20 }
 0x7d8   : > { %v15913_v43 = vpop.f32.mrf.mxu0 }
 0x7db   : > { %12380 = vmatmul.msk.bf16.vlgmr.msra.gmra.mxu0 %vm452_vm0, %v4595_v46 }
 0x7dc   : > { %4971 = vmatpush.bf16.xpose.msra.mxu0 %v19558_v34 }
 0x7dd   : > { %v13245_v61 = vpop.eup %13244  ;;  %v15919_v50 = vpop.f32.mrf.mxu3 }
 0x7de   : > { %19559 = vst [vmem:[#allocation109_spill] sm:$0xff] %v15919_v50  ;;  %v3594_v29 = vmul.f32 %v13245_v61, %v15795_v21  ;;  %v19560_v61 = vld [vmem:[#allocation51_spill] sm:$0xff] }
 0x7df   : > { %v3448_v54 = vpop.xlane.xlu2 %3447 }
 0x7e0   : > { %v3626_v5 = vpack.c.bf16 %v3594_v29, %v3594_v29  ;;  %13246 = vrcp.f32 %v3448_v54  ;;  %v4655_v58 = vpop.f32.mrf.mxu0  ;;  %v3874_v54 = vsel %vm1787_vm3, %v3640_v18, 0 }
 0x7e1   : > { %v15946_v58 = vpop.f32.mrf.mxu2 }
 0x7e2   : > { %12279 = vmatmul.msk.bf16.vlgmr.msra.gmra.mxu3 %vm1367_vm2, %v3626_v5 }
 0x7e5   : > { %v3773_v20 = vpop.f32.mrf.mxu3 }
 0x7e6   : > { %v13247_v25 = vpop.eup %13246 }
 0x7e7   : > { %v3568_v46 = vmul.f32 %v13247_v25, %v15808_v31  ;;  %v3316_v34 = vpop.xlane.xlu2 %3315 }
 0x7e8   : > { %v3364_v50 = vsub.f32 %v15818_v53, %v3316_v34  ;;  %v15927_v6 = vpop.f32.mrf.mxu0 }
 0x7e9   : > { %v3600_v21 = vpack.c.bf16 %v3568_v46, %v3568_v46  ;;  %v4414_v46 = vpop.f32.mrf.mxu2 }
 0x7ea   : > { %v3419_v29 = vmul.f32 1.442695, %v3364_v50  ;;  %v15940_v50 = vadd.f32 %v4621_v62, %v14373_v37 }
 0x7eb   : > { %12253 = vmatmul.msk.bf16.vlgmr.msrb.gmra.mxu1 %vm1367_vm2, %v3600_v21  ;;  %12382 = vmatmul.msk.bf16.vlgmr.msrb.gmra.mxu0 %vm452_vm0, %v4597_v15  ;;  %v4599_v21 = vpack.c.bf16 %v4414_v46, %v4414_v46  ;;  %v19565_v46 = vld [vmem:[#allocation55_spill] sm:$0xff] }
 0x7ec   : > { %13248 = vpow2.f32 %v3419_v29  ;;  %3883 = vmatpush.bf16.msrb.mxu1 %v3874_v54  ;;  %5003 = vmatpush.bf16.xpose.msrb.mxu0 %v19560_v61  ;;  %v5121_v15 = vsel %vm1367_vm2, %v15940_v50, -inf  ;;  %v19563_v29 = vld [vmem:[#allocation53_spill] sm:$0xff] }
 0x7ed   : > { %v15933_v52 = vpop.f32.mrf.mxu3 }
 0x7ee   : > { %19561 = vst [vmem:[#allocation110_spill] sm:$0xff] %v15933_v52 }
 0x7f0   : > { %v4687_v31 = vpop.f32.mrf.mxu0 }
 0x7f1   : > { %v15954_v31 = vpop.f32.mrf.mxu2 }
 0x7f2   : > { %v15935_v25 = vpop.eup %13248 }
 0x7f3   : > { %v3506_v53 = vsel %vm1367_vm2, %v15935_v25, 0.0 }
 0x7f4   : > { %3507 = vadd.xlane.f32.xlu2 %v3506_v53 }
 0x7f5   : > { %v3849_v34 = vpop.f32.mrf.mxu3 }
 0x7f8   : > { %v15942_v18 = vpop.f32.mrf.mxu0 }
 0x7fb   : > { %12384 = vmatmul.msk.bf16.vlgmr.msra.gmra.mxu0 %vm452_vm0, %v4599_v21  ;;  %v19566_v21 = vld [vmem:[#allocation91_spill] sm:$0xff] }
 0x7fc   : > { %5122 = vmax.xlane.f32.xlu2 %v5121_v15  ;;  %5035 = vmatpush.bf16.xpose.msra.mxu0 %v19563_v29  ;;  %v3644_v29 = vpack.c.bf16 %v19566_v21, %v19566_v21  ;;  %v12898_v21 = vld [vmem:[#allocation7 + $0x80] sm:$0xff] }
 0x800   : > { %v4719_v5 = vpop.f32.mrf.mxu0 }
 0x801   : > { %v4419_v5 = vpop.f32.mrf.mxu2 }
 0x806   : > { %v15948_v41 = vpop.f32.mrf.mxu3 }
 0x807   : > { %19562 = vst [vmem:[#allocation111_spill] sm:$0xff] %v15948_v41  ;;  %v4601_v41 = vpack.c.bf16 %v4419_v5, %v4419_v5  ;;  %v12899_v5 = vld [vmem:[#allocation7 + $0x88] sm:$0xff] }
 0x808   : > { %v15950_v20 = vpop.f32.mrf.mxu0  ;;  %4490 = vmatpush.bf16.msrb.mxu3 %v12899_v5 }
 0x809   : > { %v15966_v63 = vpop.f32.mrf.mxu2 }
 0x80b   : > { %12386 = vmatmul.msk.bf16.vlgmr.msrb.gmra.mxu0 %vm452_vm0, %v4601_v41  ;;  %v3950_v41 = vsel %vm1787_vm3, %v3644_v29, 0  ;;  %v12896_v29 = vld [vmem:[#allocation7 + $0x70] sm:$0xff] }
 0x80c   : > { %5067 = vmatpush.bf16.xpose.msrb.mxu0 %v19565_v46  ;;  %4491 = vmatpush.bf16.msrb.mxu3 %v12898_v21 }
 0x80e   : > { %v3925_v62 = vpop.f32.mrf.mxu3 }
 0x810   : > { %v4751_v54 = vpop.f32.mrf.mxu0 }
 0x816   : > { %v15956_v53 = vpop.f32.mrf.mxu3  ;;  %v3460_v34 = vpop.xlane.xlu1 %3459 }
 0x817   : > { %19564 = vst [vmem:[#allocation112_spill] sm:$0xff] %v15956_v53  ;;  %13250 = vrcp.f32 %v3460_v34 }
 0x818   : > { %v15958_v15 = vpop.f32.mrf.mxu0 }
 0x81d   : > { %v13251_v52 = vpop.eup %13250 }
 0x81e   : > { %v3572_v62 = vmul.f32 %v13251_v52, %v15859_v44  ;;  %v4001_v54 = vpop.f32.mrf.mxu3  ;;  %v3328_v61 = vpop.xlane.xlu1 %3327 }
 0x81f   : > { %v3368_v53 = vsub.f32 %v15869_v28, %v3328_v61  ;;  %v4424_v61 = vpop.f32.mrf.mxu2  ;;  %v19568_v54 = vld [vmem:[#allocation59_spill] sm:$0xff] }
 0x820   : > { %v3604_v4 = vpack.c.bf16 %v3572_v62, %v3572_v62  ;;  %v4783_v34 = vpop.f32.mrf.mxu0  ;;  %v4603_v62 = vpack.c.bf16 %v4424_v61, %v4424_v61 }
 0x821   : > { %v3427_v11 = vmul.f32 1.442695, %v3368_v53  ;;  %v12897_v53 = vld [vmem:[#allocation7 + $0x78] sm:$0xff]  ;;  %v15985_v34 = vadd.f32 %v15927_v6, %v14373_v37 }
 0x822   : > { %12257 = vmatmul.msk.bf16.vlgmr.msra.gmra.mxu1 %vm1367_vm2, %v3604_v4  ;;  %4492 = vmatpush.bf16.msrb.mxu3 %v12897_v53  ;;  %v12894_v53 = vld [vmem:[#allocation7 + $0x60] sm:$0xff] }
 0x823   : > { %13252 = vpow2.f32 %v3427_v11  ;;  %3959 = vmatpush.bf16.msra.mxu1 %v3950_v41  ;;  %12388 = vmatmul.msk.bf16.vlgmr.msra.gmra.mxu0 %vm452_vm0, %v4603_v62  ;;  %v12895_v41 = vld [vmem:[#allocation7 + $0x68] sm:$0xff]  ;;  %v5133_v61 = vsel %vm1367_vm2, %v15985_v34, -inf }
 0x824   : > { %5099 = vmatpush.bf16.xpose.msra.mxu0 %v19568_v54 }
 0x826   : > { %v15970_v46 = vpop.f32.mrf.mxu3  ;;  %4493 = vmatpush.bf16.msrb.mxu3 %v12896_v29 }
 0x827   : > { %19567 = vst [vmem:[#allocation91_spill] sm:$0xff] %v15970_v46 }
 0x828   : > { %v4813_v44 = vpop.f32.mrf.mxu0 }
 0x829   : > { %v15972_v52 = vpop.eup %13252  ;;  %v15975_v28 = vadd.f32 %v4813_v44, %v14373_v37  ;;  %v15987_v44 = vpop.f32.mrf.mxu2 }
 0x82a   : > { %v3518_v4 = vsel %vm1367_vm2, %v15972_v52, 0.0  ;;  %4494 = vmatpush.bf16.msrb.mxu3 %v12895_v41 }
 0x82b   : > { %3519 = vadd.xlane.f32.xlu0 %v3518_v4  ;;  %v5157_v11 = vsel %vm1367_vm2, %v15975_v28, -inf }
 0x82c   : > { %5158 = vmax.xlane.f32.xlu2 %v5157_v11 }
 0x82e   : > { %v4077_v5 = vpop.f32.mrf.mxu3  ;;  %4495 = vmatpush.bf16.msrb.mxu3 %v12894_v53 }
 0x830   : > { %v4815_v21 = vpop.f32.mrf.mxu0 }
 0x831   : > { %v4429_v11 = vpop.f32.mrf.mxu2  ;;  %12346 = vmatmul.msk.bf16.vlgmr.msrb.gmra.mxu3 %vm452_vm0, %v14090_v12  ;;  %v19570_v21 = vld [vmem:[#allocation93_spill] sm:$0xff] }
 0x832   : > { %v4605_v6 = vpack.c.bf16 %v4429_v11, %v4429_v11 }
 0x833   : > { %5134 = vmax.xlane.f32.xlu0 %v5133_v61  ;;  %v3648_v61 = vpack.c.bf16 %v19570_v21, %v19570_v21 }
 0x834   : > { %12390 = vmatmul.msk.bf16.vlgmr.msrb.gmra.mxu0 %vm452_vm0, %v4605_v6 }
 0x835   : > { %v4026_v6 = vsel %vm1787_vm3, %v3648_v61, 0 }
 0x836   : > { %v3472_v4 = vpop.xlane.xlu0 %3471 }
 0x837   : > { %13254 = vrcp.f32 %v3472_v4  ;;  %v3484_v4 = vpop.xlane.xlu2 %3483 }
 0x838   : > { %v15991_v62 = vpop.f32.mrf.mxu0  ;;  %13256 = vrcp.f32 %v3484_v4 }
 0x83d   : > { %v13255_v29 = vpop.eup %13254  ;;  %v15996_v5 = vpop.f32.mrf.mxu3 }
 0x83e   : > { %19569 = vst [vmem:[#allocation113_spill] sm:$0xff] %v15996_v5  ;;  %v3576_v41 = vmul.f32 %v13255_v29, %v15891_v56  ;;  %v3340_v46 = vpop.xlane.xlu0 %3339  ;;  %v13257_v48 = vpop.eup %13256 }
 0x83f   : > { %v3372_v53 = vsub.f32 %v15899_v49, %v3340_v46  ;;  %v19571_v49 = vld [vmem:[#allocation94_spill] sm:$0xff] }
 0x840   : > { %v3608_v54 = vpack.c.bf16 %v3576_v41, %v3576_v41  ;;  %v4847_v60 = vpop.f32.mrf.mxu0  ;;  %v3652_v46 = vpack.c.bf16 %v19571_v49, %v19571_v49 }
 0x841   : > { %v3435_v11 = vmul.f32 1.442695, %v3372_v53  ;;  %12347 = vmatmul.msk.bf16.gmra.mxu3 %vm452_vm0, %v14096_v19  ;;  %v3580_v60 = vmul.f32 %v13257_v48, %v15873_v14 }
 0x842   : > { %12261 = vmatmul.msk.bf16.vlgmr.msrb.gmra.mxu1 %vm1367_vm2, %v3608_v54  ;;  %v16015_v54 = vadd.f32 %v15950_v20, %v14373_v37  ;;  %v4102_v41 = vsel %vm1787_vm3, %v3652_v46, 0 }
 0x843   : > { %13258 = vpow2.f32 %v3435_v11  ;;  %4035 = vmatpush.bf16.msrb.mxu1 %v4026_v6  ;;  %v3612_v29 = vpack.c.bf16 %v3580_v60, %v3580_v60  ;;  %v19572_v6 = vld [vmem:[#allocation96_spill] sm:$0xff] }
 0x844   : > { %v5145_v4 = vsel %vm1367_vm2, %v16015_v54, -inf }
 0x845   : > { %v4153_v5 = vpop.f32.mrf.mxu3 }
 0x846   : > { %v3496_v5 = vpop.xlane.xlu1 %3495 }
 0x847   : > { %13260 = vrcp.f32 %v3496_v5 }
 0x848   : > { %v4877_v36 = vpop.f32.mrf.mxu0 }
 0x849   : > { %v16004_v21 = vpop.eup %13258  ;;  %v16022_v48 = vadd.f32 %v4877_v36, %v14373_v37 }
 0x84a   : > { %v3530_v56 = vsel %vm1367_vm2, %v16004_v21, 0.0 }
 0x84b   : > { %3531 = vadd.xlane.f32.xlu1 %v3530_v56  ;;  %v5169_v14 = vsel %vm1367_vm2, %v16022_v48, -inf  ;;  %v3656_v56 = vpack.c.bf16 %v19572_v6, %v19572_v6 }
 0x84d   : > { %v13261_v53 = vpop.eup %13260  ;;  %v4178_v36 = vsel %vm1787_vm3, %v3656_v56, 0 }
 0x84e   : > { %v3584_v11 = vmul.f32 %v13261_v53, %v15903_v23 }
 0x850   : > { %v4879_v61 = vpop.f32.mrf.mxu0  ;;  %v3616_v60 = vpack.c.bf16 %v3584_v11, %v3584_v11 }
 0x851   : > { %12348 = vmatmul.msk.bf16.gmra.mxu3 %vm452_vm0, %v14108_v26 }
 0x852   : > { %12265 = vmatmul.msk.bf16.vlgmr.msra.gmra.mxu1 %vm1367_vm2, %v3612_v29 }
 0x853   : > { %4111 = vmatpush.bf16.msra.mxu1 %v4102_v41  ;;  %5146 = vmax.xlane.f32.xlu1 %v5145_v4  ;;  %v3660_v4 = vpack.c.bf16 %v15895_v30, %v15895_v30 }
 0x858   : > { %v16026_v20 = vpop.f32.mrf.mxu0 }
 0x85b   : > { %5170 = vmax.xlane.f32.xlu1 %v5169_v14 }
 0x860   : > { %v4911_v49 = vpop.f32.mrf.mxu0 }
 0x861   : > { %12349 = vmatmul.msk.bf16.gmra.mxu3 %vm452_vm0, %v14120_v33 }
 0x862   : > { %12269 = vmatmul.msk.bf16.vlgmr.msrb.gmra.mxu1 %vm1367_vm2, %v3616_v60 }
 0x863   : > { %4187 = vmatpush.bf16.msrb.mxu1 %v4178_v36  ;;  %v4254_v36 = vsel %vm1787_vm3, %v3660_v4, 0 }
 0x865   : > { %v16035_v46 = vpop.f32.mrf.mxu3 }
 0x866   : > { %19573 = vst [vmem:[#allocation93_spill] sm:$0xff] %v16035_v46 }
 0x867   : > { %v3508_v29 = vpop.xlane.xlu2 %3507 }
 0x868   : > { %13262 = vrcp.f32 %v3508_v29  ;;  %v16037_v5 = vpop.f32.mrf.mxu1  ;;  %v4941_v61 = vpop.f32.mrf.mxu0 }
 0x869   : > { %19574 = vst [vmem:[#allocation94_spill] sm:$0xff] %v16037_v5 }
 0x86d   : > { %v4229_v23 = vpop.f32.mrf.mxu3 }
 0x86e   : > { %v13263_v41 = vpop.eup %13262 }
 0x86f   : > { %v3588_v14 = vmul.f32 %v13263_v41, %v15935_v25  ;;  %v5123_v53 = vpop.xlane.xlu2 %5122  ;;  %v16054_v25 = vadd.f32 %v4941_v61, %v14373_v37 }
 0x870   : > { %v5217_v11 = vsub.f32 %v15940_v50, %v5123_v53  ;;  %v3735_v6 = vpop.f32.mrf.mxu1  ;;  %v4943_v56 = vpop.f32.mrf.mxu0 }
 0x871   : > { %v3620_v60 = vpack.c.bf16 %v3588_v14, %v3588_v14  ;;  %12350 = vmatmul.msk.bf16.gmra.mxu3 %vm452_vm0, %v14132_v40  ;;  %v5181_v50 = vsel %vm1367_vm2, %v16054_v25, -inf }
 0x872   : > { %v5249_v49 = vmul.f32 1.442695, %v5217_v11 }
 0x873   : > { %12273 = vmatmul.msk.bf16.vlgmr.msra.gmra.mxu1 %vm1367_vm2, %v3620_v60 }
 0x874   : > { %13264 = vpow2.f32 %v5249_v49  ;;  %4263 = vmatpush.bf16.msra.mxu1 %v4254_v36 }
 0x878   : > { %v16058_v23 = vpop.f32.mrf.mxu0 }
 0x87a   : > { %v16047_v29 = vpop.eup %13264 }
 0x87b   : > { %v5313_v30 = vsel %vm1367_vm2, %v16047_v29, 0.0 }
 0x87c   : > { %5314 = vadd.xlane.f32.xlu0 %v5313_v30 }
 0x880   : > { %v4975_v41 = vpop.f32.mrf.mxu0 }
 0x881   : > { %12351 = vmatmul.msk.bf16.gmra.mxu3 %vm452_vm0, %v14144_v47 }
 0x884   : > { %5182 = vmax.xlane.f32.xlu0 %v5181_v50 }
 0x888   : > { %v5005_v4 = vpop.f32.mrf.mxu0 }
 0x890   : > { %v5007_v6 = vpop.f32.mrf.mxu0 }
 0x891   : > { %12352 = vmatmul.msk.bf16.gmra.mxu3 %vm452_vm0, %v14160_v55 }
 0x89e   : > { %v3520_v14 = vpop.xlane.xlu0 %3519 }
 0x89f   : > { %13266 = vrcp.f32 %v3520_v14  ;;  %v5159_v53 = vpop.xlane.xlu2 %5158  ;;  %v16064_v11 = vpop.f32.mrf.mxu1 }
 0x8a0   : > { %19575 = vst [vmem:[#allocation96_spill] sm:$0xff] %v16064_v11  ;;  %v5229_v61 = vsub.f32 %v15975_v28, %v5159_v53  ;;  %v16069_v5 = vpop.f32.mrf.mxu0 }
 0x8a1   : > { %12353 = vmatmul.msk.bf16.gmra.mxu3 %vm452_vm0, %v14180_v0 }
 0x8a2   : > { %v5273_v56 = vmul.f32 1.442695, %v5229_v61 }
 0x8a4   : > { %13268 = vpow2.f32 %v5273_v56  ;;  %v16090_v56 = vadd.f32 %v5005_v4, %v14373_v37 }
 0x8a5   : > { %v13267_v60 = vpop.eup %13266 }
 0x8a6   : > { %v3592_v49 = vmul.f32 %v13267_v60, %v15972_v52  ;;  %v5135_v36 = vpop.xlane.xlu0 %5134  ;;  %v19576_v52 = vld [vmem:[#allocation20_spill] sm:$0xff]  ;;  %v5193_v60 = vsel %vm1367_vm2, %v16090_v56, -inf }
 0x8a7   : > { %v5221_v30 = vsub.f32 %v15985_v34, %v5135_v36  ;;  %v3811_v50 = vpop.f32.mrf.mxu1  ;;  %v16081_v34 = vadd.f32 %v15913_v43, %v14373_v37 }
 0x8a8   : > { %v3624_v41 = vpack.c.bf16 %v3592_v49, %v3592_v49  ;;  %v5039_v61 = vpop.f32.mrf.mxu0  ;;  %v16096_v50 = vpop.f32.mrf.mxu2 }
 0x8a9   : > { %v5257_v46 = vmul.f32 1.442695, %v5221_v30 }
 0x8aa   : > { %v16071_v14 = vpop.eup %13268  ;;  %12277 = vmatmul.msk.bf16.vlgmr.msrb.gmra.mxu1 %vm1367_vm2, %v3624_v41 }
 0x8ab   : > { %13270 = vpow2.f32 %v5257_v46  ;;  %v5349_v28 = vsel %vm1367_vm2, %v16071_v14, 0.0  ;;  %4635 = vmatpush.bf16.xpose.msrb.mxu1 %v19576_v52  ;;  %v5127_v46 = vsel %vm1367_vm2, %v16081_v34, -inf }
 0x8ac   : > { %5350 = vadd.xlane.f32.xlu0 %v5349_v28 }
 0x8b1   : > { %v16083_v53 = vpop.eup %13270  ;;  %v5069_v49 = vpop.f32.mrf.mxu0  ;;  %12354 = vmatmul.msk.bf16.gmra.mxu3 %vm452_vm0, %v14196_v8 }
 0x8b2   : > { %v5325_v6 = vsel %vm1367_vm2, %v16083_v53, 0.0  ;;  %v4434_v8 = vpop.f32.mrf.mxu2 }
 0x8b3   : > { %5326 = vadd.xlane.f32.xlu2 %v5325_v6  ;;  %v4607_v0 = vpack.c.bf16 %v4434_v8, %v4434_v8 }
 0x8b4   : > { %5128 = vmax.xlane.f32.xlu0 %v5127_v46  ;;  %v4497_v43 = vpop.f32.mrf.mxu3 }
 0x8b5   : > { %v5505_v30 = vpack.c.bf16 %v4497_v43, %v4497_v43  ;;  %12392 = vmatmul.msk.bf16.vlgmr.msra.gmra.mxu0 %vm452_vm0, %v4607_v0  ;;  %v16119_v0 = vadd.f32 %v5069_v49, %v14373_v37  ;;  %v19580_v49 = vld [vmem:[#allocation26_spill] sm:$0xff] }
 0x8b7   : > { %v5541_v4 = vsel %vm1787_vm3, %v5505_v30, 0 }
 0x8b8   : > { %5550 = vmatpush.bf16.msrb.mxu0 %v5541_v4 }
 0x8b9   : > { %v5071_v28 = vpop.f32.mrf.mxu0 }
 0x8bb   : > { %5194 = vmax.xlane.f32.xlu2 %v5193_v60 }
 0x8bc   : > { %v16101_v6 = vpop.f32.mrf.mxu3 }
 0x8be   : > { %v3532_v36 = vpop.xlane.xlu1 %3531 }
 0x8bf   : > { %13272 = vrcp.f32 %v3532_v36  ;;  %v16098_v41 = vpop.f32.mrf.mxu1  ;;  %v19578_v36 = vld [vmem:[#allocation23_spill] sm:$0xff] }
 0x8c0   : > { %19577 = vst [vmem:[#allocation114_spill] sm:$0xff] %v16098_v41 }
 0x8c1   : > { %12355 = vmatmul.msk.bf16.gmra.mxu3 %vm452_vm0, %v14220_v24 }
 0x8c4   : > { %v4502_v30 = vpop.f32.mrf.mxu3 }
 0x8c5   : > { %v13273_v61 = vpop.eup %13272  ;;  %v5507_v4 = vpack.c.bf16 %v4502_v30, %v4502_v30 }
 0x8c6   : > { %v3596_v46 = vmul.f32 %v13273_v61, %v16004_v21  ;;  %v5147_v52 = vpop.xlane.xlu1 %5146 }
 0x8c7   : > { %v5225_v60 = vsub.f32 %v16015_v54, %v5147_v52  ;;  %v3887_v11 = vpop.f32.mrf.mxu1  ;;  %v5579_v8 = vsel %vm1787_vm3, %v5507_v4, 0 }
 0x8c8   : > { %v3628_v43 = vpack.c.bf16 %v3596_v46, %v3596_v46  ;;  %5588 = vmatpush.bf16.msra.mxu2 %v5579_v8 }
 0x8c9   : > { %v5265_v55 = vmul.f32 1.442695, %v5225_v60  ;;  %v5205_v60 = vsel %vm1367_vm2, %v16119_v0, -inf }
 0x8ca   : > { %12281 = vmatmul.msk.bf16.vlgmr.msra.gmra.mxu1 %vm1367_vm2, %v3628_v43 }
 0x8cb   : > { %13274 = vpow2.f32 %v5265_v55  ;;  %4667 = vmatpush.bf16.xpose.msra.mxu1 %v19578_v36 }
 0x8cc   : > { %v16121_v61 = vpop.f32.mrf.mxu3 }
 0x8ce   : > { %v5171_v21 = vpop.xlane.xlu1 %5170 }
 0x8cf   : > { %v5233_v54 = vsub.f32 %v16022_v48, %v5171_v21  ;;  %v16111_v11 = vpop.f32.mrf.mxu1  ;;  %v4578_v48 = vpack.c.bf16 %v15746_v51, %v15746_v51  ;;  %v16137_v51 = vadd.f32 %v15942_v18, %v14373_v37  ;;  %v19582_v18 = vld [vmem:[#allocation29_spill] sm:$0xff] }
 0x8d0   : > { %19579 = vst [vmem:[#allocation115_spill] sm:$0xff] %v16111_v11 }
 0x8d1   : > { %v16114_v52 = vpop.eup %13274  ;;  %v5281_v28 = vmul.f32 1.442695, %v5233_v54  ;;  %12356 = vmatmul.msk.bf16.gmra.mxu3 %vm452_vm0, %v14244_v42 }
 0x8d2   : > { %v5337_v55 = vsel %vm1367_vm2, %v16114_v52, 0.0 }
 0x8d3   : > { %13276 = vpow2.f32 %v5281_v28  ;;  %5338 = vadd.xlane.f32.xlu1 %v5337_v55  ;;  %v5139_v28 = vsel %vm1367_vm2, %v16137_v51, -inf }
 0x8d4   : > { %v4507_v21 = vpop.f32.mrf.mxu3 }
 0x8d5   : > { %v5509_v4 = vpack.c.bf16 %v4507_v21, %v4507_v21 }
 0x8d7   : > { %v3963_v46 = vpop.f32.mrf.mxu1  ;;  %v5617_v8 = vsel %vm1787_vm3, %v5509_v4, 0 }
 0x8d8   : > { %5626 = vmatpush.bf16.msra.mxu0 %v5617_v8 }
 0x8d9   : > { %v16127_v43 = vpop.eup %13276 }
 0x8da   : > { %12363 = vmatmul.msk.bf16.vlgmr.msrb.gmra.mxu1 %vm452_vm0, %v4578_v48  ;;  %v5361_v30 = vsel %vm1367_vm2, %v16127_v43, 0.0  ;;  %v4580_v48 = vpack.c.bf16 %v15763_v35, %v15763_v35 }
 0x8db   : > { %5206 = vmax.xlane.f32.xlu1 %v5205_v60  ;;  %5362 = vadd.xlane.f32.xlu2 %v5361_v30 }
 0x8dc   : > { %4699 = vmatpush.bf16.xpose.msrb.mxu1 %v19580_v49  ;;  %v16144_v55 = vpop.f32.mrf.mxu3 }
 0x8df   : > { %v16139_v54 = vpop.f32.mrf.mxu1 }
 0x8e0   : > { %19581 = vst [vmem:[#allocation116_spill] sm:$0xff] %v16139_v54  ;;  %v4582_v54 = vpack.c.bf16 %v15782_v13, %v15782_v13 }
 0x8e1   : > { %12357 = vmatmul.msk.bf16.gmra.mxu3 %vm452_vm0, %v14268_v2 }
 0x8e3   : > { %5140 = vmax.xlane.f32.xlu2 %v5139_v28 }
 0x8e4   : > { %v4512_v60 = vpop.f32.mrf.mxu3 }
 0x8e5   : > { %v5511_v30 = vpack.c.bf16 %v4512_v60, %v4512_v60 }
 0x8e7   : > { %v4039_v46 = vpop.f32.mrf.mxu1  ;;  %v5655_v8 = vsel %vm1787_vm3, %v5511_v30, 0  ;;  %v19584_v30 = vld [vmem:[#allocation32_spill] sm:$0xff] }
 0x8e8   : > { %5664 = vmatpush.bf16.msrb.mxu2 %v5655_v8 }
 0x8ea   : > { %12365 = vmatmul.msk.bf16.vlgmr.msra.gmra.mxu1 %vm452_vm0, %v4580_v48 }
 0x8eb   : > { %4731 = vmatpush.bf16.xpose.msra.mxu1 %v19582_v18 }
 0x8ec   : > { %v16155_v28 = vpop.f32.mrf.mxu3 }
 0x8ef   : > { %v5315_v21 = vpop.xlane.xlu0 %5314 }
 0x8f0   : > { %13278 = vrcp.f32 %v5315_v21  ;;  %v16152_v4 = vpop.f32.mrf.mxu1 }
 0x8f1   : > { %19583 = vst [vmem:[#allocation117_spill] sm:$0xff] %v16152_v4  ;;  %12358 = vmatmul.msk.bf16.gmra.mxu3 %vm452_vm0, %v19473_v39 }
 0x8f6   : > { %v13279_v46 = vpop.eup %13278 }
 0x8f7   : > { %v5441_v35 = vmul.f32 %v13279_v46, %v16047_v29  ;;  %v5183_v48 = vpop.xlane.xlu0 %5182  ;;  %v4517_v29 = vpop.f32.mrf.mxu3  ;;  %v19585_v46 = vld [vmem:[#allocation35_spill] sm:$0xff] }
 0x8f8   : > { %v5237_v18 = vsub.f32 %v16054_v25, %v5183_v48  ;;  %v4115_v49 = vpop.f32.mrf.mxu1  ;;  %v5513_v21 = vpack.c.bf16 %v4517_v29, %v4517_v29 }
 0x8f9   : > { %v5473_v60 = vpack.c.bf16 %v5441_v35, %v5441_v35 }
 0x8fa   : > { %v5289_v11 = vmul.f32 1.442695, %v5237_v18  ;;  %12367 = vmatmul.msk.bf16.vlgmr.msrb.gmra.mxu1 %vm452_vm0, %v4582_v54  ;;  %v5693_v8 = vsel %vm1787_vm3, %v5513_v21, 0  ;;  %v16175_v54 = vadd.f32 %v15958_v15, %v14373_v37  ;;  %v4586_v15 = vpack.c.bf16 %v15826_v45, %v15826_v45 }
 0x8fb   : > { %12394 = vmatmul.msk.bf16.vlgmr.msrb.gmra.mxu0 %vm1367_vm2, %v5473_v60  ;;  %4763 = vmatpush.bf16.xpose.msrb.mxu1 %v19584_v30  ;;  %v19586_v60 = vld [vmem:[#allocation38_spill] sm:$0xff] }
 0x8fc   : > { %13280 = vpow2.f32 %v5289_v11  ;;  %5702 = vmatpush.bf16.msrb.mxu0 %v5693_v8  ;;  %v4584_v11 = vpack.c.bf16 %v15804_v27, %v15804_v27  ;;  %v5151_v18 = vsel %vm1367_vm2, %v16175_v54, -inf  ;;  %v5508_v27 = vpack.c.bf16 %v16121_v61, %v16121_v61 }
 0x8fd   : > { %v4588_v61 = vpack.c.bf16 %v15842_v9, %v15842_v9 }
 0x8fe   : > { %v5598_v29 = vsel %vm1787_vm3, %v5508_v27, 0  ;;  %v19588_v27 = vld [vmem:[#allocation41_spill] sm:$0xff] }
 0x8ff   : > { %v16171_v49 = vpop.f32.mrf.mxu3  ;;  %5607 = vmatpush.bf16.msra.mxu3 %v5598_v29 }
 0x901   : > { %12359 = vmatmul.msk.bf16.gmra.mxu3 %vm452_vm0, %v19476_v57 }
 0x902   : > { %v16167_v13 = vpop.eup %13280 }
 0x903   : > { %v5373_v25 = vsel %vm1367_vm2, %v16167_v13, 0.0 }
 0x904   : > { %5374 = vadd.xlane.f32.xlu1 %v5373_v25 }
 0x907   : > { %v16185_v35 = vpop.f32.mrf.mxu3 }
 0x90a   : > { %12369 = vmatmul.msk.bf16.vlgmr.msra.gmra.mxu1 %vm452_vm0, %v4584_v11 }
 0x90b   : > { %4795 = vmatpush.bf16.xpose.msra.mxu1 %v19585_v46 }
 0x90c   : > { %5152 = vmax.xlane.f32.xlu1 %v5151_v18 }
 0x90f   : > { %v16187_v48 = vpop.f32.mrf.mxu3 }
 0x911   : > { %12360 = vmatmul.msk.bf16.gmra.mxu3 %vm452_vm0, %v14340_v17 }
 0x917   : > { %v4527_v21 = vpop.f32.mrf.mxu3 }
 0x918   : > { %v5517_v29 = vpack.c.bf16 %v4527_v21, %v4527_v21 }
 0x91a   : > { %12371 = vmatmul.msk.bf16.vlgmr.msrb.gmra.mxu1 %vm452_vm0, %v4586_v15 }
 0x91b   : > { %4827 = vmatpush.bf16.xpose.msrb.mxu1 %v19586_v60 }
 0x91f   : > { %v16198_v8 = vpop.xlane.xlu0 %5350  ;;  %v16200_v25 = vpop.f32.mrf.mxu3 }
 0x921   : > { %12361 = vmatmul.msk.bf16.gmra.mxu3 %vm452_vm0, %v14467_v32 }
 0x926   : > { %v5327_v11 = vpop.xlane.xlu2 %5326 }
 0x927   : > { %v5129_v45 = vpop.xlane.xlu0 %5128  ;;  %13282 = vrcp.f32 %v5327_v11  ;;  %v16202_v18 = vpop.f32.mrf.mxu1 }
 0x928   : > { %19587 = vst [vmem:[#allocation118_spill] sm:$0xff] %v16202_v18  ;;  %v5219_v15 = vsub.f32 %v16081_v34, %v5129_v45  ;;  %v16211_v46 = vpop.f32.mrf.mxu3  ;;  %v5769_v45 = vsel %vm1787_vm3, %v5517_v29, 0  ;;  %v19590_v29 = vld [vmem:[#allocation44_spill] sm:$0xff] }
 0x92a   : > { %v5253_v4 = vmul.f32 1.442695, %v5219_v15  ;;  %12373 = vmatmul.msk.bf16.vlgmr.msra.gmra.mxu1 %vm452_vm0, %v4588_v61 }
 0x92b   : > { %4859 = vmatpush.bf16.xpose.msra.mxu1 %v19588_v27 }
 0x92c   : > { %13284 = vpow2.f32 %v5253_v4 }
 0x92d   : > { %v13283_v60 = vpop.eup %13282 }
 0x92e   : > { %v5445_v11 = vmul.f32 %v13283_v60, %v16083_v53  ;;  %v5195_v18 = vpop.xlane.xlu2 %5194  ;;  %v16225_v53 = vadd.f32 %v16058_v23, %v14373_v37  ;;  %v16239_v23 = vadd.f32 %v15991_v62, %v14373_v37  ;;  %v19592_v62 = vld [vmem:[#allocation46_spill] sm:$0xff] }
 0x92f   : > { %v5241_v9 = vsub.f32 %v16090_v56, %v5195_v18  ;;  %v4191_v30 = vpop.f32.mrf.mxu1  ;;  %v4590_v56 = vpack.c.bf16 %v15863_v10, %v15863_v10 }
 0x930   : > { %v5477_v34 = vpack.c.bf16 %v5445_v11, %v5445_v11  ;;  %v16221_v21 = vpop.f32.mrf.mxu3  ;;  %v5187_v18 = vsel %vm1367_vm2, %v16225_v53, -inf  ;;  %v5163_v10 = vsel %vm1367_vm2, %v16239_v23, -inf }
 0x931   : > { %v5297_v61 = vmul.f32 1.442695, %v5241_v9  ;;  %19589 = vst [vmem:[#allocation119_spill] sm:$0xff] %v16221_v21 }
 0x932   : > { %v16216_v15 = vpop.eup %13284  ;;  %12398 = vmatmul.msk.bf16.vlgmr.msra.gmra.mxu0 %vm1367_vm2, %v5477_v34 }
 0x933   : > { %13286 = vpow2.f32 %v5297_v61  ;;  %v5319_v4 = vsel %vm1367_vm2, %v16216_v15, 0.0  ;;  %5778 = vmatpush.bf16.msra.mxu0 %v5769_v45  ;;  %v5512_v45 = vpack.c.bf16 %v16155_v28, %v16155_v28 }
 0x934   : > { %5320 = vadd.xlane.f32.xlu1 %v5319_v4  ;;  %v4592_v4 = vpack.c.bf16 %v15881_v1, %v15881_v1 }
 0x938   : > { %v4537_v11 = vpop.f32.mrf.mxu3 }
 0x939   : > { %v16229_v30 = vpop.eup %13286 }
 0x93a   : > { %12375 = vmatmul.msk.bf16.vlgmr.msrb.gmra.mxu1 %vm452_vm0, %v4590_v56  ;;  %v5385_v60 = vsel %vm1367_vm2, %v16229_v30, 0.0  ;;  %v5101_v56 = vpop.f32.mrf.mxu0 }
 0x93b   : > { %5386 = vadd.xlane.f32.xlu0 %v5385_v60  ;;  %4891 = vmatpush.bf16.xpose.msrb.mxu1 %v19590_v29  ;;  %v5674_v60 = vsel %vm1787_vm3, %v5512_v45, 0 }
 0x93c   : > { %5188 = vmax.xlane.f32.xlu1 %v5187_v18  ;;  %v5521_v18 = vpack.c.bf16 %v4537_v11, %v4537_v11  ;;  %5683 = vmatpush.bf16.msrb.mxu3 %v5674_v60 }
 0x93e   : > { %v5845_v41 = vsel %vm1787_vm3, %v5521_v18, 0 }
 0x940   : > { %v16243_v9 = vpop.f32.mrf.mxu3 }
 0x943   : > { %5164 = vmax.xlane.f32.xlu0 %v5163_v10 }
 0x946   : > { %v5339_v34 = vpop.xlane.xlu1 %5338 }
 0x947   : > { %13288 = vrcp.f32 %v5339_v34  ;;  %v16247_v61 = vpop.f32.mrf.mxu1 }
 0x948   : > { %19591 = vst [vmem:[#allocation120_spill] sm:$0xff] %v16247_v61  ;;  %v16254_v29 = vpop.f32.mrf.mxu3  ;;  %13290 = vrcp.f32 %v16198_v8 }
 0x94a   : > { %12377 = vmatmul.msk.bf16.vlgmr.msra.gmra.mxu1 %vm452_vm0, %v4592_v4  ;;  %v5103_v4 = vpop.f32.mrf.mxu0 }
 0x94b   : > { %4923 = vmatpush.bf16.xpose.msra.mxu1 %v19592_v62 }
 0x94d   : > { %v13289_v10 = vpop.eup %13288 }
 0x94e   : > { %v5449_v28 = vmul.f32 %v13289_v10, %v16114_v52  ;;  %v5207_v34 = vpop.xlane.xlu1 %5206  ;;  %v5363_v27 = vpop.xlane.xlu2 %5362  ;;  %v16277_v10 = vadd.f32 %v16026_v20, %v14373_v37  ;;  %v16289_v20 = vadd.f32 %v16069_v5, %v14373_v37 }
 0x94f   : > { %v5245_v61 = vsub.f32 %v16119_v0, %v5207_v34  ;;  %v4267_v36 = vpop.f32.mrf.mxu1  ;;  %v13291_v0 = vpop.eup %13290 }
 0x950   : > { %v5481_v1 = vpack.c.bf16 %v5449_v28, %v5449_v28  ;;  %v16261_v11 = vpop.f32.mrf.mxu3  ;;  %v4594_v36 = vpack.c.bf16 %v15901_v22, %v15901_v22 }
 0x951   : > { %v5305_v21 = vmul.f32 1.442695, %v5245_v61 }
 0x952   : > { %12402 = vmatmul.msk.bf16.vlgmr.msrb.gmra.mxu0 %vm1367_vm2, %v5481_v1 }
 0x953   : > { %13292 = vpow2.f32 %v5305_v21  ;;  %5854 = vmatpush.bf16.msrb.mxu0 %v5845_v41  ;;  %v19593_v41 = vld [vmem:[#allocation48_spill] sm:$0xff] }
 0x956   : > { %v5141_v45 = vpop.xlane.xlu2 %5140 }
 0x957   : > { %v5223_v52 = vsub.f32 %v16137_v51, %v5141_v45  ;;  %v16264_v60 = vpop.f32.mrf.mxu1  ;;  %v5453_v51 = vmul.f32 %v13291_v0, %v16071_v14  ;;  %v5175_v45 = vsel %vm1367_vm2, %v16277_v10, -inf  ;;  %v4596_v0 = vpack.c.bf16 %v15915_v59, %v15915_v59  ;;  %v19595_v59 = vld [vmem:[#allocation66_spill] sm:$0xff] }
 0x958   : > { %v4547_v21 = vpop.f32.mrf.mxu3 }
 0x959   : > { %v16268_v18 = vpop.eup %13292  ;;  %v5261_v61 = vmul.f32 1.442695, %v5223_v52  ;;  %v5525_v22 = vpack.c.bf16 %v4547_v21, %v4547_v21  ;;  %v5485_v34 = vpack.c.bf16 %v5453_v51, %v5453_v51  ;;  %v16301_v51 = vadd.f32 %v5101_v56, %v14373_v37 }
 0x95a   : > { %12379 = vmatmul.msk.bf16.vlgmr.msrb.gmra.mxu1 %vm452_vm0, %v4594_v36  ;;  %v5397_v8 = vsel %vm1367_vm2, %v16268_v18, 0.0 }
 0x95b   : > { %13294 = vpow2.f32 %v5261_v61  ;;  %5398 = vadd.xlane.f32.xlu2 %v5397_v8  ;;  %4955 = vmatpush.bf16.xpose.msrb.mxu1 %v19593_v41  ;;  %v5921_v4 = vsel %vm1787_vm3, %v5525_v22, 0  ;;  %v5199_v61 = vsel %vm1367_vm2, %v16289_v20, -inf  ;;  %v5211_v22 = vsel %vm1367_vm2, %v16301_v51, -inf }
 0x95c   : > { %13296 = vrcp.f32 %v5363_v27  ;;  %v19594_v27 = vld [vmem:[#allocation50_spill] sm:$0xff] }
 0x95f   : > { %v4639_v28 = vpop.f32.mrf.mxu1 }
 0x960   : > { %v19596_v28 = vld [vmem:[#allocation95_spill] sm:$0xff] }
 0x961   : > { %v16279_v1 = vpop.eup %13294 }
 0x962   : > { %12406 = vmatmul.msk.bf16.vlgmr.msra.gmra.mxu0 %vm1367_vm2, %v5485_v34  ;;  %v5331_v14 = vsel %vm1367_vm2, %v16279_v1, 0.0  ;;  %v13297_v36 = vpop.eup %13296  ;;  %v4269_v34 = vadd.f32 %v19596_v28, %v19595_v59 }
 0x963   : > { %5176 = vmax.xlane.f32.xlu2 %v5175_v45  ;;  %5332 = vadd.xlane.f32.xlu0 %v5331_v14  ;;  %v5457_v8 = vmul.f32 %v13297_v36, %v16127_v43  ;;  %v4598_v14 = vpack.c.bf16 %v15946_v58, %v15946_v58  ;;  %v19598_v36 = vld [vmem:[#allocation52_spill] sm:$0xff] }
 0x964   : > { %5930 = vmatpush.bf16.msra.mxu0 %v5921_v4 }
 0x965   : > { %v5489_v21 = vpack.c.bf16 %v5457_v8, %v5457_v8 }
 0x967   : > { %v16291_v52 = vpop.f32.mrf.mxu1 }
 0x96a   : > { %12381 = vmatmul.msk.bf16.vlgmr.msra.gmra.mxu1 %vm452_vm0, %v4596_v0  ;;  %v16313_v0 = vpop.f32.mrf.mxu3 }
 0x96b   : > { %5200 = vmax.xlane.f32.xlu0 %v5199_v61  ;;  %4987 = vmatpush.bf16.xpose.msra.mxu1 %v19594_v27 }
 0x96f   : > { %v4671_v5 = vpop.f32.mrf.mxu1 }
 0x972   : > { %12410 = vmatmul.msk.bf16.vlgmr.msrb.gmra.mxu0 %vm1367_vm2, %v5489_v21 }
 0x973   : > { %5212 = vmax.xlane.f32.xlu0 %v5211_v22 }
 0x977   : > { %v5375_v4 = vpop.xlane.xlu1 %5374  ;;  %v4701_v45 = vpop.f32.mrf.mxu1 }
 0x978   : > { %13298 = vrcp.f32 %v5375_v4  ;;  %v5552_v43 = vpop.f32.mrf.mxu0 }
 0x979   : > { %v16310_v56 = vadd.f32 %v5552_v43, %v4269_v34  ;;  %v16319_v34 = vpop.f32.mrf.mxu3 }
 0x97a   : > { %12383 = vmatmul.msk.bf16.vlgmr.msrb.gmra.mxu1 %vm452_vm0, %v4598_v14  ;;  %v4600_v14 = vpack.c.bf16 %v15954_v31, %v15954_v31 }
 0x97b   : > { %19597 = vst [vmem:[#allocation66_spill] sm:$0xff] %v16310_v56  ;;  %5019 = vmatpush.bf16.xpose.msrb.mxu1 %v19598_v36  ;;  %v19605_v56 = vld [vmem:[#allocation97_spill] sm:$0xff]  ;;  %v5515_v36 = vpack.c.bf16 %v16185_v35, %v16185_v35 }
 0x97e   : > { %v13299_v61 = vpop.eup %13298 }
 0x97f   : > { %v5461_v8 = vmul.f32 %v13299_v61, %v16167_v13  ;;  %v5153_v5 = vpop.xlane.xlu1 %5152  ;;  %v4703_v21 = vpop.f32.mrf.mxu1 }
 0x980   : > { %v5227_v22 = vsub.f32 %v16175_v54, %v5153_v5  ;;  %v5554_v59 = vpop.f32.mrf.mxu0  ;;  %v19599_v54 = vld [vmem:[#allocation54_spill] sm:$0xff] }
 0x981   : > { %v5493_v28 = vpack.c.bf16 %v5461_v8, %v5461_v8  ;;  %v16331_v61 = vpop.f32.mrf.mxu3  ;;  %v16335_v8 = vadd.f32 %v16264_v60, %v14373_v37  ;;  %v16340_v59 = vadd.f32 %v4701_v45, %v14373_v37 }
 0x982   : > { %v5269_v58 = vmul.f32 1.442695, %v5227_v22  ;;  %19600 = vst [vmem:[#allocation95_spill] sm:$0xff] %v16331_v61  ;;  %v5731_v61 = vsel %vm1787_vm3, %v5515_v36, 0 }
 0x983   : > { %12414 = vmatmul.msk.bf16.vlgmr.msra.gmra.mxu0 %vm1367_vm2, %v5493_v28  ;;  %v5124_v31 = vsel %vm1367_vm2, %v16335_v8, -inf  ;;  %v5136_v60 = vsel %vm1367_vm2, %v16340_v59, -inf }
 0x984   : > { %13300 = vpow2.f32 %v5269_v58  ;;  %v4602_v58 = vpack.c.bf16 %v15966_v63, %v15966_v63  ;;  %v4604_v63 = vpack.c.bf16 %v15987_v44, %v15987_v44 }
 0x987   : > { %v16321_v4 = vpop.f32.mrf.mxu1 }
 0x989   : > { %v4557_v21 = vpop.f32.mrf.mxu3 }
 0x98a   : > { %v16325_v43 = vpop.eup %13300  ;;  %12385 = vmatmul.msk.bf16.vlgmr.msra.gmra.mxu1 %vm452_vm0, %v4600_v14  ;;  %v5529_v22 = vpack.c.bf16 %v4557_v21, %v4557_v21 }
 0x98b   : > { %v5343_v13 = vsel %vm1367_vm2, %v16325_v43, 0.0  ;;  %5051 = vmatpush.bf16.xpose.msra.mxu1 %v19599_v54 }
 0x98c   : > { %5344 = vadd.xlane.f32.xlu2 %v5343_v13  ;;  %v5997_v14 = vsel %vm1787_vm3, %v5529_v22, 0  ;;  %v19601_v13 = vld [vmem:[#allocation56_spill] sm:$0xff] }
 0x98d   : > { %6006 = vmatpush.bf16.msrb.mxu0 %v5997_v14  ;;  %v19602_v22 = vld [vmem:[#allocation60_spill] sm:$0xff] }
 0x98f   : > { %v4735_v5 = vpop.f32.mrf.mxu1 }
 0x991   : > { %v16351_v5 = vpop.f32.mrf.mxu3 }
 0x994   : > { %5125 = vmax.xlane.f32.xlu2 %v5124_v31 }
 0x997   : > { %v16342_v28 = vpop.f32.mrf.mxu1 }
 0x999   : > { %v16353_v31 = vpop.f32.mrf.mxu3 }
 0x99a   : > { %12387 = vmatmul.msk.bf16.vlgmr.msrb.gmra.mxu1 %vm452_vm0, %v4602_v58 }
 0x99b   : > { %5083 = vmatpush.bf16.xpose.msrb.mxu1 %v19601_v13  ;;  %v19604_v13 = vld [vmem:[#allocation68_spill] sm:$0xff] }
 0x99c   : > { %5137 = vmax.xlane.f32.xlu2 %v5136_v60 }
 0x99f   : > { %v4767_v45 = vpop.f32.mrf.mxu1 }
 0x9a0   : > { %v4273_v45 = vadd.f32 %v19605_v56, %v19604_v13 }
 0x9a1   : > { %v16361_v58 = vpop.f32.mrf.mxu3 }
 0x9a2   : > { %19603 = vst [vmem:[#allocation121_spill] sm:$0xff] %v16361_v58 }
 0x9a7   : > { %v5321_v21 = vpop.xlane.xlu1 %5320  ;;  %v16355_v54 = vpop.f32.mrf.mxu1 }
 0x9a8   : > { %13302 = vrcp.f32 %v5321_v21 }
 0x9a9   : > { %v4567_v35 = vpop.f32.mrf.mxu3 }
 0x9aa   : > { %12389 = vmatmul.msk.bf16.vlgmr.msra.gmra.mxu1 %vm452_vm0, %v4604_v63 }
 0x9ab   : > { %5115 = vmatpush.bf16.xpose.msra.mxu1 %v19602_v22 }
 0x9ae   : > { %v13303_v14 = vpop.eup %13302  ;;  %v5387_v60 = vpop.xlane.xlu0 %5386 }
 0x9af   : > { %v5443_v27 = vmul.f32 %v13303_v14, %v16216_v15  ;;  %v5189_v41 = vpop.xlane.xlu1 %5188  ;;  %13304 = vrcp.f32 %v5387_v60  ;;  %v4799_v44 = vpop.f32.mrf.mxu1  ;;  %v5506_v15 = vpack.c.bf16 %v16101_v6, %v16101_v6  ;;  %v4606_v60 = vpack.c.bf16 %v16096_v50, %v16096_v50 }
 0x9b0   : > { %v5239_v21 = vsub.f32 %v16225_v53, %v5189_v41  ;;  %v5628_v63 = vpop.f32.mrf.mxu0  ;;  %v5533_v53 = vpack.c.bf16 %v4567_v35, %v4567_v35  ;;  %v5510_v35 = vpack.c.bf16 %v16144_v55, %v16144_v55 }
 0x9b1   : > { %v5475_v62 = vpack.c.bf16 %v5443_v27, %v5443_v27  ;;  %v16369_v22 = vadd.f32 %v5628_v63, %v4273_v45  ;;  %v5560_v6 = vsel %vm1787_vm3, %v5506_v15, 0 }
 0x9b2   : > { %v5293_v58 = vmul.f32 1.442695, %v5239_v21 }
 0x9b3   : > { %12396 = vmatmul.msk.bf16.vlgmr.msra.gmra.mxu2 %vm1367_vm2, %v5475_v62  ;;  %v6073_v62 = vsel %vm1787_vm3, %v5533_v53, 0  ;;  %v19606_v53 = vld [vmem:[#allocation70_spill] sm:$0xff] }
 0x9b4   : > { %13306 = vpow2.f32 %v5293_v58  ;;  %5740 = vmatpush.bf16.msra.mxu2 %v5731_v61  ;;  %6082 = vmatpush.bf16.msra.mxu0 %v6073_v62 }
 0x9b5   : > { %v13305_v56 = vpop.eup %13304 }
 0x9b6   : > { %v5465_v13 = vmul.f32 %v13305_v56, %v16229_v30  ;;  %v5165_v14 = vpop.xlane.xlu0 %5164  ;;  %v4436_v56 = vpop.f32.mrf.mxu2 }
 0x9b7   : > { %v5231_v41 = vsub.f32 %v16239_v23, %v5165_v14  ;;  %v4829_v27 = vpop.f32.mrf.mxu1  ;;  %v5636_v14 = vsel %vm1787_vm3, %v5510_v35, 0 }
 0x9b8   : > { %v5497_v36 = vpack.c.bf16 %v5465_v13, %v5465_v13  ;;  %v5630_v45 = vpop.f32.mrf.mxu0  ;;  %v16388_v50 = vadd.f32 %v4829_v27, %v14373_v37  ;;  %v4608_v13 = vpack.c.bf16 %v4436_v56, %v4436_v56 }
 0x9b9   : > { %v5277_v61 = vmul.f32 1.442695, %v5231_v41  ;;  %v4277_v41 = vadd.f32 %v15578_v3, %v19606_v53 }
 0x9ba   : > { %v16380_v58 = vpop.eup %13306  ;;  %12391 = vmatmul.msk.bf16.vlgmr.msrb.gmra.mxu1 %vm452_vm0, %v4606_v60  ;;  %12418 = vmatmul.msk.bf16.vlgmr.msrb.gmra.mxu0 %vm1367_vm2, %v5497_v36  ;;  %v5160_v63 = vsel %vm1367_vm2, %v16388_v50, -inf }
 0x9bb   : > { %13308 = vpow2.f32 %v5277_v61  ;;  %5569 = vmatpush.bf16.msrb.mxu1 %v5560_v6  ;;  %v5379_v30 = vsel %vm1367_vm2, %v16380_v58, 0.0 }
 0x9bc   : > { %5380 = vadd.xlane.f32.xlu0 %v5379_v30 }
 0x9bf   : > { %v4831_v23 = vpop.f32.mrf.mxu1 }
 0x9c1   : > { %v16390_v44 = vpop.eup %13308 }
 0x9c2   : > { %v5355_v21 = vsel %vm1367_vm2, %v16390_v44, 0.0 }
 0x9c3   : > { %5356 = vadd.xlane.f32.xlu1 %v5355_v21 }
 0x9c4   : > { %5161 = vmax.xlane.f32.xlu0 %v5160_v63 }
 0x9c7   : > { %v16398_v15 = vpop.f32.mrf.mxu1 }
 0x9ca   : > { %12393 = vmatmul.msk.bf16.vlgmr.msra.gmra.mxu1 %vm452_vm0, %v4608_v13  ;;  %v19607_v13 = vld [vmem:[#allocation71_spill] sm:$0xff] }
 0x9cb   : > { %5645 = vmatpush.bf16.msra.mxu1 %v5636_v14  ;;  %v4281_v14 = vadd.f32 %v15597_v16, %v19607_v13  ;;  %v19609_v13 = vld [vmem:[#allocation72_spill] sm:$0xff] }
 0x9ce   : > { %v5399_v27 = vpop.xlane.xlu2 %5398 }
 0x9cf   : > { %13310 = vrcp.f32 %v5399_v27  ;;  %v4863_v60 = vpop.f32.mrf.mxu1  ;;  %v5704_v36 = vpop.f32.mrf.mxu0 }
 0x9d0   : > { %v16404_v45 = vadd.f32 %v5704_v36, %v4277_v41 }
 0x9d5   : > { %v13311_v62 = vpop.eup %13310 }
 0x9d6   : > { %v5469_v55 = vmul.f32 %v13311_v62, %v16268_v18  ;;  %v5333_v61 = vpop.xlane.xlu0 %5332  ;;  %v5177_v6 = vpop.xlane.xlu2 %5176 }
 0x9d7   : > { %13312 = vrcp.f32 %v5333_v61  ;;  %v5235_v30 = vsub.f32 %v16277_v10, %v5177_v6  ;;  %v4893_v23 = vpop.f32.mrf.mxu1  ;;  %v5706_v21 = vpop.f32.mrf.mxu0  ;;  %v5519_v10 = vpack.c.bf16 %v16211_v46, %v16211_v46  ;;  %v16430_v46 = vadd.f32 %v16342_v28, %v14373_v37  ;;  %v12905_v28 = vld [vmem:[#allocation5 + $0xb8] sm:$0xff] }
 0x9d8   : > { %v5501_v63 = vpack.c.bf16 %v5469_v55, %v5469_v55  ;;  %v16409_v56 = vadd.f32 %v4893_v23, %v14373_v37  ;;  %6228 = vmatpush.bf16.msrb.mxu0 %v12905_v28 }
 0x9d9   : > { %v5285_v3 = vmul.f32 1.442695, %v5235_v30  ;;  %v5807_v30 = vsel %vm1787_vm3, %v5519_v10, 0 }
 0x9da   : > { %12422 = vmatmul.msk.bf16.vlgmr.msra.gmra.mxu0 %vm1367_vm2, %v5501_v63  ;;  %v5172_v35 = vsel %vm1367_vm2, %v16409_v56, -inf }
 0x9db   : > { %13314 = vpow2.f32 %v5285_v3  ;;  %5173 = vmax.xlane.f32.xlu0 %v5172_v35 }
 0x9dd   : > { %v13313_v18 = vpop.eup %13312 }
 0x9de   : > { %v5447_v53 = vmul.f32 %v13313_v18, %v16279_v1  ;;  %v5201_v41 = vpop.xlane.xlu0 %5200  ;;  %v5148_v18 = vsel %vm1367_vm2, %v16430_v46, -inf }
 0x9df   : > { %v5243_v27 = vsub.f32 %v16289_v20, %v5201_v41  ;;  %v4895_v60 = vpop.f32.mrf.mxu1  ;;  %v5780_v36 = vpop.f32.mrf.mxu0  ;;  %v12904_v41 = vld [vmem:[#allocation5 + $0xb0] sm:$0xff] }
 0x9e0   : > { %v5479_v62 = vpack.c.bf16 %v5447_v53, %v5447_v53  ;;  %v16420_v55 = vadd.f32 %v5780_v36, %v4281_v14  ;;  %v19610_v14 = vld [vmem:[#allocation98_spill] sm:$0xff]  ;;  %6229 = vmatpush.bf16.msrb.mxu0 %v12904_v41  ;;  %v5523_v41 = vpack.c.bf16 %v16254_v29, %v16254_v29 }
 0x9e1   : > { %v16422_v61 = vpop.eup %13314  ;;  %v5301_v6 = vmul.f32 1.442695, %v5243_v27 }
 0x9e2   : > { %19608 = vst [vmem:[#allocation68_spill] sm:$0xff] %v16420_v55  ;;  %12400 = vmatmul.msk.bf16.vlgmr.msrb.gmra.mxu2 %vm1367_vm2, %v5479_v62  ;;  %v5367_v16 = vsel %vm1367_vm2, %v16422_v61, 0.0  ;;  %v12903_v62 = vld [vmem:[#allocation5 + $0xa8] sm:$0xff] }
 0x9e3   : > { %13316 = vpow2.f32 %v5301_v6  ;;  %5816 = vmatpush.bf16.msrb.mxu2 %v5807_v30  ;;  %5368 = vadd.xlane.f32.xlu1 %v5367_v16  ;;  %v12902_v16 = vld [vmem:[#allocation5 + $0xa0] sm:$0xff] }
 0x9e4   : > { %6230 = vmatpush.bf16.msrb.mxu0 %v12903_v62 }
 0x9e6   : > { %v5213_v1 = vpop.xlane.xlu0 %5212 }
 0x9e7   : > { %v5247_v20 = vsub.f32 %v16301_v51, %v5213_v1  ;;  %v16433_v23 = vpop.f32.mrf.mxu1  ;;  %v5782_v21 = vpop.f32.mrf.mxu0  ;;  %v4285_v51 = vadd.f32 %v19610_v14, %v19609_v13  ;;  %v12900_v14 = vld [vmem:[#allocation5 + $0x90] sm:$0xff] }
 0x9e8   : > { %6231 = vmatpush.bf16.msrb.mxu0 %v12902_v16 }
 0x9e9   : > { %v16435_v63 = vpop.eup %13316  ;;  %v5309_v3 = vmul.f32 1.442695, %v5247_v20  ;;  %v12901_v20 = vld [vmem:[#allocation5 + $0x98] sm:$0xff] }
 0x9ea   : > { %v5391_v35 = vsel %vm1367_vm2, %v16435_v63, 0.0 }
 0x9eb   : > { %13318 = vpow2.f32 %v5309_v3  ;;  %5392 = vadd.xlane.f32.xlu2 %v5391_v35  ;;  %5149 = vmax.xlane.f32.xlu1 %v5148_v18  ;;  %v19612_v3 = vld [vmem:[#allocation73_spill] sm:$0xff]  ;;  %v19613_v35 = vld [vmem:[#allocation99_spill] sm:$0xff] }
 0x9ec   : > { %6232 = vmatpush.bf16.msrb.mxu0 %v12901_v20  ;;  %v4289_v18 = vadd.f32 %v19613_v35, %v19612_v3  ;;  %v5883_v3 = vsel %vm1787_vm3, %v5523_v41, 0 }
 0x9ef   : > { %v4927_v10 = vpop.f32.mrf.mxu1  ;;  %v5856_v53 = vpop.f32.mrf.mxu0 }
 0x9f0   : > { %v16443_v27 = vadd.f32 %v5856_v53, %v4285_v51  ;;  %6233 = vmatpush.bf16.msrb.mxu0 %v12900_v14 }
 0x9f1   : > { %v16445_v60 = vpop.eup %13318 }
 0x9f2   : > { %19611 = vst [vmem:[#allocation97_spill] sm:$0xff] %v16443_v27  ;;  %v5403_v36 = vsel %vm1367_vm2, %v16445_v60, 0.0 }
 0x9f3   : > { %5404 = vadd.xlane.f32.xlu2 %v5403_v36  ;;  %12450 = vmatmul.msk.bf16.vlgmr.msrb.gmra.mxu0 %vm452_vm0, %v14090_v12 }
 0x9f7   : > { %v4957_v6 = vpop.f32.mrf.mxu1  ;;  %v5858_v30 = vpop.f32.mrf.mxu0 }
 0x9f8   : > { %v16450_v1 = vadd.f32 %v4957_v6, %v14373_v37 }
 0x9fa   : > { %v5184_v21 = vsel %vm1367_vm2, %v16450_v1, -inf }
 0x9fb   : > { %5185 = vmax.xlane.f32.xlu2 %v5184_v21 }
 0x9ff   : > { %v5345_v28 = vpop.xlane.xlu2 %5344  ;;  %v4959_v13 = vpop.f32.mrf.mxu1 }
 0xa00   : > { %13320 = vrcp.f32 %v5345_v28  ;;  %v5932_v51 = vpop.f32.mrf.mxu0 }
 0xa01   : > { %v16456_v10 = vadd.f32 %v5932_v51, %v4289_v18 }
 0xa03   : > { %19614 = vst [vmem:[#allocation70_spill] sm:$0xff] %v16456_v10  ;;  %12451 = vmatmul.msk.bf16.gmra.mxu0 %vm452_vm0, %v14096_v19 }
 0xa06   : > { %v13321_v53 = vpop.eup %13320 }
 0xa07   : > { %v5451_v36 = vmul.f32 %v13321_v53, %v16325_v43  ;;  %v5126_v62 = vpop.xlane.xlu2 %5125  ;;  %v16463_v6 = vpop.f32.mrf.mxu1 }
 0xa08   : > { %v5218_v30 = vsub.f32 %v16335_v8, %v5126_v62  ;;  %v5934_v16 = vpop.f32.mrf.mxu0 }
 0xa09   : > { %v5483_v20 = vpack.c.bf16 %v5451_v36, %v5451_v36  ;;  %v19615_v16 = vld [vmem:[#allocation76_spill] sm:$0xff] }
 0xa0a   : > { %v5251_v21 = vmul.f32 1.442695, %v5218_v30 }
 0xa0b   : > { %12404 = vmatmul.msk.bf16.vlgmr.msra.gmra.mxu2 %vm1367_vm2, %v5483_v20  ;;  %v4271_v20 = vadd.f32 %v15698_v7, %v19615_v16  ;;  %v5527_v7 = vpack.c.bf16 %v16319_v34, %v16319_v34  ;;  %v16514_v34 = vadd.f32 %v16291_v52, %v14373_v37 }
 0xa0c   : > { %13322 = vpow2.f32 %v5251_v21  ;;  %5892 = vmatpush.bf16.msra.mxu2 %v5883_v3 }
 0xa0f   : > { %v5138_v35 = vpop.xlane.xlu2 %5137  ;;  %v4991_v18 = vpop.f32.mrf.mxu1 }
 0xa10   : > { %v5222_v29 = vsub.f32 %v16340_v59, %v5138_v35  ;;  %v19616_v35 = vld [vmem:[#allocation74_spill] sm:$0xff]  ;;  %v19617_v18 = vld [vmem:[#allocation100_spill] sm:$0xff] }
 0xa12   : > { %v16469_v28 = vpop.eup %13322  ;;  %v5259_v43 = vmul.f32 1.442695, %v5222_v29  ;;  %v4293_v29 = vadd.f32 %v19617_v18, %v19616_v35 }
 0xa13   : > { %v5316_v13 = vsel %vm1367_vm2, %v16469_v28, 0.0  ;;  %12452 = vmatmul.msk.bf16.gmra.mxu0 %vm452_vm0, %v14108_v26 }
 0xa14   : > { %13324 = vpow2.f32 %v5259_v43  ;;  %5317 = vadd.xlane.f32.xlu1 %v5316_v13 }
 0xa17   : > { %v5021_v8 = vpop.f32.mrf.mxu1 }
 0xa18   : > { %v16480_v59 = vadd.f32 %v5021_v8, %v14373_v37 }
 0xa1a   : > { %v16475_v14 = vpop.eup %13324  ;;  %v5196_v41 = vsel %vm1367_vm2, %v16480_v59, -inf }
 0xa1b   : > { %v5328_v51 = vsel %vm1367_vm2, %v16475_v14, 0.0 }
 0xa1c   : > { %5329 = vadd.xlane.f32.xlu1 %v5328_v51 }
 0xa1f   : > { %v5023_v53 = vpop.f32.mrf.mxu1 }
 0xa23   : > { %12453 = vmatmul.msk.bf16.gmra.mxu0 %vm452_vm0, %v14120_v33 }
 0xa24   : > { %5197 = vmax.xlane.f32.xlu1 %v5196_v41 }
 0xa27   : > { %v16486_v36 = vpop.f32.mrf.mxu1 }
 0xa2f   : > { %v5381_v62 = vpop.xlane.xlu0 %5380  ;;  %v5055_v30 = vpop.f32.mrf.mxu1 }
 0xa33   : > { %12454 = vmatmul.msk.bf16.gmra.mxu0 %vm452_vm0, %v14132_v40 }
 0xa36   : > { %v5590_v21 = vpop.f32.mrf.mxu2  ;;  %v5357_v3 = vpop.xlane.xlu1 %5356 }
 0xa37   : > { %v16494_v43 = vadd.f32 %v5590_v21, %v4271_v20  ;;  %13326 = vrcp.f32 %v5357_v3  ;;  %v5162_v13 = vpop.xlane.xlu0 %5161  ;;  %v16496_v8 = vpop.f32.mrf.mxu1 }
 0xa38   : > { %v5230_v51 = vsub.f32 %v16388_v50, %v5162_v13  ;;  %v6008_v53 = vpop.f32.mrf.mxu0 }
 0xa39   : > { %19618 = vst [vmem:[#allocation71_spill] sm:$0xff] %v16494_v43  ;;  %v16499_v41 = vadd.f32 %v6008_v53, %v4293_v29  ;;  %v5959_v43 = vsel %vm1787_vm3, %v5527_v7, 0  ;;  %v19620_v53 = vld [vmem:[#allocation75_spill] sm:$0xff] }
 0xa3a   : > { %v5275_v30 = vmul.f32 1.442695, %v5230_v51 }
 0xa3b   : > { %19619 = vst [vmem:[#allocation72_spill] sm:$0xff] %v16499_v41 }
 0xa3c   : > { %13328 = vpow2.f32 %v5275_v30  ;;  %v4297_v30 = vadd.f32 %v15696_v38, %v19620_v53 }
 0xa3d   : > { %v13327_v10 = vpop.eup %13326 }
 0xa3e   : > { %v5455_v16 = vmul.f32 %v13327_v10, %v16390_v44  ;;  %v5592_v35 = vpop.f32.mrf.mxu2  ;;  %v5130_v10 = vsel %vm1367_vm2, %v16514_v34, -inf }
 0xa3f   : > { %v5087_v20 = vpop.f32.mrf.mxu1 }
 0xa40   : > { %v5487_v21 = vpack.c.bf16 %v5455_v16, %v5455_v16  ;;  %v6010_v3 = vpop.f32.mrf.mxu0 }
 0xa41   : > { %v5531_v3 = vpack.c.bf16 %v16353_v31, %v16353_v31  ;;  %v19622_v31 = vld [vmem:[#allocation77_spill] sm:$0xff] }
 0xa42   : > { %v16504_v18 = vpop.eup %13328  ;;  %12408 = vmatmul.msk.bf16.vlgmr.msrb.gmra.mxu2 %vm1367_vm2, %v5487_v21  ;;  %v16533_v21 = vadd.f32 %v16321_v4, %v14373_v37 }
 0xa43   : > { %5968 = vmatpush.bf16.msrb.mxu2 %v5959_v43  ;;  %v5352_v50 = vsel %vm1367_vm2, %v16504_v18, 0.0  ;;  %12455 = vmatmul.msk.bf16.gmra.mxu0 %vm452_vm0, %v14144_v47  ;;  %v6035_v53 = vsel %vm1787_vm3, %v5531_v3, 0 }
 0xa44   : > { %5353 = vadd.xlane.f32.xlu2 %v5352_v50  ;;  %v5142_v4 = vsel %vm1367_vm2, %v16533_v21, -inf }
 0xa47   : > { %v16516_v44 = vpop.f32.mrf.mxu1 }
 0xa4c   : > { %5131 = vmax.xlane.f32.xlu2 %v5130_v10 }
 0xa4e   : > { %v5174_v29 = vpop.xlane.xlu0 %5173 }
 0xa4f   : > { %v5234_v43 = vsub.f32 %v16409_v56, %v5174_v29  ;;  %v5119_v13 = vpop.f32.mrf.mxu1 }
 0xa51   : > { %v5283_v51 = vmul.f32 1.442695, %v5234_v43 }
 0xa53   : > { %13330 = vpow2.f32 %v5283_v51 }
 0xa56   : > { %v5369_v52 = vpop.xlane.xlu1 %5368 }
 0xa57   : > { %13332 = vrcp.f32 %v5369_v52  ;;  %v6084_v7 = vpop.f32.mrf.mxu0  ;;  %v19624_v52 = vld [vmem:[#allocation19_spill] sm:$0xff] }
 0xa58   : > { %v16525_v16 = vadd.f32 %v6084_v7, %v4297_v30  ;;  %13334 = vrcp.f32 %v5381_v62  ;;  %12456 = vmatmul.msk.bf16.gmra.mxu0 %vm452_vm0, %v19624_v52 }
 0xa59   : > { %v16527_v35 = vpop.eup %13330 }
 0xa5a   : > { %19621 = vst [vmem:[#allocation98_spill] sm:$0xff] %v16525_v16  ;;  %v5364_v20 = vsel %vm1367_vm2, %v16527_v35, 0.0 }
 0xa5b   : > { %5365 = vadd.xlane.f32.xlu1 %v5364_v20 }
 0xa5d   : > { %v13333_v56 = vpop.eup %13332 }
 0xa5e   : > { %v5459_v38 = vmul.f32 %v13333_v56, %v16422_v61  ;;  %v5150_v50 = vpop.xlane.xlu1 %5149  ;;  %v5393_v10 = vpop.xlane.xlu2 %5392  ;;  %v19623_v61 = vld [vmem:[#allocation101_spill] sm:$0xff] }
 0xa5f   : > { %v5226_v29 = vsub.f32 %v16430_v46, %v5150_v50  ;;  %v6086_v43 = vpop.f32.mrf.mxu0  ;;  %v4275_v30 = vadd.f32 %v19623_v61, %v19622_v31  ;;  %v16547_v46 = vpop.f32.mrf.mxu3 }
 0xa60   : > { %v5491_v13 = vpack.c.bf16 %v5459_v38, %v5459_v38  ;;  %v13335_v56 = vpop.eup %13334 }
 0xa61   : > { %v5267_v51 = vmul.f32 1.442695, %v5226_v29  ;;  %v5463_v50 = vmul.f32 %v13335_v56, %v16380_v58 }
 0xa62   : > { %12412 = vmatmul.msk.bf16.vlgmr.msra.gmra.mxu2 %vm1367_vm2, %v5491_v13  ;;  %v16558_v13 = vadd.f32 %v16496_v8, %v14373_v37 }
 0xa63   : > { %13336 = vpow2.f32 %v5267_v51  ;;  %6044 = vmatpush.bf16.msra.mxu2 %v6035_v53  ;;  %5143 = vmax.xlane.f32.xlu1 %v5142_v4  ;;  %v5495_v31 = vpack.c.bf16 %v5463_v50, %v5463_v50 }
 0xa64   : > { %13338 = vrcp.f32 %v5393_v10  ;;  %v5208_v58 = vsel %vm1367_vm2, %v16558_v13, -inf }
 0xa65   : > { %v5666_v7 = vpop.f32.mrf.mxu2 }
 0xa66   : > { %v16549_v20 = vadd.f32 %v5666_v7, %v4275_v30  ;;  %v5405_v62 = vpop.xlane.xlu2 %5404  ;;  %v19626_v7 = vld [vmem:[#allocation22_spill] sm:$0xff] }
 0xa67   : > { %v4572_v43 = vpop.f32.mrf.mxu3 }
 0xa68   : > { %19625 = vst [vmem:[#allocation73_spill] sm:$0xff] %v16549_v20  ;;  %v5535_v53 = vpack.c.bf16 %v4572_v43, %v4572_v43  ;;  %12457 = vmatmul.msk.bf16.gmra.mxu0 %vm452_vm0, %v19626_v7 }
 0xa69   : > { %v16551_v3 = vpop.eup %13336 }
 0xa6a   : > { %v5340_v38 = vsel %vm1367_vm2, %v16551_v3, 0.0  ;;  %v6111_v61 = vsel %vm1787_vm3, %v5535_v53, 0  ;;  %v13339_v8 = vpop.eup %13338  ;;  %v19628_v53 = vld [vmem:[#allocation24_spill] sm:$0xff] }
 0xa6b   : > { %5341 = vadd.xlane.f32.xlu0 %v5340_v38  ;;  %v5467_v10 = vmul.f32 %v13339_v8, %v16435_v63  ;;  %v16574_v38 = vadd.f32 %v16355_v54, %v14373_v37 }
 0xa6d   : > { %v5668_v29 = vpop.f32.mrf.mxu2  ;;  %v5499_v50 = vpack.c.bf16 %v5467_v10, %v5467_v10  ;;  %v5154_v43 = vsel %vm1367_vm2, %v16574_v38, -inf }
 0xa6e   : > { %v5186_v51 = vpop.xlane.xlu2 %5185 }
 0xa6f   : > { %v5238_v4 = vsub.f32 %v16450_v1, %v5186_v51  ;;  %v19627_v51 = vld [vmem:[#allocation18_spill] sm:$0xff] }
 0xa70   : > { %v6235_v29 = vpop.f32.mrf.mxu0 }
 0xa71   : > { %v5291_v30 = vmul.f32 1.442695, %v5238_v4 }
 0xa72   : > { %12416 = vmatmul.msk.bf16.vlgmr.msrb.gmra.mxu2 %vm1367_vm2, %v5495_v31 }
 0xa73   : > { %13340 = vpow2.f32 %v5291_v30  ;;  %5209 = vmax.xlane.f32.xlu0 %v5208_v58  ;;  %6120 = vmatpush.bf16.msrb.mxu2 %v6111_v61  ;;  %v19629_v61 = vld [vmem:[#allocation78_spill] sm:$0xff] }
 0xa74   : > { %13342 = vrcp.f32 %v5405_v62  ;;  %v19630_v30 = vld [vmem:[#allocation102_spill] sm:$0xff]  ;;  %v5514_v62 = vpack.c.bf16 %v16171_v49, %v16171_v49 }
 0xa75   : > { %v4279_v58 = vadd.f32 %v19630_v30, %v19629_v61 }
 0xa78   : > { %12458 = vmatmul.msk.bf16.gmra.mxu0 %vm452_vm0, %v19628_v53  ;;  %v16582_v31 = vpop.f32.mrf.mxu0 }
 0xa79   : > { %v16567_v56 = vpop.eup %13340 }
 0xa7a   : > { %v5376_v1 = vsel %vm1367_vm2, %v16567_v56, 0.0  ;;  %v13343_v63 = vpop.eup %13342 }
 0xa7b   : > { %5377 = vadd.xlane.f32.xlu0 %v5376_v1  ;;  %v5471_v54 = vmul.f32 %v13343_v63, %v16445_v60  ;;  %v5712_v60 = vsel %vm1787_vm3, %v5514_v62, 0  ;;  %v19632_v63 = vld [vmem:[#allocation21_spill] sm:$0xff] }
 0xa7d   : > { %v5503_v20 = vpack.c.bf16 %v5471_v54, %v5471_v54 }
 0xa82   : > { %12420 = vmatmul.msk.bf16.vlgmr.msra.gmra.mxu2 %vm1367_vm2, %v5499_v50 }
 0xa83   : > { %5155 = vmax.xlane.f32.xlu0 %v5154_v43  ;;  %6495 = vmatpush.bf16.xpose.msra.mxu2 %v19627_v51  ;;  %v6240_v51 = vpop.f32.mrf.mxu0 }
 0xa87   : > { %v5318_v4 = vpop.xlane.xlu1 %5317 }
 0xa88   : > { %13344 = vrcp.f32 %v5318_v4  ;;  %12459 = vmatmul.msk.bf16.gmra.mxu0 %vm452_vm0, %v14220_v24 }
 0xa8b   : > { %v16599_v54 = vpop.f32.mrf.mxu0 }
 0xa8e   : > { %v13345_v8 = vpop.eup %13344  ;;  %v5742_v1 = vpop.f32.mrf.mxu2 }
 0xa8f   : > { %v5442_v10 = vmul.f32 %v13345_v8, %v16469_v28  ;;  %v16590_v50 = vadd.f32 %v5742_v1, %v4279_v58  ;;  %v5330_v43 = vpop.xlane.xlu1 %5329  ;;  %v6453_v8 = vpack.c.bf16 %v6235_v29, %v6235_v29  ;;  %v5518_v1 = vpack.c.bf16 %v16200_v25, %v16200_v25 }
 0xa90   : > { %13346 = vrcp.f32 %v5330_v43  ;;  %v16616_v25 = vadd.f32 %v16398_v15, %v14373_v37 }
 0xa91   : > { %19631 = vst [vmem:[#allocation99_spill] sm:$0xff] %v16590_v50  ;;  %v5474_v4 = vpack.c.bf16 %v5442_v10, %v5442_v10 }
 0xa92   : > { %12424 = vmatmul.msk.bf16.vlgmr.msrb.gmra.mxu2 %vm1367_vm2, %v5503_v20  ;;  %v5166_v29 = vsel %vm1367_vm2, %v16616_v25, -inf }
 0xa93   : > { %12395 = vmatmul.msk.bf16.vlgmr.msrb.gmra.mxu1 %vm1367_vm2, %v5474_v4  ;;  %6527 = vmatpush.bf16.xpose.msrb.mxu2 %v19632_v63  ;;  %v6245_v10 = vpop.f32.mrf.mxu0 }
 0xa94   : > { %5721 = vmatpush.bf16.msrb.mxu1 %v5712_v60  ;;  %v19633_v60 = vld [vmem:[#allocation25_spill] sm:$0xff]  ;;  %v6457_v15 = vpack.c.bf16 %v6245_v10, %v6245_v10 }
 0xa96   : > { %v5744_v49 = vpop.f32.mrf.mxu2  ;;  %v13347_v30 = vpop.eup %13346 }
 0xa97   : > { %v5198_v28 = vpop.xlane.xlu1 %5197  ;;  %v5446_v20 = vmul.f32 %v13347_v30, %v16475_v14  ;;  %v6455_v49 = vpack.c.bf16 %v6240_v51, %v6240_v51  ;;  %v19635_v51 = vld [vmem:[#allocation31_spill] sm:$0xff] }
 0xa98   : > { %v5242_v61 = vsub.f32 %v16480_v59, %v5198_v28  ;;  %v5788_v59 = vsel %vm1787_vm3, %v5518_v1, 0  ;;  %12460 = vmatmul.msk.bf16.gmra.mxu0 %vm452_vm0, %v14244_v42 }
 0xa99   : > { %v5478_v62 = vpack.c.bf16 %v5446_v20, %v5446_v20 }
 0xa9a   : > { %v5299_v58 = vmul.f32 1.442695, %v5242_v61  ;;  %v19634_v61 = vld [vmem:[#allocation28_spill] sm:$0xff] }
 0xa9b   : > { %v16618_v14 = vpop.f32.mrf.mxu0 }
 0xa9c   : > { %13348 = vpow2.f32 %v5299_v58 }
 0xaa2   : > { %v16604_v43 = vpop.eup %13348  ;;  %12506 = vmatmul.msk.bf16.vlgmr.msra.gmra.mxu2 %vm452_vm0, %v6453_v8 }
 0xaa3   : > { %12399 = vmatmul.msk.bf16.vlgmr.msra.gmra.mxu1 %vm1367_vm2, %v5478_v62  ;;  %v5388_v4 = vsel %vm1367_vm2, %v16604_v43, 0.0  ;;  %6559 = vmatpush.bf16.xpose.msra.mxu2 %v19633_v60  ;;  %v6250_v28 = vpop.f32.mrf.mxu0  ;;  %v19641_v60 = vld [vmem:[#allocation79_spill] sm:$0xff] }
 0xaa4   : > { %5797 = vmatpush.bf16.msra.mxu1 %v5788_v59  ;;  %5389 = vadd.xlane.f32.xlu2 %v5388_v4  ;;  %v19636_v59 = vld [vmem:[#allocation58_spill] sm:$0xff]  ;;  %v19637_v4 = vld [vmem:[#allocation103_spill] sm:$0xff] }
 0xaa8   : > { %12461 = vmatmul.msk.bf16.gmra.mxu0 %vm452_vm0, %v14268_v2 }
 0xaab   : > { %v16626_v58 = vpop.f32.mrf.mxu0 }
 0xaac   : > { %5167 = vmax.xlane.f32.xlu2 %v5166_v29  ;;  %v4283_v29 = vadd.f32 %v19637_v4, %v19636_v59 }
 0xab2   : > { %12508 = vmatmul.msk.bf16.vlgmr.msrb.gmra.mxu2 %vm452_vm0, %v6455_v49 }
 0xab3   : > { %6591 = vmatpush.bf16.xpose.msrb.mxu2 %v19634_v61  ;;  %v6255_v1 = vpop.f32.mrf.mxu0 }
 0xab7   : > { %v5354_v30 = vpop.xlane.xlu2 %5353 }
 0xab8   : > { %12462 = vmatmul.msk.bf16.gmra.mxu0 %vm452_vm0, %v19473_v39 }
 0xabb   : > { %v16637_v10 = vpop.f32.mrf.mxu0 }
 0xabf   : > { %v5132_v20 = vpop.xlane.xlu2 %5131 }
 0xac0   : > { %v5220_v8 = vsub.f32 %v16514_v34, %v5132_v20 }
 0xac2   : > { %v5255_v62 = vmul.f32 1.442695, %v5220_v8  ;;  %12510 = vmatmul.msk.bf16.vlgmr.msra.gmra.mxu2 %vm452_vm0, %v6457_v15  ;;  %v6459_v8 = vpack.c.bf16 %v6250_v28, %v6250_v28 }
 0xac3   : > { %6623 = vmatpush.bf16.xpose.msra.mxu2 %v19635_v51  ;;  %v6260_v59 = vpop.f32.mrf.mxu0 }
 0xac4   : > { %13350 = vpow2.f32 %v5255_v62  ;;  %v16647_v62 = vadd.f32 %v16463_v6, %v14373_v37 }
 0xac5   : > { %v5818_v49 = vpop.f32.mrf.mxu2 }
 0xac6   : > { %v16635_v50 = vadd.f32 %v5818_v49, %v4283_v29  ;;  %v5190_v4 = vsel %vm1367_vm2, %v16647_v62, -inf  ;;  %v19639_v29 = vld [vmem:[#allocation34_spill] sm:$0xff] }
 0xac8   : > { %19638 = vst [vmem:[#allocation76_spill] sm:$0xff] %v16635_v50  ;;  %12463 = vmatmul.msk.bf16.gmra.mxu0 %vm452_vm0, %v19476_v57  ;;  %v6461_v50 = vpack.c.bf16 %v6255_v1, %v6255_v1  ;;  %v5522_v1 = vpack.c.bf16 %v16243_v9, %v16243_v9 }
 0xaca   : > { %v16639_v61 = vpop.eup %13350  ;;  %v5864_v9 = vsel %vm1787_vm3, %v5522_v1, 0 }
 0xacb   : > { %v5322_v34 = vsel %vm1367_vm2, %v16639_v61, 0.0 }
 0xacc   : > { %5323 = vadd.xlane.f32.xlu0 %v5322_v34 }
 0xacd   : > { %v5820_v15 = vpop.f32.mrf.mxu2 }
 0xace   : > { %v16643_v20 = vpop.xlane.xlu1 %5365  ;;  %v16656_v15 = vpop.f32.mrf.mxu0 }
 0xad2   : > { %12512 = vmatmul.msk.bf16.vlgmr.msrb.gmra.mxu2 %vm452_vm0, %v6459_v8 }
 0xad3   : > { %6655 = vmatpush.bf16.xpose.msrb.mxu2 %v19639_v29  ;;  %v19640_v29 = vld [vmem:[#allocation37_spill] sm:$0xff] }
 0xad4   : > { %5191 = vmax.xlane.f32.xlu0 %v5190_v4 }
 0xad6   : > { %v5144_v49 = vpop.xlane.xlu1 %5143  ;;  %v6265_v51 = vpop.f32.mrf.mxu0 }
 0xad7   : > { %v5224_v34 = vsub.f32 %v16533_v21, %v5144_v49  ;;  %v19642_v21 = vld [vmem:[#allocation104_spill] sm:$0xff] }
 0xad8   : > { %v4287_v49 = vadd.f32 %v19642_v21, %v19641_v60  ;;  %12464 = vmatmul.msk.bf16.gmra.mxu0 %vm452_vm0, %v14340_v17 }
 0xad9   : > { %v5263_v28 = vmul.f32 1.442695, %v5224_v34 }
 0xadb   : > { %13352 = vpow2.f32 %v5263_v28 }
 0xade   : > { %v5342_v6 = vpop.xlane.xlu0 %5341  ;;  %v16678_v16 = vpop.f32.mrf.mxu0 }
 0xadf   : > { %13354 = vrcp.f32 %v5342_v6 }
 0xae0   : > { %13356 = vrcp.f32 %v5354_v30 }
 0xae1   : > { %v16658_v8 = vpop.eup %13352 }
 0xae2   : > { %12514 = vmatmul.msk.bf16.vlgmr.msra.gmra.mxu2 %vm452_vm0, %v6461_v50  ;;  %v5334_v4 = vsel %vm1367_vm2, %v16658_v8, 0.0  ;;  %v16672_v50 = vadd.f32 %v16486_v36, %v14373_v37 }
 0xae3   : > { %5335 = vadd.xlane.f32.xlu2 %v5334_v4  ;;  %6687 = vmatpush.bf16.xpose.msra.mxu2 %v19640_v29 }
 0xae4   : > { %v5202_v36 = vsel %vm1367_vm2, %v16672_v50, -inf }
 0xae5   : > { %v13355_v34 = vpop.eup %13354  ;;  %v5894_v63 = vpop.f32.mrf.mxu2 }
 0xae6   : > { %v5450_v28 = vmul.f32 %v13355_v34, %v16551_v3  ;;  %v16675_v6 = vadd.f32 %v5894_v63, %v4287_v49  ;;  %v5210_v4 = vpop.xlane.xlu0 %5209  ;;  %v6463_v49 = vpack.c.bf16 %v6260_v59, %v6260_v59  ;;  %v13357_v34 = vpop.eup %13356  ;;  %v5526_v59 = vpack.c.bf16 %v16313_v0, %v16313_v0 }
 0xae7   : > { %v5246_v29 = vsub.f32 %v16558_v13, %v5210_v4  ;;  %v6270_v1 = vpop.f32.mrf.mxu0  ;;  %v19646_v4 = vld [vmem:[#allocation105_spill] sm:$0xff] }
 0xae8   : > { %19643 = vst [vmem:[#allocation74_spill] sm:$0xff] %v16675_v6  ;;  %v5482_v60 = vpack.c.bf16 %v5450_v28, %v5450_v28  ;;  %v19645_v28 = vld [vmem:[#allocation80_spill] sm:$0xff]  ;;  %12465 = vmatmul.msk.bf16.gmra.mxu0 %vm452_vm0, %v14467_v32  ;;  %v19683_v6 = vld [vmem:[#allocation95_spill] sm:$0xff] }
 0xae9   : > { %v5307_v21 = vmul.f32 1.442695, %v5246_v29  ;;  %v19644_v29 = vld [vmem:[#allocation40_spill] sm:$0xff] }
 0xaea   : > { %12403 = vmatmul.msk.bf16.vlgmr.msrb.gmra.mxu1 %vm1367_vm2, %v5482_v60  ;;  %v4291_v60 = vadd.f32 %v19646_v4, %v19645_v28  ;;  %v6465_v4 = vpack.c.bf16 %v6265_v51, %v6265_v51  ;;  %v5530_v51 = vpack.c.bf16 %v16351_v5, %v16351_v5  ;;  %v6467_v5 = vpack.c.bf16 %v6270_v1, %v6270_v1 }
 0xaeb   : > { %13358 = vpow2.f32 %v5307_v21  ;;  %5873 = vmatpush.bf16.msrb.mxu1 %v5864_v9  ;;  %5203 = vmax.xlane.f32.xlu2 %v5202_v36  ;;  %v5454_v21 = vmul.f32 %v13357_v34, %v16504_v18  ;;  %v16699_v36 = vadd.f32 %v16433_v23, %v14373_v37  ;;  %v5940_v18 = vsel %vm1787_vm3, %v5526_v59, 0 }
 0xaec   : > { %13360 = vrcp.f32 %v16643_v20  ;;  %v5534_v1 = vpack.c.bf16 %v16547_v46, %v16547_v46 }
 0xaed   : > { %v5896_v3 = vpop.f32.mrf.mxu2  ;;  %v5178_v0 = vsel %vm1367_vm2, %v16699_v36, -inf }
 0xaee   : > { %v5378_v63 = vpop.xlane.xlu0 %5377 }
 0xaef   : > { %v16709_v34 = vpop.f32.mrf.mxu0 }
 0xaf1   : > { %v16684_v13 = vpop.eup %13358 }
 0xaf2   : > { %12516 = vmatmul.msk.bf16.vlgmr.msrb.gmra.mxu2 %vm452_vm0, %v6463_v49  ;;  %v5400_v30 = vsel %vm1367_vm2, %v16684_v13, 0.0 }
 0xaf3   : > { %5401 = vadd.xlane.f32.xlu1 %v5400_v30  ;;  %6719 = vmatpush.bf16.xpose.msrb.mxu2 %v19644_v29  ;;  %v5486_v29 = vpack.c.bf16 %v5454_v21, %v5454_v21  ;;  %v19649_v21 = vld [vmem:[#allocation61_spill] sm:$0xff] }
 0xaf5   : > { %v5970_v9 = vpop.f32.mrf.mxu2 }
 0xaf6   : > { %v16701_v3 = vadd.f32 %v5970_v9, %v4291_v60  ;;  %v5156_v49 = vpop.xlane.xlu0 %5155  ;;  %v13361_v60 = vpop.eup %13360  ;;  %v19650_v9 = vld [vmem:[#allocation106_spill] sm:$0xff] }
 0xaf7   : > { %v5228_v30 = vsub.f32 %v16574_v38, %v5156_v49  ;;  %v4295_v59 = vadd.f32 %v19650_v9, %v19649_v21  ;;  %v5458_v49 = vmul.f32 %v13361_v60, %v16527_v35  ;;  %v19652_v60 = vld [vmem:[#allocation81_spill] sm:$0xff]  ;;  %v19653_v21 = vld [vmem:[#allocation108_spill] sm:$0xff] }
 0xaf8   : > { %19647 = vst [vmem:[#allocation100_spill] sm:$0xff] %v16701_v3 }
 0xaf9   : > { %v5271_v28 = vmul.f32 1.442695, %v5228_v30 }
 0xafa   : > { %12407 = vmatmul.msk.bf16.vlgmr.msra.gmra.mxu1 %vm1367_vm2, %v5486_v29  ;;  %v19648_v29 = vld [vmem:[#allocation43_spill] sm:$0xff] }
 0xafb   : > { %13362 = vpow2.f32 %v5271_v28  ;;  %5949 = vmatpush.bf16.msra.mxu1 %v5940_v18  ;;  %5179 = vmax.xlane.f32.xlu1 %v5178_v0  ;;  %v16724_v28 = vadd.f32 %v16516_v44, %v14373_v37  ;;  %v6275_v0 = vpop.f32.mrf.mxu0  ;;  %v4270_v44 = vadd.f32 %v19653_v21, %v19652_v60 }
 0xafc   : > { %13364 = vrcp.f32 %v5378_v63 }
 0xafd   : > { %v5972_v23 = vpop.f32.mrf.mxu2 }
 0xafe   : > { %v5490_v23 = vpack.c.bf16 %v5458_v49, %v5458_v49 }
 0xb01   : > { %v16711_v38 = vpop.eup %13362 }
 0xb02   : > { %12518 = vmatmul.msk.bf16.vlgmr.msra.gmra.mxu2 %vm452_vm0, %v6465_v4  ;;  %v5346_v20 = vsel %vm1367_vm2, %v16711_v38, 0.0  ;;  %v6016_v4 = vsel %vm1787_vm3, %v5530_v51, 0  ;;  %v19655_v51 = vld [vmem:[#allocation45_spill] sm:$0xff] }
 0xb03   : > { %5347 = vadd.xlane.f32.xlu1 %v5346_v20  ;;  %6751 = vmatpush.bf16.xpose.msra.mxu2 %v19648_v29  ;;  %v5214_v20 = vsel %vm1367_vm2, %v16724_v28, -inf  ;;  %v16734_v9 = vpop.f32.mrf.mxu0  ;;  %v19657_v29 = vld [vmem:[#allocation107_spill] sm:$0xff] }
 0xb05   : > { %v6046_v30 = vpop.f32.mrf.mxu2 }
 0xb06   : > { %v16726_v18 = vadd.f32 %v6046_v30, %v4295_v59  ;;  %v13365_v30 = vpop.eup %13364 }
 0xb08   : > { %19651 = vst [vmem:[#allocation75_spill] sm:$0xff] %v16726_v18 }
 0xb0a   : > { %12411 = vmatmul.msk.bf16.vlgmr.msrb.gmra.mxu1 %vm1367_vm2, %v5490_v23  ;;  %v19656_v23 = vld [vmem:[#allocation64_spill] sm:$0xff] }
 0xb0b   : > { %6025 = vmatpush.bf16.msrb.mxu1 %v6016_v4  ;;  %5215 = vmax.xlane.f32.xlu1 %v5214_v20  ;;  %v4299_v63 = vadd.f32 %v19657_v29, %v19656_v23  ;;  %v5462_v4 = vmul.f32 %v13365_v30, %v16567_v56  ;;  %v6469_v29 = vpack.c.bf16 %v6275_v0, %v6275_v0  ;;  %v19659_v23 = vld [vmem:[#allocation82_spill] sm:$0xff]  ;;  %v19660_v56 = vld [vmem:[#allocation109_spill] sm:$0xff] }
 0xb0c   : > { %v4274_v30 = vadd.f32 %v19660_v56, %v19659_v23  ;;  %v19663_v56 = vld [vmem:[#allocation49_spill] sm:$0xff] }
 0xb0d   : > { %v6048_v35 = vpop.f32.mrf.mxu2  ;;  %v5494_v21 = vpack.c.bf16 %v5462_v4, %v5462_v4 }
 0xb10   : > { %v5571_v59 = vpop.f32.mrf.mxu1 }
 0xb11   : > { %v16736_v49 = vadd.f32 %v5571_v59, %v4270_v44  ;;  %v6280_v44 = vpop.f32.mrf.mxu0 }
 0xb12   : > { %12520 = vmatmul.msk.bf16.vlgmr.msrb.gmra.mxu2 %vm452_vm0, %v6467_v5  ;;  %v6092_v5 = vsel %vm1787_vm3, %v5534_v1, 0  ;;  %v19662_v1 = vld [vmem:[#allocation47_spill] sm:$0xff]  ;;  %v6471_v23 = vpack.c.bf16 %v6280_v44, %v6280_v44  ;;  %v5516_v44 = vpack.c.bf16 %v16187_v48, %v16187_v48 }
 0xb13   : > { %19654 = vst [vmem:[#allocation77_spill] sm:$0xff] %v16736_v49  ;;  %6783 = vmatpush.bf16.xpose.msrb.mxu2 %v19655_v51 }
 0xb15   : > { %v6122_v20 = vpop.f32.mrf.mxu2 }
 0xb16   : > { %v16745_v35 = vadd.f32 %v6122_v20, %v4299_v63 }
 0xb17   : > { %v5390_v60 = vpop.xlane.xlu2 %5389 }
 0xb18   : > { %19658 = vst [vmem:[#allocation101_spill] sm:$0xff] %v16745_v35  ;;  %v5573_v18 = vpop.f32.mrf.mxu1  ;;  %13366 = vrcp.f32 %v5390_v60 }
 0xb19   : > { %v16755_v4 = vpop.f32.mrf.mxu0 }
 0xb1a   : > { %12415 = vmatmul.msk.bf16.vlgmr.msra.gmra.mxu1 %vm1367_vm2, %v5494_v21 }
 0xb1b   : > { %6101 = vmatpush.bf16.msra.mxu1 %v6092_v5 }
 0xb1d   : > { %v6124_v59 = vpop.f32.mrf.mxu2 }
 0xb1e   : > { %v13367_v20 = vpop.eup %13366 }
 0xb1f   : > { %v5168_v49 = vpop.xlane.xlu2 %5167  ;;  %v5466_v60 = vmul.f32 %v13367_v20, %v16604_v43 }
 0xb20   : > { %v5232_v46 = vsub.f32 %v16616_v25, %v5168_v49  ;;  %v5647_v63 = vpop.f32.mrf.mxu1 }
 0xb21   : > { %v16752_v51 = vadd.f32 %v5647_v63, %v4274_v30  ;;  %v5498_v21 = vpack.c.bf16 %v5466_v60, %v5466_v60  ;;  %v19664_v60 = vld [vmem:[#allocation51_spill] sm:$0xff] }
 0xb22   : > { %v5279_v18 = vmul.f32 1.442695, %v5232_v46  ;;  %12522 = vmatmul.msk.bf16.vlgmr.msra.gmra.mxu2 %vm452_vm0, %v6469_v29  ;;  %v6285_v29 = vpop.f32.mrf.mxu0 }
 0xb23   : > { %19661 = vst [vmem:[#allocation19_spill] sm:$0xff] %v16752_v51  ;;  %6815 = vmatpush.bf16.xpose.msra.mxu2 %v19662_v1  ;;  %v6473_v63 = vpack.c.bf16 %v6285_v29, %v6285_v29  ;;  %v5750_v29 = vsel %vm1787_vm3, %v5516_v44, 0 }
 0xb24   : > { %13368 = vpow2.f32 %v5279_v18 }
 0xb25   : > { %v6497_v0 = vpop.f32.mrf.mxu2 }
 0xb26   : > { %v16789_v44 = vadd.f32 %v6497_v0, %v14373_v37 }
 0xb28   : > { %v5649_v5 = vpop.f32.mrf.mxu1 }
 0xb2a   : > { %v16759_v59 = vpop.eup %13368  ;;  %12419 = vmatmul.msk.bf16.vlgmr.msrb.gmra.mxu1 %vm1367_vm2, %v5498_v21  ;;  %v16768_v30 = vpop.f32.mrf.mxu0 }
 0xb2b   : > { %v5358_v25 = vsel %vm1367_vm2, %v16759_v59, 0.0 }
 0xb2c   : > { %5359 = vadd.xlane.f32.xlu0 %v5358_v25 }
 0xb2d   : > { %v6499_v49 = vpop.f32.mrf.mxu2 }
 0xb32   : > { %12524 = vmatmul.msk.bf16.vlgmr.msrb.gmra.mxu2 %vm452_vm0, %v6471_v23  ;;  %v6290_v18 = vpop.f32.mrf.mxu0 }
 0xb33   : > { %6847 = vmatpush.bf16.xpose.msrb.mxu2 %v19663_v56 }
 0xb35   : > { %v16766_v43 = vpop.f32.mrf.mxu2 }
 0xb3d   : > { %v6531_v46 = vpop.f32.mrf.mxu2 }
 0xb3f   : > { %v5324_v20 = vpop.xlane.xlu0 %5323 }
 0xb40   : > { %13370 = vrcp.f32 %v5324_v20  ;;  %v16778_v20 = vpop.f32.mrf.mxu0 }
 0xb42   : > { %12526 = vmatmul.msk.bf16.vlgmr.msra.gmra.mxu2 %vm452_vm0, %v6473_v63 }
 0xb43   : > { %6879 = vmatpush.bf16.xpose.msra.mxu2 %v19664_v60  ;;  %v6475_v60 = vpack.c.bf16 %v6290_v18, %v6290_v18  ;;  %v6997_v18 = vsel %vm1367_vm2, %v16789_v44, -inf }
 0xb45   : > { %v6561_v21 = vpop.f32.mrf.mxu2 }
 0xb46   : > { %v13371_v5 = vpop.eup %13370 }
 0xb47   : > { %v5444_v25 = vmul.f32 %v13371_v5, %v16639_v61  ;;  %v5192_v49 = vpop.xlane.xlu0 %5191  ;;  %v19665_v61 = vld [vmem:[#allocation53_spill] sm:$0xff] }
 0xb48   : > { %v5240_v23 = vsub.f32 %v16647_v62, %v5192_v49  ;;  %v19666_v49 = vld [vmem:[#allocation119_spill] sm:$0xff] }
 0xb49   : > { %v5476_v51 = vpack.c.bf16 %v5444_v25, %v5444_v25 }
 0xb4a   : > { %v5295_v46 = vmul.f32 1.442695, %v5240_v23  ;;  %v5520_v23 = vpack.c.bf16 %v19666_v49, %v19666_v49 }
 0xb4b   : > { %12397 = vmatmul.msk.bf16.vlgmr.msra.gmra.mxu3 %vm1367_vm2, %v5476_v51  ;;  %v6295_v51 = vpop.f32.mrf.mxu0 }
 0xb4c   : > { %13372 = vpow2.f32 %v5295_v46  ;;  %5759 = vmatpush.bf16.msra.mxu3 %v5750_v29 }
 0xb4d   : > { %v6563_v63 = vpop.f32.mrf.mxu2 }
 0xb4e   : > { %v6477_v63 = vpack.c.bf16 %v6295_v51, %v6295_v51  ;;  %v19669_v51 = vld [vmem:[#allocation110_spill] sm:$0xff] }
 0xb52   : > { %v16780_v56 = vpop.eup %13372  ;;  %12528 = vmatmul.msk.bf16.vlgmr.msrb.gmra.mxu2 %vm452_vm0, %v6475_v60 }
 0xb53   : > { %v5382_v48 = vsel %vm1367_vm2, %v16780_v56, 0.0  ;;  %6911 = vmatpush.bf16.xpose.msrb.mxu2 %v19665_v61  ;;  %v16797_v61 = vpop.f32.mrf.mxu0 }
 0xb54   : > { %5383 = vadd.xlane.f32.xlu0 %v5382_v48 }
 0xb55   : > { %v16786_v62 = vpop.f32.mrf.mxu2 }
 0xb56   : > { %v5336_v5 = vpop.xlane.xlu2 %5335 }
 0xb57   : > { %13374 = vrcp.f32 %v5336_v5  ;;  %v5826_v5 = vsel %vm1787_vm3, %v5520_v23, 0 }
 0xb5c   : > { %6998 = vmax.xlane.f32.xlu0 %v6997_v18  ;;  %v19667_v18 = vld [vmem:[#allocation55_spill] sm:$0xff] }
 0xb5d   : > { %v13375_v25 = vpop.eup %13374  ;;  %v6595_v60 = vpop.f32.mrf.mxu2 }
 0xb5e   : > { %v5448_v46 = vmul.f32 %v13375_v25, %v16658_v8  ;;  %v5204_v29 = vpop.xlane.xlu2 %5203  ;;  %v19668_v8 = vld [vmem:[#allocation62_spill] sm:$0xff] }
 0xb5f   : > { %v5244_v48 = vsub.f32 %v16672_v50, %v5204_v29  ;;  %v4278_v25 = vadd.f32 %v19669_v51, %v19668_v8 }
 0xb60   : > { %v5480_v0 = vpack.c.bf16 %v5448_v46, %v5448_v46  ;;  %v6300_v46 = vpop.f32.mrf.mxu0 }
 0xb61   : > { %v5303_v1 = vmul.f32 1.442695, %v5244_v48  ;;  %v6479_v51 = vpack.c.bf16 %v6300_v46, %v6300_v46  ;;  %v19672_v46 = vld [vmem:[#allocation83_spill] sm:$0xff] }
 0xb62   : > { %12401 = vmatmul.msk.bf16.vlgmr.msrb.gmra.mxu3 %vm1367_vm2, %v5480_v0  ;;  %12530 = vmatmul.msk.bf16.vlgmr.msra.gmra.mxu2 %vm452_vm0, %v6477_v63  ;;  %v16814_v0 = vadd.f32 %v6561_v21, %v14373_v37  ;;  %v19671_v21 = vld [vmem:[#allocation59_spill] sm:$0xff] }
 0xb63   : > { %13376 = vpow2.f32 %v5303_v1  ;;  %5835 = vmatpush.bf16.msrb.mxu3 %v5826_v5  ;;  %6943 = vmatpush.bf16.xpose.msra.mxu2 %v19667_v18 }
 0xb65   : > { %v16803_v60 = vpop.f32.mrf.mxu2 }
 0xb66   : > { %v5402_v50 = vpop.xlane.xlu1 %5401 }
 0xb67   : > { %13378 = vrcp.f32 %v5402_v50  ;;  %v5723_v49 = vpop.f32.mrf.mxu1 }
 0xb68   : > { %v16807_v29 = vadd.f32 %v5723_v49, %v4278_v25 }
 0xb69   : > { %v16809_v48 = vpop.eup %13376 }
 0xb6a   : > { %19670 = vst [vmem:[#allocation22_spill] sm:$0xff] %v16807_v29  ;;  %v5394_v23 = vsel %vm1367_vm2, %v16809_v48, 0.0  ;;  %v16818_v29 = vpop.f32.mrf.mxu0 }
 0xb6b   : > { %5395 = vadd.xlane.f32.xlu1 %v5394_v23  ;;  %v7009_v23 = vsel %vm1367_vm2, %v16814_v0, -inf }
 0xb6d   : > { %v13379_v1 = vpop.eup %13378  ;;  %v6627_v63 = vpop.f32.mrf.mxu2 }
 0xb6e   : > { %v5470_v5 = vmul.f32 %v13379_v1, %v16684_v13  ;;  %v5180_v8 = vpop.xlane.xlu1 %5179 }
 0xb6f   : > { %v5236_v50 = vsub.f32 %v16699_v36, %v5180_v8  ;;  %v5725_v18 = vpop.f32.mrf.mxu1  ;;  %v19673_v36 = vld [vmem:[#allocation111_spill] sm:$0xff] }
 0xb70   : > { %v5502_v25 = vpack.c.bf16 %v5470_v5, %v5470_v5  ;;  %v4282_v18 = vadd.f32 %v19673_v36, %v19672_v46  ;;  %v12911_v5 = vld [vmem:[#allocation7 + $0xb8] sm:$0xff]  ;;  %v5524_v46 = vpack.c.bf16 %v16261_v11, %v16261_v11  ;;  %v12908_v11 = vld [vmem:[#allocation7 + $0xa0] sm:$0xff] }
 0xb71   : > { %v5287_v49 = vmul.f32 1.442695, %v5236_v50  ;;  %6366 = vmatpush.bf16.msrb.mxu1 %v12911_v5  ;;  %v12909_v5 = vld [vmem:[#allocation7 + $0xa8] sm:$0xff] }
 0xb72   : > { %12423 = vmatmul.msk.bf16.vlgmr.msra.gmra.mxu1 %vm1367_vm2, %v5502_v25  ;;  %12532 = vmatmul.msk.bf16.vlgmr.msrb.gmra.mxu2 %vm452_vm0, %v6479_v51  ;;  %v12910_v25 = vld [vmem:[#allocation7 + $0xb0] sm:$0xff] }
 0xb73   : > { %13380 = vpow2.f32 %v5287_v49  ;;  %7010 = vmax.xlane.f32.xlu1 %v7009_v23  ;;  %6975 = vmatpush.bf16.xpose.msrb.mxu2 %v19671_v21  ;;  %v6305_v49 = vpop.f32.mrf.mxu0 }
 0xb75   : > { %v16825_v13 = vpop.f32.mrf.mxu2  ;;  %6367 = vmatpush.bf16.msrb.mxu1 %v12910_v25  ;;  %v19676_v25 = vld [vmem:[#allocation112_spill] sm:$0xff] }
 0xb76   : > { %v5348_v1 = vpop.xlane.xlu1 %5347 }
 0xb77   : > { %13382 = vrcp.f32 %v5348_v1  ;;  %v5799_v63 = vpop.f32.mrf.mxu1 }
 0xb78   : > { %v16829_v8 = vadd.f32 %v5799_v63, %v4282_v18  ;;  %v6481_v18 = vpack.c.bf16 %v6305_v49, %v6305_v49 }
 0xb79   : > { %v16831_v50 = vpop.eup %13380  ;;  %6368 = vmatpush.bf16.msrb.mxu1 %v12909_v5 }
 0xb7a   : > { %19674 = vst [vmem:[#allocation24_spill] sm:$0xff] %v16829_v8  ;;  %v5370_v51 = vsel %vm1367_vm2, %v16831_v50, 0.0 }
 0xb7b   : > { %5371 = vadd.xlane.f32.xlu2 %v5370_v51  ;;  %v5902_v51 = vsel %vm1787_vm3, %v5524_v46, 0 }
 0xb7d   : > { %v13383_v23 = vpop.eup %13382  ;;  %v6659_v21 = vpop.f32.mrf.mxu2  ;;  %6369 = vmatpush.bf16.msrb.mxu1 %v12908_v11 }
 0xb7e   : > { %v5452_v36 = vmul.f32 %v13383_v23, %v16711_v38  ;;  %v5216_v1 = vpop.xlane.xlu1 %5215  ;;  %v19675_v38 = vld [vmem:[#allocation84_spill] sm:$0xff]  ;;  %v12907_v23 = vld [vmem:[#allocation7 + $0x98] sm:$0xff] }
 0xb7f   : > { %v5248_v63 = vsub.f32 %v16724_v28, %v5216_v1  ;;  %v5801_v8 = vpop.f32.mrf.mxu1  ;;  %v4286_v49 = vadd.f32 %v19676_v25, %v19675_v38  ;;  %v12906_v1 = vld [vmem:[#allocation7 + $0x90] sm:$0xff]  ;;  %v19679_v38 = vld [vmem:[#allocation91_spill] sm:$0xff] }
 0xb80   : > { %v5484_v35 = vpack.c.bf16 %v5452_v36, %v5452_v36 }
 0xb81   : > { %v5311_v3 = vmul.f32 1.442695, %v5248_v63  ;;  %6370 = vmatpush.bf16.msrb.mxu1 %v12907_v23  ;;  %v16857_v63 = vadd.f32 %v16803_v60, %v14373_v37 }
 0xb82   : > { %12405 = vmatmul.msk.bf16.vlgmr.msra.gmra.mxu3 %vm1367_vm2, %v5484_v35  ;;  %12534 = vmatmul.msk.bf16.vlgmr.msra.gmra.mxu2 %vm452_vm0, %v6481_v18 }
 0xb83   : > { %13384 = vpow2.f32 %v5311_v3  ;;  %5911 = vmatpush.bf16.msra.mxu3 %v5902_v51  ;;  %v7021_v51 = vsel %vm1367_vm2, %v16857_v63, -inf }
 0xb85   : > { %v6689_v21 = vpop.f32.mrf.mxu2  ;;  %6371 = vmatpush.bf16.msrb.mxu1 %v12906_v1 }
 0xb86   : > { %v16845_v28 = vadd.f32 %v6689_v21, %v14373_v37  ;;  %v19678_v21 = vld [vmem:[#allocation63_spill] sm:$0xff] }
 0xb87   : > { %v5875_v8 = vpop.f32.mrf.mxu1  ;;  %v4290_v25 = vadd.f32 %v19679_v38, %v19678_v21  ;;  %v5528_v21 = vpack.c.bf16 %v19683_v6, %v19683_v6 }
 0xb88   : > { %v16847_v36 = vadd.f32 %v5875_v8, %v4286_v49  ;;  %v7033_v35 = vsel %vm1367_vm2, %v16845_v28, -inf  ;;  %12490 = vmatmul.msk.bf16.vlgmr.msrb.gmra.mxu1 %vm452_vm0, %v14090_v12 }
 0xb89   : > { %v16851_v46 = vpop.eup %13384  ;;  %7034 = vmax.xlane.f32.xlu0 %v7033_v35 }
 0xb8a   : > { %19677 = vst [vmem:[#allocation78_spill] sm:$0xff] %v16847_v36  ;;  %v5406_v3 = vsel %vm1367_vm2, %v16851_v46, 0.0 }
 0xb8b   : > { %5407 = vadd.xlane.f32.xlu2 %v5406_v3 }
 0xb8d   : > { %v6691_v18 = vpop.f32.mrf.mxu2 }
 0xb8e   : > { %v19681_v18 = vld [vmem:[#allocation65_spill] sm:$0xff] }
 0xb8f   : > { %v5877_v5 = vpop.f32.mrf.mxu1 }
 0xb90   : > { %v19682_v5 = vld [vmem:[#allocation113_spill] sm:$0xff] }
 0xb93   : > { %7022 = vmax.xlane.f32.xlu2 %v7021_v51  ;;  %v4294_v51 = vadd.f32 %v19682_v5, %v19681_v18  ;;  %v16891_v5 = vpop.f32.mrf.mxu3 }
 0xb95   : > { %v16863_v11 = vpop.f32.mrf.mxu2 }
 0xb97   : > { %v5951_v49 = vpop.f32.mrf.mxu1 }
 0xb98   : > { %v16867_v8 = vadd.f32 %v5951_v49, %v4290_v25  ;;  %12491 = vmatmul.msk.bf16.gmra.mxu1 %vm452_vm0, %v14096_v19 }
 0xb9a   : > { %19680 = vst [vmem:[#allocation102_spill] sm:$0xff] %v16867_v8 }
 0xb9d   : > { %v6723_v23 = vpop.f32.mrf.mxu2 }
 0xb9f   : > { %v5360_v35 = vpop.xlane.xlu0 %5359  ;;  %v5953_v60 = vpop.f32.mrf.mxu1 }
 0xba0   : > { %13386 = vrcp.f32 %v5360_v35  ;;  %v5978_v60 = vsel %vm1787_vm3, %v5528_v21, 0 }
 0xba5   : > { %v6753_v3 = vpop.f32.mrf.mxu2 }
 0xba6   : > { %v13387_v1 = vpop.eup %13386  ;;  %v16874_v36 = vadd.f32 %v6753_v3, %v14373_v37 }
 0xba7   : > { %v5456_v38 = vmul.f32 %v13387_v1, %v16759_v59  ;;  %v6027_v25 = vpop.f32.mrf.mxu1 }
 0xba8   : > { %v16879_v49 = vadd.f32 %v6027_v25, %v4294_v51  ;;  %v7045_v23 = vsel %vm1367_vm2, %v16874_v36, -inf  ;;  %12492 = vmatmul.msk.bf16.gmra.mxu1 %vm452_vm0, %v14108_v26  ;;  %v19686_v25 = vld [vmem:[#allocation94_spill] sm:$0xff]  ;;  %v19690_v26 = vld [vmem:[#allocation67_spill] sm:$0xff] }
 0xba9   : > { %v5488_v35 = vpack.c.bf16 %v5456_v38, %v5456_v38  ;;  %7046 = vmax.xlane.f32.xlu2 %v7045_v23  ;;  %v19685_v38 = vld [vmem:[#allocation69_spill] sm:$0xff] }
 0xbaa   : > { %19684 = vst [vmem:[#allocation58_spill] sm:$0xff] %v16879_v49  ;;  %v4272_v23 = vadd.f32 %v19686_v25, %v19685_v38 }
 0xbab   : > { %12409 = vmatmul.msk.bf16.vlgmr.msrb.gmra.mxu3 %vm1367_vm2, %v5488_v35 }
 0xbac   : > { %5987 = vmatpush.bf16.msrb.mxu3 %v5978_v60 }
 0xbad   : > { %v6755_v3 = vpop.f32.mrf.mxu2 }
 0xbaf   : > { %v6029_v18 = vpop.f32.mrf.mxu1 }
 0xbb5   : > { %v16887_v6 = vpop.f32.mrf.mxu2 }
 0xbb8   : > { %12493 = vmatmul.msk.bf16.gmra.mxu1 %vm452_vm0, %v14120_v33 }
 0xbbd   : > { %v6787_v59 = vpop.f32.mrf.mxu2 }
 0xbc5   : > { %v6817_v1 = vpop.f32.mrf.mxu2 }
 0xbc7   : > { %v5384_v51 = vpop.xlane.xlu0 %5383 }
 0xbc8   : > { %12494 = vmatmul.msk.bf16.gmra.mxu1 %vm452_vm0, %v14132_v40 }
 0xbcd   : > { %v6819_v21 = vpop.f32.mrf.mxu2 }
 0xbce   : > { %v5609_v35 = vpop.f32.mrf.mxu3  ;;  %v16907_v21 = vadd.f32 %v6817_v1, %v14373_v37 }
 0xbcf   : > { %v16895_v60 = vadd.f32 %v5609_v35, %v4272_v23  ;;  %v6999_v3 = vpop.xlane.xlu0 %6998  ;;  %v19688_v35 = vld [vmem:[#allocation85_spill] sm:$0xff] }
 0xbd0   : > { %v7093_v18 = vsub.f32 %v16789_v44, %v6999_v3  ;;  %v7057_v44 = vsel %vm1367_vm2, %v16907_v21, -inf  ;;  %v19689_v3 = vld [vmem:[#allocation96_spill] sm:$0xff] }
 0xbd1   : > { %19687 = vst [vmem:[#allocation103_spill] sm:$0xff] %v16895_v60 }
 0xbd2   : > { %v7125_v59 = vmul.f32 1.442695, %v7093_v18 }
 0xbd4   : > { %13388 = vpow2.f32 %v7125_v59 }
 0xbd5   : > { %v16900_v49 = vpop.f32.mrf.mxu2 }
 0xbd6   : > { %v5611_v8 = vpop.f32.mrf.mxu3 }
 0xbd7   : > { %v4276_v8 = vadd.f32 %v19689_v3, %v19688_v35 }
 0xbd8   : > { %12495 = vmatmul.msk.bf16.gmra.mxu1 %vm452_vm0, %v14144_v47  ;;  %v19691_v47 = vld [vmem:[#allocation93_spill] sm:$0xff] }
 0xbd9   : > { %v4298_v19 = vadd.f32 %v19691_v47, %v19690_v26  ;;  %v19693_v26 = vld [vmem:[#allocation121_spill] sm:$0xff] }
 0xbda   : > { %v16902_v41 = vpop.eup %13388 }
 0xbdb   : > { %v7189_v38 = vsel %vm1367_vm2, %v16902_v41, 0.0 }
 0xbdc   : > { %7190 = vadd.xlane.f32.xlu1 %v7189_v38 }
 0xbdd   : > { %v6851_v25 = vpop.f32.mrf.mxu2 }
 0xbde   : > { %v5396_v23 = vpop.xlane.xlu1 %5395 }
 0xbe4   : > { %7058 = vmax.xlane.f32.xlu1 %v7057_v44 }
 0xbe5   : > { %v5685_v18 = vpop.f32.mrf.mxu3  ;;  %v6881_v59 = vpop.f32.mrf.mxu2 }
 0xbe6   : > { %v16915_v60 = vadd.f32 %v5685_v18, %v4276_v8  ;;  %v7011_v38 = vpop.xlane.xlu1 %7010 }
 0xbe7   : > { %v7097_v25 = vsub.f32 %v16814_v0, %v7011_v38 }
 0xbe8   : > { %12496 = vmatmul.msk.bf16.gmra.mxu1 %vm452_vm0, %v19624_v52 }
 0xbe9   : > { %v7133_v40 = vmul.f32 1.442695, %v7097_v25 }
 0xbeb   : > { %13390 = vpow2.f32 %v7133_v40  ;;  %v16929_v40 = vadd.f32 %v6881_v59, %v14373_v37 }
 0xbed   : > { %v5687_v1 = vpop.f32.mrf.mxu3  ;;  %v6883_v33 = vpop.f32.mrf.mxu2  ;;  %v7069_v3 = vsel %vm1367_vm2, %v16929_v40, -inf }
 0xbee   : > { %v5372_v12 = vpop.xlane.xlu2 %5371 }
 0xbef   : > { %13392 = vrcp.f32 %v5372_v12  ;;  %v6103_v27 = vpop.f32.mrf.mxu1  ;;  %v5532_v12 = vpack.c.bf16 %v19693_v26, %v19693_v26 }
 0xbf0   : > { %v16920_v55 = vadd.f32 %v6103_v27, %v4298_v19  ;;  %13394 = vrcp.f32 %v5384_v51 }
 0xbf1   : > { %v16924_v44 = vpop.eup %13390  ;;  %v6054_v8 = vsel %vm1787_vm3, %v5532_v12, 0 }
 0xbf2   : > { %19692 = vst [vmem:[#allocation79_spill] sm:$0xff] %v16920_v55  ;;  %v7201_v0 = vsel %vm1367_vm2, %v16924_v44, 0.0 }
 0xbf3   : > { %7202 = vadd.xlane.f32.xlu0 %v7201_v0  ;;  %v19694_v0 = vld [vmem:[#allocation86_spill] sm:$0xff] }
 0xbf5   : > { %v13393_v33 = vpop.eup %13392  ;;  %v16931_v35 = vpop.f32.mrf.mxu2 }
 0xbf6   : > { %v5460_v19 = vmul.f32 %v13393_v33, %v16831_v50  ;;  %v13395_v50 = vpop.eup %13394  ;;  %v19695_v33 = vld [vmem:[#allocation114_spill] sm:$0xff] }
 0xbf7   : > { %v6105_v47 = vpop.f32.mrf.mxu1  ;;  %v4280_v26 = vadd.f32 %v19695_v33, %v19694_v0 }
 0xbf8   : > { %v5492_v27 = vpack.c.bf16 %v5460_v19, %v5460_v19  ;;  %12497 = vmatmul.msk.bf16.gmra.mxu1 %vm452_vm0, %v19626_v7  ;;  %v5464_v19 = vmul.f32 %v13395_v50, %v16780_v56  ;;  %v5536_v47 = vpack.c.bf16 %v16891_v5, %v16891_v5 }
 0xbfa   : > { %12413 = vmatmul.msk.bf16.vlgmr.msra.gmra.mxu3 %vm1367_vm2, %v5492_v27  ;;  %v6130_v56 = vsel %vm1787_vm3, %v5536_v47, 0 }
 0xbfb   : > { %6063 = vmatpush.bf16.msra.mxu3 %v6054_v8  ;;  %7070 = vmax.xlane.f32.xlu0 %v7069_v3  ;;  %v16952_v8 = vpop.f32.mrf.mxu0 }
 0xbfc   : > { %v7035_v18 = vpop.xlane.xlu0 %7034 }
 0xbfd   : > { %v7105_v59 = vsub.f32 %v16845_v28, %v7035_v18  ;;  %v6915_v38 = vpop.f32.mrf.mxu2 }
 0xbfe   : > { %v5408_v25 = vpop.xlane.xlu2 %5407 }
 0xbff   : > { %v7149_v1 = vmul.f32 1.442695, %v7105_v59  ;;  %v5496_v59 = vpack.c.bf16 %v5464_v19, %v5464_v19 }
 0xc01   : > { %13396 = vpow2.f32 %v7149_v1 }
 0xc02   : > { %13398 = vrcp.f32 %v5396_v23 }
 0xc05   : > { %v5761_v12 = vpop.f32.mrf.mxu3  ;;  %v6945_v51 = vpop.f32.mrf.mxu2 }
 0xc06   : > { %v16948_v27 = vadd.f32 %v5761_v12, %v4280_v26  ;;  %v7023_v28 = vpop.xlane.xlu2 %7022  ;;  %v6373_v0 = vpop.f32.mrf.mxu1 }
 0xc07   : > { %v16950_v3 = vpop.eup %13396  ;;  %v7101_v18 = vsub.f32 %v16857_v63, %v7023_v28  ;;  %v7381_v33 = vpack.c.bf16 %v6373_v0, %v6373_v0  ;;  %v6310_v26 = vpop.f32.mrf.mxu0 }
 0xc08   : > { %v7225_v38 = vsel %vm1367_vm2, %v16950_v3, 0.0  ;;  %v13399_v12 = vpop.eup %13398  ;;  %12498 = vmatmul.msk.bf16.gmra.mxu1 %vm452_vm0, %v19628_v53  ;;  %v6483_v63 = vpack.c.bf16 %v6310_v26, %v6310_v26 }
 0xc09   : > { %v7141_v1 = vmul.f32 1.442695, %v7101_v18  ;;  %7226 = vadd.xlane.f32.xlu1 %v7225_v38  ;;  %v7417_v23 = vsel %vm1787_vm3, %v7381_v33, 0  ;;  %v5468_v47 = vmul.f32 %v13399_v12, %v16809_v48  ;;  %v16969_v18 = vadd.f32 %v6945_v51, %v14373_v37 }
 0xc0a   : > { %12417 = vmatmul.msk.bf16.vlgmr.msrb.gmra.mxu3 %vm1367_vm2, %v5496_v59  ;;  %12536 = vmatmul.msk.bf16.vlgmr.msrb.gmra.mxu2 %vm452_vm0, %v6483_v63  ;;  %v16980_v48 = vadd.f32 %v16766_v43, %v14373_v37 }
 0xc0b   : > { %13400 = vpow2.f32 %v7141_v1  ;;  %6139 = vmatpush.bf16.msrb.mxu3 %v6130_v56  ;;  %7426 = vmatpush.bf16.msra.mxu2 %v7417_v23  ;;  %v5500_v38 = vpack.c.bf16 %v5468_v47, %v5468_v47  ;;  %v7081_v1 = vsel %vm1367_vm2, %v16969_v18, -inf  ;;  %v19696_v56 = vld [vmem:[#allocation20_spill] sm:$0xff]  ;;  %v19697_v47 = vld [vmem:[#allocation23_spill] sm:$0xff] }
 0xc0c   : > { %13402 = vrcp.f32 %v5408_v25  ;;  %v7003_v12 = vsel %vm1367_vm2, %v16980_v48, -inf }
 0xc0d   : > { %v5763_v5 = vpop.f32.mrf.mxu3  ;;  %v6947_v50 = vpop.f32.mrf.mxu2 }
 0xc0e   : > { %v16971_v59 = vpop.f32.mrf.mxu1 }
 0xc11   : > { %v16961_v19 = vpop.eup %13400 }
 0xc12   : > { %v7213_v28 = vsel %vm1367_vm2, %v16961_v19, 0.0  ;;  %v13403_v26 = vpop.eup %13402 }
 0xc13   : > { %7214 = vadd.xlane.f32.xlu2 %v7213_v28 }
 0xc16   : > { %v6378_v51 = vpop.f32.mrf.mxu1 }
 0xc17   : > { %v7383_v33 = vpack.c.bf16 %v6378_v51, %v6378_v51 }
 0xc18   : > { %12499 = vmatmul.msk.bf16.gmra.mxu1 %vm452_vm0, %v14220_v24 }
 0xc19   : > { %v7455_v25 = vsel %vm1787_vm3, %v7383_v33, 0 }
 0xc1a   : > { %12421 = vmatmul.msk.bf16.vlgmr.msra.gmra.mxu3 %vm1367_vm2, %v5500_v38  ;;  %7464 = vmatpush.bf16.msra.mxu0 %v7455_v25  ;;  %v19698_v38 = vld [vmem:[#allocation87_spill] sm:$0xff] }
 0xc1b   : > { %7082 = vmax.xlane.f32.xlu2 %v7081_v1  ;;  %6511 = vmatpush.bf16.xpose.msra.mxu3 %v19696_v56  ;;  %v19699_v1 = vld [vmem:[#allocation115_spill] sm:$0xff] }
 0xc1c   : > { %v7047_v5 = vpop.xlane.xlu2 %7046 }
 0xc1d   : > { %v7109_v50 = vsub.f32 %v16874_v36, %v7047_v5  ;;  %v5472_v36 = vmul.f32 %v13403_v26, %v16851_v46  ;;  %v4284_v5 = vadd.f32 %v19699_v1, %v19698_v38 }
 0xc1e   : > { %v6380_v63 = vpop.f32.mrf.mxu1 }
 0xc1f   : > { %v7157_v0 = vmul.f32 1.442695, %v7109_v50  ;;  %v5504_v23 = vpack.c.bf16 %v5472_v36, %v5472_v36  ;;  %v19701_v36 = vld [vmem:[#allocation26_spill] sm:$0xff] }
 0xc21   : > { %13404 = vpow2.f32 %v7157_v0 }
 0xc23   : > { %7004 = vmax.xlane.f32.xlu2 %v7003_v12  ;;  %v6454_v12 = vpack.c.bf16 %v16582_v31, %v16582_v31  ;;  %v7384_v31 = vpack.c.bf16 %v6380_v63, %v6380_v63 }
 0xc26   : > { %v6383_v51 = vpop.f32.mrf.mxu1 }
 0xc27   : > { %v16988_v43 = vpop.eup %13404  ;;  %v7385_v46 = vpack.c.bf16 %v6383_v51, %v6383_v51 }
 0xc28   : > { %v7237_v28 = vsel %vm1367_vm2, %v16988_v43, 0.0  ;;  %12500 = vmatmul.msk.bf16.gmra.mxu1 %vm452_vm0, %v14244_v42 }
 0xc29   : > { %7238 = vadd.xlane.f32.xlu0 %v7237_v28  ;;  %v7493_v33 = vsel %vm1787_vm3, %v7385_v46, 0 }
 0xc2a   : > { %12425 = vmatmul.msk.bf16.vlgmr.msrb.gmra.mxu3 %vm1367_vm2, %v5504_v23  ;;  %7502 = vmatpush.bf16.msrb.mxu2 %v7493_v33  ;;  %v7474_v33 = vsel %vm1787_vm3, %v7384_v31, 0 }
 0xc2b   : > { %6543 = vmatpush.bf16.xpose.msrb.mxu3 %v19697_v47  ;;  %7483 = vmatpush.bf16.msra.mxu1 %v7474_v33 }
 0xc2e   : > { %v5837_v50 = vpop.f32.mrf.mxu3  ;;  %v17001_v25 = vpop.f32.mrf.mxu1 }
 0xc2f   : > { %v16996_v0 = vadd.f32 %v5837_v50, %v4284_v5  ;;  %v6456_v5 = vpack.c.bf16 %v16599_v54, %v16599_v54  ;;  %v19702_v50 = vld [vmem:[#allocation29_spill] sm:$0xff] }
 0xc31   : > { %19700 = vst [vmem:[#allocation104_spill] sm:$0xff] %v16996_v0 }
 0xc36   : > { %v5839_v26 = vpop.f32.mrf.mxu3  ;;  %v6388_v23 = vpop.f32.mrf.mxu1 }
 0xc37   : > { %v7387_v28 = vpack.c.bf16 %v6388_v23, %v6388_v23 }
 0xc38   : > { %12501 = vmatmul.msk.bf16.gmra.mxu1 %vm452_vm0, %v14268_v2 }
 0xc39   : > { %v7531_v38 = vsel %vm1787_vm3, %v7387_v28, 0 }
 0xc3a   : > { %12507 = vmatmul.msk.bf16.vlgmr.msra.gmra.mxu3 %vm452_vm0, %v6454_v12  ;;  %7540 = vmatpush.bf16.msrb.mxu0 %v7531_v38  ;;  %v6458_v38 = vpack.c.bf16 %v16618_v14, %v16618_v14 }
 0xc3b   : > { %6575 = vmatpush.bf16.xpose.msra.mxu3 %v19701_v36 }
 0xc3e   : > { %v6390_v1 = vpop.f32.mrf.mxu1 }
 0xc46   : > { %v6393_v51 = vpop.f32.mrf.mxu1 }
 0xc47   : > { %v7389_v26 = vpack.c.bf16 %v6393_v51, %v6393_v51  ;;  %v19703_v51 = vld [vmem:[#allocation32_spill] sm:$0xff] }
 0xc48   : > { %12502 = vmatmul.msk.bf16.gmra.mxu1 %vm452_vm0, %v19473_v39 }
 0xc4a   : > { %12509 = vmatmul.msk.bf16.vlgmr.msrb.gmra.mxu3 %vm452_vm0, %v6456_v5 }
 0xc4b   : > { %6607 = vmatpush.bf16.xpose.msrb.mxu3 %v19702_v50 }
 0xc4e   : > { %v17017_v23 = vpop.f32.mrf.mxu1 }
 0xc4f   : > { %v7191_v46 = vpop.xlane.xlu1 %7190 }
 0xc50   : > { %13406 = vrcp.f32 %v7191_v46  ;;  %v7569_v46 = vsel %vm1787_vm3, %v7389_v26, 0 }
 0xc56   : > { %v13407_v12 = vpop.eup %13406  ;;  %v17027_v33 = vpop.f32.mrf.mxu1 }
 0xc57   : > { %v7317_v54 = vmul.f32 %v13407_v12, %v16902_v41  ;;  %v7059_v28 = vpop.xlane.xlu1 %7058  ;;  %v17039_v12 = vadd.f32 %v16786_v62, %v14373_v37  ;;  %v17050_v62 = vadd.f32 %v16863_v11, %v14373_v37 }
 0xc58   : > { %v7113_v63 = vsub.f32 %v16907_v21, %v7059_v28  ;;  %12503 = vmatmul.msk.bf16.gmra.mxu1 %vm452_vm0, %v19476_v57 }
 0xc59   : > { %v7349_v5 = vpack.c.bf16 %v7317_v54, %v7317_v54  ;;  %v6460_v54 = vpack.c.bf16 %v16626_v58, %v16626_v58  ;;  %v7015_v28 = vsel %vm1367_vm2, %v17039_v12, -inf }
 0xc5a   : > { %v7165_v31 = vmul.f32 1.442695, %v7113_v63  ;;  %12511 = vmatmul.msk.bf16.vlgmr.msra.gmra.mxu3 %vm452_vm0, %v6458_v38  ;;  %v19704_v38 = vld [vmem:[#allocation35_spill] sm:$0xff] }
 0xc5b   : > { %12538 = vmatmul.msk.bf16.vlgmr.msra.gmra.mxu2 %vm1367_vm2, %v7349_v5  ;;  %6639 = vmatpush.bf16.xpose.msra.mxu3 %v19703_v51 }
 0xc5c   : > { %13408 = vpow2.f32 %v7165_v31  ;;  %7578 = vmatpush.bf16.msra.mxu2 %v7569_v46 }
 0xc5e   : > { %v17035_v26 = vpop.f32.mrf.mxu1 }
 0xc62   : > { %v17031_v41 = vpop.eup %13408 }
 0xc63   : > { %v7249_v14 = vsel %vm1367_vm2, %v17031_v41, 0.0 }
 0xc64   : > { %7250 = vadd.xlane.f32.xlu1 %v7249_v14  ;;  %v7388_v14 = vpack.c.bf16 %v6390_v1, %v6390_v1  ;;  %v6462_v1 = vpack.c.bf16 %v16637_v10, %v16637_v10 }
 0xc66   : > { %v7203_v21 = vpop.xlane.xlu0 %7202  ;;  %v6403_v31 = vpop.f32.mrf.mxu1  ;;  %v7550_v11 = vsel %vm1787_vm3, %v7388_v14, 0 }
 0xc67   : > { %13410 = vrcp.f32 %v7203_v21  ;;  %7559 = vmatpush.bf16.msrb.mxu1 %v7550_v11  ;;  %v17086_v11 = vadd.f32 %v16887_v6, %v14373_v37 }
 0xc68   : > { %12504 = vmatmul.msk.bf16.gmra.mxu1 %vm452_vm0, %v14340_v17 }
 0xc6a   : > { %12513 = vmatmul.msk.bf16.vlgmr.msrb.gmra.mxu3 %vm452_vm0, %v6460_v54  ;;  %v7393_v54 = vpack.c.bf16 %v6403_v31, %v6403_v31  ;;  %v19707_v31 = vld [vmem:[#allocation116_spill] sm:$0xff] }
 0xc6b   : > { %6671 = vmatpush.bf16.xpose.msrb.mxu3 %v19704_v38 }
 0xc6c   : > { %7016 = vmax.xlane.f32.xlu1 %v7015_v28  ;;  %v7645_v28 = vsel %vm1787_vm3, %v7393_v54, 0 }
 0xc6d   : > { %v13411_v63 = vpop.eup %13410 }
 0xc6e   : > { %v7321_v5 = vmul.f32 %v13411_v63, %v16924_v44  ;;  %v7071_v46 = vpop.xlane.xlu0 %7070  ;;  %v7039_v44 = vsel %vm1367_vm2, %v17050_v62, -inf }
 0xc6f   : > { %v7117_v58 = vsub.f32 %v16929_v40, %v7071_v46  ;;  %v17060_v40 = vpop.f32.mrf.mxu1  ;;  %v19706_v46 = vld [vmem:[#allocation88_spill] sm:$0xff] }
 0xc70   : > { %v7353_v21 = vpack.c.bf16 %v7321_v5, %v7321_v5  ;;  %v19705_v5 = vld [vmem:[#allocation38_spill] sm:$0xff]  ;;  %v4288_v14 = vadd.f32 %v19707_v31, %v19706_v46  ;;  %v7051_v46 = vsel %vm1367_vm2, %v17086_v11, -inf  ;;  %v19709_v31 = vld [vmem:[#allocation41_spill] sm:$0xff] }
 0xc71   : > { %v7173_v55 = vmul.f32 1.442695, %v7117_v58 }
 0xc72   : > { %12542 = vmatmul.msk.bf16.vlgmr.msrb.gmra.mxu2 %vm1367_vm2, %v7353_v21  ;;  %v17074_v21 = vadd.f32 %v16825_v13, %v14373_v37  ;;  %v6464_v13 = vpack.c.bf16 %v16656_v15, %v16656_v15 }
 0xc73   : > { %13412 = vpow2.f32 %v7173_v55  ;;  %7654 = vmatpush.bf16.msrb.mxu2 %v7645_v28 }
 0xc74   : > { %7040 = vmax.xlane.f32.xlu1 %v7039_v44  ;;  %v7027_v28 = vsel %vm1367_vm2, %v17074_v21, -inf }
 0xc77   : > { %v17078_v10 = vpop.f32.mrf.mxu1 }
 0xc78   : > { %12505 = vmatmul.msk.bf16.gmra.mxu1 %vm452_vm0, %v14467_v32 }
 0xc79   : > { %v17064_v63 = vpop.eup %13412 }
 0xc7a   : > { %12515 = vmatmul.msk.bf16.vlgmr.msra.gmra.mxu3 %vm452_vm0, %v6462_v1  ;;  %v7261_v55 = vsel %vm1367_vm2, %v17064_v63, 0.0 }
 0xc7b   : > { %7262 = vadd.xlane.f32.xlu0 %v7261_v55  ;;  %6703 = vmatpush.bf16.xpose.msra.mxu3 %v19705_v5 }
 0xc7c   : > { %v7227_v15 = vpop.xlane.xlu1 %7226 }
 0xc7d   : > { %v5913_v58 = vpop.f32.mrf.mxu3 }
 0xc7e   : > { %v17076_v54 = vadd.f32 %v5913_v58, %v4288_v14  ;;  %v19710_v14 = vld [vmem:[#allocation89_spill] sm:$0xff] }
 0xc7f   : > { %v17088_v55 = vpop.f32.mrf.mxu1  ;;  %v19711_v58 = vld [vmem:[#allocation117_spill] sm:$0xff] }
 0xc80   : > { %19708 = vst [vmem:[#allocation80_spill] sm:$0xff] %v17076_v54 }
 0xc83   : > { %7028 = vmax.xlane.f32.xlu0 %v7027_v28  ;;  %v4292_v28 = vadd.f32 %v19711_v58, %v19710_v14 }
 0xc85   : > { %v5915_v44 = vpop.f32.mrf.mxu3 }
 0xc86   : > { %v7215_v1 = vpop.xlane.xlu2 %7214 }
 0xc87   : > { %13414 = vrcp.f32 %v7215_v1  ;;  %v6413_v38 = vpop.f32.mrf.mxu1 }
 0xc88   : > { %v7397_v0 = vpack.c.bf16 %v6413_v38, %v6413_v38  ;;  %13416 = vrcp.f32 %v7227_v15 }
 0xc8a   : > { %12517 = vmatmul.msk.bf16.vlgmr.msrb.gmra.mxu3 %vm452_vm0, %v6464_v13 }
 0xc8b   : > { %7052 = vmax.xlane.f32.xlu0 %v7051_v46  ;;  %6735 = vmatpush.bf16.xpose.msrb.mxu3 %v19709_v31  ;;  %v7721_v46 = vsel %vm1787_vm3, %v7397_v0, 0 }
 0xc8d   : > { %v13415_v6 = vpop.eup %13414  ;;  %v5989_v44 = vpop.f32.mrf.mxu3 }
 0xc8e   : > { %v7325_v5 = vmul.f32 %v13415_v6, %v16961_v19  ;;  %v17099_v54 = vadd.f32 %v5989_v44, %v4292_v28  ;;  %v7083_v1 = vpop.xlane.xlu2 %7082  ;;  %v6977_v58 = vpop.f32.mrf.mxu2  ;;  %v6466_v44 = vpack.c.bf16 %v16678_v16, %v16678_v16 }
 0xc8f   : > { %v7121_v13 = vsub.f32 %v16969_v18, %v7083_v1  ;;  %v13417_v6 = vpop.eup %13416 }
 0xc90   : > { %19712 = vst [vmem:[#allocation105_spill] sm:$0xff] %v17099_v54  ;;  %v7357_v51 = vpack.c.bf16 %v7325_v5, %v7325_v5  ;;  %v19714_v5 = vld [vmem:[#allocation90_spill] sm:$0xff]  ;;  %v7329_v15 = vmul.f32 %v13417_v6, %v16950_v3  ;;  %v17129_v3 = vadd.f32 %v16900_v49, %v14373_v37  ;;  %v6468_v6 = vpack.c.bf16 %v16709_v34, %v16709_v34 }
 0xc91   : > { %v7181_v50 = vmul.f32 1.442695, %v7121_v13  ;;  %v17144_v34 = vadd.f32 %v16931_v35, %v14373_v37  ;;  %v6470_v35 = vpack.c.bf16 %v16734_v9, %v16734_v9  ;;  %v19722_v9 = vld [vmem:[#allocation50_spill] sm:$0xff]  ;;  %v6476_v54 = vpack.c.bf16 %v16778_v20, %v16778_v20 }
 0xc92   : > { %12546 = vmatmul.msk.bf16.vlgmr.msra.gmra.mxu2 %vm1367_vm2, %v7357_v51  ;;  %v17112_v51 = vpop.f32.mrf.mxu1 }
 0xc93   : > { %13418 = vpow2.f32 %v7181_v50  ;;  %7730 = vmatpush.bf16.msra.mxu2 %v7721_v46  ;;  %v19713_v50 = vld [vmem:[#allocation44_spill] sm:$0xff] }
 0xc95   : > { %v5991_v14 = vpop.f32.mrf.mxu3 }
 0xc96   : > { %v7005_v19 = vpop.xlane.xlu2 %7004  ;;  %v6979_v13 = vpop.f32.mrf.mxu2  ;;  %v7361_v14 = vpack.c.bf16 %v7329_v15, %v7329_v15  ;;  %v19717_v15 = vld [vmem:[#allocation46_spill] sm:$0xff] }
 0xc97   : > { %v7095_v28 = vsub.f32 %v16980_v48, %v7005_v19  ;;  %v19715_v48 = vld [vmem:[#allocation118_spill] sm:$0xff]  ;;  %v19719_v13 = vld [vmem:[#allocation120_spill] sm:$0xff] }
 0xc98   : > { %v4296_v1 = vadd.f32 %v19715_v48, %v19714_v5  ;;  %v7063_v48 = vsel %vm1367_vm2, %v17129_v3, -inf }
 0xc99   : > { %v17107_v18 = vpop.eup %13418  ;;  %v7129_v38 = vmul.f32 1.442695, %v7095_v28 }
 0xc9a   : > { %12519 = vmatmul.msk.bf16.vlgmr.msra.gmra.mxu3 %vm452_vm0, %v6466_v44  ;;  %v7273_v0 = vsel %vm1367_vm2, %v17107_v18, 0.0 }
 0xc9b   : > { %13420 = vpow2.f32 %v7129_v38  ;;  %7274 = vadd.xlane.f32.xlu2 %v7273_v0  ;;  %6767 = vmatpush.bf16.xpose.msra.mxu3 %v19713_v50  ;;  %v17125_v38 = vpop.f32.mrf.mxu1 }
 0xc9c   : > { %v7239_v19 = vpop.xlane.xlu0 %7238 }
 0xc9d   : > { %v6065_v16 = vpop.f32.mrf.mxu3  ;;  %13422 = vrcp.f32 %v7239_v19 }
 0xc9e   : > { %v17118_v46 = vadd.f32 %v6065_v16, %v4296_v1  ;;  %v19718_v16 = vld [vmem:[#allocation92_spill] sm:$0xff] }
 0xca0   : > { %19716 = vst [vmem:[#allocation61_spill] sm:$0xff] %v17118_v46 }
 0xca1   : > { %v17120_v28 = vpop.eup %13420 }
 0xca2   : > { %12550 = vmatmul.msk.bf16.vlgmr.msrb.gmra.mxu2 %vm1367_vm2, %v7361_v14  ;;  %v7195_v44 = vsel %vm1367_vm2, %v17120_v28, 0.0  ;;  %v4300_v14 = vadd.f32 %v19719_v13, %v19718_v16  ;;  %v17152_v16 = vadd.f32 %v6977_v58, %v14373_v37 }
 0xca3   : > { %7196 = vadd.xlane.f32.xlu2 %v7195_v44  ;;  %v13423_v5 = vpop.eup %13422  ;;  %v17136_v1 = vpop.f32.mrf.mxu1 }
 0xca4   : > { %v7333_v49 = vmul.f32 %v13423_v5, %v16988_v43  ;;  %v7087_v13 = vsel %vm1367_vm2, %v17152_v16, -inf }
 0xca5   : > { %v6067_v0 = vpop.f32.mrf.mxu3 }
 0xca6   : > { %v7365_v0 = vpack.c.bf16 %v7333_v49, %v7333_v49 }
 0xcaa   : > { %12521 = vmatmul.msk.bf16.vlgmr.msrb.gmra.mxu3 %vm452_vm0, %v6468_v6  ;;  %v7075_v6 = vsel %vm1367_vm2, %v17144_v34, -inf }
 0xcab   : > { %7064 = vmax.xlane.f32.xlu2 %v7063_v48  ;;  %6799 = vmatpush.bf16.xpose.msrb.mxu3 %v19717_v15  ;;  %v6423_v48 = vpop.f32.mrf.mxu1 }
 0xcac   : > { %v7401_v15 = vpack.c.bf16 %v6423_v48, %v6423_v48 }
 0xcad   : > { %v6141_v19 = vpop.f32.mrf.mxu3 }
 0xcae   : > { %v17146_v44 = vadd.f32 %v6141_v19, %v4300_v14  ;;  %v7797_v5 = vsel %vm1787_vm3, %v7401_v15, 0  ;;  %v19721_v14 = vld [vmem:[#allocation48_spill] sm:$0xff]  ;;  %v6472_v15 = vpack.c.bf16 %v16755_v4, %v16755_v4 }
 0xcaf   : > { %7806 = vmatpush.bf16.msrb.mxu2 %v7797_v5  ;;  %v19723_v4 = vld [vmem:[#allocation52_spill] sm:$0xff] }
 0xcb0   : > { %19720 = vst [vmem:[#allocation106_spill] sm:$0xff] %v17146_v44 }
 0xcb2   : > { %12554 = vmatmul.msk.bf16.vlgmr.msra.gmra.mxu2 %vm1367_vm2, %v7365_v0 }
 0xcb3   : > { %7076 = vmax.xlane.f32.xlu2 %v7075_v6  ;;  %v17161_v19 = vpop.f32.mrf.mxu1 }
 0xcb5   : > { %v6143_v43 = vpop.f32.mrf.mxu3 }
 0xcba   : > { %12523 = vmatmul.msk.bf16.vlgmr.msra.gmra.mxu3 %vm452_vm0, %v6470_v35 }
 0xcbb   : > { %7088 = vmax.xlane.f32.xlu2 %v7087_v13  ;;  %6831 = vmatpush.bf16.xpose.msra.mxu3 %v19721_v14  ;;  %v17163_v0 = vpop.f32.mrf.mxu1 }
 0xcbd   : > { %v6513_v49 = vpop.f32.mrf.mxu3 }
 0xcc3   : > { %v17171_v48 = vpop.f32.mrf.mxu1 }
 0xcc5   : > { %v6515_v58 = vpop.f32.mrf.mxu3 }
 0xcc6   : > { %v6474_v58 = vpack.c.bf16 %v16768_v30, %v16768_v30 }
 0xcca   : > { %12525 = vmatmul.msk.bf16.vlgmr.msrb.gmra.mxu3 %vm452_vm0, %v6472_v15 }
 0xccb   : > { %6863 = vmatpush.bf16.xpose.msrb.mxu3 %v19722_v9  ;;  %v6433_v5 = vpop.f32.mrf.mxu1 }
 0xccc   : > { %v7405_v35 = vpack.c.bf16 %v6433_v5, %v6433_v5  ;;  %v19724_v5 = vld [vmem:[#allocation66_spill] sm:$0xff] }
 0xccd   : > { %v17169_v6 = vpop.f32.mrf.mxu3 }
 0xcce   : > { %v7873_v14 = vsel %vm1787_vm3, %v7405_v35, 0 }
 0xccf   : > { %7882 = vmatpush.bf16.msra.mxu2 %v7873_v14 }
 0xcd3   : > { %v17178_v9 = vpop.f32.mrf.mxu1 }
 0xcd5   : > { %v6547_v43 = vpop.f32.mrf.mxu3 }
 0xcd7   : > { %v7251_v13 = vpop.xlane.xlu1 %7250 }
 0xcd8   : > { %13424 = vrcp.f32 %v7251_v13 }
 0xcda   : > { %12527 = vmatmul.msk.bf16.vlgmr.msra.gmra.mxu3 %vm452_vm0, %v6474_v58 }
 0xcdb   : > { %6895 = vmatpush.bf16.xpose.msra.mxu3 %v19723_v4  ;;  %v17186_v58 = vpop.f32.mrf.mxu1 }
 0xcdd   : > { %v6577_v15 = vpop.f32.mrf.mxu3 }
 0xcde   : > { %v13425_v44 = vpop.eup %13424  ;;  %v7428_v50 = vpop.f32.mrf.mxu2 }
 0xcdf   : > { %v7337_v43 = vmul.f32 %v13425_v44, %v17031_v41  ;;  %v17182_v46 = vadd.f32 %v7428_v50, %v19724_v5  ;;  %v7017_v31 = vpop.xlane.xlu1 %7016 }
 0xce0   : > { %v7099_v30 = vsub.f32 %v17039_v12, %v7017_v31  ;;  %v19726_v12 = vld [vmem:[#allocation54_spill] sm:$0xff] }
 0xce1   : > { %19725 = vst [vmem:[#allocation81_spill] sm:$0xff] %v17182_v46  ;;  %v7369_v13 = vpack.c.bf16 %v7337_v43, %v7337_v43  ;;  %v17199_v43 = vadd.f32 %v6513_v49, %v14373_v37  ;;  %v17208_v46 = vadd.f32 %v6577_v15, %v14373_v37  ;;  %v19728_v15 = vld [vmem:[#allocation56_spill] sm:$0xff] }
 0xce2   : > { %v7137_v35 = vmul.f32 1.442695, %v7099_v30 }
 0xce3   : > { %12558 = vmatmul.msk.bf16.vlgmr.msrb.gmra.mxu2 %vm1367_vm2, %v7369_v13  ;;  %v17196_v50 = vpop.f32.mrf.mxu1  ;;  %v7000_v20 = vsel %vm1367_vm2, %v17199_v43, -inf }
 0xce4   : > { %13426 = vpow2.f32 %v7137_v35 }
 0xce5   : > { %v6579_v14 = vpop.f32.mrf.mxu3 }
 0xce6   : > { %v7430_v4 = vpop.f32.mrf.mxu2 }
 0xce7   : > { %v7041_v4 = vpop.xlane.xlu1 %7040 }
 0xcea   : > { %v17190_v36 = vpop.eup %13426  ;;  %12529 = vmatmul.msk.bf16.vlgmr.msrb.gmra.mxu3 %vm452_vm0, %v6476_v54 }
 0xceb   : > { %v7207_v41 = vsel %vm1367_vm2, %v17190_v36, 0.0  ;;  %6927 = vmatpush.bf16.xpose.msrb.mxu3 %v19726_v12  ;;  %v6478_v12 = vpack.c.bf16 %v16797_v61, %v16797_v61 }
 0xcec   : > { %7208 = vadd.xlane.f32.xlu1 %v7207_v41  ;;  %v6443_v41 = vpop.f32.mrf.mxu1 }
 0xced   : > { %v6609_v31 = vpop.f32.mrf.mxu3 }
 0xcee   : > { %v7263_v44 = vpop.xlane.xlu0 %7262 }
 0xcef   : > { %13428 = vrcp.f32 %v7263_v44  ;;  %v7409_v44 = vpack.c.bf16 %v6443_v41, %v6443_v41 }
 0xcf4   : > { %7001 = vmax.xlane.f32.xlu1 %v7000_v20 }
 0xcf5   : > { %v13429_v54 = vpop.eup %13428  ;;  %v6611_v5 = vpop.f32.mrf.mxu3 }
 0xcf6   : > { %v7504_v30 = vpop.f32.mrf.mxu2  ;;  %v7341_v13 = vmul.f32 %v13429_v54, %v17064_v63  ;;  %v7029_v14 = vpop.xlane.xlu0 %7028  ;;  %v7107_v5 = vsub.f32 %v17050_v62, %v7041_v4  ;;  %v7949_v63 = vsel %vm1787_vm3, %v7409_v44, 0 }
 0xcf7   : > { %v17205_v35 = vadd.f32 %v7504_v30, %v16369_v22  ;;  %v7103_v49 = vsub.f32 %v17074_v21, %v7029_v14  ;;  %v7012_v22 = vsel %vm1367_vm2, %v17208_v46, -inf  ;;  %7958 = vmatpush.bf16.msrb.mxu2 %v7949_v63 }
 0xcf8   : > { %v7373_v20 = vpack.c.bf16 %v7341_v13, %v7341_v13  ;;  %v7153_v21 = vmul.f32 1.442695, %v7107_v5  ;;  %v6480_v5 = vpack.c.bf16 %v16818_v29, %v16818_v29 }
 0xcf9   : > { %19727 = vst [vmem:[#allocation108_spill] sm:$0xff] %v17205_v35  ;;  %v7145_v47 = vmul.f32 1.442695, %v7103_v49 }
 0xcfa   : > { %12531 = vmatmul.msk.bf16.vlgmr.msra.gmra.mxu3 %vm452_vm0, %v6478_v12  ;;  %12562 = vmatmul.msk.bf16.vlgmr.msra.gmra.mxu2 %vm1367_vm2, %v7373_v20  ;;  %v17225_v12 = vadd.f32 %v17169_v6, %v14373_v37  ;;  %v17239_v20 = vadd.f32 %v6609_v31, %v14373_v37 }
 0xcfb   : > { %13430 = vpow2.f32 %v7145_v47  ;;  %6959 = vmatpush.bf16.xpose.msra.mxu3 %v19728_v15 }
 0xcfc   : > { %7013 = vmax.xlane.f32.xlu1 %v7012_v22  ;;  %13432 = vpow2.f32 %v7153_v21  ;;  %v7006_v41 = vsel %vm1367_vm2, %v17225_v12, -inf  ;;  %v7018_v63 = vsel %vm1367_vm2, %v17239_v20, -inf  ;;  %v19729_v22 = vld [vmem:[#allocation60_spill] sm:$0xff] }
 0xcfd   : > { %v6641_v61 = vpop.f32.mrf.mxu3 }
 0xcfe   : > { %v7506_v54 = vpop.f32.mrf.mxu2  ;;  %v17221_v62 = vadd.f32 %v6641_v61, %v14373_v37  ;;  %v7053_v4 = vpop.xlane.xlu0 %7052 }
 0xcff   : > { %v7111_v13 = vsub.f32 %v17086_v11, %v7053_v4 }
 0xd00   : > { %v7024_v47 = vsel %vm1367_vm2, %v17221_v62, -inf }
 0xd01   : > { %v17229_v30 = vpop.eup %13430  ;;  %7025 = vmax.xlane.f32.xlu2 %v7024_v47  ;;  %v7161_v49 = vmul.f32 1.442695, %v7111_v13  ;;  %v7382_v13 = vpack.c.bf16 %v16971_v59, %v16971_v59 }
 0xd02   : > { %v7219_v14 = vsel %vm1367_vm2, %v17229_v30, 0.0  ;;  %v17236_v44 = vpop.eup %13432 }
 0xd03   : > { %7220 = vadd.xlane.f32.xlu0 %v7219_v14  ;;  %13434 = vpow2.f32 %v7161_v49  ;;  %v7231_v11 = vsel %vm1367_vm2, %v17236_v44, 0.0 }
 0xd04   : > { %7007 = vmax.xlane.f32.xlu1 %v7006_v41 }
 0xd05   : > { %v6643_v6 = vpop.f32.mrf.mxu3 }
 0xd06   : > { %v6482_v6 = vpack.c.bf16 %v16952_v8, %v16952_v8 }
 0xd09   : > { %v17249_v31 = vpop.eup %13434 }
 0xd0a   : > { %12533 = vmatmul.msk.bf16.vlgmr.msrb.gmra.mxu3 %vm452_vm0, %v6480_v5  ;;  %v7243_v29 = vsel %vm1367_vm2, %v17249_v31, 0.0 }
 0xd0b   : > { %7232 = vadd.xlane.f32.xlu0 %v7231_v11  ;;  %6991 = vmatpush.bf16.xpose.msrb.mxu3 %v19729_v22  ;;  %v7436_v11 = vsel %vm1787_vm3, %v7382_v13, 0 }
 0xd0c   : > { %7019 = vmax.xlane.f32.xlu1 %v7018_v63 }
 0xd0d   : > { %v6673_v21 = vpop.f32.mrf.mxu3 }
 0xd0e   : > { %v7275_v61 = vpop.xlane.xlu2 %7274 }
 0xd0f   : > { %13436 = vrcp.f32 %v7275_v61 }
 0xd13   : > { %7244 = vadd.xlane.f32.xlu0 %v7243_v29 }
 0xd15   : > { %v13437_v54 = vpop.eup %13436  ;;  %v6675_v4 = vpop.f32.mrf.mxu3 }
 0xd16   : > { %v7580_v47 = vpop.f32.mrf.mxu2  ;;  %v7345_v14 = vmul.f32 %v13437_v54, %v17107_v18  ;;  %v7197_v49 = vpop.xlane.xlu2 %7196  ;;  %v12917_v18 = vld [vmem:[#allocation5 + $0xe8] sm:$0xff] }
 0xd17   : > { %v17257_v41 = vadd.f32 %v7580_v47, %v16404_v45  ;;  %13438 = vrcp.f32 %v7197_v49  ;;  %v7391_v45 = vpack.c.bf16 %v17027_v33, %v17027_v33  ;;  %8104 = vmatpush.bf16.msra.mxu2 %v12917_v18  ;;  %v12916_v47 = vld [vmem:[#allocation5 + $0xe0] sm:$0xff]  ;;  %v6312_v33 = vpop.f32.mrf.mxu0 }
 0xd18   : > { %v7377_v5 = vpack.c.bf16 %v7345_v14, %v7345_v14 }
 0xd19   : > { %19730 = vst [vmem:[#allocation64_spill] sm:$0xff] %v17257_v41 }
 0xd1a   : > { %12535 = vmatmul.msk.bf16.vlgmr.msra.gmra.mxu3 %vm452_vm0, %v6482_v6  ;;  %12566 = vmatmul.msk.bf16.vlgmr.msrb.gmra.mxu2 %vm1367_vm2, %v7377_v5  ;;  %v7607_v6 = vsel %vm1787_vm3, %v7391_v45, 0 }
 0xd1b   : > { %7445 = vmatpush.bf16.msra.mxu3 %v7436_v11  ;;  %8105 = vmatpush.bf16.msra.mxu2 %v12916_v47  ;;  %v12915_v11 = vld [vmem:[#allocation5 + $0xd8] sm:$0xff] }
 0xd1d   : > { %v13439_v63 = vpop.eup %13438  ;;  %v6705_v59 = vpop.f32.mrf.mxu3 }
 0xd1e   : > { %v7582_v61 = vpop.f32.mrf.mxu2  ;;  %v7319_v29 = vmul.f32 %v13439_v63, %v17120_v28  ;;  %v17268_v54 = vadd.f32 %v6705_v59, %v14373_v37  ;;  %v7065_v8 = vpop.xlane.xlu2 %7064  ;;  %v17276_v28 = vadd.f32 %v6673_v21, %v14373_v37  ;;  %v7386_v63 = vpack.c.bf16 %v17001_v25, %v17001_v25  ;;  %v19731_v59 = vld [vmem:[#allocation68_spill] sm:$0xff] }
 0xd1f   : > { %v7115_v4 = vsub.f32 %v17129_v3, %v7065_v8  ;;  %8106 = vmatpush.bf16.msra.mxu2 %v12915_v11 }
 0xd20   : > { %v7351_v13 = vpack.c.bf16 %v7319_v29, %v7319_v29  ;;  %v7036_v14 = vsel %vm1367_vm2, %v17268_v54, -inf  ;;  %v6484_v29 = vpack.c.bf16 %v6312_v33, %v6312_v33  ;;  %v7030_v8 = vsel %vm1367_vm2, %v17276_v28, -inf }
 0xd21   : > { %v7169_v49 = vmul.f32 1.442695, %v7115_v4  ;;  %7037 = vmax.xlane.f32.xlu2 %v7036_v14  ;;  %v12914_v4 = vld [vmem:[#allocation5 + $0xd0] sm:$0xff]  ;;  %v7512_v25 = vsel %vm1787_vm3, %v7386_v63, 0 }
 0xd22   : > { %12540 = vmatmul.msk.bf16.vlgmr.msra.gmra.mxu0 %vm1367_vm2, %v7351_v13 }
 0xd23   : > { %13440 = vpow2.f32 %v7169_v49  ;;  %7616 = vmatpush.bf16.msra.mxu0 %v7607_v6  ;;  %8107 = vmatpush.bf16.msra.mxu2 %v12914_v4  ;;  %v12913_v49 = vld [vmem:[#allocation5 + $0xc8] sm:$0xff] }
 0xd25   : > { %v6707_v3 = vpop.f32.mrf.mxu3 }
 0xd26   : > { %v7656_v5 = vpop.f32.mrf.mxu2  ;;  %v7077_v18 = vpop.xlane.xlu2 %7076  ;;  %v12912_v3 = vld [vmem:[#allocation5 + $0xc0] sm:$0xff] }
 0xd27   : > { %v17281_v61 = vadd.f32 %v7656_v5, %v19731_v59  ;;  %v7119_v45 = vsub.f32 %v17144_v34, %v7077_v18  ;;  %8108 = vmatpush.bf16.msra.mxu2 %v12913_v49 }
 0xd29   : > { %19732 = vst [vmem:[#allocation107_spill] sm:$0xff] %v17281_v61  ;;  %v17286_v21 = vpop.eup %13440  ;;  %v7177_v47 = vmul.f32 1.442695, %v7119_v45  ;;  %7031 = vmax.xlane.f32.xlu2 %v7030_v8  ;;  %v19733_v45 = vld [vmem:[#allocation97_spill] sm:$0xff]  ;;  %v19735_v8 = vld [vmem:[#allocation12_spill] sm:$0xff] }
 0xd2a   : > { %12537 = vmatmul.msk.bf16.vlgmr.msrb.gmra.mxu3 %vm452_vm0, %v6484_v29  ;;  %v7255_v13 = vsel %vm1367_vm2, %v17286_v21, 0.0 }
 0xd2b   : > { %13442 = vpow2.f32 %v7177_v47  ;;  %7521 = vmatpush.bf16.msrb.mxu3 %v7512_v25  ;;  %7256 = vadd.xlane.f32.xlu0 %v7255_v13 }
 0xd2c   : > { %8109 = vmatpush.bf16.msra.mxu2 %v12912_v3 }
 0xd2d   : > { %v17292_v34 = vpop.f32.mrf.mxu3 }
 0xd2e   : > { %v7658_v14 = vpop.f32.mrf.mxu2  ;;  %v7089_v6 = vpop.xlane.xlu2 %7088 }
 0xd2f   : > { %v7123_v33 = vsub.f32 %v17152_v16, %v7089_v6  ;;  %12594 = vmatmul.msk.bf16.vlgmr.msra.gmra.mxu2 %vm452_vm0, %v19735_v8  ;;  %v19736_v14 = vld [vmem:[#allocation13_spill] sm:$0xff] }
 0xd31   : > { %v17295_v5 = vpop.eup %13442  ;;  %v7185_v11 = vmul.f32 1.442695, %v7123_v33  ;;  %v19737_v33 = vld [vmem:[#allocation14_spill] sm:$0xff] }
 0xd32   : > { %v7267_v63 = vsel %vm1367_vm2, %v17295_v5, 0.0 }
 0xd33   : > { %13444 = vpow2.f32 %v7185_v11  ;;  %7268 = vadd.xlane.f32.xlu1 %v7267_v63 }
 0xd35   : > { %v6739_v59 = vpop.f32.mrf.mxu3 }
 0xd36   : > { %v7732_v18 = vpop.f32.mrf.mxu2 }
 0xd37   : > { %v17300_v29 = vadd.f32 %v7732_v18, %v19733_v45 }
 0xd39   : > { %19734 = vst [vmem:[#allocation82_spill] sm:$0xff] %v17300_v29  ;;  %v17304_v16 = vpop.eup %13444 }
 0xd3a   : > { %v7279_v4 = vsel %vm1367_vm2, %v17304_v16, 0.0 }
 0xd3b   : > { %7280 = vadd.xlane.f32.xlu2 %v7279_v4 }
 0xd3d   : > { %v6769_v47 = vpop.f32.mrf.mxu3 }
 0xd3e   : > { %v7734_v25 = vpop.f32.mrf.mxu2 }
 0xd3f   : > { %12595 = vmatmul.msk.bf16.gmra.mxu2 %vm452_vm0, %v19736_v14  ;;  %v7395_v25 = vpack.c.bf16 %v17078_v10, %v17078_v10 }
 0xd45   : > { %v6771_v13 = vpop.f32.mrf.mxu3 }
 0xd4d   : > { %v17310_v49 = vpop.f32.mrf.mxu3 }
 0xd4f   : > { %12596 = vmatmul.msk.bf16.gmra.mxu2 %vm452_vm0, %v19737_v33 }
 0xd55   : > { %v6803_v6 = vpop.f32.mrf.mxu3 }
 0xd56   : > { %v19738_v6 = vld [vmem:[#allocation70_spill] sm:$0xff] }
 0xd5d   : > { %v6833_v3 = vpop.f32.mrf.mxu3 }
 0xd5e   : > { %v17315_v11 = vadd.f32 %v6833_v3, %v14373_v37  ;;  %v19740_v3 = vld [vmem:[#allocation15_spill] sm:$0xff] }
 0xd5f   : > { %v7209_v63 = vpop.xlane.xlu1 %7208  ;;  %12597 = vmatmul.msk.bf16.gmra.mxu2 %vm452_vm0, %v19740_v3 }
 0xd60   : > { %13446 = vrcp.f32 %v7209_v63  ;;  %v7060_v59 = vsel %vm1367_vm2, %v17315_v11, -inf }
 0xd61   : > { %7061 = vmax.xlane.f32.xlu2 %v7060_v59  ;;  %v7683_v59 = vsel %vm1787_vm3, %v7395_v25, 0 }
 0xd65   : > { %v6835_v18 = vpop.f32.mrf.mxu3 }
 0xd66   : > { %v13447_v45 = vpop.eup %13446  ;;  %v7808_v4 = vpop.f32.mrf.mxu2 }
 0xd67   : > { %v7323_v13 = vmul.f32 %v13447_v45, %v17190_v36  ;;  %v17323_v29 = vadd.f32 %v7808_v4, %v19738_v6  ;;  %v7002_v61 = vpop.xlane.xlu1 %7001 }
 0xd68   : > { %v7094_v63 = vsub.f32 %v17199_v43, %v7002_v61 }
 0xd69   : > { %19739 = vst [vmem:[#allocation109_spill] sm:$0xff] %v17323_v29  ;;  %v7355_v41 = vpack.c.bf16 %v7323_v13, %v7323_v13 }
 0xd6a   : > { %v7127_v35 = vmul.f32 1.442695, %v7094_v63  ;;  %v19741_v63 = vld [vmem:[#allocation16_spill] sm:$0xff] }
 0xd6b   : > { %12544 = vmatmul.msk.bf16.vlgmr.msrb.gmra.mxu0 %vm1367_vm2, %v7355_v41  ;;  %v17338_v41 = vadd.f32 %v6769_v47, %v14373_v37 }
 0xd6c   : > { %13448 = vpow2.f32 %v7127_v35  ;;  %7692 = vmatpush.bf16.msrb.mxu0 %v7683_v59 }
 0xd6d   : > { %v17330_v10 = vpop.f32.mrf.mxu3 }
 0xd6e   : > { %v7810_v36 = vpop.f32.mrf.mxu2 }
 0xd6f   : > { %v7014_v18 = vpop.xlane.xlu1 %7013  ;;  %12598 = vmatmul.msk.bf16.gmra.mxu2 %vm452_vm0, %v19741_v63 }
 0xd70   : > { %v7098_v45 = vsub.f32 %v17208_v46, %v7014_v18 }
 0xd72   : > { %v17333_v4 = vpop.eup %13448  ;;  %v7135_v6 = vmul.f32 1.442695, %v7098_v45  ;;  %v7048_v45 = vsel %vm1367_vm2, %v17338_v41, -inf }
 0xd73   : > { %v7192_v43 = vsel %vm1367_vm2, %v17333_v4, 0.0 }
 0xd74   : > { %13450 = vpow2.f32 %v7135_v6  ;;  %7193 = vadd.xlane.f32.xlu0 %v7192_v43  ;;  %v7026_v35 = vpop.xlane.xlu2 %7025 }
 0xd75   : > { %v6867_v61 = vpop.f32.mrf.mxu3  ;;  %v7102_v36 = vsub.f32 %v17221_v62, %v7026_v35  ;;  %v19742_v62 = vld [vmem:[#allocation72_spill] sm:$0xff] }
 0xd76   : > { %v7221_v25 = vpop.xlane.xlu0 %7220 }
 0xd77   : > { %v7008_v13 = vpop.xlane.xlu1 %7007  ;;  %13452 = vrcp.f32 %v7221_v25  ;;  %v7143_v25 = vmul.f32 1.442695, %v7102_v36  ;;  %v17371_v36 = vadd.f32 %v17310_v49, %v14373_v37 }
 0xd78   : > { %v7096_v46 = vsub.f32 %v17225_v12, %v7008_v13  ;;  %v7399_v12 = vpack.c.bf16 %v17125_v38, %v17125_v38 }
 0xd7a   : > { %v17343_v59 = vpop.eup %13450  ;;  %v7131_v18 = vmul.f32 1.442695, %v7096_v46  ;;  %v17358_v46 = vadd.f32 %v17292_v34, %v14373_v37  ;;  %v7759_v15 = vsel %vm1787_vm3, %v7399_v12, 0 }
 0xd7b   : > { %v7204_v47 = vsel %vm1367_vm2, %v17343_v59, 0.0 }
 0xd7c   : > { %13454 = vpow2.f32 %v7131_v18  ;;  %7049 = vmax.xlane.f32.xlu0 %v7048_v45  ;;  %7205 = vadd.xlane.f32.xlu1 %v7204_v47 }
 0xd7d   : > { %v13453_v6 = vpop.eup %13452  ;;  %v6897_v43 = vpop.f32.mrf.mxu3  ;;  %13456 = vpow2.f32 %v7143_v25  ;;  %v7054_v25 = vsel %vm1367_vm2, %v17371_v36, -inf }
 0xd7e   : > { %v7884_v61 = vpop.f32.mrf.mxu2  ;;  %v7327_v13 = vmul.f32 %v13453_v6, %v17229_v30  ;;  %v7233_v47 = vpop.xlane.xlu0 %7232  ;;  %v7042_v30 = vsel %vm1367_vm2, %v17358_v46, -inf  ;;  %v19744_v6 = vld [vmem:[#allocation17_spill] sm:$0xff] }
 0xd7f   : > { %v17354_v35 = vadd.f32 %v7884_v61, %v19742_v62  ;;  %v7020_v29 = vpop.xlane.xlu1 %7019  ;;  %13458 = vrcp.f32 %v7233_v47  ;;  %12599 = vmatmul.msk.bf16.gmra.mxu2 %vm452_vm0, %v19744_v6  ;;  %v17390_v47 = vadd.f32 %v17330_v10, %v14373_v37 }
 0xd80   : > { %v7359_v18 = vpack.c.bf16 %v7327_v13, %v7327_v13  ;;  %v7100_v45 = vsub.f32 %v17239_v20, %v7020_v29 }
 0xd81   : > { %19743 = vst [vmem:[#allocation119_spill] sm:$0xff] %v17354_v35 }
 0xd82   : > { %v17361_v22 = vpop.eup %13454  ;;  %v7139_v38 = vmul.f32 1.442695, %v7100_v45  ;;  %12548 = vmatmul.msk.bf16.vlgmr.msra.gmra.mxu0 %vm1367_vm2, %v7359_v18  ;;  %v7403_v45 = vpack.c.bf16 %v17163_v0, %v17163_v0 }
 0xd83   : > { %7768 = vmatpush.bf16.msra.mxu0 %v7759_v15  ;;  %v7198_v34 = vsel %vm1367_vm2, %v17361_v22, 0.0  ;;  %v17375_v61 = vpop.eup %13456 }
 0xd84   : > { %13460 = vpow2.f32 %v7139_v38  ;;  %7043 = vmax.xlane.f32.xlu0 %v7042_v30  ;;  %7199 = vadd.xlane.f32.xlu1 %v7198_v34  ;;  %v7216_v49 = vsel %vm1367_vm2, %v17375_v61, 0.0  ;;  %v17393_v38 = vadd.f32 %v6897_v43, %v14373_v37 }
 0xd85   : > { %v6899_v20 = vpop.f32.mrf.mxu3  ;;  %v13459_v15 = vpop.eup %13458 }
 0xd86   : > { %v7886_v29 = vpop.f32.mrf.mxu2  ;;  %v7331_v62 = vmul.f32 %v13459_v15, %v17236_v44  ;;  %v7245_v34 = vpop.xlane.xlu0 %7244  ;;  %v7835_v44 = vsel %vm1787_vm3, %v7403_v45, 0  ;;  %v7066_v20 = vsel %vm1367_vm2, %v17390_v47, -inf  ;;  %v7072_v0 = vsel %vm1367_vm2, %v17393_v38, -inf }
 0xd87   : > { %13462 = vrcp.f32 %v7245_v34  ;;  %v7407_v34 = vpack.c.bf16 %v17186_v58, %v17186_v58  ;;  %v17420_v58 = vpop.f32.mrf.mxu1 }
 0xd88   : > { %v7363_v30 = vpack.c.bf16 %v7331_v62, %v7331_v62 }
 0xd8a   : > { %v17377_v12 = vpop.eup %13460 }
 0xd8b   : > { %v7210_v13 = vsel %vm1367_vm2, %v17377_v12, 0.0 }
 0xd8c   : > { %7055 = vmax.xlane.f32.xlu1 %v7054_v25  ;;  %7211 = vadd.xlane.f32.xlu2 %v7210_v13 }
 0xd8d   : > { %7217 = vadd.xlane.f32.xlu0 %v7216_v49  ;;  %v6929_v18 = vpop.f32.mrf.mxu3  ;;  %v13463_v25 = vpop.eup %13462 }
 0xd8e   : > { %v7335_v13 = vmul.f32 %v13463_v25, %v17249_v31 }
 0xd8f   : > { %12600 = vmatmul.msk.bf16.gmra.mxu2 %vm452_vm0, %v19624_v52 }
 0xd92   : > { %12552 = vmatmul.msk.bf16.vlgmr.msrb.gmra.mxu0 %vm1367_vm2, %v7363_v30 }
 0xd93   : > { %7844 = vmatpush.bf16.msrb.mxu0 %v7835_v44  ;;  %v19745_v44 = vld [vmem:[#allocation98_spill] sm:$0xff] }
 0xd94   : > { %7067 = vmax.xlane.f32.xlu2 %v7066_v20  ;;  %v7038_v10 = vpop.xlane.xlu2 %7037 }
 0xd95   : > { %7073 = vmax.xlane.f32.xlu0 %v7072_v0  ;;  %v7106_v43 = vsub.f32 %v17268_v54, %v7038_v10  ;;  %v6931_v29 = vpop.f32.mrf.mxu3 }
 0xd97   : > { %v7151_v15 = vmul.f32 1.442695, %v7106_v43  ;;  %v7367_v43 = vpack.c.bf16 %v7335_v13, %v7335_v13 }
 0xd99   : > { %13464 = vpow2.f32 %v7151_v15  ;;  %v19747_v15 = vld [vmem:[#allocation71_spill] sm:$0xff] }
 0xd9c   : > { %v7032_v62 = vpop.xlane.xlu2 %7031 }
 0xd9d   : > { %v7104_v49 = vsub.f32 %v17276_v28, %v7032_v62  ;;  %v6961_v45 = vpop.f32.mrf.mxu3  ;;  %v7960_v30 = vpop.f32.mrf.mxu2  ;;  %v7911_v28 = vsel %vm1787_vm3, %v7407_v34, 0 }
 0xd9e   : > { %v17409_v20 = vadd.f32 %v7960_v30, %v19745_v44  ;;  %v7257_v29 = vpop.xlane.xlu0 %7256  ;;  %v17423_v25 = vadd.f32 %v6961_v45, %v14373_v37  ;;  %v17434_v45 = vadd.f32 %v6929_v18, %v14373_v37 }
 0xd9f   : > { %v17411_v54 = vpop.eup %13464  ;;  %v7147_v0 = vmul.f32 1.442695, %v7104_v49  ;;  %v7466_v10 = vpop.f32.mrf.mxu0  ;;  %12601 = vmatmul.msk.bf16.gmra.mxu2 %vm452_vm0, %v19626_v7 }
 0xda0   : > { %19746 = vst [vmem:[#allocation62_spill] sm:$0xff] %v17409_v20  ;;  %v17414_v35 = vadd.f32 %v7466_v10, %v19747_v15  ;;  %v7228_v31 = vsel %vm1367_vm2, %v17411_v54, 0.0  ;;  %v7084_v34 = vsel %vm1367_vm2, %v17423_v25, -inf  ;;  %v6448_v10 = vpop.f32.mrf.mxu1 }
 0xda1   : > { %13466 = vpow2.f32 %v7147_v0  ;;  %7229 = vadd.xlane.f32.xlu1 %v7228_v31 }
 0xda2   : > { %19748 = vst [vmem:[#allocation110_spill] sm:$0xff] %v17414_v35  ;;  %12556 = vmatmul.msk.bf16.vlgmr.msra.gmra.mxu0 %vm1367_vm2, %v7367_v43  ;;  %13468 = vrcp.f32 %v7257_v29  ;;  %v7411_v29 = vpack.c.bf16 %v6448_v10, %v6448_v10 }
 0xda3   : > { %7920 = vmatpush.bf16.msra.mxu0 %v7911_v28 }
 0xda5   : > { %v6963_v13 = vpop.f32.mrf.mxu3  ;;  %v7962_v62 = vpop.f32.mrf.mxu2 }
 0xda6   : > { %v7269_v28 = vpop.xlane.xlu1 %7268  ;;  %v7078_v13 = vsel %vm1367_vm2, %v17434_v45, -inf  ;;  %v7987_v62 = vsel %vm1787_vm3, %v7411_v29, 0 }
 0xda7   : > { %v17425_v49 = vpop.eup %13466  ;;  %v7468_v30 = vpop.f32.mrf.mxu0  ;;  %13470 = vrcp.f32 %v7269_v28 }
 0xda8   : > { %v7222_v44 = vsel %vm1367_vm2, %v17425_v49, 0.0  ;;  %v13469_v0 = vpop.eup %13468 }
 0xda9   : > { %7085 = vmax.xlane.f32.xlu1 %v7084_v34  ;;  %7223 = vadd.xlane.f32.xlu0 %v7222_v44  ;;  %v7339_v43 = vmul.f32 %v13469_v0, %v17286_v21 }
 0xdab   : > { %v7371_v31 = vpack.c.bf16 %v7339_v43, %v7339_v43 }
 0xdad   : > { %v6993_v15 = vpop.f32.mrf.mxu3  ;;  %v13471_v34 = vpop.eup %13470 }
 0xdae   : > { %v17442_v30 = vadd.f32 %v6993_v15, %v14373_v37  ;;  %v7343_v0 = vmul.f32 %v13471_v34, %v17295_v5  ;;  %v7281_v43 = vpop.xlane.xlu2 %7280  ;;  %v19749_v15 = vld [vmem:[#allocation18_spill] sm:$0xff] }
 0xdaf   : > { %12602 = vmatmul.msk.bf16.gmra.mxu2 %vm452_vm0, %v19628_v53  ;;  %13472 = vrcp.f32 %v7281_v43 }
 0xdb0   : > { %v7090_v21 = vsel %vm1367_vm2, %v17442_v30, -inf  ;;  %v7375_v10 = vpack.c.bf16 %v7343_v0, %v7343_v0 }
 0xdb1   : > { %7079 = vmax.xlane.f32.xlu0 %v7078_v13 }
 0xdb2   : > { %12560 = vmatmul.msk.bf16.vlgmr.msrb.gmra.mxu0 %vm1367_vm2, %v7371_v31  ;;  %v8111_v44 = vpop.f32.mrf.mxu2 }
 0xdb3   : > { %7996 = vmatpush.bf16.msrb.mxu0 %v7987_v62  ;;  %v8329_v34 = vpack.c.bf16 %v8111_v44, %v8111_v44  ;;  %v7390_v44 = vpack.c.bf16 %v17017_v23, %v17017_v23 }
 0xdb5   : > { %v6995_v18 = vpop.f32.mrf.mxu3  ;;  %v13473_v31 = vpop.eup %13472  ;;  %v7588_v23 = vsel %vm1787_vm3, %v7390_v44, 0 }
 0xdb6   : > { %v7347_v13 = vmul.f32 %v13473_v31, %v17304_v16  ;;  %v19750_v18 = vld [vmem:[#allocation21_spill] sm:$0xff] }
 0xdb7   : > { %v19752_v31 = vld [vmem:[#allocation73_spill] sm:$0xff] }
 0xdb8   : > { %v7379_v62 = vpack.c.bf16 %v7347_v13, %v7347_v13 }
 0xdb9   : > { %7091 = vmax.xlane.f32.xlu0 %v7090_v21 }
 0xdba   : > { %v17450_v29 = vpop.f32.mrf.mxu2 }
 0xdbf   : > { %12603 = vmatmul.msk.bf16.gmra.mxu2 %vm452_vm0, %v14220_v24 }
 0xdc2   : > { %12564 = vmatmul.msk.bf16.vlgmr.msra.gmra.mxu0 %vm1367_vm2, %v7375_v10  ;;  %v8116_v28 = vpop.f32.mrf.mxu2  ;;  %v19751_v10 = vld [vmem:[#allocation25_spill] sm:$0xff] }
 0xdc3   : > { %8371 = vmatpush.bf16.xpose.msra.mxu0 %v19749_v15  ;;  %v8331_v15 = vpack.c.bf16 %v8116_v28, %v8116_v28 }
 0xdca   : > { %v17457_v5 = vpop.f32.mrf.mxu2 }
 0xdcf   : > { %12604 = vmatmul.msk.bf16.gmra.mxu2 %vm452_vm0, %v14244_v42 }
 0xdd2   : > { %12568 = vmatmul.msk.bf16.vlgmr.msrb.gmra.mxu0 %vm1367_vm2, %v7379_v62  ;;  %v17462_v21 = vpop.f32.mrf.mxu2 }
 0xdd3   : > { %8403 = vmatpush.bf16.xpose.msrb.mxu0 %v19750_v18  ;;  %v8333_v44 = vpack.c.bf16 %v17462_v21, %v17462_v21 }
 0xdd4   : > { %v7062_v20 = vpop.xlane.xlu2 %7061 }
 0xdda   : > { %v17465_v0 = vpop.f32.mrf.mxu2 }
 0xddf   : > { %12605 = vmatmul.msk.bf16.gmra.mxu2 %vm452_vm0, %v14268_v2 }
 0xde2   : > { %12650 = vmatmul.msk.bf16.vlgmr.msra.gmra.mxu0 %vm452_vm0, %v8329_v34  ;;  %v17473_v62 = vpop.f32.mrf.mxu2 }
 0xde3   : > { %8435 = vmatpush.bf16.xpose.msra.mxu0 %v19751_v10 }
 0xde7   : > { %v7194_v16 = vpop.xlane.xlu0 %7193 }
 0xde8   : > { %13474 = vrcp.f32 %v7194_v16  ;;  %v7542_v43 = vpop.f32.mrf.mxu0 }
 0xde9   : > { %v17471_v13 = vadd.f32 %v7542_v43, %v19752_v31  ;;  %v7114_v31 = vsub.f32 %v17315_v11, %v7062_v20 }
 0xdea   : > { %v17480_v43 = vpop.f32.mrf.mxu2 }
 0xdeb   : > { %v7167_v28 = vmul.f32 1.442695, %v7114_v31 }
 0xdee   : > { %v13475_v18 = vpop.eup %13474 }
 0xdef   : > { %v7318_v34 = vmul.f32 %v13475_v18, %v17333_v4  ;;  %v7050_v35 = vpop.xlane.xlu0 %7049  ;;  %v7206_v10 = vpop.xlane.xlu1 %7205  ;;  %v19753_v4 = vld [vmem:[#allocation28_spill] sm:$0xff]  ;;  %12606 = vmatmul.msk.bf16.gmra.mxu2 %vm452_vm0, %v19473_v39 }
 0xdf0   : > { %v7110_v42 = vsub.f32 %v17338_v41, %v7050_v35  ;;  %v7544_v2 = vpop.f32.mrf.mxu0  ;;  %13476 = vrcp.f32 %v7206_v10 }
 0xdf1   : > { %v7350_v16 = vpack.c.bf16 %v7318_v34, %v7318_v34  ;;  %v7394_v34 = vpack.c.bf16 %v17060_v40, %v17060_v40 }
 0xdf2   : > { %v7159_v24 = vmul.f32 1.442695, %v7110_v42  ;;  %12652 = vmatmul.msk.bf16.vlgmr.msrb.gmra.mxu0 %vm452_vm0, %v8331_v15  ;;  %v17491_v15 = vpop.f32.mrf.mxu2 }
 0xdf3   : > { %12539 = vmatmul.msk.bf16.vlgmr.msra.gmra.mxu3 %vm1367_vm2, %v7350_v16  ;;  %8467 = vmatpush.bf16.xpose.msrb.mxu0 %v19753_v4 }
 0xdf4   : > { %13478 = vpow2.f32 %v7159_v24  ;;  %7597 = vmatpush.bf16.msra.mxu3 %v7588_v23 }
 0xdf6   : > { %v13477_v35 = vpop.eup %13476 }
 0xdf7   : > { %v7044_v41 = vpop.xlane.xlu0 %7043  ;;  %v7200_v2 = vpop.xlane.xlu1 %7199  ;;  %v7322_v18 = vmul.f32 %v13477_v35, %v17343_v59 }
 0xdf8   : > { %v7108_v42 = vsub.f32 %v17358_v46, %v7044_v41  ;;  %13480 = vrcp.f32 %v7200_v2  ;;  %v7392_v46 = vpack.c.bf16 %v17035_v26, %v17035_v26 }
 0xdf9   : > { %13482 = vpow2.f32 %v7167_v28  ;;  %v7354_v59 = vpack.c.bf16 %v7322_v18, %v7322_v18 }
 0xdfa   : > { %v17489_v11 = vpop.eup %13478  ;;  %v7155_v20 = vmul.f32 1.442695, %v7108_v42  ;;  %v17512_v40 = vpop.f32.mrf.mxu2 }
 0xdfb   : > { %v7240_v24 = vsel %vm1367_vm2, %v17489_v11, 0.0 }
 0xdfc   : > { %13484 = vpow2.f32 %v7155_v20  ;;  %7241 = vadd.xlane.f32.xlu2 %v7240_v24  ;;  %v19754_v20 = vld [vmem:[#allocation99_spill] sm:$0xff] }
 0xdfe   : > { %v13481_v10 = vpop.eup %13480 }
 0xdff   : > { %v7320_v16 = vmul.f32 %v13481_v10, %v17361_v22  ;;  %v7056_v31 = vpop.xlane.xlu1 %7055  ;;  %v7212_v23 = vpop.xlane.xlu2 %7211  ;;  %v7626_v22 = vsel %vm1787_vm3, %v7392_v46, 0  ;;  %12607 = vmatmul.msk.bf16.gmra.mxu2 %vm452_vm0, %v19476_v57 }
 0xe00   : > { %v7112_v28 = vsub.f32 %v17371_v36, %v7056_v31  ;;  %v7218_v41 = vpop.xlane.xlu0 %7217  ;;  %v7618_v2 = vpop.f32.mrf.mxu0  ;;  %13486 = vrcp.f32 %v7212_v23  ;;  %v7664_v36 = vsel %vm1787_vm3, %v7394_v34, 0 }
 0xe01   : > { %v17504_v42 = vpop.eup %13482  ;;  %v7352_v35 = vpack.c.bf16 %v7320_v16, %v7320_v16  ;;  %v17507_v21 = vadd.f32 %v7618_v2, %v19754_v20  ;;  %13488 = vrcp.f32 %v7218_v41 }
 0xe02   : > { %v17509_v24 = vpop.eup %13484  ;;  %v7163_v26 = vmul.f32 1.442695, %v7112_v28  ;;  %12654 = vmatmul.msk.bf16.vlgmr.msra.gmra.mxu0 %vm452_vm0, %v8333_v44  ;;  %v7252_v10 = vsel %vm1367_vm2, %v17504_v42, 0.0  ;;  %v19755_v44 = vld [vmem:[#allocation31_spill] sm:$0xff] }
 0xe03   : > { %12541 = vmatmul.msk.bf16.vlgmr.msra.gmra.mxu1 %vm1367_vm2, %v7352_v35  ;;  %12543 = vmatmul.msk.bf16.vlgmr.msrb.gmra.mxu3 %vm1367_vm2, %v7354_v59  ;;  %v7234_v18 = vsel %vm1367_vm2, %v17509_v24, 0.0  ;;  %v17529_v35 = vpop.f32.mrf.mxu2 }
 0xe04   : > { %13490 = vpow2.f32 %v7163_v26  ;;  %7635 = vmatpush.bf16.msra.mxu1 %v7626_v22  ;;  %7673 = vmatpush.bf16.msrb.mxu3 %v7664_v36 }
 0xe05   : > { %7235 = vadd.xlane.f32.xlu1 %v7234_v18  ;;  %7253 = vadd.xlane.f32.xlu2 %v7252_v10  ;;  %v7398_v18 = vpack.c.bf16 %v17112_v51, %v17112_v51 }
 0xe06   : > { %8499 = vmatpush.bf16.xpose.msra.mxu0 %v19755_v44  ;;  %v13487_v46 = vpop.eup %13486 }
 0xe07   : > { %v7068_v16 = vpop.xlane.xlu2 %7067  ;;  %v13489_v28 = vpop.eup %13488  ;;  %v7324_v36 = vmul.f32 %v13487_v46, %v17377_v12  ;;  %v7740_v51 = vsel %vm1787_vm3, %v7398_v18, 0 }
 0xe08   : > { %v7074_v31 = vpop.xlane.xlu0 %7073  ;;  %v7116_v34 = vsub.f32 %v17390_v47, %v7068_v16  ;;  %v7620_v23 = vpop.f32.mrf.mxu0  ;;  %v7326_v22 = vmul.f32 %v13489_v28, %v17375_v61  ;;  %v8335_v47 = vpack.c.bf16 %v17473_v62, %v17473_v62 }
 0xe09   : > { %v7118_v41 = vsub.f32 %v17393_v38, %v7074_v31  ;;  %v7396_v38 = vpack.c.bf16 %v17088_v55, %v17088_v55  ;;  %v7356_v31 = vpack.c.bf16 %v7324_v36, %v7324_v36 }
 0xe0a   : > { %v17527_v2 = vpop.eup %13490  ;;  %v7171_v59 = vmul.f32 1.442695, %v7116_v34  ;;  %v7358_v16 = vpack.c.bf16 %v7326_v22, %v7326_v22  ;;  %v19756_v34 = vld [vmem:[#allocation76_spill] sm:$0xff] }
 0xe0b   : > { %v7175_v20 = vmul.f32 1.442695, %v7118_v41  ;;  %v7246_v26 = vsel %vm1367_vm2, %v17527_v2, 0.0  ;;  %v7702_v55 = vsel %vm1787_vm3, %v7396_v38, 0  ;;  %v17555_v46 = vpop.f32.mrf.mxu2 }
 0xe0c   : > { %13492 = vpow2.f32 %v7171_v59  ;;  %v19758_v59 = vld [vmem:[#allocation34_spill] sm:$0xff] }
 0xe0d   : > { %13494 = vpow2.f32 %v7175_v20  ;;  %7247 = vadd.xlane.f32.xlu1 %v7246_v26 }
 0xe0f   : > { %12608 = vmatmul.msk.bf16.gmra.mxu2 %vm452_vm0, %v14340_v17 }
 0xe10   : > { %v7694_v10 = vpop.f32.mrf.mxu0 }
 0xe11   : > { %v17542_v23 = vadd.f32 %v7694_v10, %v19756_v34  ;;  %v8337_v10 = vpack.c.bf16 %v17491_v15, %v17491_v15  ;;  %v7400_v15 = vpack.c.bf16 %v17136_v1, %v17136_v1 }
 0xe12   : > { %v17544_v61 = vpop.eup %13492  ;;  %12656 = vmatmul.msk.bf16.vlgmr.msrb.gmra.mxu0 %vm452_vm0, %v8335_v47 }
 0xe13   : > { %19757 = vst [vmem:[#allocation83_spill] sm:$0xff] %v17542_v23  ;;  %v17547_v12 = vpop.eup %13494  ;;  %12545 = vmatmul.msk.bf16.vlgmr.msrb.gmra.mxu1 %vm1367_vm2, %v7356_v31  ;;  %12547 = vmatmul.msk.bf16.vlgmr.msra.gmra.mxu3 %vm1367_vm2, %v7358_v16  ;;  %v7258_v62 = vsel %vm1367_vm2, %v17544_v61, 0.0  ;;  %v8141_v18 = vpop.f32.mrf.mxu2  ;;  %v7402_v16 = vpack.c.bf16 %v17161_v19, %v17161_v19  ;;  %v7778_v1 = vsel %vm1787_vm3, %v7400_v15, 0 }
 0xe14   : > { %7711 = vmatpush.bf16.msrb.mxu1 %v7702_v55  ;;  %7749 = vmatpush.bf16.msra.mxu3 %v7740_v51  ;;  %v7264_v28 = vsel %vm1367_vm2, %v17547_v12, 0.0  ;;  %v7230_v41 = vpop.xlane.xlu1 %7229  ;;  %v19759_v51 = vld [vmem:[#allocation74_spill] sm:$0xff] }
 0xe15   : > { %7265 = vadd.xlane.f32.xlu2 %v7264_v28  ;;  %7259 = vadd.xlane.f32.xlu0 %v7258_v62  ;;  %13496 = vrcp.f32 %v7230_v41  ;;  %v19761_v28 = vld [vmem:[#allocation37_spill] sm:$0xff] }
 0xe16   : > { %8531 = vmatpush.bf16.xpose.msrb.mxu0 %v19758_v59  ;;  %v19775_v59 = vld [vmem:[#allocation103_spill] sm:$0xff] }
 0xe18   : > { %v7696_v20 = vpop.f32.mrf.mxu0 }
 0xe1b   : > { %v13497_v26 = vpop.eup %13496 }
 0xe1c   : > { %v7086_v22 = vpop.xlane.xlu1 %7085  ;;  %v7224_v36 = vpop.xlane.xlu0 %7223  ;;  %v7330_v47 = vmul.f32 %v13497_v26, %v17411_v54 }
 0xe1d   : > { %v7122_v38 = vsub.f32 %v17423_v25, %v7086_v22  ;;  %13498 = vrcp.f32 %v7224_v36  ;;  %v7816_v25 = vsel %vm1787_vm3, %v7402_v16, 0  ;;  %v8339_v16 = vpack.c.bf16 %v17529_v35, %v17529_v35 }
 0xe1e   : > { %v7362_v55 = vpack.c.bf16 %v7330_v47, %v7330_v47  ;;  %v17581_v47 = vpop.f32.mrf.mxu2 }
 0xe1f   : > { %v7183_v31 = vmul.f32 1.442695, %v7122_v38  ;;  %12609 = vmatmul.msk.bf16.gmra.mxu2 %vm452_vm0, %v14467_v32 }
 0xe20   : > { %v7770_v34 = vpop.f32.mrf.mxu0 }
 0xe21   : > { %13500 = vpow2.f32 %v7183_v31  ;;  %v17569_v62 = vadd.f32 %v7770_v34, %v19759_v51 }
 0xe22   : > { %12658 = vmatmul.msk.bf16.vlgmr.msra.gmra.mxu0 %vm452_vm0, %v8337_v10 }
 0xe23   : > { %19760 = vst [vmem:[#allocation111_spill] sm:$0xff] %v17569_v62  ;;  %v13499_v54 = vpop.eup %13498  ;;  %12551 = vmatmul.msk.bf16.vlgmr.msrb.gmra.mxu3 %vm1367_vm2, %v7362_v55  ;;  %8563 = vmatpush.bf16.xpose.msra.mxu0 %v19761_v28 }
 0xe24   : > { %v7328_v19 = vmul.f32 %v13499_v54, %v17425_v49  ;;  %7825 = vmatpush.bf16.msrb.mxu3 %v7816_v25  ;;  %v7080_v41 = vpop.xlane.xlu0 %7079  ;;  %v19762_v54 = vld [vmem:[#allocation100_spill] sm:$0xff] }
 0xe25   : > { %v7120_v20 = vsub.f32 %v17434_v45, %v7080_v41 }
 0xe26   : > { %v7360_v26 = vpack.c.bf16 %v7328_v19, %v7328_v19  ;;  %v8146_v15 = vpop.f32.mrf.mxu2  ;;  %v19764_v19 = vld [vmem:[#allocation40_spill] sm:$0xff] }
 0xe27   : > { %v17579_v22 = vpop.eup %13500  ;;  %v7179_v36 = vmul.f32 1.442695, %v7120_v20 }
 0xe28   : > { %v7772_v38 = vpop.f32.mrf.mxu0  ;;  %12549 = vmatmul.msk.bf16.vlgmr.msra.gmra.mxu1 %vm1367_vm2, %v7360_v26  ;;  %v7276_v49 = vsel %vm1367_vm2, %v17579_v22, 0.0  ;;  %v8341_v26 = vpack.c.bf16 %v8141_v18, %v8141_v18  ;;  %v19770_v18 = vld [vmem:[#allocation45_spill] sm:$0xff] }
 0xe29   : > { %13502 = vpow2.f32 %v7179_v36  ;;  %7787 = vmatpush.bf16.msra.mxu1 %v7778_v1  ;;  %7277 = vadd.xlane.f32.xlu1 %v7276_v49  ;;  %v19765_v38 = vld [vmem:[#allocation75_spill] sm:$0xff] }
 0xe2a   : > { %v19767_v49 = vld [vmem:[#allocation43_spill] sm:$0xff] }
 0xe2c   : > { %v7092_v45 = vpop.xlane.xlu0 %7091 }
 0xe2d   : > { %v7124_v10 = vsub.f32 %v17442_v30, %v7092_v45 }
 0xe2e   : > { %v17605_v20 = vpop.f32.mrf.mxu2 }
 0xe2f   : > { %v17592_v31 = vpop.eup %13502  ;;  %v7187_v34 = vmul.f32 1.442695, %v7124_v10 }
 0xe30   : > { %v7846_v55 = vpop.f32.mrf.mxu0  ;;  %v7270_v51 = vsel %vm1367_vm2, %v17592_v31, 0.0 }
 0xe31   : > { %13504 = vpow2.f32 %v7187_v34  ;;  %v17597_v25 = vadd.f32 %v7846_v55, %v19762_v54  ;;  %7271 = vadd.xlane.f32.xlu2 %v7270_v51  ;;  %v19768_v51 = vld [vmem:[#allocation101_spill] sm:$0xff] }
 0xe32   : > { %12660 = vmatmul.msk.bf16.vlgmr.msrb.gmra.mxu0 %vm452_vm0, %v8339_v16  ;;  %v8343_v16 = vpack.c.bf16 %v8146_v15, %v8146_v15 }
 0xe33   : > { %19763 = vst [vmem:[#allocation84_spill] sm:$0xff] %v17597_v25  ;;  %8595 = vmatpush.bf16.xpose.msrb.mxu0 %v19764_v19 }
 0xe36   : > { %v8151_v45 = vpop.f32.mrf.mxu2 }
 0xe37   : > { %v17601_v30 = vpop.eup %13504 }
 0xe38   : > { %v7848_v35 = vpop.f32.mrf.mxu0  ;;  %v7282_v41 = vsel %vm1367_vm2, %v17601_v30, 0.0 }
 0xe39   : > { %7283 = vadd.xlane.f32.xlu0 %v7282_v41 }
 0xe3e   : > { %v17612_v34 = vpop.f32.mrf.mxu2 }
 0xe40   : > { %v7922_v36 = vpop.f32.mrf.mxu0 }
 0xe41   : > { %v17608_v1 = vadd.f32 %v7922_v36, %v19765_v38  ;;  %v8345_v36 = vpack.c.bf16 %v8151_v45, %v8151_v45 }
 0xe42   : > { %12662 = vmatmul.msk.bf16.vlgmr.msra.gmra.mxu0 %vm452_vm0, %v8341_v26 }
 0xe43   : > { %19766 = vst [vmem:[#allocation112_spill] sm:$0xff] %v17608_v1  ;;  %8627 = vmatpush.bf16.xpose.msra.mxu0 %v19767_v49  ;;  %v7406_v49 = vpack.c.bf16 %v17178_v9, %v17178_v9 }
 0xe46   : > { %v8156_v41 = vpop.f32.mrf.mxu2 }
 0xe48   : > { %v7924_v10 = vpop.f32.mrf.mxu0 }
 0xe4e   : > { %v17625_v10 = vpop.f32.mrf.mxu2 }
 0xe50   : > { %v7998_v55 = vpop.f32.mrf.mxu0 }
 0xe51   : > { %v17615_v54 = vadd.f32 %v7998_v55, %v19768_v51  ;;  %v19771_v55 = vld [vmem:[#allocation47_spill] sm:$0xff] }
 0xe52   : > { %12664 = vmatmul.msk.bf16.vlgmr.msrb.gmra.mxu0 %vm452_vm0, %v8343_v16 }
 0xe53   : > { %19769 = vst [vmem:[#allocation63_spill] sm:$0xff] %v17615_v54  ;;  %8659 = vmatpush.bf16.xpose.msrb.mxu0 %v19770_v18  ;;  %v8347_v54 = vpack.c.bf16 %v8156_v41, %v8156_v41  ;;  %v17640_v41 = vpop.f32.mrf.mxu1 }
 0xe56   : > { %v8161_v51 = vpop.f32.mrf.mxu2 }
 0xe57   : > { %v8349_v9 = vpack.c.bf16 %v8161_v51, %v8161_v51  ;;  %v19776_v51 = vld [vmem:[#allocation51_spill] sm:$0xff] }
 0xe58   : > { %v8000_v35 = vpop.f32.mrf.mxu0 }
 0xe60   : > { %v8373_v38 = vpop.f32.mrf.mxu0 }
 0xe61   : > { %v17620_v26 = vadd.f32 %v8373_v38, %v14373_v37  ;;  %v19772_v38 = vld [vmem:[#allocation49_spill] sm:$0xff] }
 0xe62   : > { %12666 = vmatmul.msk.bf16.vlgmr.msra.gmra.mxu0 %vm452_vm0, %v8345_v36 }
 0xe63   : > { %v8873_v15 = vsel %vm1367_vm2, %v17620_v26, -inf  ;;  %8691 = vmatpush.bf16.xpose.msra.mxu0 %v19771_v55  ;;  %v19773_v55 = vld [vmem:[#allocation77_spill] sm:$0xff] }
 0xe64   : > { %8874 = vmax.xlane.f32.xlu1 %v8873_v15 }
 0xe68   : > { %v8375_v16 = vpop.f32.mrf.mxu0 }
 0xe69   : > { %v17638_v16 = vpop.f32.mrf.mxu2 }
 0xe6f   : > { %v7242_v35 = vpop.xlane.xlu2 %7241 }
 0xe70   : > { %13506 = vrcp.f32 %v7242_v35  ;;  %v17628_v45 = vpop.f32.mrf.mxu0 }
 0xe72   : > { %12668 = vmatmul.msk.bf16.vlgmr.msrb.gmra.mxu0 %vm452_vm0, %v8347_v54 }
 0xe73   : > { %8723 = vmatpush.bf16.xpose.msrb.mxu0 %v19772_v38  ;;  %v7892_v38 = vsel %vm1787_vm3, %v7406_v49, 0 }
 0xe76   : > { %v13507_v36 = vpop.eup %13506  ;;  %v7447_v18 = vpop.f32.mrf.mxu3 }
 0xe77   : > { %v7334_v19 = vmul.f32 %v13507_v36, %v17489_v11  ;;  %v17636_v15 = vadd.f32 %v7447_v18, %v19773_v55  ;;  %v7404_v18 = vpack.c.bf16 %v17171_v48, %v17171_v48 }
 0xe78   : > { %v7236_v35 = vpop.xlane.xlu1 %7235  ;;  %v7254_v54 = vpop.xlane.xlu2 %7253 }
 0xe79   : > { %19774 = vst [vmem:[#allocation91_spill] sm:$0xff] %v17636_v15  ;;  %v7366_v1 = vpack.c.bf16 %v7334_v19, %v7334_v19  ;;  %13508 = vrcp.f32 %v7236_v35  ;;  %v8407_v28 = vpop.f32.mrf.mxu0  ;;  %v7854_v48 = vsel %vm1787_vm3, %v7404_v18, 0 }
 0xe7a   : > { %13510 = vrcp.f32 %v7254_v54  ;;  %v8166_v28 = vpop.f32.mrf.mxu2  ;;  %v19777_v54 = vld [vmem:[#allocation19_spill] sm:$0xff] }
 0xe7b   : > { %12555 = vmatmul.msk.bf16.vlgmr.msra.gmra.mxu3 %vm1367_vm2, %v7366_v1 }
 0xe7c   : > { %7901 = vmatpush.bf16.msra.mxu3 %v7892_v38 }
 0xe7e   : > { %v7449_v11 = vpop.f32.mrf.mxu3 }
 0xe7f   : > { %v13509_v36 = vpop.eup %13508 }
 0xe80   : > { %v7332_v55 = vmul.f32 %v13509_v36, %v17509_v24  ;;  %v7485_v15 = vpop.f32.mrf.mxu1  ;;  %v13511_v25 = vpop.eup %13510 }
 0xe81   : > { %v17648_v19 = vadd.f32 %v7485_v15, %v19775_v59  ;;  %v8437_v35 = vpop.f32.mrf.mxu0  ;;  %v7248_v44 = vpop.xlane.xlu1 %7247  ;;  %v7338_v59 = vmul.f32 %v13511_v25, %v17504_v42  ;;  %v7410_v15 = vpack.c.bf16 %v17420_v58, %v17420_v58  ;;  %v8351_v25 = vpack.c.bf16 %v8166_v28, %v8166_v28 }
 0xe82   : > { %v7364_v1 = vpack.c.bf16 %v7332_v55, %v7332_v55  ;;  %v17651_v49 = vadd.f32 %v8437_v35, %v14373_v37  ;;  %12670 = vmatmul.msk.bf16.vlgmr.msra.gmra.mxu0 %vm452_vm0, %v8349_v9  ;;  %13512 = vrcp.f32 %v7248_v44  ;;  %v17667_v42 = vpop.f32.mrf.mxu2 }
 0xe83   : > { %8755 = vmatpush.bf16.xpose.msra.mxu0 %v19776_v51  ;;  %v7370_v36 = vpack.c.bf16 %v7338_v59, %v7338_v59  ;;  %v8352_v62 = vpack.c.bf16 %v17667_v42, %v17667_v42  ;;  %v19820_v42 = vld [vmem:[#allocation54_spill] sm:$0xff] }
 0xe84   : > { %12553 = vmatmul.msk.bf16.vlgmr.msrb.gmra.mxu1 %vm1367_vm2, %v7364_v1  ;;  %v8885_v24 = vsel %vm1367_vm2, %v17651_v49, -inf  ;;  %v7968_v1 = vsel %vm1787_vm3, %v7410_v15, 0  ;;  %v19779_v15 = vld [vmem:[#allocation53_spill] sm:$0xff] }
 0xe85   : > { %7863 = vmatpush.bf16.msrb.mxu1 %v7854_v48  ;;  %8886 = vmax.xlane.f32.xlu2 %v8885_v24  ;;  %v7408_v48 = vpack.c.bf16 %v17196_v50, %v17196_v50 }
 0xe86   : > { %v7523_v38 = vpop.f32.mrf.mxu3 }
 0xe87   : > { %v17663_v9 = vadd.f32 %v7523_v38, %v19777_v54 }
 0xe88   : > { %v7266_v11 = vpop.xlane.xlu2 %7265  ;;  %v7487_v55 = vpop.f32.mrf.mxu1 }
 0xe89   : > { %19778 = vst [vmem:[#allocation65_spill] sm:$0xff] %v17663_v9  ;;  %v8439_v35 = vpop.f32.mrf.mxu0  ;;  %v13513_v18 = vpop.eup %13512  ;;  %13514 = vrcp.f32 %v7266_v11 }
 0xe8a   : > { %v7336_v44 = vmul.f32 %v13513_v18, %v17527_v2  ;;  %v7260_v55 = vpop.xlane.xlu0 %7259  ;;  %v7930_v2 = vsel %vm1787_vm3, %v7408_v48, 0  ;;  %v8171_v28 = vpop.f32.mrf.mxu2  ;;  %v19780_v35 = vld [vmem:[#allocation22_spill] sm:$0xff] }
 0xe8b   : > { %12559 = vmatmul.msk.bf16.vlgmr.msrb.gmra.mxu3 %vm1367_vm2, %v7370_v36  ;;  %13516 = vrcp.f32 %v7260_v55  ;;  %v8353_v48 = vpack.c.bf16 %v8171_v28, %v8171_v28 }
 0xe8c   : > { %7977 = vmatpush.bf16.msrb.mxu3 %v7968_v1  ;;  %v7368_v54 = vpack.c.bf16 %v7336_v44, %v7336_v44 }
 0xe8e   : > { %v7525_v58 = vpop.f32.mrf.mxu3 }
 0xe8f   : > { %v13515_v38 = vpop.eup %13514 }
 0xe90   : > { %v7561_v24 = vpop.f32.mrf.mxu1  ;;  %v7342_v50 = vmul.f32 %v13515_v38, %v17547_v12  ;;  %v7412_v12 = vpack.c.bf16 %v17640_v41, %v17640_v41 }
 0xe91   : > { %v17672_v59 = vpop.f32.mrf.mxu0  ;;  %v17675_v36 = vadd.f32 %v7561_v24, %v16915_v60  ;;  %v13517_v58 = vpop.eup %13516 }
 0xe92   : > { %12672 = vmatmul.msk.bf16.vlgmr.msrb.gmra.mxu0 %vm452_vm0, %v8351_v25  ;;  %v7374_v1 = vpack.c.bf16 %v7342_v50, %v7342_v50  ;;  %v7340_v24 = vmul.f32 %v13517_v58, %v17544_v61  ;;  %v17687_v55 = vpop.f32.mrf.mxu2  ;;  %v8006_v61 = vsel %vm1787_vm3, %v7412_v12, 0  ;;  %v12922_v58 = vld [vmem:[#allocation7 + $0xe0] sm:$0xff] }
 0xe93   : > { %8787 = vmatpush.bf16.xpose.msrb.mxu0 %v19779_v15 }
 0xe94   : > { %12557 = vmatmul.msk.bf16.vlgmr.msra.gmra.mxu1 %vm1367_vm2, %v7368_v54 }
 0xe95   : > { %7939 = vmatpush.bf16.msra.mxu1 %v7930_v2  ;;  %v7372_v2 = vpack.c.bf16 %v7340_v24, %v7340_v24 }
 0xe96   : > { %v7599_v11 = vpop.f32.mrf.mxu3 }
 0xe97   : > { %v17683_v18 = vadd.f32 %v7599_v11, %v19780_v35  ;;  %v12923_v11 = vld [vmem:[#allocation7 + $0xe8] sm:$0xff] }
 0xe98   : > { %v7563_v60 = vpop.f32.mrf.mxu1 }
 0xe99   : > { %19781 = vst [vmem:[#allocation113_spill] sm:$0xff] %v17683_v18  ;;  %v8471_v44 = vpop.f32.mrf.mxu0 }
 0xe9b   : > { %12563 = vmatmul.msk.bf16.vlgmr.msra.gmra.mxu3 %vm1367_vm2, %v7374_v1  ;;  %v19782_v1 = vld [vmem:[#allocation55_spill] sm:$0xff] }
 0xe9c   : > { %v7278_v25 = vpop.xlane.xlu1 %7277  ;;  %8242 = vmatpush.bf16.msra.mxu3 %v12923_v11 }
 0xe9d   : > { %13518 = vrcp.f32 %v7278_v25 }
 0xe9e   : > { %v7601_v54 = vpop.f32.mrf.mxu3 }
 0xea0   : > { %8243 = vmatpush.bf16.msra.mxu3 %v12922_v58 }
 0xea1   : > { %v8501_v38 = vpop.f32.mrf.mxu0 }
 0xea2   : > { %v17692_v50 = vadd.f32 %v8501_v38, %v14373_v37  ;;  %12674 = vmatmul.msk.bf16.vlgmr.msra.gmra.mxu0 %vm452_vm0, %v8353_v48  ;;  %v19784_v48 = vld [vmem:[#allocation24_spill] sm:$0xff]  ;;  %v8176_v38 = vpop.f32.mrf.mxu2 }
 0xea3   : > { %v13519_v35 = vpop.eup %13518  ;;  %8819 = vmatpush.bf16.xpose.msra.mxu0 %v19782_v1  ;;  %v12921_v1 = vld [vmem:[#allocation7 + $0xd8] sm:$0xff] }
 0xea4   : > { %12561 = vmatmul.msk.bf16.vlgmr.msrb.gmra.mxu1 %vm1367_vm2, %v7372_v2  ;;  %v8897_v28 = vsel %vm1367_vm2, %v17692_v50, -inf  ;;  %v7272_v60 = vpop.xlane.xlu2 %7271  ;;  %v7346_v41 = vmul.f32 %v13519_v35, %v17579_v22  ;;  %8244 = vmatpush.bf16.msra.mxu3 %v12921_v1  ;;  %v12920_v22 = vld [vmem:[#allocation7 + $0xd0] sm:$0xff]  ;;  %v12918_v1 = vld [vmem:[#allocation7 + $0xc0] sm:$0xff] }
 0xea5   : > { %8015 = vmatpush.bf16.msrb.mxu1 %v8006_v61  ;;  %8898 = vmax.xlane.f32.xlu0 %v8897_v28  ;;  %13520 = vrcp.f32 %v7272_v60  ;;  %v7637_v44 = vpop.f32.mrf.mxu1  ;;  %v8355_v28 = vpack.c.bf16 %v8176_v38, %v8176_v38 }
 0xea6   : > { %v17702_v25 = vadd.f32 %v7637_v44, %v16948_v27  ;;  %v7675_v24 = vpop.f32.mrf.mxu3  ;;  %v7378_v12 = vpack.c.bf16 %v7346_v41, %v7346_v41  ;;  %v12919_v41 = vld [vmem:[#allocation7 + $0xc8] sm:$0xff] }
 0xea7   : > { %v17705_v54 = vadd.f32 %v7675_v24, %v19784_v48  ;;  %v19786_v48 = vld [vmem:[#allocation59_spill] sm:$0xff] }
 0xea8   : > { %19783 = vst [vmem:[#allocation95_spill] sm:$0xff] %v17702_v25  ;;  %8245 = vmatpush.bf16.msra.mxu3 %v12920_v22 }
 0xea9   : > { %19785 = vst [vmem:[#allocation69_spill] sm:$0xff] %v17705_v54  ;;  %v8503_v2 = vpop.f32.mrf.mxu0  ;;  %v8338_v54 = vpack.c.bf16 %v17512_v40, %v17512_v40  ;;  %v19801_v40 = vld [vmem:[#allocation58_spill] sm:$0xff] }
 0xeaa   : > { %v17712_v58 = vpop.f32.mrf.mxu2 }
 0xeab   : > { %v13521_v11 = vpop.eup %13520  ;;  %12567 = vmatmul.msk.bf16.vlgmr.msrb.gmra.mxu3 %vm1367_vm2, %v7378_v12 }
 0xeac   : > { %v7344_v61 = vmul.f32 %v13521_v11, %v17592_v31  ;;  %v7284_v24 = vpop.xlane.xlu0 %7283  ;;  %8246 = vmatpush.bf16.msra.mxu3 %v12919_v41  ;;  %v19788_v41 = vld [vmem:[#allocation26_spill] sm:$0xff] }
 0xead   : > { %v7639_v35 = vpop.f32.mrf.mxu1  ;;  %13522 = vrcp.f32 %v7284_v24  ;;  %v8330_v24 = vpack.c.bf16 %v17450_v29, %v17450_v29 }
 0xeae   : > { %v7677_v27 = vpop.f32.mrf.mxu3  ;;  %v7376_v44 = vpack.c.bf16 %v7344_v61, %v7344_v61 }
 0xeaf   : > { %v19787_v27 = vld [vmem:[#allocation23_spill] sm:$0xff] }
 0xeb0   : > { %8247 = vmatpush.bf16.msra.mxu3 %v12918_v1 }
 0xeb1   : > { %v17709_v60 = vpop.f32.mrf.mxu0 }
 0xeb2   : > { %12676 = vmatmul.msk.bf16.vlgmr.msrb.gmra.mxu0 %vm452_vm0, %v8355_v28  ;;  %v8181_v38 = vpop.f32.mrf.mxu2 }
 0xeb3   : > { %8851 = vmatpush.bf16.xpose.msrb.mxu0 %v19786_v48  ;;  %v13523_v12 = vpop.eup %13522  ;;  %v8357_v11 = vpack.c.bf16 %v8181_v38, %v8181_v38 }
 0xeb4   : > { %12565 = vmatmul.msk.bf16.vlgmr.msra.gmra.mxu1 %vm1367_vm2, %v7376_v44  ;;  %v7348_v2 = vmul.f32 %v13523_v12, %v17601_v30 }
 0xeb5   : > { %8387 = vmatpush.bf16.xpose.msra.mxu1 %v19696_v56  ;;  %v19832_v56 = vld [vmem:[#allocation64_spill] sm:$0xff] }
 0xeb6   : > { %v7380_v35 = vpack.c.bf16 %v7348_v2, %v7348_v2 }
 0xeb9   : > { %v8535_v31 = vpop.f32.mrf.mxu0 }
 0xebb   : > { %12634 = vmatmul.msk.bf16.vlgmr.msra.gmra.mxu3 %vm452_vm0, %v19735_v8 }
 0xec1   : > { %v8565_v22 = vpop.f32.mrf.mxu0 }
 0xec2   : > { %v17721_v61 = vadd.f32 %v8565_v22, %v14373_v37  ;;  %12678 = vmatmul.msk.bf16.vlgmr.msra.gmra.mxu0 %vm452_vm0, %v8357_v11  ;;  %v8332_v22 = vpack.c.bf16 %v17457_v5, %v17457_v5 }
 0xec4   : > { %12569 = vmatmul.msk.bf16.vlgmr.msrb.gmra.mxu1 %vm1367_vm2, %v7380_v35  ;;  %v8909_v28 = vsel %vm1367_vm2, %v17721_v61, -inf }
 0xec5   : > { %8910 = vmax.xlane.f32.xlu1 %v8909_v28  ;;  %8419 = vmatpush.bf16.xpose.msrb.mxu1 %v19787_v27  ;;  %v19789_v28 = vld [vmem:[#allocation29_spill] sm:$0xff] }
 0xec9   : > { %v8567_v44 = vpop.f32.mrf.mxu0 }
 0xecb   : > { %12635 = vmatmul.msk.bf16.gmra.mxu3 %vm452_vm0, %v19736_v14 }
 0xed1   : > { %v17730_v30 = vpop.f32.mrf.mxu0 }
 0xed4   : > { %12651 = vmatmul.msk.bf16.vlgmr.msra.gmra.mxu1 %vm452_vm0, %v8330_v24  ;;  %v8334_v24 = vpack.c.bf16 %v17465_v0, %v17465_v0  ;;  %v8336_v0 = vpack.c.bf16 %v17480_v43, %v17480_v43  ;;  %v19795_v43 = vld [vmem:[#allocation35_spill] sm:$0xff] }
 0xed5   : > { %8451 = vmatpush.bf16.xpose.msra.mxu1 %v19788_v41 }
 0xed7   : > { %v8875_v1 = vpop.xlane.xlu1 %8874 }
 0xed8   : > { %v8969_v31 = vsub.f32 %v17620_v26, %v8875_v1  ;;  %v19790_v1 = vld [vmem:[#allocation32_spill] sm:$0xff] }
 0xed9   : > { %v8599_v12 = vpop.f32.mrf.mxu0 }
 0xeda   : > { %v9001_v38 = vmul.f32 1.442695, %v8969_v31 }
 0xedb   : > { %12636 = vmatmul.msk.bf16.gmra.mxu3 %vm452_vm0, %v19737_v33 }
 0xedc   : > { %13524 = vpow2.f32 %v9001_v38 }
 0xee1   : > { %v8629_v2 = vpop.f32.mrf.mxu0 }
 0xee2   : > { %v17739_v11 = vpop.eup %13524  ;;  %v17744_v29 = vadd.f32 %v8629_v2, %v14373_v37 }
 0xee3   : > { %v9065_v35 = vsel %vm1367_vm2, %v17739_v11, 0.0 }
 0xee4   : > { %12653 = vmatmul.msk.bf16.vlgmr.msrb.gmra.mxu1 %vm452_vm0, %v8332_v22  ;;  %9066 = vadd.xlane.f32.xlu2 %v9065_v35  ;;  %v8921_v26 = vsel %vm1367_vm2, %v17744_v29, -inf  ;;  %v19791_v35 = vld [vmem:[#allocation78_spill] sm:$0xff] }
 0xee5   : > { %8922 = vmax.xlane.f32.xlu0 %v8921_v26  ;;  %8483 = vmatpush.bf16.xpose.msrb.mxu1 %v19789_v28 }
 0xee9   : > { %v8631_v44 = vpop.f32.mrf.mxu0 }
 0xeeb   : > { %12637 = vmatmul.msk.bf16.gmra.mxu3 %vm452_vm0, %v19740_v3 }
 0xef1   : > { %v17754_v5 = vpop.f32.mrf.mxu0 }
 0xef4   : > { %12655 = vmatmul.msk.bf16.vlgmr.msra.gmra.mxu1 %vm452_vm0, %v8334_v24  ;;  %v19793_v24 = vld [vmem:[#allocation104_spill] sm:$0xff] }
 0xef5   : > { %8515 = vmatpush.bf16.xpose.msra.mxu1 %v19790_v1 }
 0xef8   : > { %v8887_v31 = vpop.xlane.xlu2 %8886 }
 0xef9   : > { %v8973_v12 = vsub.f32 %v17651_v49, %v8887_v31  ;;  %v8663_v38 = vpop.f32.mrf.mxu0 }
 0xefb   : > { %v9009_v2 = vmul.f32 1.442695, %v8973_v12  ;;  %12638 = vmatmul.msk.bf16.gmra.mxu3 %vm452_vm0, %v19741_v63 }
 0xefd   : > { %13526 = vpow2.f32 %v9009_v2 }
 0xefe   : > { %v7751_v22 = vpop.f32.mrf.mxu3 }
 0xeff   : > { %v17764_v26 = vadd.f32 %v7751_v22, %v19791_v35 }
 0xf01   : > { %19792 = vst [vmem:[#allocation94_spill] sm:$0xff] %v17764_v26  ;;  %v7713_v44 = vpop.f32.mrf.mxu1  ;;  %v8693_v48 = vpop.f32.mrf.mxu0 }
 0xf02   : > { %v17769_v15 = vadd.f32 %v7713_v44, %v19793_v24  ;;  %v17772_v49 = vadd.f32 %v8693_v48, %v14373_v37  ;;  %v19796_v44 = vld [vmem:[#allocation102_spill] sm:$0xff] }
 0xf03   : > { %v17774_v31 = vpop.eup %13526 }
 0xf04   : > { %19794 = vst [vmem:[#allocation85_spill] sm:$0xff] %v17769_v15  ;;  %12657 = vmatmul.msk.bf16.vlgmr.msrb.gmra.mxu1 %vm452_vm0, %v8336_v0  ;;  %v8933_v12 = vsel %vm1367_vm2, %v17772_v49, -inf  ;;  %v9077_v38 = vsel %vm1367_vm2, %v17774_v31, 0.0 }
 0xf05   : > { %8934 = vmax.xlane.f32.xlu2 %v8933_v12  ;;  %9078 = vadd.xlane.f32.xlu1 %v9077_v38  ;;  %v19798_v12 = vld [vmem:[#allocation80_spill] sm:$0xff] }
 0xf06   : > { %v7753_v2 = vpop.f32.mrf.mxu3  ;;  %8547 = vmatpush.bf16.xpose.msrb.mxu1 %v19795_v43 }
 0xf07   : > { %v19800_v2 = vld [vmem:[#allocation38_spill] sm:$0xff] }
 0xf09   : > { %v7715_v22 = vpop.f32.mrf.mxu1  ;;  %v8695_v35 = vpop.f32.mrf.mxu0 }
 0xf0b   : > { %12639 = vmatmul.msk.bf16.gmra.mxu3 %vm452_vm0, %v19744_v6 }
 0xf0e   : > { %v7827_v48 = vpop.f32.mrf.mxu3 }
 0xf0f   : > { %v17785_v24 = vadd.f32 %v7827_v48, %v19796_v44 }
 0xf11   : > { %19797 = vst [vmem:[#allocation96_spill] sm:$0xff] %v17785_v24  ;;  %v7789_v0 = vpop.f32.mrf.mxu1  ;;  %v17787_v26 = vpop.f32.mrf.mxu0 }
 0xf12   : > { %v17792_v38 = vadd.f32 %v7789_v0, %v19798_v12 }
 0xf14   : > { %19799 = vst [vmem:[#allocation67_spill] sm:$0xff] %v17792_v38  ;;  %12659 = vmatmul.msk.bf16.vlgmr.msra.gmra.mxu1 %vm452_vm0, %v8338_v54  ;;  %v8340_v54 = vpack.c.bf16 %v17555_v46, %v17555_v46 }
 0xf15   : > { %8579 = vmatpush.bf16.xpose.msra.mxu1 %v19800_v2 }
 0xf16   : > { %v7829_v22 = vpop.f32.mrf.mxu3 }
 0xf17   : > { %v19803_v22 = vld [vmem:[#allocation105_spill] sm:$0xff] }
 0xf18   : > { %v8899_v35 = vpop.xlane.xlu0 %8898 }
 0xf19   : > { %v8977_v51 = vsub.f32 %v17692_v50, %v8899_v35  ;;  %v7791_v18 = vpop.f32.mrf.mxu1  ;;  %v8727_v48 = vpop.f32.mrf.mxu0 }
 0xf1a   : > { %v17817_v35 = vpop.f32.mrf.mxu2  ;;  %v19805_v48 = vld [vmem:[#allocation41_spill] sm:$0xff] }
 0xf1b   : > { %v9017_v44 = vmul.f32 1.442695, %v8977_v51  ;;  %12640 = vmatmul.msk.bf16.gmra.mxu3 %vm452_vm0, %v19624_v52 }
 0xf1d   : > { %13528 = vpow2.f32 %v9017_v44 }
 0xf1e   : > { %v7903_v24 = vpop.f32.mrf.mxu3 }
 0xf1f   : > { %v17800_v9 = vadd.f32 %v7903_v24, %v19801_v40 }
 0xf21   : > { %19802 = vst [vmem:[#allocation93_spill] sm:$0xff] %v17800_v9  ;;  %v7865_v0 = vpop.f32.mrf.mxu1  ;;  %v8757_v12 = vpop.f32.mrf.mxu0 }
 0xf22   : > { %v17805_v2 = vadd.f32 %v7865_v0, %v19803_v22  ;;  %v17808_v18 = vadd.f32 %v8757_v12, %v14373_v37  ;;  %v8186_v0 = vpop.f32.mrf.mxu2  ;;  %v19806_v22 = vld [vmem:[#allocation79_spill] sm:$0xff] }
 0xf23   : > { %v17810_v51 = vpop.eup %13528 }
 0xf24   : > { %19804 = vst [vmem:[#allocation121_spill] sm:$0xff] %v17805_v2  ;;  %12661 = vmatmul.msk.bf16.vlgmr.msrb.gmra.mxu1 %vm452_vm0, %v8340_v54  ;;  %v9089_v50 = vsel %vm1367_vm2, %v17810_v51, 0.0  ;;  %v8945_v24 = vsel %vm1367_vm2, %v17808_v18, -inf  ;;  %v8359_v54 = vpack.c.bf16 %v8186_v0, %v8186_v0 }
 0xf25   : > { %9090 = vadd.xlane.f32.xlu0 %v9089_v50  ;;  %8946 = vmax.xlane.f32.xlu1 %v8945_v24  ;;  %v8342_v50 = vpack.c.bf16 %v17581_v47, %v17581_v47  ;;  %v19808_v24 = vld [vmem:[#allocation61_spill] sm:$0xff] }
 0xf26   : > { %v7905_v46 = vpop.f32.mrf.mxu3  ;;  %8611 = vmatpush.bf16.xpose.msrb.mxu1 %v19805_v48  ;;  %12680 = vmatmul.msk.bf16.vlgmr.msrb.gmra.mxu0 %vm452_vm0, %v8359_v54 }
 0xf29   : > { %v7867_v44 = vpop.f32.mrf.mxu1  ;;  %v8759_v40 = vpop.f32.mrf.mxu0 }
 0xf2a   : > { %v19810_v44 = vld [vmem:[#allocation44_spill] sm:$0xff] }
 0xf2b   : > { %12641 = vmatmul.msk.bf16.gmra.mxu3 %vm452_vm0, %v19626_v7 }
 0xf2e   : > { %v7979_v12 = vpop.f32.mrf.mxu3 }
 0xf2f   : > { %v17823_v9 = vadd.f32 %v7979_v12, %v19806_v22 }
 0xf31   : > { %19807 = vst [vmem:[#allocation86_spill] sm:$0xff] %v17823_v9  ;;  %v7941_v43 = vpop.f32.mrf.mxu1  ;;  %v17826_v2 = vpop.f32.mrf.mxu0 }
 0xf32   : > { %v17831_v46 = vadd.f32 %v7941_v43, %v19808_v24 }
 0xf34   : > { %19809 = vst [vmem:[#allocation114_spill] sm:$0xff] %v17831_v46  ;;  %12663 = vmatmul.msk.bf16.vlgmr.msra.gmra.mxu1 %vm452_vm0, %v8342_v50  ;;  %v8344_v50 = vpack.c.bf16 %v17605_v20, %v17605_v20  ;;  %v19813_v20 = vld [vmem:[#allocation46_spill] sm:$0xff] }
 0xf35   : > { %8643 = vmatpush.bf16.xpose.msra.mxu1 %v19810_v44 }
 0xf36   : > { %v7981_v40 = vpop.f32.mrf.mxu3 }
 0xf37   : > { %v19811_v40 = vld [vmem:[#allocation106_spill] sm:$0xff] }
 0xf38   : > { %v8911_v0 = vpop.xlane.xlu1 %8910 }
 0xf39   : > { %v8981_v12 = vsub.f32 %v17721_v61, %v8911_v0  ;;  %v7943_v22 = vpop.f32.mrf.mxu1  ;;  %v8791_v9 = vpop.f32.mrf.mxu0 }
 0xf3b   : > { %v9025_v54 = vmul.f32 1.442695, %v8981_v12  ;;  %12642 = vmatmul.msk.bf16.gmra.mxu3 %vm452_vm0, %v19628_v53  ;;  %v17859_v12 = vadd.f32 %v17628_v45, %v14373_v37 }
 0xf3d   : > { %13530 = vpow2.f32 %v9025_v54 }
 0xf3e   : > { %v8249_v48 = vpop.f32.mrf.mxu3 }
 0xf3f   : > { %v9257_v47 = vpack.c.bf16 %v8249_v48, %v8249_v48 }
 0xf41   : > { %v8017_v1 = vpop.f32.mrf.mxu1  ;;  %v8821_v43 = vpop.f32.mrf.mxu0  ;;  %v9293_v24 = vsel %vm1787_vm3, %v9257_v47, 0  ;;  %v19814_v47 = vld [vmem:[#allocation27_spill] sm:$0xff] }
 0xf42   : > { %v17842_v44 = vadd.f32 %v8017_v1, %v19811_v40  ;;  %v17845_v61 = vadd.f32 %v8821_v43, %v14373_v37  ;;  %9302 = vmatpush.bf16.msra.mxu0 %v9293_v24  ;;  %v8879_v43 = vsel %vm1367_vm2, %v17859_v12, -inf  ;;  %v17867_v40 = vadd.f32 %v17672_v59, %v14373_v37 }
 0xf43   : > { %v17847_v9 = vpop.eup %13530 }
 0xf44   : > { %19812 = vst [vmem:[#allocation87_spill] sm:$0xff] %v17842_v44  ;;  %12665 = vmatmul.msk.bf16.vlgmr.msrb.gmra.mxu1 %vm452_vm0, %v8344_v50  ;;  %v9101_v48 = vsel %vm1367_vm2, %v17847_v9, 0.0  ;;  %v8957_v0 = vsel %vm1367_vm2, %v17845_v61, -inf }
 0xf45   : > { %9102 = vadd.xlane.f32.xlu2 %v9101_v48  ;;  %8958 = vmax.xlane.f32.xlu0 %v8957_v0  ;;  %v8346_v0 = vpack.c.bf16 %v17612_v34, %v17612_v34 }
 0xf46   : > { %8675 = vmatpush.bf16.xpose.msrb.mxu1 %v19813_v20  ;;  %v17855_v1 = vpop.f32.mrf.mxu3 }
 0xf49   : > { %v8019_v22 = vpop.f32.mrf.mxu1  ;;  %v8823_v54 = vpop.f32.mrf.mxu0 }
 0xf4a   : > { %v8891_v22 = vsel %vm1367_vm2, %v17867_v40, -inf  ;;  %v19815_v54 = vld [vmem:[#allocation48_spill] sm:$0xff] }
 0xf4b   : > { %12643 = vmatmul.msk.bf16.gmra.mxu3 %vm452_vm0, %v19814_v47 }
 0xf4d   : > { %8880 = vmax.xlane.f32.xlu0 %v8879_v43 }
 0xf4e   : > { %v8254_v24 = vpop.f32.mrf.mxu3 }
 0xf4f   : > { %v9259_v50 = vpack.c.bf16 %v8254_v24, %v8254_v24  ;;  %v17882_v24 = vadd.f32 %v17709_v60, %v14373_v37 }
 0xf51   : > { %v17869_v48 = vpop.f32.mrf.mxu1  ;;  %v9331_v45 = vsel %vm1787_vm3, %v9259_v50, 0 }
 0xf52   : > { %9340 = vmatpush.bf16.msrb.mxu2 %v9331_v45 }
 0xf54   : > { %12667 = vmatmul.msk.bf16.vlgmr.msra.gmra.mxu1 %vm452_vm0, %v8346_v0  ;;  %v19816_v0 = vld [vmem:[#allocation30_spill] sm:$0xff] }
 0xf55   : > { %8892 = vmax.xlane.f32.xlu0 %v8891_v22  ;;  %8707 = vmatpush.bf16.xpose.msra.mxu1 %v19815_v54  ;;  %v8903_v22 = vsel %vm1367_vm2, %v17882_v24, -inf }
 0xf56   : > { %v17878_v43 = vpop.f32.mrf.mxu3 }
 0xf57   : > { %v9067_v59 = vpop.xlane.xlu2 %9066 }
 0xf58   : > { %v8923_v50 = vpop.xlane.xlu0 %8922  ;;  %13532 = vrcp.f32 %v9067_v59 }
 0xf59   : > { %v8985_v34 = vsub.f32 %v17744_v29, %v8923_v50  ;;  %v8391_v45 = vpop.f32.mrf.mxu1  ;;  %v8348_v29 = vpack.c.bf16 %v17625_v10, %v17625_v10  ;;  %v19818_v10 = vld [vmem:[#allocation33_spill] sm:$0xff] }
 0xf5b   : > { %v9033_v44 = vmul.f32 1.442695, %v8985_v34  ;;  %12644 = vmatmul.msk.bf16.gmra.mxu3 %vm452_vm0, %v19816_v0 }
 0xf5d   : > { %13534 = vpow2.f32 %v9033_v44  ;;  %8904 = vmax.xlane.f32.xlu0 %v8903_v22 }
 0xf5e   : > { %v13533_v54 = vpop.eup %13532  ;;  %v8259_v20 = vpop.f32.mrf.mxu3 }
 0xf5f   : > { %v9193_v46 = vmul.f32 %v13533_v54, %v17739_v11  ;;  %v9261_v60 = vpack.c.bf16 %v8259_v20, %v8259_v20  ;;  %v19817_v11 = vld [vmem:[#allocation50_spill] sm:$0xff] }
 0xf61   : > { %v9225_v28 = vpack.c.bf16 %v9193_v46, %v9193_v46  ;;  %v8421_v38 = vpop.f32.mrf.mxu1  ;;  %v9369_v59 = vsel %vm1787_vm3, %v9261_v60, 0 }
 0xf62   : > { %9378 = vmatpush.bf16.msrb.mxu0 %v9369_v59  ;;  %v17903_v20 = vadd.f32 %v8421_v38, %v14373_v37  ;;  %v8350_v59 = vpack.c.bf16 %v17638_v16, %v17638_v16  ;;  %v19819_v38 = vld [vmem:[#allocation52_spill] sm:$0xff] }
 0xf63   : > { %v17893_v50 = vpop.eup %13534  ;;  %12682 = vmatmul.msk.bf16.vlgmr.msra.gmra.mxu0 %vm1367_vm2, %v9225_v28 }
 0xf64   : > { %12669 = vmatmul.msk.bf16.vlgmr.msrb.gmra.mxu1 %vm452_vm0, %v8348_v29  ;;  %v9113_v44 = vsel %vm1367_vm2, %v17893_v50, 0.0  ;;  %v8882_v28 = vsel %vm1367_vm2, %v17903_v20, -inf }
 0xf65   : > { %9114 = vadd.xlane.f32.xlu1 %v9113_v44  ;;  %8739 = vmatpush.bf16.xpose.msrb.mxu1 %v19817_v11 }
 0xf66   : > { %v17900_v46 = vpop.f32.mrf.mxu3 }
 0xf69   : > { %v8423_v54 = vpop.f32.mrf.mxu1 }
 0xf6b   : > { %12645 = vmatmul.msk.bf16.gmra.mxu3 %vm452_vm0, %v19818_v10 }
 0xf6d   : > { %8883 = vmax.xlane.f32.xlu1 %v8882_v28 }
 0xf6e   : > { %v8264_v34 = vpop.f32.mrf.mxu3 }
 0xf6f   : > { %v9263_v45 = vpack.c.bf16 %v8264_v34, %v8264_v34 }
 0xf71   : > { %v17909_v22 = vpop.f32.mrf.mxu1  ;;  %v9407_v60 = vsel %vm1787_vm3, %v9263_v45, 0 }
 0xf72   : > { %9416 = vmatpush.bf16.msra.mxu2 %v9407_v60 }
 0xf74   : > { %12671 = vmatmul.msk.bf16.vlgmr.msra.gmra.mxu1 %vm452_vm0, %v8350_v59 }
 0xf75   : > { %8771 = vmatpush.bf16.xpose.msra.mxu1 %v19819_v38 }
 0xf76   : > { %v17916_v29 = vpop.f32.mrf.mxu3 }
 0xf78   : > { %v9079_v44 = vpop.xlane.xlu1 %9078  ;;  %v8935_v54 = vpop.xlane.xlu2 %8934 }
 0xf79   : > { %13536 = vrcp.f32 %v9079_v44  ;;  %v8989_v28 = vsub.f32 %v17772_v49, %v8935_v54  ;;  %v8455_v34 = vpop.f32.mrf.mxu1 }
 0xf7a   : > { %v8354_v34 = vpack.c.bf16 %v17687_v55, %v17687_v55 }
 0xf7b   : > { %v9041_v11 = vmul.f32 1.442695, %v8989_v28  ;;  %12646 = vmatmul.msk.bf16.gmra.mxu3 %vm452_vm0, %v19473_v39  ;;  %v8356_v39 = vpack.c.bf16 %v17712_v58, %v17712_v58  ;;  %v19823_v58 = vld [vmem:[#allocation60_spill] sm:$0xff] }
 0xf7d   : > { %13538 = vpow2.f32 %v9041_v11 }
 0xf7e   : > { %v8269_v45 = vpop.f32.mrf.mxu3 }
 0xf7f   : > { %v13537_v16 = vpop.eup %13536  ;;  %v9265_v60 = vpack.c.bf16 %v8269_v45, %v8269_v45  ;;  %v19822_v45 = vld [vmem:[#allocation56_spill] sm:$0xff] }
 0xf80   : > { %v9197_v59 = vmul.f32 %v13537_v16, %v17774_v31 }
 0xf81   : > { %v8485_v41 = vpop.f32.mrf.mxu1  ;;  %v9445_v38 = vsel %vm1787_vm3, %v9265_v60, 0 }
 0xf82   : > { %v9229_v44 = vpack.c.bf16 %v9197_v59, %v9197_v59  ;;  %v17926_v49 = vadd.f32 %v8485_v41, %v14373_v37  ;;  %9454 = vmatpush.bf16.msra.mxu0 %v9445_v38 }
 0xf83   : > { %v17928_v54 = vpop.eup %13538 }
 0xf84   : > { %12673 = vmatmul.msk.bf16.vlgmr.msrb.gmra.mxu1 %vm452_vm0, %v8352_v62  ;;  %12686 = vmatmul.msk.bf16.vlgmr.msrb.gmra.mxu0 %vm1367_vm2, %v9229_v44  ;;  %v8894_v31 = vsel %vm1367_vm2, %v17926_v49, -inf  ;;  %v9125_v11 = vsel %vm1367_vm2, %v17928_v54, 0.0 }
 0xf85   : > { %8895 = vmax.xlane.f32.xlu1 %v8894_v31  ;;  %9126 = vadd.xlane.f32.xlu2 %v9125_v11 }
 0xf86   : > { %8803 = vmatpush.bf16.xpose.msrb.mxu1 %v19820_v42  ;;  %v17937_v28 = vpop.f32.mrf.mxu3 }
 0xf87   : > { %19821 = vst [vmem:[#allocation115_spill] sm:$0xff] %v17937_v28 }
 0xf89   : > { %v8487_v41 = vpop.f32.mrf.mxu1 }
 0xf8b   : > { %12647 = vmatmul.msk.bf16.gmra.mxu3 %vm452_vm0, %v19476_v57 }
 0xf8e   : > { %v17941_v38 = vpop.f32.mrf.mxu3 }
 0xf91   : > { %v17943_v62 = vpop.f32.mrf.mxu1 }
 0xf94   : > { %12675 = vmatmul.msk.bf16.vlgmr.msra.gmra.mxu1 %vm452_vm0, %v8354_v34 }
 0xf95   : > { %8835 = vmatpush.bf16.xpose.msra.mxu1 %v19822_v45 }
 0xf96   : > { %v17949_v16 = vpop.f32.mrf.mxu3 }
 0xf98   : > { %v9091_v60 = vpop.xlane.xlu0 %9090  ;;  %v8947_v59 = vpop.xlane.xlu1 %8946 }
 0xf99   : > { %13540 = vrcp.f32 %v9091_v60  ;;  %v8993_v44 = vsub.f32 %v17808_v18, %v8947_v59  ;;  %v8519_v31 = vpop.f32.mrf.mxu1 }
 0xf9b   : > { %v9049_v11 = vmul.f32 1.442695, %v8993_v44  ;;  %12648 = vmatmul.msk.bf16.gmra.mxu3 %vm452_vm0, %v14340_v17 }
 0xf9d   : > { %13542 = vpow2.f32 %v9049_v11  ;;  %v8358_v11 = vpack.c.bf16 %v17817_v35, %v17817_v35 }
 0xf9e   : > { %v8279_v41 = vpop.f32.mrf.mxu3 }
 0xf9f   : > { %v13541_v42 = vpop.eup %13540  ;;  %v9269_v55 = vpack.c.bf16 %v8279_v41, %v8279_v41 }
 0xfa0   : > { %v9201_v34 = vmul.f32 %v13541_v42, %v17810_v51 }
 0xfa1   : > { %v8549_v57 = vpop.f32.mrf.mxu1  ;;  %v9521_v45 = vsel %vm1787_vm3, %v9269_v55, 0 }
 0xfa2   : > { %v9233_v60 = vpack.c.bf16 %v9201_v34, %v9201_v34  ;;  %v17959_v18 = vadd.f32 %v8549_v57, %v14373_v37  ;;  %9530 = vmatpush.bf16.msrb.mxu0 %v9521_v45 }
 0xfa3   : > { %v17961_v59 = vpop.eup %13542  ;;  %v17982_v41 = vpop.f32.mrf.mxu0 }
 0xfa4   : > { %12677 = vmatmul.msk.bf16.vlgmr.msrb.gmra.mxu1 %vm452_vm0, %v8356_v39  ;;  %12690 = vmatmul.msk.bf16.vlgmr.msra.gmra.mxu0 %vm1367_vm2, %v9233_v60  ;;  %v8906_v51 = vsel %vm1367_vm2, %v17959_v18, -inf  ;;  %v9137_v42 = vsel %vm1367_vm2, %v17961_v59, 0.0  ;;  %v9258_v39 = vpack.c.bf16 %v17855_v1, %v17855_v1 }
 0xfa5   : > { %8907 = vmax.xlane.f32.xlu1 %v8906_v51  ;;  %9138 = vadd.xlane.f32.xlu2 %v9137_v42 }
 0xfa6   : > { %8867 = vmatpush.bf16.xpose.msrb.mxu1 %v19823_v58  ;;  %v17970_v44 = vpop.f32.mrf.mxu3  ;;  %v9312_v55 = vsel %vm1787_vm3, %v9258_v39, 0 }
 0xfa7   : > { %19824 = vst [vmem:[#allocation88_spill] sm:$0xff] %v17970_v44 }
 0xfa9   : > { %v8551_v57 = vpop.f32.mrf.mxu1 }
 0xfab   : > { %12649 = vmatmul.msk.bf16.gmra.mxu3 %vm452_vm0, %v14467_v32  ;;  %v8855_v57 = vpop.f32.mrf.mxu0  ;;  %v8188_v32 = vpop.f32.mrf.mxu2 }
 0xfac   : > { %v8360_v4 = vpack.c.bf16 %v8188_v32, %v8188_v32 }
 0xfae   : > { %v17974_v45 = vpop.f32.mrf.mxu3 }
 0xfb1   : > { %v17978_v31 = vpop.f32.mrf.mxu1 }
 0xfb4   : > { %12679 = vmatmul.msk.bf16.vlgmr.msra.gmra.mxu1 %vm452_vm0, %v8358_v11 }
 0xfb5   : > { %9321 = vmatpush.bf16.msra.mxu1 %v9312_v55  ;;  %v9260_v55 = vpack.c.bf16 %v17878_v43, %v17878_v43 }
 0xfb6   : > { %v17986_v34 = vpop.f32.mrf.mxu3 }
 0xfb8   : > { %v8959_v60 = vpop.xlane.xlu0 %8958  ;;  %v9103_v51 = vpop.xlane.xlu2 %9102 }
 0xfb9   : > { %v8997_v42 = vsub.f32 %v17845_v61, %v8959_v60  ;;  %13544 = vrcp.f32 %v9103_v51  ;;  %v8583_v1 = vpop.f32.mrf.mxu1 }
 0xfbb   : > { %v9057_v58 = vmul.f32 1.442695, %v8997_v42 }
 0xfbd   : > { %13546 = vpow2.f32 %v9057_v58 }
 0xfbe   : > { %v8289_v35 = vpop.f32.mrf.mxu3 }
 0xfbf   : > { %v13545_v17 = vpop.eup %13544  ;;  %v9273_v10 = vpack.c.bf16 %v8289_v35, %v8289_v35 }
 0xfc0   : > { %v9205_v11 = vmul.f32 %v13545_v17, %v17847_v9  ;;  %v8881_v39 = vpop.xlane.xlu0 %8880 }
 0xfc1   : > { %v8971_v27 = vsub.f32 %v17859_v12, %v8881_v39  ;;  %v8613_v23 = vpop.f32.mrf.mxu1  ;;  %v9597_v61 = vsel %vm1787_vm3, %v9273_v10, 0 }
 0xfc2   : > { %v9237_v60 = vpack.c.bf16 %v9205_v11, %v9205_v11  ;;  %v17995_v51 = vadd.f32 %v8613_v23, %v14373_v37  ;;  %9606 = vmatpush.bf16.msra.mxu0 %v9597_v61  ;;  %v9350_v23 = vsel %vm1787_vm3, %v9260_v55, 0 }
 0xfc3   : > { %v17997_v58 = vpop.eup %13546  ;;  %v9005_v42 = vmul.f32 1.442695, %v8971_v27  ;;  %9359 = vmatpush.bf16.msrb.mxu3 %v9350_v23  ;;  %v18010_v27 = vadd.f32 %v17754_v5, %v14373_v37 }
 0xfc4   : > { %12681 = vmatmul.msk.bf16.vlgmr.msrb.gmra.mxu1 %vm452_vm0, %v8360_v4  ;;  %12694 = vmatmul.msk.bf16.vlgmr.msrb.gmra.mxu0 %vm1367_vm2, %v9237_v60  ;;  %v8918_v17 = vsel %vm1367_vm2, %v17995_v51, -inf  ;;  %v9149_v32 = vsel %vm1367_vm2, %v17997_v58, 0.0  ;;  %v18014_v4 = vadd.f32 %v17730_v30, %v14373_v37 }
 0xfc5   : > { %13548 = vpow2.f32 %v9005_v42  ;;  %8919 = vmax.xlane.f32.xlu0 %v8918_v17  ;;  %9150 = vadd.xlane.f32.xlu2 %v9149_v32  ;;  %v8927_v10 = vsel %vm1367_vm2, %v18010_v27, -inf  ;;  %v9262_v17 = vpack.c.bf16 %v17900_v46, %v17900_v46 }
 0xfc6   : > { %v18006_v9 = vpop.f32.mrf.mxu3  ;;  %v8915_v57 = vsel %vm1367_vm2, %v18014_v4, -inf }
 0xfc7   : > { %19825 = vst [vmem:[#allocation116_spill] sm:$0xff] %v18006_v9 }
 0xfc8   : > { %v8893_v60 = vpop.xlane.xlu0 %8892 }
 0xfc9   : > { %v8615_v12 = vpop.f32.mrf.mxu1 }
 0xfcb   : > { %v18016_v43 = vpop.eup %13548 }
 0xfcc   : > { %v9071_v1 = vsel %vm1367_vm2, %v18016_v43, 0.0 }
 0xfcd   : > { %8928 = vmax.xlane.f32.xlu0 %v8927_v10  ;;  %9072 = vadd.xlane.f32.xlu1 %v9071_v1 }
 0xfce   : > { %8916 = vmax.xlane.f32.xlu2 %v8915_v57  ;;  %v18024_v5 = vpop.f32.mrf.mxu3  ;;  %v19826_v57 = vld [vmem:[#allocation81_spill] sm:$0xff] }
 0xfd1   : > { %v18026_v35 = vpop.f32.mrf.mxu1 }
 0xfd6   : > { %v18028_v30 = vpop.f32.mrf.mxu3 }
 0xfd8   : > { %v9115_v11 = vpop.xlane.xlu1 %9114 }
 0xfd9   : > { %13550 = vrcp.f32 %v9115_v11  ;;  %v8647_v39 = vpop.f32.mrf.mxu1 }
 0xfde   : > { %v8299_v55 = vpop.f32.mrf.mxu3 }
 0xfdf   : > { %v13551_v61 = vpop.eup %13550  ;;  %v9277_v42 = vpack.c.bf16 %v8299_v55, %v8299_v55  ;;  %v8975_v55 = vsub.f32 %v17867_v40, %v8893_v60 }
 0xfe0   : > { %v9209_v32 = vmul.f32 %v13551_v61, %v17893_v50  ;;  %v8884_v23 = vpop.xlane.xlu1 %8883  ;;  %v9304_v12 = vpop.f32.mrf.mxu0 }
 0xfe1   : > { %v8972_v10 = vsub.f32 %v17903_v20, %v8884_v23  ;;  %v8677_v1 = vpop.f32.mrf.mxu1  ;;  %v18035_v9 = vadd.f32 %v9304_v12, %v19826_v57  ;;  %v9673_v11 = vsel %vm1787_vm3, %v9277_v42, 0  ;;  %v9388_v20 = vsel %vm1787_vm3, %v9262_v17, 0 }
 0xfe2   : > { %v9241_v39 = vpack.c.bf16 %v9209_v32, %v9209_v32  ;;  %v18039_v15 = vadd.f32 %v8677_v1, %v14373_v37  ;;  %9682 = vmatpush.bf16.msrb.mxu0 %v9673_v11  ;;  %9397 = vmatpush.bf16.msrb.mxu1 %v9388_v20  ;;  %v9013_v42 = vmul.f32 1.442695, %v8975_v55  ;;  %v18050_v32 = vadd.f32 %v17787_v26, %v14373_v37 }
 0xfe3   : > { %19827 = vst [vmem:[#allocation89_spill] sm:$0xff] %v18035_v9  ;;  %v9007_v46 = vmul.f32 1.442695, %v8972_v10  ;;  %v9264_v10 = vpack.c.bf16 %v17916_v29, %v17916_v29 }
 0xfe4   : > { %12698 = vmatmul.msk.bf16.vlgmr.msra.gmra.mxu0 %vm1367_vm2, %v9241_v39  ;;  %v8930_v50 = vsel %vm1367_vm2, %v18039_v15, -inf  ;;  %v8939_v12 = vsel %vm1367_vm2, %v18050_v32, -inf }
 0xfe5   : > { %13552 = vpow2.f32 %v9007_v46  ;;  %8931 = vmax.xlane.f32.xlu1 %v8930_v50  ;;  %v9426_v11 = vsel %vm1787_vm3, %v9264_v10, 0  ;;  %v8905_v46 = vpop.xlane.xlu0 %8904 }
 0xfe6   : > { %v18046_v61 = vpop.f32.mrf.mxu3  ;;  %13554 = vpow2.f32 %v9013_v42  ;;  %9435 = vmatpush.bf16.msra.mxu3 %v9426_v11 }
 0xfe7   : > { %19828 = vst [vmem:[#allocation117_spill] sm:$0xff] %v18046_v61 }
 0xfe8   : > { %v9306_v23 = vpop.f32.mrf.mxu0 }
 0xfe9   : > { %v8679_v40 = vpop.f32.mrf.mxu1  ;;  %v8979_v23 = vsub.f32 %v17882_v24, %v8905_v46 }
 0xfeb   : > { %v18052_v60 = vpop.eup %13552  ;;  %v9021_v10 = vmul.f32 1.442695, %v8979_v23 }
 0xfec   : > { %v9074_v17 = vsel %vm1367_vm2, %v18052_v60, 0.0  ;;  %v18062_v26 = vpop.eup %13554 }
 0xfed   : > { %8940 = vmax.xlane.f32.xlu1 %v8939_v12  ;;  %9075 = vadd.xlane.f32.xlu2 %v9074_v17  ;;  %v9083_v39 = vsel %vm1367_vm2, %v18062_v26, 0.0 }
 0xfee   : > { %v18060_v1 = vpop.f32.mrf.mxu3 }
 0xff1   : > { %v18064_v57 = vpop.f32.mrf.mxu1 }
 0xff5   : > { %9084 = vadd.xlane.f32.xlu2 %v9083_v39 }
 0xff6   : > { %v18069_v55 = vpop.f32.mrf.mxu3 }
 0xff8   : > { %v8896_v50 = vpop.xlane.xlu1 %8895  ;;  %v9127_v20 = vpop.xlane.xlu2 %9126 }
 0xff9   : > { %v8976_v29 = vsub.f32 %v17926_v49, %v8896_v50  ;;  %13556 = vrcp.f32 %v9127_v20  ;;  %v8711_v42 = vpop.f32.mrf.mxu1  ;;  %v19829_v49 = vld [vmem:[#allocation108_spill] sm:$0xff] }
 0xffb   : > { %v9015_v40 = vmul.f32 1.442695, %v8976_v29 }
 0xffd   : > { %13558 = vpow2.f32 %v9015_v40 }
 0xffe   : > { %v8309_v12 = vpop.f32.mrf.mxu3  ;;  %13560 = vpow2.f32 %v9021_v10 }
 0xfff   : > { %v13557_v17 = vpop.eup %13556  ;;  %v9281_v11 = vpack.c.bf16 %v8309_v12, %v8309_v12 }
0x1000   : > { %v9213_v9 = vmul.f32 %v13557_v17, %v17928_v54 }
0x1001   : > { %v8741_v39 = vpop.f32.mrf.mxu1  ;;  %v9380_v61 = vpop.f32.mrf.mxu0  ;;  %v9749_v44 = vsel %vm1787_vm3, %v9281_v11, 0 }
0x1002   : > { %v9245_v0 = vpack.c.bf16 %v9213_v9, %v9213_v9  ;;  %v18076_v47 = vadd.f32 %v8741_v39, %v14373_v37  ;;  %v18079_v50 = vadd.f32 %v9380_v61, %v19829_v49  ;;  %9758 = vmatpush.bf16.msra.mxu0 %v9749_v44  ;;  %v18092_v61 = vadd.f32 %v17826_v2, %v14373_v37 }
0x1003   : > { %v18081_v24 = vpop.eup %13558 }
0x1004   : > { %19830 = vst [vmem:[#allocation90_spill] sm:$0xff] %v18079_v50  ;;  %12702 = vmatmul.msk.bf16.vlgmr.msrb.gmra.mxu0 %vm1367_vm2, %v9245_v0  ;;  %v9086_v54 = vsel %vm1367_vm2, %v18081_v24, 0.0  ;;  %v8942_v46 = vsel %vm1367_vm2, %v18076_v47, -inf  ;;  %v18094_v44 = vpop.eup %13560  ;;  %v8951_v42 = vsel %vm1367_vm2, %v18092_v61, -inf }
0x1005   : > { %9087 = vadd.xlane.f32.xlu0 %v9086_v54  ;;  %8943 = vmax.xlane.f32.xlu2 %v8942_v46  ;;  %v9095_v0 = vsel %vm1367_vm2, %v18094_v44, 0.0 }
0x1006   : > { %v18088_v9 = vpop.f32.mrf.mxu3 }
0x1007   : > { %19831 = vst [vmem:[#allocation118_spill] sm:$0xff] %v18088_v9 }
0x1009   : > { %v8743_v20 = vpop.f32.mrf.mxu1  ;;  %v9382_v29 = vpop.f32.mrf.mxu0 }
0x100d   : > { %9096 = vadd.xlane.f32.xlu0 %v9095_v0  ;;  %8952 = vmax.xlane.f32.xlu2 %v8951_v42 }
0x100e   : > { %v18100_v23 = vpop.f32.mrf.mxu3 }
0x1011   : > { %v18102_v40 = vpop.f32.mrf.mxu1 }
0x1016   : > { %v18104_v12 = vpop.f32.mrf.mxu3 }
0x1018   : > { %v8908_v2 = vpop.xlane.xlu1 %8907  ;;  %v9139_v17 = vpop.xlane.xlu2 %9138 }
0x1019   : > { %v8980_v10 = vsub.f32 %v17959_v18, %v8908_v2  ;;  %13562 = vrcp.f32 %v9139_v17  ;;  %v8775_v11 = vpop.f32.mrf.mxu1  ;;  %v18124_v17 = vadd.f32 %v17869_v48, %v14373_v37 }
0x101b   : > { %v9023_v39 = vmul.f32 1.442695, %v8980_v10  ;;  %v8876_v11 = vsel %vm1367_vm2, %v18124_v17, -inf }
0x101d   : > { %13564 = vpow2.f32 %v9023_v39 }
0x101e   : > { %v8319_v49 = vpop.f32.mrf.mxu3 }
0x101f   : > { %v13563_v54 = vpop.eup %13562  ;;  %v9285_v46 = vpack.c.bf16 %v8319_v49, %v8319_v49 }
0x1020   : > { %v9217_v20 = vmul.f32 %v13563_v54, %v17961_v59 }
0x1021   : > { %v8805_v29 = vpop.f32.mrf.mxu1  ;;  %v9456_v0 = vpop.f32.mrf.mxu0  ;;  %v9825_v42 = vsel %vm1787_vm3, %v9285_v46, 0 }
0x1022   : > { %v9249_v50 = vpack.c.bf16 %v9217_v20, %v9217_v20  ;;  %v18110_v9 = vadd.f32 %v8805_v29, %v14373_v37  ;;  %v18113_v25 = vadd.f32 %v9456_v0, %v19832_v56  ;;  %9834 = vmatpush.bf16.msrb.mxu0 %v9825_v42 }
0x1023   : > { %v18115_v18 = vpop.eup %13564 }
0x1024   : > { %19833 = vst [vmem:[#allocation92_spill] sm:$0xff] %v18113_v25  ;;  %12706 = vmatmul.msk.bf16.vlgmr.msra.gmra.mxu0 %vm1367_vm2, %v9249_v50  ;;  %v8954_v2 = vsel %vm1367_vm2, %v18110_v9, -inf  ;;  %v9098_v59 = vsel %vm1367_vm2, %v18115_v18, 0.0  ;;  %v18130_v50 = vadd.f32 %v17982_v41, %v14373_v37 }
0x1025   : > { %8955 = vmax.xlane.f32.xlu0 %v8954_v2  ;;  %9099 = vadd.xlane.f32.xlu1 %v9098_v59 }
0x1026   : > { %v8963_v49 = vsel %vm1367_vm2, %v18130_v50, -inf }
0x1029   : > { %v8807_v10 = vpop.f32.mrf.mxu1  ;;  %v9458_v56 = vpop.f32.mrf.mxu0 }
0x102d   : > { %8877 = vmax.xlane.f32.xlu1 %v8876_v11 }
0x1031   : > { %v18132_v39 = vpop.f32.mrf.mxu1 }
0x1035   : > { %8964 = vmax.xlane.f32.xlu1 %v8963_v49 }
0x1038   : > { %v8920_v54 = vpop.xlane.xlu0 %8919  ;;  %v9151_v46 = vpop.xlane.xlu2 %9150 }
0x1039   : > { %v8984_v48 = vsub.f32 %v17995_v51, %v8920_v54  ;;  %13566 = vrcp.f32 %v9151_v46  ;;  %v8839_v20 = vpop.f32.mrf.mxu1  ;;  %v19834_v54 = vld [vmem:[#allocation107_spill] sm:$0xff] }
0x103a   : > { %v9267_v20 = vpack.c.bf16 %v17941_v38, %v17941_v38 }
0x103b   : > { %v9031_v29 = vmul.f32 1.442695, %v8984_v48 }
0x103d   : > { %13568 = vpow2.f32 %v9031_v29 }
0x103f   : > { %v13567_v0 = vpop.eup %13566 }
0x1040   : > { %v9221_v42 = vmul.f32 %v13567_v0, %v17997_v58  ;;  %v8929_v2 = vpop.xlane.xlu0 %8928  ;;  %v9073_v41 = vpop.xlane.xlu1 %9072 }
0x1041   : > { %v8987_v59 = vsub.f32 %v18010_v27, %v8929_v2  ;;  %13570 = vrcp.f32 %v9073_v41  ;;  %v8917_v10 = vpop.xlane.xlu2 %8916  ;;  %v8869_v56 = vpop.f32.mrf.mxu1 }
0x1042   : > { %v9253_v11 = vpack.c.bf16 %v9221_v42, %v9221_v42  ;;  %v8983_v49 = vsub.f32 %v18014_v4, %v8917_v10  ;;  %v9532_v25 = vpop.f32.mrf.mxu0  ;;  %v18150_v4 = vadd.f32 %v17909_v22, %v14373_v37 }
0x1043   : > { %v18140_v28 = vpop.eup %13568  ;;  %v9037_v51 = vmul.f32 1.442695, %v8987_v59  ;;  %v18143_v46 = vadd.f32 %v9532_v25, %v19834_v54  ;;  %v9483_v59 = vsel %vm1787_vm3, %v9267_v20, 0  ;;  %v18180_v54 = vadd.f32 %v17978_v31, %v14373_v37 }
0x1044   : > { %v9029_v48 = vmul.f32 1.442695, %v8983_v49  ;;  %12710 = vmatmul.msk.bf16.vlgmr.msrb.gmra.mxu0 %vm1367_vm2, %v9253_v11  ;;  %v9110_v58 = vsel %vm1367_vm2, %v18140_v28, 0.0  ;;  %v8888_v22 = vsel %vm1367_vm2, %v18150_v4, -inf  ;;  %v18172_v11 = vadd.f32 %v8869_v56, %v14373_v37 }
0x1045   : > { %13572 = vpow2.f32 %v9037_v51  ;;  %9111 = vadd.xlane.f32.xlu0 %v9110_v58  ;;  %v8912_v56 = vsel %vm1367_vm2, %v18180_v54, -inf }
0x1046   : > { %13574 = vpow2.f32 %v9029_v48  ;;  %v8966_v51 = vsel %vm1367_vm2, %v18172_v11, -inf }
0x1047   : > { %v13571_v27 = vpop.eup %13570 }
0x1048   : > { %v9195_v25 = vmul.f32 %v13571_v27, %v18016_v43  ;;  %v18169_v43 = vadd.f32 %v17943_v62, %v14373_v37 }
0x1049   : > { %v8871_v29 = vpop.f32.mrf.mxu1 }
0x104a   : > { %v9227_v0 = vpack.c.bf16 %v9195_v25, %v9195_v25  ;;  %v9534_v42 = vpop.f32.mrf.mxu0  ;;  %v8900_v49 = vsel %vm1367_vm2, %v18169_v43, -inf }
0x104b   : > { %v18155_v2 = vpop.eup %13572 }
0x104c   : > { %v18157_v41 = vpop.eup %13574  ;;  %12684 = vmatmul.msk.bf16.vlgmr.msrb.gmra.mxu2 %vm1367_vm2, %v9227_v0  ;;  %v9119_v10 = vsel %vm1367_vm2, %v18155_v2, 0.0  ;;  %v19835_v0 = vld [vmem:[#allocation82_spill] sm:$0xff] }
0x104d   : > { %9492 = vmatpush.bf16.msrb.mxu2 %v9483_v59  ;;  %8889 = vmax.xlane.f32.xlu0 %v8888_v22  ;;  %v9107_v38 = vsel %vm1367_vm2, %v18157_v41, 0.0 }
0x104e   : > { %9120 = vadd.xlane.f32.xlu1 %v9119_v10  ;;  %9108 = vadd.xlane.f32.xlu2 %v9107_v38  ;;  %v9268_v10 = vpack.c.bf16 %v17949_v16, %v17949_v16  ;;  %v9271_v16 = vpack.c.bf16 %v17974_v45, %v17974_v45 }
0x1055   : > { %8901 = vmax.xlane.f32.xlu0 %v8900_v49 }
0x1056   : > { %8967 = vmax.xlane.f32.xlu2 %v8966_v51 }
0x1058   : > { %v8932_v48 = vpop.xlane.xlu1 %8931 }
0x1059   : > { %v8988_v58 = vsub.f32 %v18039_v15, %v8932_v48 }
0x105b   : > { %v9039_v62 = vmul.f32 1.442695, %v8988_v58  ;;  %v9502_v58 = vsel %vm1787_vm3, %v9268_v10, 0 }
0x105d   : > { %13576 = vpow2.f32 %v9039_v62  ;;  %8913 = vmax.xlane.f32.xlu0 %v8912_v56 }
0x1060   : > { %v8941_v27 = vpop.xlane.xlu1 %8940  ;;  %v9076_v20 = vpop.xlane.xlu2 %9075 }
0x1061   : > { %v8991_v25 = vsub.f32 %v18050_v32, %v8941_v27  ;;  %13578 = vrcp.f32 %v9076_v20  ;;  %v9608_v29 = vpop.f32.mrf.mxu0  ;;  %v9559_v20 = vsel %vm1787_vm3, %v9271_v16, 0 }
0x1062   : > { %v18187_v42 = vadd.f32 %v9608_v29, %v19835_v0 }
0x1063   : > { %v18189_v31 = vpop.eup %13576  ;;  %v9045_v59 = vmul.f32 1.442695, %v8991_v25 }
0x1064   : > { %19836 = vst [vmem:[#allocation120_spill] sm:$0xff] %v18187_v42  ;;  %v9122_v15 = vsel %vm1367_vm2, %v18189_v31, 0.0 }
0x1065   : > { %13580 = vpow2.f32 %v9045_v59  ;;  %9123 = vadd.xlane.f32.xlu2 %v9122_v15 }
0x1067   : > { %v13579_v22 = vpop.eup %13578 }
0x1068   : > { %v9196_v38 = vmul.f32 %v13579_v22, %v18052_v60  ;;  %v9085_v32 = vpop.xlane.xlu2 %9084  ;;  %v9272_v22 = vpack.c.bf16 %v17986_v34, %v17986_v34 }
0x1069   : > { %13582 = vrcp.f32 %v9085_v32  ;;  %v9610_v49 = vpop.f32.mrf.mxu0 }
0x106a   : > { %v9228_v51 = vpack.c.bf16 %v9196_v38, %v9196_v38 }
0x106b   : > { %v18196_v48 = vpop.eup %13580 }
0x106c   : > { %12685 = vmatmul.msk.bf16.vlgmr.msrb.gmra.mxu3 %vm1367_vm2, %v9228_v51  ;;  %v9131_v62 = vsel %vm1367_vm2, %v18196_v48, 0.0  ;;  %v19837_v51 = vld [vmem:[#allocation109_spill] sm:$0xff] }
0x106d   : > { %9511 = vmatpush.bf16.msrb.mxu3 %v9502_v58  ;;  %9132 = vadd.xlane.f32.xlu1 %v9131_v62 }
0x106f   : > { %v13583_v56 = vpop.eup %13582 }
0x1070   : > { %v9199_v60 = vmul.f32 %v13583_v56, %v18062_v26  ;;  %v9578_v56 = vsel %vm1787_vm3, %v9272_v22, 0 }
0x1072   : > { %v9231_v27 = vpack.c.bf16 %v9199_v60, %v9199_v60 }
0x1074   : > { %12688 = vmatmul.msk.bf16.vlgmr.msra.gmra.mxu2 %vm1367_vm2, %v9231_v27 }
0x1075   : > { %9568 = vmatpush.bf16.msra.mxu2 %v9559_v20 }
0x1078   : > { %v9088_v25 = vpop.xlane.xlu0 %9087  ;;  %v8944_v29 = vpop.xlane.xlu2 %8943 }
0x1079   : > { %13584 = vrcp.f32 %v9088_v25  ;;  %v8992_v0 = vsub.f32 %v18076_v47, %v8944_v29 }
0x107b   : > { %v9047_v59 = vmul.f32 1.442695, %v8992_v0  ;;  %v12929_v0 = vld [vmem:[#allocation5 + $0x118] sm:$0xff] }
0x107c   : > { %9980 = vmatpush.bf16.msra.mxu0 %v12929_v0 }
0x107d   : > { %13586 = vpow2.f32 %v9047_v59  ;;  %v12928_v59 = vld [vmem:[#allocation5 + $0x110] sm:$0xff] }
0x107f   : > { %v13585_v15 = vpop.eup %13584 }
0x1080   : > { %v9200_v45 = vmul.f32 %v13585_v15, %v18081_v24  ;;  %v9097_v26 = vpop.xlane.xlu0 %9096  ;;  %v8953_v10 = vpop.xlane.xlu2 %8952  ;;  %9981 = vmatpush.bf16.msra.mxu0 %v12928_v59 }
0x1081   : > { %13588 = vrcp.f32 %v9097_v26  ;;  %v8995_v38 = vsub.f32 %v18092_v61, %v8953_v10  ;;  %v9684_v32 = vpop.f32.mrf.mxu0  ;;  %v9275_v61 = vpack.c.bf16 %v18024_v5, %v18024_v5  ;;  %v18232_v5 = vadd.f32 %v18026_v35, %v14373_v37  ;;  %v12926_v26 = vld [vmem:[#allocation5 + $0x100] sm:$0xff] }
0x1082   : > { %v9232_v49 = vpack.c.bf16 %v9200_v45, %v9200_v45  ;;  %v18213_v58 = vadd.f32 %v9684_v32, %v19837_v51  ;;  %v12925_v32 = vld [vmem:[#allocation5 + $0xf8] sm:$0xff] }
0x1083   : > { %v18215_v62 = vpop.eup %13586  ;;  %v9053_v47 = vmul.f32 1.442695, %v8995_v38  ;;  %v9635_v25 = vsel %vm1787_vm3, %v9275_v61, 0  ;;  %v8924_v15 = vsel %vm1367_vm2, %v18232_v5, -inf }
0x1084   : > { %19838 = vst [vmem:[#allocation66_spill] sm:$0xff] %v18213_v58  ;;  %12689 = vmatmul.msk.bf16.vlgmr.msra.gmra.mxu3 %vm1367_vm2, %v9232_v49  ;;  %v9134_v34 = vsel %vm1367_vm2, %v18215_v62, 0.0  ;;  %v9276_v49 = vpack.c.bf16 %v18028_v30, %v18028_v30 }
0x1085   : > { %13590 = vpow2.f32 %v9053_v47  ;;  %9587 = vmatpush.bf16.msra.mxu3 %v9578_v56  ;;  %9135 = vadd.xlane.f32.xlu2 %v9134_v34 }
0x1087   : > { %v13589_v24 = vpop.eup %13588 }
0x1088   : > { %v9203_v16 = vmul.f32 %v13589_v24, %v18094_v44  ;;  %v12927_v44 = vld [vmem:[#allocation5 + $0x108] sm:$0xff]  ;;  %v12924_v24 = vld [vmem:[#allocation5 + $0xf0] sm:$0xff] }
0x1089   : > { %v9686_v60 = vpop.f32.mrf.mxu0  ;;  %9982 = vmatpush.bf16.msra.mxu0 %v12927_v44 }
0x108a   : > { %v9235_v27 = vpack.c.bf16 %v9203_v16, %v9203_v16  ;;  %v19839_v16 = vld [vmem:[#allocation119_spill] sm:$0xff] }
0x108b   : > { %v18224_v20 = vpop.eup %13590 }
0x108c   : > { %12692 = vmatmul.msk.bf16.vlgmr.msrb.gmra.mxu2 %vm1367_vm2, %v9235_v27  ;;  %v9143_v29 = vsel %vm1367_vm2, %v18224_v20, 0.0 }
0x108d   : > { %9644 = vmatpush.bf16.msrb.mxu2 %v9635_v25  ;;  %9144 = vadd.xlane.f32.xlu1 %v9143_v29  ;;  %v9654_v25 = vsel %vm1787_vm3, %v9276_v49, 0 }
0x108e   : > { %9983 = vmatpush.bf16.msra.mxu0 %v12926_v26 }
0x1092   : > { %9984 = vmatpush.bf16.msra.mxu0 %v12925_v32 }
0x1095   : > { %8925 = vmax.xlane.f32.xlu1 %v8924_v15 }
0x1096   : > { %9985 = vmatpush.bf16.msra.mxu0 %v12924_v24 }
0x1098   : > { %v8956_v22 = vpop.xlane.xlu0 %8955  ;;  %v9100_v45 = vpop.xlane.xlu1 %9099 }
0x1099   : > { %v8996_v10 = vsub.f32 %v18110_v9, %v8956_v22  ;;  %13592 = vrcp.f32 %v9100_v45  ;;  %12738 = vmatmul.msk.bf16.vlgmr.msra.gmra.mxu0 %vm452_vm0, %v19735_v8 }
0x109b   : > { %v9055_v38 = vmul.f32 1.442695, %v8996_v10 }
0x109d   : > { %13594 = vpow2.f32 %v9055_v38  ;;  %v9280_v38 = vpack.c.bf16 %v18069_v55, %v18069_v55 }
0x109f   : > { %v13593_v35 = vpop.eup %13592 }
0x10a0   : > { %v9204_v51 = vmul.f32 %v13593_v35, %v18115_v18  ;;  %v8878_v47 = vpop.xlane.xlu1 %8877 }
0x10a1   : > { %v8970_v56 = vsub.f32 %v18124_v17, %v8878_v47  ;;  %v9760_v34 = vpop.f32.mrf.mxu0 }
0x10a2   : > { %v9236_v61 = vpack.c.bf16 %v9204_v51, %v9204_v51  ;;  %v18242_v9 = vadd.f32 %v9760_v34, %v19839_v16  ;;  %v19841_v34 = vld [vmem:[#allocation62_spill] sm:$0xff]  ;;  %v9279_v16 = vpack.c.bf16 %v18060_v1, %v18060_v1 }
0x10a3   : > { %v18244_v60 = vpop.eup %13594  ;;  %v9003_v27 = vmul.f32 1.442695, %v8970_v56 }
0x10a4   : > { %19840 = vst [vmem:[#allocation68_spill] sm:$0xff] %v18242_v9  ;;  %12693 = vmatmul.msk.bf16.vlgmr.msrb.gmra.mxu3 %vm1367_vm2, %v9236_v61  ;;  %v9146_v30 = vsel %vm1367_vm2, %v18244_v60, 0.0  ;;  %v9730_v61 = vsel %vm1787_vm3, %v9280_v38, 0 }
0x10a5   : > { %13596 = vpow2.f32 %v9003_v27  ;;  %9663 = vmatpush.bf16.msrb.mxu3 %v9654_v25  ;;  %9147 = vadd.xlane.f32.xlu2 %v9146_v30 }
0x10a8   : > { %v8965_v18 = vpop.xlane.xlu1 %8964 }
0x10a9   : > { %v8999_v17 = vsub.f32 %v18130_v50, %v8965_v18  ;;  %v9762_v29 = vpop.f32.mrf.mxu0  ;;  %12739 = vmatmul.msk.bf16.gmra.mxu0 %vm452_vm0, %v19736_v14  ;;  %v18265_v50 = vadd.f32 %v18064_v57, %v14373_v37 }
0x10ab   : > { %v18253_v0 = vpop.eup %13596  ;;  %v9061_v59 = vmul.f32 1.442695, %v8999_v17  ;;  %v8936_v26 = vsel %vm1367_vm2, %v18265_v50, -inf }
0x10ac   : > { %v9068_v44 = vsel %vm1367_vm2, %v18253_v0, 0.0 }
0x10ad   : > { %13598 = vpow2.f32 %v9061_v59  ;;  %9069 = vadd.xlane.f32.xlu0 %v9068_v44 }
0x10b3   : > { %v18257_v15 = vpop.eup %13598 }
0x10b4   : > { %v9155_v22 = vsel %vm1367_vm2, %v18257_v15, 0.0 }
0x10b5   : > { %9156 = vadd.xlane.f32.xlu2 %v9155_v22 }
0x10b8   : > { %v9112_v45 = vpop.xlane.xlu0 %9111 }
0x10b9   : > { %13600 = vrcp.f32 %v9112_v45  ;;  %12740 = vmatmul.msk.bf16.gmra.mxu0 %vm452_vm0, %v19737_v33  ;;  %v9711_v45 = vsel %vm1787_vm3, %v9279_v16, 0 }
0x10bd   : > { %8937 = vmax.xlane.f32.xlu2 %v8936_v26  ;;  %v19843_v26 = vld [vmem:[#allocation110_spill] sm:$0xff] }
0x10bf   : > { %v13601_v10 = vpop.eup %13600 }
0x10c0   : > { %v9208_v32 = vmul.f32 %v13601_v10, %v18140_v28  ;;  %v8890_v35 = vpop.xlane.xlu0 %8889 }
0x10c1   : > { %v8974_v49 = vsub.f32 %v18150_v4, %v8890_v35  ;;  %v9109_v51 = vpop.xlane.xlu2 %9108  ;;  %v9836_v56 = vpop.f32.mrf.mxu0 }
0x10c2   : > { %v9240_v47 = vpack.c.bf16 %v9208_v32, %v9208_v32  ;;  %13602 = vrcp.f32 %v9109_v51  ;;  %v18274_v24 = vadd.f32 %v9836_v56, %v19841_v34  ;;  %v9121_v17 = vpop.xlane.xlu1 %9120  ;;  %v18299_v32 = vpop.f32.mrf.mxu3 }
0x10c3   : > { %v9011_v57 = vmul.f32 1.442695, %v8974_v49 }
0x10c4   : > { %19842 = vst [vmem:[#allocation97_spill] sm:$0xff] %v18274_v24  ;;  %12697 = vmatmul.msk.bf16.vlgmr.msra.gmra.mxu3 %vm1367_vm2, %v9240_v47 }
0x10c5   : > { %13604 = vpow2.f32 %v9011_v57  ;;  %9739 = vmatpush.bf16.msra.mxu3 %v9730_v61  ;;  %v9283_v61 = vpack.c.bf16 %v18100_v23, %v18100_v23  ;;  %v9284_v23 = vpack.c.bf16 %v18104_v12, %v18104_v12 }
0x10c8   : > { %v8902_v28 = vpop.xlane.xlu0 %8901  ;;  %v13603_v55 = vpop.eup %13602 }
0x10c9   : > { %v8968_v4 = vpop.xlane.xlu2 %8967  ;;  %v9207_v27 = vmul.f32 %v13603_v55, %v18157_v41  ;;  %v9838_v30 = vpop.f32.mrf.mxu0  ;;  %v8978_v59 = vsub.f32 %v18169_v43, %v8902_v28  ;;  %v18293_v41 = vadd.f32 %v18102_v40, %v14373_v37  ;;  %12741 = vmatmul.msk.bf16.gmra.mxu0 %vm452_vm0, %v19740_v3 }
0x10ca   : > { %v9000_v25 = vsub.f32 %v18172_v11, %v8968_v4  ;;  %v8324_v55 = vpop.f32.mrf.mxu3 }
0x10cb   : > { %v18284_v18 = vpop.eup %13604  ;;  %v9239_v29 = vpack.c.bf16 %v9207_v27, %v9207_v27  ;;  %v9019_v11 = vmul.f32 1.442695, %v8978_v59  ;;  %v8948_v51 = vsel %vm1367_vm2, %v18293_v41, -inf }
0x10cc   : > { %v9063_v44 = vmul.f32 1.442695, %v9000_v25  ;;  %v9080_v22 = vsel %vm1367_vm2, %v18284_v18, 0.0 }
0x10cd   : > { %9081 = vadd.xlane.f32.xlu1 %v9080_v22  ;;  %12696 = vmatmul.msk.bf16.vlgmr.msra.gmra.mxu2 %vm1367_vm2, %v9239_v29  ;;  %v18327_v29 = vadd.f32 %v18132_v39, %v14373_v37 }
0x10ce   : > { %13606 = vpow2.f32 %v9063_v44  ;;  %9720 = vmatpush.bf16.msra.mxu2 %v9711_v45  ;;  %v9806_v44 = vsel %vm1787_vm3, %v9284_v23, 0 }
0x10cf   : > { %13608 = vrcp.f32 %v9121_v17  ;;  %v9342_v1 = vpop.f32.mrf.mxu2  ;;  %v8960_v22 = vsel %vm1367_vm2, %v18327_v29, -inf }
0x10d0   : > { %v18296_v43 = vadd.f32 %v9342_v1, %v19843_v26  ;;  %v8914_v10 = vpop.xlane.xlu0 %8913  ;;  %13610 = vpow2.f32 %v9019_v11 }
0x10d1   : > { %v8982_v38 = vsub.f32 %v18180_v54, %v8914_v10 }
0x10d2   : > { %v18333_v45 = vpop.f32.mrf.mxu3 }
0x10d3   : > { %v9027_v35 = vmul.f32 1.442695, %v8982_v38 }
0x10d4   : > { %v18301_v49 = vpop.eup %13606 }
0x10d5   : > { %v13609_v47 = vpop.eup %13608  ;;  %13612 = vpow2.f32 %v9027_v35  ;;  %8949 = vmax.xlane.f32.xlu1 %v8948_v51  ;;  %v9158_v40 = vsel %vm1367_vm2, %v18301_v49, 0.0 }
0x10d6   : > { %9159 = vadd.xlane.f32.xlu0 %v9158_v40  ;;  %v9211_v56 = vmul.f32 %v13609_v47, %v18155_v2  ;;  %v18310_v34 = vpop.eup %13610  ;;  %v9787_v2 = vsel %vm1787_vm3, %v9283_v61, 0 }
0x10d7   : > { %v9344_v54 = vpop.f32.mrf.mxu2  ;;  %v9092_v27 = vsel %vm1367_vm2, %v18310_v34, 0.0 }
0x10d8   : > { %v9124_v57 = vpop.xlane.xlu2 %9123  ;;  %v9243_v4 = vpack.c.bf16 %v9211_v56, %v9211_v56 }
0x10d9   : > { %13614 = vrcp.f32 %v9124_v57  ;;  %12742 = vmatmul.msk.bf16.gmra.mxu0 %vm452_vm0, %v19741_v63 }
0x10db   : > { %v18314_v28 = vpop.eup %13612 }
0x10dc   : > { %v9104_v16 = vsel %vm1367_vm2, %v18314_v28, 0.0 }
0x10dd   : > { %9105 = vadd.xlane.f32.xlu2 %v9104_v16  ;;  %12700 = vmatmul.msk.bf16.vlgmr.msrb.gmra.mxu2 %vm1367_vm2, %v9243_v4 }
0x10de   : > { %9093 = vadd.xlane.f32.xlu0 %v9092_v27  ;;  %9796 = vmatpush.bf16.msrb.mxu2 %v9787_v2  ;;  %v19844_v2 = vld [vmem:[#allocation18_spill] sm:$0xff] }
0x10df   : > { %v13615_v25 = vpop.eup %13614 }
0x10e0   : > { %v9212_v30 = vmul.f32 %v13615_v25, %v18189_v31  ;;  %v9133_v17 = vpop.xlane.xlu1 %9132  ;;  %v9287_v31 = vpack.c.bf16 %v8324_v55, %v8324_v55 }
0x10e1   : > { %13616 = vrcp.f32 %v9133_v17 }
0x10e2   : > { %v9244_v59 = vpack.c.bf16 %v9212_v30, %v9212_v30  ;;  %v9863_v11 = vsel %vm1787_vm3, %v9287_v31, 0 }
0x10e4   : > { %12701 = vmatmul.msk.bf16.vlgmr.msrb.gmra.mxu3 %vm1367_vm2, %v9244_v59 }
0x10e5   : > { %9815 = vmatpush.bf16.msrb.mxu3 %v9806_v44 }
0x10e6   : > { %8961 = vmax.xlane.f32.xlu0 %v8960_v22 }
0x10e7   : > { %v13617_v12 = vpop.eup %13616 }
0x10e8   : > { %v9215_v39 = vmul.f32 %v13617_v12, %v18196_v48 }
0x10e9   : > { %12743 = vmatmul.msk.bf16.gmra.mxu0 %vm452_vm0, %v19744_v6 }
0x10ea   : > { %v9247_v1 = vpack.c.bf16 %v9215_v39, %v9215_v39 }
0x10ed   : > { %12704 = vmatmul.msk.bf16.vlgmr.msra.gmra.mxu2 %vm1367_vm2, %v9247_v1 }
0x10ee   : > { %9872 = vmatpush.bf16.msra.mxu2 %v9863_v11  ;;  %v19845_v11 = vld [vmem:[#allocation115_spill] sm:$0xff] }
0x10ef   : > { %v9361_v26 = vpop.f32.mrf.mxu3 }
0x10f0   : > { %v18341_v10 = vadd.f32 %v9361_v26, %v17648_v19  ;;  %v9266_v26 = vpack.c.bf16 %v19845_v11, %v19845_v11 }
0x10f7   : > { %v9363_v38 = vpop.f32.mrf.mxu3  ;;  %v9418_v35 = vpop.f32.mrf.mxu2 }
0x10f8   : > { %v18346_v51 = vadd.f32 %v9418_v35, %v17471_v13  ;;  %v9136_v47 = vpop.xlane.xlu2 %9135 }
0x10f9   : > { %13618 = vrcp.f32 %v9136_v47  ;;  %12744 = vmatmul.msk.bf16.gmra.mxu0 %vm452_vm0, %v19624_v52 }
0x10ff   : > { %v13619_v48 = vpop.eup %13618  ;;  %v9420_v40 = vpop.f32.mrf.mxu2 }
0x1100   : > { %v9216_v54 = vmul.f32 %v13619_v48, %v18215_v62  ;;  %v9145_v56 = vpop.xlane.xlu1 %9144 }
0x1101   : > { %13620 = vrcp.f32 %v9145_v56 }
0x1102   : > { %v9248_v57 = vpack.c.bf16 %v9216_v54, %v9216_v54  ;;  %v19847_v54 = vld [vmem:[#allocation20_spill] sm:$0xff] }
0x1104   : > { %12705 = vmatmul.msk.bf16.vlgmr.msra.gmra.mxu3 %vm1367_vm2, %v9248_v57 }
0x1107   : > { %v13621_v19 = vpop.eup %13620  ;;  %v9437_v61 = vpop.f32.mrf.mxu3 }
0x1108   : > { %v9219_v55 = vmul.f32 %v13621_v19, %v18224_v20  ;;  %v18354_v13 = vadd.f32 %v9437_v61, %v17675_v36  ;;  %v8926_v4 = vpop.xlane.xlu1 %8925 }
0x1109   : > { %v8986_v16 = vsub.f32 %v18232_v5, %v8926_v4  ;;  %12745 = vmatmul.msk.bf16.gmra.mxu0 %vm452_vm0, %v19626_v7 }
0x110a   : > { %v9251_v27 = vpack.c.bf16 %v9219_v55, %v9219_v55 }
0x110b   : > { %v9035_v62 = vmul.f32 1.442695, %v8986_v16 }
0x110c   : > { %12708 = vmatmul.msk.bf16.vlgmr.msrb.gmra.mxu2 %vm1367_vm2, %v9251_v27  ;;  %v19848_v27 = vld [vmem:[#allocation21_spill] sm:$0xff] }
0x110d   : > { %13622 = vpow2.f32 %v9035_v62  ;;  %10247 = vmatpush.bf16.xpose.msrb.mxu2 %v19844_v2  ;;  %v19849_v62 = vld [vmem:[#allocation27_spill] sm:$0xff] }
0x110f   : > { %v9439_v25 = vpop.f32.mrf.mxu3  ;;  %v9494_v23 = vpop.f32.mrf.mxu2 }
0x1110   : > { %v18360_v30 = vadd.f32 %v9494_v23, %v17507_v21  ;;  %v9288_v21 = vpack.c.bf16 %v18333_v45, %v18333_v45  ;;  %v9464_v45 = vsel %vm1787_vm3, %v9266_v26, 0 }
0x1112   : > { %v9882_v40 = vsel %vm1787_vm3, %v9288_v21, 0 }
0x1113   : > { %v18362_v17 = vpop.eup %13622  ;;  %9891 = vmatpush.bf16.msra.mxu3 %v9882_v40 }
0x1114   : > { %v9116_v36 = vsel %vm1367_vm2, %v18362_v17, 0.0 }
0x1115   : > { %9117 = vadd.xlane.f32.xlu1 %v9116_v36 }
0x1116   : > { %v9987_v31 = vpop.f32.mrf.mxu0 }
0x1117   : > { %v9496_v20 = vpop.f32.mrf.mxu2  ;;  %v10205_v36 = vpack.c.bf16 %v9987_v31, %v9987_v31 }
0x1118   : > { %v9148_v5 = vpop.xlane.xlu2 %9147  ;;  %v19850_v20 = vld [vmem:[#allocation25_spill] sm:$0xff] }
0x1119   : > { %13624 = vrcp.f32 %v9148_v5  ;;  %12746 = vmatmul.msk.bf16.gmra.mxu0 %vm452_vm0, %v19628_v53  ;;  %v19851_v5 = vld [vmem:[#allocation30_spill] sm:$0xff] }
0x111e   : > { %v18385_v61 = vpop.f32.mrf.mxu0 }
0x111f   : > { %v13625_v59 = vpop.eup %13624 }
0x1120   : > { %v9220_v44 = vmul.f32 %v13625_v59, %v18244_v60  ;;  %v9070_v22 = vpop.xlane.xlu0 %9069  ;;  %v19846_v60 = vld [vmem:[#allocation95_spill] sm:$0xff] }
0x1121   : > { %13626 = vrcp.f32 %v9070_v22  ;;  %v19852_v22 = vld [vmem:[#allocation88_spill] sm:$0xff] }
0x1122   : > { %v9252_v12 = vpack.c.bf16 %v9220_v44, %v9220_v44 }
0x1124   : > { %12709 = vmatmul.msk.bf16.vlgmr.msrb.gmra.mxu3 %vm1367_vm2, %v9252_v12  ;;  %v9270_v12 = vpack.c.bf16 %v19852_v22, %v19852_v22 }
0x1125   : > { %10263 = vmatpush.bf16.xpose.msrb.mxu3 %v19847_v54 }
0x1126   : > { %v9992_v2 = vpop.f32.mrf.mxu0 }
0x1127   : > { %v13627_v39 = vpop.eup %13626  ;;  %v9513_v1 = vpop.f32.mrf.mxu3 }
0x1128   : > { %v9194_v38 = vmul.f32 %v13627_v39, %v18253_v0  ;;  %v18378_v35 = vadd.f32 %v9513_v1, %v19846_v60  ;;  %v9157_v47 = vpop.xlane.xlu2 %9156  ;;  %v19853_v39 = vld [vmem:[#allocation85_spill] sm:$0xff] }
0x1129   : > { %13628 = vrcp.f32 %v9157_v47  ;;  %12747 = vmatmul.msk.bf16.gmra.mxu0 %vm452_vm0, %v19849_v62 }
0x112a   : > { %v9226_v48 = vpack.c.bf16 %v9194_v38, %v9194_v38 }
0x112c   : > { %12683 = vmatmul.msk.bf16.vlgmr.msra.gmra.mxu1 %vm1367_vm2, %v9226_v48  ;;  %v9540_v48 = vsel %vm1787_vm3, %v9270_v12, 0 }
0x112d   : > { %9473 = vmatpush.bf16.msra.mxu1 %v9464_v45 }
0x112f   : > { %v13629_v56 = vpop.eup %13628  ;;  %v9515_v57 = vpop.f32.mrf.mxu3 }
0x1130   : > { %v9223_v0 = vmul.f32 %v13629_v56, %v18257_v15  ;;  %v8938_v19 = vpop.xlane.xlu2 %8937 }
0x1131   : > { %v8990_v55 = vsub.f32 %v18265_v50, %v8938_v19  ;;  %v18396_v50 = vpop.f32.mrf.mxu0 }
0x1132   : > { %v9255_v4 = vpack.c.bf16 %v9223_v0, %v9223_v0  ;;  %v19855_v0 = vld [vmem:[#allocation83_spill] sm:$0xff] }
0x1133   : > { %v9043_v16 = vmul.f32 1.442695, %v8990_v55 }
0x1134   : > { %12712 = vmatmul.msk.bf16.vlgmr.msra.gmra.mxu2 %vm1367_vm2, %v9255_v4 }
0x1135   : > { %13630 = vpow2.f32 %v9043_v16  ;;  %10279 = vmatpush.bf16.xpose.msra.mxu2 %v19848_v27  ;;  %v19858_v27 = vld [vmem:[#allocation28_spill] sm:$0xff] }
0x1139   : > { %12748 = vmatmul.msk.bf16.gmra.mxu0 %vm452_vm0, %v19851_v5  ;;  %v9997_v60 = vpop.f32.mrf.mxu0 }
0x113b   : > { %v18392_v25 = vpop.eup %13630 }
0x113c   : > { %v9128_v15 = vsel %vm1367_vm2, %v18392_v25, 0.0 }
0x113d   : > { %9129 = vadd.xlane.f32.xlu2 %v9128_v15 }
0x1140   : > { %v9082_v23 = vpop.xlane.xlu1 %9081 }
0x1141   : > { %13632 = vrcp.f32 %v9082_v23  ;;  %v18415_v19 = vpop.f32.mrf.mxu0  ;;  %v19860_v23 = vld [vmem:[#allocation116_spill] sm:$0xff] }
0x1144   : > { %12794 = vmatmul.msk.bf16.vlgmr.msrb.gmra.mxu2 %vm452_vm0, %v10205_v36  ;;  %v9274_v36 = vpack.c.bf16 %v19860_v23, %v19860_v23 }
0x1145   : > { %10311 = vmatpush.bf16.xpose.msrb.mxu2 %v19850_v20 }
0x1147   : > { %v13633_v59 = vpop.eup %13632  ;;  %v9589_v44 = vpop.f32.mrf.mxu3 }
0x1148   : > { %v9198_v21 = vmul.f32 %v13633_v59, %v18284_v18  ;;  %v18406_v1 = vadd.f32 %v9589_v44, %v19853_v39  ;;  %v8950_v31 = vpop.xlane.xlu1 %8949  ;;  %v10207_v18 = vpack.c.bf16 %v9992_v2, %v9992_v2  ;;  %v19859_v2 = vld [vmem:[#allocation33_spill] sm:$0xff] }
0x1149   : > { %v8994_v11 = vsub.f32 %v18293_v41, %v8950_v31  ;;  %v9160_v26 = vpop.xlane.xlu0 %9159  ;;  %12749 = vmatmul.msk.bf16.gmra.mxu0 %vm452_vm0, %v19859_v2  ;;  %v10002_v31 = vpop.f32.mrf.mxu0 }
0x114a   : > { %19854 = vst [vmem:[#allocation12_spill] sm:$0xff] %v18406_v1  ;;  %v9230_v38 = vpack.c.bf16 %v9198_v21, %v9198_v21  ;;  %13634 = vrcp.f32 %v9160_v26  ;;  %v10209_v26 = vpack.c.bf16 %v9997_v60, %v9997_v60  ;;  %v19864_v60 = vld [vmem:[#allocation26_spill] sm:$0xff] }
0x114b   : > { %v9051_v47 = vmul.f32 1.442695, %v8994_v11  ;;  %v9616_v11 = vsel %vm1787_vm3, %v9274_v36, 0 }
0x114c   : > { %12687 = vmatmul.msk.bf16.vlgmr.msrb.gmra.mxu1 %vm1367_vm2, %v9230_v38 }
0x114d   : > { %13636 = vpow2.f32 %v9051_v47  ;;  %9549 = vmatpush.bf16.msrb.mxu1 %v9540_v48  ;;  %v19861_v47 = vld [vmem:[#allocation111_spill] sm:$0xff] }
0x114f   : > { %v9591_v40 = vpop.f32.mrf.mxu3 }
0x1150   : > { %v13635_v45 = vpop.eup %13634  ;;  %v9570_v56 = vpop.f32.mrf.mxu2  ;;  %v10206_v40 = vpack.c.bf16 %v18385_v61, %v18385_v61  ;;  %v19866_v61 = vld [vmem:[#allocation67_spill] sm:$0xff] }
0x1151   : > { %v9224_v54 = vmul.f32 %v13635_v45, %v18301_v49  ;;  %v9094_v57 = vpop.xlane.xlu0 %9093  ;;  %v18413_v41 = vadd.f32 %v9570_v56, %v19855_v0  ;;  %v19857_v49 = vld [vmem:[#allocation23_spill] sm:$0xff]  ;;  %v9106_v22 = vpop.xlane.xlu2 %9105  ;;  %v19865_v0 = vld [vmem:[#allocation36_spill] sm:$0xff] }
0x1152   : > { %13638 = vrcp.f32 %v9094_v57 }
0x1153   : > { %19856 = vst [vmem:[#allocation13_spill] sm:$0xff] %v18413_v41  ;;  %v18417_v55 = vpop.eup %13636  ;;  %v9256_v4 = vpack.c.bf16 %v9224_v54, %v9224_v54  ;;  %13640 = vrcp.f32 %v9106_v22  ;;  %v10004_v54 = vpop.f32.mrf.mxu0 }
0x1154   : > { %12796 = vmatmul.msk.bf16.vlgmr.msra.gmra.mxu2 %vm452_vm0, %v10207_v18  ;;  %v9140_v16 = vsel %vm1367_vm2, %v18417_v55, 0.0  ;;  %v19863_v18 = vld [vmem:[#allocation31_spill] sm:$0xff] }
0x1155   : > { %12713 = vmatmul.msk.bf16.vlgmr.msra.gmra.mxu3 %vm1367_vm2, %v9256_v4  ;;  %9141 = vadd.xlane.f32.xlu0 %v9140_v16  ;;  %v19868_v16 = vld [vmem:[#allocation117_spill] sm:$0xff] }
0x1156   : > { %10295 = vmatpush.bf16.xpose.msra.mxu3 %v19857_v49  ;;  %10343 = vmatpush.bf16.xpose.msra.mxu2 %v19858_v27  ;;  %v9278_v49 = vpack.c.bf16 %v19868_v16, %v19868_v16 }
0x1158   : > { %v13639_v15 = vpop.eup %13638  ;;  %v9572_v59 = vpop.f32.mrf.mxu2  ;;  %v9692_v23 = vsel %vm1787_vm3, %v9278_v49, 0 }
0x1159   : > { %v9202_v20 = vmul.f32 %v13639_v15, %v18310_v34  ;;  %v8962_v44 = vpop.xlane.xlu0 %8961  ;;  %v13641_v34 = vpop.eup %13640  ;;  %12750 = vmatmul.msk.bf16.gmra.mxu0 %vm452_vm0, %v19865_v0 }
0x115a   : > { %v8998_v12 = vsub.f32 %v18327_v29, %v8962_v44  ;;  %v9206_v56 = vmul.f32 %v13641_v34, %v18314_v28  ;;  %v19869_v44 = vld [vmem:[#allocation84_spill] sm:$0xff]  ;;  %v19874_v34 = vld [vmem:[#allocation37_spill] sm:$0xff] }
0x115b   : > { %v9234_v21 = vpack.c.bf16 %v9202_v20, %v9202_v20  ;;  %v10211_v20 = vpack.c.bf16 %v10002_v31, %v10002_v31  ;;  %v10007_v28 = vpop.f32.mrf.mxu0 }
0x115c   : > { %v9059_v39 = vmul.f32 1.442695, %v8998_v12  ;;  %v9238_v15 = vpack.c.bf16 %v9206_v56, %v9206_v56  ;;  %v10208_v12 = vpack.c.bf16 %v18396_v50, %v18396_v50 }
0x115d   : > { %12691 = vmatmul.msk.bf16.vlgmr.msra.gmra.mxu1 %vm1367_vm2, %v9234_v21  ;;  %v19871_v21 = vld [vmem:[#allocation34_spill] sm:$0xff] }
0x115e   : > { %13642 = vpow2.f32 %v9059_v39  ;;  %9625 = vmatpush.bf16.msra.mxu1 %v9616_v11  ;;  %v19872_v39 = vld [vmem:[#allocation29_spill] sm:$0xff]  ;;  %v19873_v11 = vld [vmem:[#allocation39_spill] sm:$0xff] }
0x1160   : > { %v9646_v38 = vpop.f32.mrf.mxu2 }
0x1161   : > { %v18434_v48 = vadd.f32 %v9646_v38, %v19861_v47  ;;  %v10213_v38 = vpack.c.bf16 %v10007_v28, %v10007_v28  ;;  %v10210_v47 = vpack.c.bf16 %v18415_v19, %v18415_v19 }
0x1163   : > { %19862 = vst [vmem:[#allocation14_spill] sm:$0xff] %v18434_v48 }
0x1164   : > { %v18438_v29 = vpop.eup %13642  ;;  %12798 = vmatmul.msk.bf16.vlgmr.msrb.gmra.mxu2 %vm452_vm0, %v10209_v26  ;;  %v10009_v26 = vpop.f32.mrf.mxu0 }
0x1165   : > { %12795 = vmatmul.msk.bf16.vlgmr.msrb.gmra.mxu3 %vm452_vm0, %v10206_v40  ;;  %v9152_v45 = vsel %vm1367_vm2, %v18438_v29, 0.0  ;;  %10375 = vmatpush.bf16.xpose.msrb.mxu2 %v19863_v18  ;;  %v19875_v40 = vld [vmem:[#allocation32_spill] sm:$0xff]  ;;  %v19876_v18 = vld [vmem:[#allocation42_spill] sm:$0xff] }
0x1166   : > { %9153 = vadd.xlane.f32.xlu1 %v9152_v45  ;;  %10327 = vmatpush.bf16.xpose.msrb.mxu3 %v19864_v60  ;;  %v19877_v60 = vld [vmem:[#allocation121_spill] sm:$0xff] }
0x1167   : > { %v9665_v57 = vpop.f32.mrf.mxu3 }
0x1168   : > { %v18450_v4 = vadd.f32 %v9665_v57, %v19866_v61  ;;  %v9648_v27 = vpop.f32.mrf.mxu2 }
0x1169   : > { %12751 = vmatmul.msk.bf16.gmra.mxu0 %vm452_vm0, %v19873_v11  ;;  %v19879_v27 = vld [vmem:[#allocation118_spill] sm:$0xff] }
0x116a   : > { %19867 = vst [vmem:[#allocation70_spill] sm:$0xff] %v18450_v4 }
0x116c   : > { %v10012_v50 = vpop.f32.mrf.mxu0 }
0x116d   : > { %12695 = vmatmul.msk.bf16.vlgmr.msrb.gmra.mxu1 %vm1367_vm2, %v9238_v15  ;;  %v9282_v15 = vpack.c.bf16 %v19879_v27, %v19879_v27  ;;  %v10215_v28 = vpack.c.bf16 %v10012_v50, %v10012_v50  ;;  %v10214_v50 = vpack.c.bf16 %v10009_v26, %v10009_v26 }
0x116e   : > { %9701 = vmatpush.bf16.msrb.mxu1 %v9692_v23 }
0x116f   : > { %v9667_v36 = vpop.f32.mrf.mxu3 }
0x1170   : > { %v9722_v59 = vpop.f32.mrf.mxu2  ;;  %v19880_v36 = vld [vmem:[#allocation112_spill] sm:$0xff] }
0x1171   : > { %v18457_v22 = vadd.f32 %v9722_v59, %v19869_v44  ;;  %v10212_v44 = vpack.c.bf16 %v10004_v54, %v10004_v54 }
0x1173   : > { %19870 = vst [vmem:[#allocation15_spill] sm:$0xff] %v18457_v22 }
0x1174   : > { %12800 = vmatmul.msk.bf16.vlgmr.msra.gmra.mxu2 %vm452_vm0, %v10211_v20  ;;  %v10014_v61 = vpop.f32.mrf.mxu0 }
0x1175   : > { %12797 = vmatmul.msk.bf16.vlgmr.msra.gmra.mxu3 %vm452_vm0, %v10208_v12  ;;  %10407 = vmatpush.bf16.xpose.msra.mxu2 %v19871_v21  ;;  %v9768_v12 = vsel %vm1787_vm3, %v9282_v15, 0  ;;  %v19882_v21 = vld [vmem:[#allocation35_spill] sm:$0xff] }
0x1176   : > { %10359 = vmatpush.bf16.xpose.msra.mxu3 %v19872_v39  ;;  %v19883_v39 = vld [vmem:[#allocation40_spill] sm:$0xff] }
0x1178   : > { %v9724_v31 = vpop.f32.mrf.mxu2 }
0x1179   : > { %12752 = vmatmul.msk.bf16.gmra.mxu0 %vm452_vm0, %v19876_v18  ;;  %v19884_v31 = vld [vmem:[#allocation57_spill] sm:$0xff] }
0x1184   : > { %12802 = vmatmul.msk.bf16.vlgmr.msrb.gmra.mxu2 %vm452_vm0, %v10213_v38  ;;  %v10017_v38 = vpop.f32.mrf.mxu0 }
0x1185   : > { %12799 = vmatmul.msk.bf16.vlgmr.msrb.gmra.mxu3 %vm452_vm0, %v10210_v47  ;;  %10439 = vmatpush.bf16.xpose.msrb.mxu2 %v19874_v34  ;;  %v10217_v47 = vpack.c.bf16 %v10017_v38, %v10017_v38  ;;  %v19885_v34 = vld [vmem:[#allocation43_spill] sm:$0xff] }
0x1186   : > { %10391 = vmatpush.bf16.xpose.msrb.mxu3 %v19875_v40  ;;  %v19886_v40 = vld [vmem:[#allocation38_spill] sm:$0xff] }
0x1187   : > { %v9741_v45 = vpop.f32.mrf.mxu3 }
0x1188   : > { %v18476_v56 = vadd.f32 %v9741_v45, %v19877_v60  ;;  %v9118_v57 = vpop.xlane.xlu1 %9117  ;;  %v19887_v60 = vld [vmem:[#allocation114_spill] sm:$0xff] }
0x1189   : > { %13644 = vrcp.f32 %v9118_v57  ;;  %12753 = vmatmul.msk.bf16.gmra.mxu0 %vm452_vm0, %v19884_v31 }
0x118a   : > { %19878 = vst [vmem:[#allocation16_spill] sm:$0xff] %v18476_v56 }
0x118c   : > { %v10019_v54 = vpop.f32.mrf.mxu0 }
0x118f   : > { %v13645_v19 = vpop.eup %13644  ;;  %v9743_v16 = vpop.f32.mrf.mxu3 }
0x1190   : > { %v9798_v49 = vpop.f32.mrf.mxu2  ;;  %v9210_v23 = vmul.f32 %v13645_v19, %v18362_v17  ;;  %v19889_v16 = vld [vmem:[#allocation91_spill] sm:$0xff] }
0x1191   : > { %v18482_v20 = vadd.f32 %v9798_v49, %v19880_v36 }
0x1192   : > { %v9242_v59 = vpack.c.bf16 %v9210_v23, %v9210_v23 }
0x1193   : > { %19881 = vst [vmem:[#allocation72_spill] sm:$0xff] %v18482_v20 }
0x1194   : > { %12699 = vmatmul.msk.bf16.vlgmr.msra.gmra.mxu1 %vm1367_vm2, %v9242_v59  ;;  %12804 = vmatmul.msk.bf16.vlgmr.msra.gmra.mxu2 %vm452_vm0, %v10215_v28  ;;  %v10022_v27 = vpop.f32.mrf.mxu0  ;;  %v10216_v28 = vpack.c.bf16 %v10014_v61, %v10014_v61 }
0x1195   : > { %9777 = vmatpush.bf16.msra.mxu1 %v9768_v12  ;;  %12801 = vmatmul.msk.bf16.vlgmr.msra.gmra.mxu3 %vm452_vm0, %v10212_v44  ;;  %v10219_v26 = vpack.c.bf16 %v10022_v27, %v10022_v27  ;;  %v19890_v44 = vld [vmem:[#allocation45_spill] sm:$0xff] }
0x1196   : > { %10423 = vmatpush.bf16.xpose.msra.mxu3 %v19882_v21  ;;  %10471 = vmatpush.bf16.xpose.msra.mxu2 %v19883_v39  ;;  %v19891_v12 = vld [vmem:[#allocation41_spill] sm:$0xff] }
0x1198   : > { %v9800_v17 = vpop.f32.mrf.mxu2 }
0x1199   : > { %v9286_v17 = vpack.c.bf16 %v18299_v32, %v18299_v32  ;;  %v19894_v32 = vld [vmem:[#allocation47_spill] sm:$0xff] }
0x119c   : > { %v10024_v59 = vpop.f32.mrf.mxu0 }
0x11a4   : > { %12806 = vmatmul.msk.bf16.vlgmr.msrb.gmra.mxu2 %vm452_vm0, %v10217_v47  ;;  %v19892_v47 = vld [vmem:[#allocation63_spill] sm:$0xff] }
0x11a5   : > { %12803 = vmatmul.msk.bf16.vlgmr.msrb.gmra.mxu3 %vm452_vm0, %v10214_v50  ;;  %10503 = vmatpush.bf16.xpose.msrb.mxu2 %v19885_v34  ;;  %v9844_v34 = vsel %vm1787_vm3, %v9286_v17, 0  ;;  %v12935_v17 = vld [vmem:[#allocation7 + $0x118] sm:$0xff] }
0x11a6   : > { %10455 = vmatpush.bf16.xpose.msrb.mxu3 %v19886_v40  ;;  %v10027_v40 = vpop.f32.mrf.mxu0 }
0x11a7   : > { %v9817_v45 = vpop.f32.mrf.mxu3 }
0x11a8   : > { %v18497_v57 = vadd.f32 %v9817_v45, %v19887_v60  ;;  %v10221_v60 = vpack.c.bf16 %v10027_v40, %v10027_v40  ;;  %v12934_v40 = vld [vmem:[#allocation7 + $0x110] sm:$0xff] }
0x11a9   : > { %v9323_v19 = vpop.f32.mrf.mxu1 }
0x11aa   : > { %19888 = vst [vmem:[#allocation17_spill] sm:$0xff] %v18497_v57  ;;  %v18500_v49 = vadd.f32 %v9323_v19, %v19889_v16  ;;  %v10218_v19 = vpack.c.bf16 %v10019_v54, %v10019_v54 }
0x11af   : > { %v9819_v15 = vpop.f32.mrf.mxu3 }
0x11b0   : > { %v9130_v23 = vpop.xlane.xlu2 %9129 }
0x11b1   : > { %13646 = vrcp.f32 %v9130_v23  ;;  %v9325_v36 = vpop.f32.mrf.mxu1 }
0x11b4   : > { %12808 = vmatmul.msk.bf16.vlgmr.msra.gmra.mxu2 %vm452_vm0, %v10219_v26  ;;  %v19896_v26 = vld [vmem:[#allocation65_spill] sm:$0xff] }
0x11b5   : > { %12805 = vmatmul.msk.bf16.vlgmr.msra.gmra.mxu3 %vm452_vm0, %v10216_v28  ;;  %10535 = vmatpush.bf16.xpose.msra.mxu2 %v19890_v44  ;;  %v10029_v28 = vpop.f32.mrf.mxu0 }
0x11b6   : > { %10487 = vmatpush.bf16.xpose.msra.mxu3 %v19891_v12 }
0x11b7   : > { %v13647_v21 = vpop.eup %13646  ;;  %v9874_v39 = vpop.f32.mrf.mxu2 }
0x11b8   : > { %v9214_v38 = vmul.f32 %v13647_v21, %v18392_v25  ;;  %v18510_v50 = vadd.f32 %v9874_v39, %v19892_v47  ;;  %v19895_v25 = vld [vmem:[#allocation44_spill] sm:$0xff] }
0x11ba   : > { %19893 = vst [vmem:[#allocation98_spill] sm:$0xff] %v18510_v50  ;;  %v9246_v61 = vpack.c.bf16 %v9214_v38, %v9214_v38 }
0x11bc   : > { %12703 = vmatmul.msk.bf16.vlgmr.msrb.gmra.mxu1 %vm1367_vm2, %v9246_v61  ;;  %v10220_v61 = vpack.c.bf16 %v10024_v59, %v10024_v59 }
0x11bd   : > { %9853 = vmatpush.bf16.msrb.mxu1 %v9844_v34  ;;  %v10032_v47 = vpop.f32.mrf.mxu0 }
0x11be   : > { %v10223_v34 = vpack.c.bf16 %v10032_v47, %v10032_v47 }
0x11bf   : > { %v9876_v45 = vpop.f32.mrf.mxu2 }
0x11c0   : > { %v19897_v45 = vld [vmem:[#allocation46_spill] sm:$0xff] }
0x11c4   : > { %12810 = vmatmul.msk.bf16.vlgmr.msrb.gmra.mxu2 %vm452_vm0, %v10221_v60 }
0x11c5   : > { %12807 = vmatmul.msk.bf16.vlgmr.msrb.gmra.mxu3 %vm452_vm0, %v10218_v19  ;;  %10567 = vmatpush.bf16.xpose.msrb.mxu2 %v19894_v32  ;;  %v19898_v19 = vld [vmem:[#allocation49_spill] sm:$0xff] }
0x11c6   : > { %10519 = vmatpush.bf16.xpose.msrb.mxu3 %v19895_v25  ;;  %v19899_v25 = vld [vmem:[#allocation87_spill] sm:$0xff] }
0x11c7   : > { %v10249_v16 = vpop.f32.mrf.mxu2 }
0x11c8   : > { %v18519_v27 = vadd.f32 %v10249_v16, %v14373_v37  ;;  %v9142_v15 = vpop.xlane.xlu0 %9141 }
0x11c9   : > { %13648 = vrcp.f32 %v9142_v15  ;;  %v9399_v23 = vpop.f32.mrf.mxu1  ;;  %v12933_v15 = vld [vmem:[#allocation7 + $0x108] sm:$0xff] }
0x11ca   : > { %v18522_v36 = vadd.f32 %v9399_v23, %v19896_v26  ;;  %v10749_v54 = vsel %vm1367_vm2, %v18519_v27, -inf }
0x11cb   : > { %10750 = vmax.xlane.f32.xlu2 %v10749_v54  ;;  %v10034_v54 = vpop.f32.mrf.mxu0 }
0x11cf   : > { %v13649_v44 = vpop.eup %13648  ;;  %v10251_v12 = vpop.f32.mrf.mxu2 }
0x11d0   : > { %v9218_v21 = vmul.f32 %v13649_v44, %v18417_v55  ;;  %v19901_v44 = vld [vmem:[#allocation113_spill] sm:$0xff] }
0x11d1   : > { %v9401_v39 = vpop.f32.mrf.mxu1 }
0x11d2   : > { %v9250_v38 = vpack.c.bf16 %v9218_v21, %v9218_v21  ;;  %v12932_v21 = vld [vmem:[#allocation7 + $0x100] sm:$0xff] }
0x11d4   : > { %12707 = vmatmul.msk.bf16.vlgmr.msra.gmra.mxu1 %vm1367_vm2, %v9250_v38  ;;  %12812 = vmatmul.msk.bf16.vlgmr.msra.gmra.mxu2 %vm452_vm0, %v10223_v34 }
0x11d5   : > { %12809 = vmatmul.msk.bf16.vlgmr.msra.gmra.mxu3 %vm452_vm0, %v10220_v61  ;;  %10118 = vmatpush.bf16.msra.mxu1 %v12935_v17  ;;  %v10222_v61 = vpack.c.bf16 %v10029_v28, %v10029_v28 }
0x11d6   : > { %10551 = vmatpush.bf16.xpose.msra.mxu3 %v19897_v45  ;;  %10599 = vmatpush.bf16.xpose.msra.mxu2 %v19898_v19  ;;  %v10037_v45 = vpop.f32.mrf.mxu0 }
0x11d7   : > { %v10281_v60 = vpop.f32.mrf.mxu2  ;;  %v10225_v19 = vpack.c.bf16 %v10037_v45, %v10037_v45 }
0x11d8   : > { %v9893_v55 = vpop.f32.mrf.mxu3  ;;  %v18533_v32 = vadd.f32 %v10281_v60, %v14373_v37 }
0x11d9   : > { %v18536_v59 = vadd.f32 %v9893_v55, %v19899_v25  ;;  %v9154_v16 = vpop.xlane.xlu1 %9153  ;;  %10119 = vmatpush.bf16.msra.mxu1 %v12934_v40  ;;  %v12931_v40 = vld [vmem:[#allocation7 + $0xf8] sm:$0xff]  ;;  %v12930_v55 = vld [vmem:[#allocation7 + $0xf0] sm:$0xff]  ;;  %v19902_v25 = vld [vmem:[#allocation48_spill] sm:$0xff] }
0x11da   : > { %13650 = vrcp.f32 %v9154_v16  ;;  %v9475_v23 = vpop.f32.mrf.mxu1  ;;  %v10755_v26 = vsel %vm1367_vm2, %v18533_v32, -inf }
0x11db   : > { %19900 = vst [vmem:[#allocation71_spill] sm:$0xff] %v18536_v59  ;;  %v18541_v12 = vadd.f32 %v9475_v23, %v19901_v44  ;;  %10756 = vmax.xlane.f32.xlu1 %v10755_v26  ;;  %v19904_v44 = vld [vmem:[#allocation69_spill] sm:$0xff] }
0x11dd   : > { %10120 = vmatpush.bf16.msra.mxu1 %v12933_v15 }
0x11de   : > { %v10039_v26 = vpop.f32.mrf.mxu0 }
0x11df   : > { %v10283_v39 = vpop.f32.mrf.mxu2 }
0x11e0   : > { %v13651_v17 = vpop.eup %13650  ;;  %v9895_v38 = vpop.f32.mrf.mxu3 }
0x11e1   : > { %v9222_v47 = vmul.f32 %v13651_v17, %v18438_v29  ;;  %10121 = vmatpush.bf16.msra.mxu1 %v12932_v21  ;;  %v19903_v29 = vld [vmem:[#allocation51_spill] sm:$0xff] }
0x11e2   : > { %v9477_v34 = vpop.f32.mrf.mxu1 }
0x11e3   : > { %v9254_v60 = vpack.c.bf16 %v9222_v47, %v9222_v47  ;;  %v10224_v34 = vpack.c.bf16 %v10034_v54, %v10034_v54 }
0x11e4   : > { %12814 = vmatmul.msk.bf16.vlgmr.msrb.gmra.mxu2 %vm452_vm0, %v10225_v19  ;;  %v19906_v19 = vld [vmem:[#allocation50_spill] sm:$0xff] }
0x11e5   : > { %12711 = vmatmul.msk.bf16.vlgmr.msrb.gmra.mxu1 %vm1367_vm2, %v9254_v60  ;;  %12811 = vmatmul.msk.bf16.vlgmr.msrb.gmra.mxu3 %vm452_vm0, %v10222_v61 }
0x11e6   : > { %10122 = vmatpush.bf16.msra.mxu1 %v12931_v40  ;;  %10583 = vmatpush.bf16.xpose.msrb.mxu3 %v19902_v25  ;;  %v10042_v45 = vpop.f32.mrf.mxu0 }
0x11e7   : > { %v10313_v16 = vpop.f32.mrf.mxu2  ;;  %10631 = vmatpush.bf16.xpose.msrb.mxu2 %v19903_v29  ;;  %v10227_v60 = vpack.c.bf16 %v10042_v45, %v10042_v45 }
0x11e8   : > { %v10265_v15 = vpop.f32.mrf.mxu3  ;;  %v18558_v17 = vadd.f32 %v10313_v16, %v14373_v37  ;;  %v19907_v16 = vld [vmem:[#allocation53_spill] sm:$0xff] }
0x11e9   : > { %v18550_v28 = vadd.f32 %v10265_v15, %v14373_v37 }
0x11ea   : > { %v9551_v23 = vpop.f32.mrf.mxu1  ;;  %10123 = vmatpush.bf16.msra.mxu1 %v12930_v55  ;;  %v10761_v61 = vsel %vm1367_vm2, %v18558_v17, -inf }
0x11eb   : > { %v18553_v21 = vadd.f32 %v9551_v23, %v19904_v44  ;;  %v10752_v39 = vsel %vm1367_vm2, %v18550_v28, -inf }
0x11ec   : > { %10753 = vmax.xlane.f32.xlu0 %v10752_v39 }
0x11ed   : > { %19905 = vst [vmem:[#allocation73_spill] sm:$0xff] %v18553_v21 }
0x11ee   : > { %v10044_v54 = vpop.f32.mrf.mxu0 }
0x11ef   : > { %v10315_v38 = vpop.f32.mrf.mxu2 }
0x11f0   : > { %v10267_v47 = vpop.f32.mrf.mxu3  ;;  %v10226_v38 = vpack.c.bf16 %v10039_v26, %v10039_v26 }
0x11f2   : > { %v9553_v40 = vpop.f32.mrf.mxu1 }
0x11f4   : > { %10762 = vmax.xlane.f32.xlu0 %v10761_v61  ;;  %12816 = vmatmul.msk.bf16.vlgmr.msra.gmra.mxu2 %vm452_vm0, %v10227_v60  ;;  %v19909_v60 = vld [vmem:[#allocation55_spill] sm:$0xff] }
0x11f5   : > { %12778 = vmatmul.msk.bf16.vlgmr.msra.gmra.mxu1 %vm452_vm0, %v19735_v8  ;;  %12813 = vmatmul.msk.bf16.vlgmr.msra.gmra.mxu3 %vm452_vm0, %v10224_v34  ;;  %v19908_v34 = vld [vmem:[#allocation52_spill] sm:$0xff] }
0x11f6   : > { %10615 = vmatpush.bf16.xpose.msra.mxu3 %v19906_v19  ;;  %10663 = vmatpush.bf16.xpose.msra.mxu2 %v19907_v16  ;;  %v10047_v47 = vpop.f32.mrf.mxu0 }
0x11f7   : > { %v10345_v55 = vpop.f32.mrf.mxu2  ;;  %v10229_v61 = vpack.c.bf16 %v10047_v47, %v10047_v47 }
0x11f8   : > { %v10297_v25 = vpop.f32.mrf.mxu3  ;;  %v18574_v8 = vadd.f32 %v10345_v55, %v14373_v37 }
0x11f9   : > { %v18569_v15 = vadd.f32 %v10297_v25, %v14373_v37 }
0x11fa   : > { %v10767_v39 = vsel %vm1367_vm2, %v18574_v8, -inf }
0x11fb   : > { %v10758_v29 = vsel %vm1367_vm2, %v18569_v15, -inf }
0x11fc   : > { %10759 = vmax.xlane.f32.xlu2 %v10758_v29 }
0x11fe   : > { %v10049_v26 = vpop.f32.mrf.mxu0 }
0x11ff   : > { %v10347_v23 = vpop.f32.mrf.mxu2 }
0x1200   : > { %v10299_v44 = vpop.f32.mrf.mxu3 }
0x1201   : > { %v10228_v44 = vpack.c.bf16 %v10044_v54, %v10044_v54 }
0x1204   : > { %10768 = vmax.xlane.f32.xlu2 %v10767_v39  ;;  %12818 = vmatmul.msk.bf16.vlgmr.msrb.gmra.mxu2 %vm452_vm0, %v10229_v61  ;;  %v19910_v39 = vld [vmem:[#allocation94_spill] sm:$0xff] }
0x1205   : > { %12779 = vmatmul.msk.bf16.gmra.mxu1 %vm452_vm0, %v19736_v14  ;;  %12815 = vmatmul.msk.bf16.vlgmr.msrb.gmra.mxu3 %vm452_vm0, %v10226_v38 }
0x1206   : > { %10647 = vmatpush.bf16.xpose.msrb.mxu3 %v19908_v34  ;;  %10695 = vmatpush.bf16.xpose.msrb.mxu2 %v19909_v60  ;;  %v10052_v47 = vpop.f32.mrf.mxu0  ;;  %v19912_v34 = vld [vmem:[#allocation54_spill] sm:$0xff]  ;;  %v19913_v60 = vld [vmem:[#allocation59_spill] sm:$0xff] }
0x1207   : > { %v10377_v40 = vpop.f32.mrf.mxu2  ;;  %v10231_v61 = vpack.c.bf16 %v10052_v47, %v10052_v47 }
0x1208   : > { %v10329_v45 = vpop.f32.mrf.mxu3  ;;  %v18590_v14 = vadd.f32 %v10377_v40, %v14373_v37 }
0x1209   : > { %v18585_v19 = vadd.f32 %v10329_v45, %v14373_v37 }
0x120a   : > { %v10773_v23 = vsel %vm1367_vm2, %v18590_v14, -inf }
0x120b   : > { %v10764_v55 = vsel %vm1367_vm2, %v18585_v19, -inf }
0x120c   : > { %10765 = vmax.xlane.f32.xlu1 %v10764_v55 }
0x120f   : > { %v10379_v25 = vpop.f32.mrf.mxu2 }
0x1210   : > { %v10331_v16 = vpop.f32.mrf.mxu3  ;;  %v10054_v25 = vpop.f32.mrf.mxu0 }
0x1211   : > { %v9627_v29 = vpop.f32.mrf.mxu1 }
0x1212   : > { %v18595_v38 = vadd.f32 %v9627_v29, %v19910_v39  ;;  %v10230_v39 = vpack.c.bf16 %v10049_v26, %v10049_v26 }
0x1214   : > { %19911 = vst [vmem:[#allocation99_spill] sm:$0xff] %v18595_v38  ;;  %10774 = vmax.xlane.f32.xlu1 %v10773_v23  ;;  %12820 = vmatmul.msk.bf16.vlgmr.msra.gmra.mxu2 %vm452_vm0, %v10231_v61 }
0x1215   : > { %12780 = vmatmul.msk.bf16.gmra.mxu1 %vm452_vm0, %v19737_v33  ;;  %12817 = vmatmul.msk.bf16.vlgmr.msra.gmra.mxu3 %vm452_vm0, %v10228_v44 }
0x1216   : > { %10679 = vmatpush.bf16.xpose.msra.mxu3 %v19912_v34  ;;  %10727 = vmatpush.bf16.xpose.msra.mxu2 %v19913_v60  ;;  %v19914_v34 = vld [vmem:[#allocation56_spill] sm:$0xff] }
0x1217   : > { %v10409_v40 = vpop.f32.mrf.mxu2 }
0x1218   : > { %v10361_v45 = vpop.f32.mrf.mxu3  ;;  %v18609_v33 = vadd.f32 %v10409_v40, %v14373_v37  ;;  %v10057_v47 = vpop.f32.mrf.mxu0 }
0x1219   : > { %v18604_v54 = vadd.f32 %v10361_v45, %v14373_v37  ;;  %v9629_v55 = vpop.f32.mrf.mxu1  ;;  %v10233_v61 = vpack.c.bf16 %v10057_v47, %v10057_v47 }
0x121a   : > { %v10779_v44 = vsel %vm1367_vm2, %v18609_v33, -inf }
0x121b   : > { %v10770_v16 = vsel %vm1367_vm2, %v18604_v54, -inf }
0x121c   : > { %10771 = vmax.xlane.f32.xlu0 %v10770_v16 }
0x121f   : > { %v10411_v29 = vpop.f32.mrf.mxu2 }
0x1220   : > { %v10363_v23 = vpop.f32.mrf.mxu3  ;;  %v10059_v16 = vpop.f32.mrf.mxu0 }
0x1224   : > { %10780 = vmax.xlane.f32.xlu0 %v10779_v44  ;;  %12822 = vmatmul.msk.bf16.vlgmr.msrb.gmra.mxu2 %vm452_vm0, %v10233_v61  ;;  %v10232_v44 = vpack.c.bf16 %v10054_v25, %v10054_v25 }
0x1225   : > { %12781 = vmatmul.msk.bf16.gmra.mxu1 %vm452_vm0, %v19740_v3  ;;  %12819 = vmatmul.msk.bf16.vlgmr.msrb.gmra.mxu3 %vm452_vm0, %v10230_v39  ;;  %v19915_v39 = vld [vmem:[#allocation60_spill] sm:$0xff] }
0x1226   : > { %10711 = vmatpush.bf16.xpose.msrb.mxu3 %v19914_v34 }
0x1227   : > { %v10441_v45 = vpop.f32.mrf.mxu2 }
0x1228   : > { %v10393_v40 = vpop.f32.mrf.mxu3  ;;  %v18624_v55 = vadd.f32 %v10441_v45, %v14373_v37  ;;  %v10062_v34 = vpop.f32.mrf.mxu0 }
0x1229   : > { %v18619_v60 = vadd.f32 %v10393_v40, %v14373_v37 }
0x122a   : > { %v10785_v23 = vsel %vm1367_vm2, %v18624_v55, -inf }
0x122b   : > { %v10776_v26 = vsel %vm1367_vm2, %v18619_v60, -inf }
0x122c   : > { %10777 = vmax.xlane.f32.xlu2 %v10776_v26  ;;  %v10235_v26 = vpack.c.bf16 %v10062_v34, %v10062_v34 }
0x122f   : > { %v10443_v3 = vpop.f32.mrf.mxu2 }
0x1230   : > { %v10395_v29 = vpop.f32.mrf.mxu3  ;;  %v19916_v3 = vld [vmem:[#allocation96_spill] sm:$0xff] }
0x1234   : > { %10786 = vmax.xlane.f32.xlu2 %v10785_v23  ;;  %12824 = vmatmul.msk.bf16.vlgmr.msra.gmra.mxu2 %vm452_vm0, %v10235_v26 }
0x1235   : > { %12782 = vmatmul.msk.bf16.gmra.mxu1 %vm452_vm0, %v19741_v63  ;;  %12821 = vmatmul.msk.bf16.vlgmr.msra.gmra.mxu3 %vm452_vm0, %v10232_v44 }
0x1236   : > { %10743 = vmatpush.bf16.xpose.msra.mxu3 %v19915_v39  ;;  %v10234_v39 = vpack.c.bf16 %v10059_v16, %v10059_v16 }
0x1237   : > { %v10473_v47 = vpop.f32.mrf.mxu2 }
0x1238   : > { %v10425_v61 = vpop.f32.mrf.mxu3  ;;  %v18650_v26 = vadd.f32 %v10473_v47, %v14373_v37 }
0x1239   : > { %v18633_v45 = vadd.f32 %v10425_v61, %v14373_v37  ;;  %v9703_v40 = vpop.f32.mrf.mxu1 }
0x123a   : > { %v18636_v29 = vadd.f32 %v9703_v40, %v19916_v3 }
0x123b   : > { %v10782_v25 = vsel %vm1367_vm2, %v18633_v45, -inf }
0x123c   : > { %19917 = vst [vmem:[#allocation76_spill] sm:$0xff] %v18636_v29  ;;  %10783 = vmax.xlane.f32.xlu1 %v10782_v25  ;;  %v10064_v25 = vpop.f32.mrf.mxu0 }
0x123f   : > { %v10475_v63 = vpop.f32.mrf.mxu2 }
0x1240   : > { %v10427_v23 = vpop.f32.mrf.mxu3  ;;  %v10751_v63 = vpop.xlane.xlu2 %10750 }
0x1241   : > { %v9705_v44 = vpop.f32.mrf.mxu1  ;;  %v10845_v59 = vsub.f32 %v18519_v27, %v10751_v63 }
0x1243   : > { %v10877_v47 = vmul.f32 1.442695, %v10845_v59  ;;  %v19920_v59 = vld [vmem:[#allocation86_spill] sm:$0xff] }
0x1245   : > { %12783 = vmatmul.msk.bf16.gmra.mxu1 %vm452_vm0, %v19744_v6  ;;  %12823 = vmatmul.msk.bf16.vlgmr.msrb.gmra.mxu3 %vm452_vm0, %v10234_v39  ;;  %v10791_v6 = vsel %vm1367_vm2, %v18650_v26, -inf  ;;  %v10236_v39 = vpack.c.bf16 %v10064_v25, %v10064_v25  ;;  %13652 = vpow2.f32 %v10877_v47 }
0x1247   : > { %v10505_v61 = vpop.f32.mrf.mxu2 }
0x1248   : > { %v10457_v34 = vpop.f32.mrf.mxu3  ;;  %v18675_v47 = vadd.f32 %v10505_v61, %v14373_v37 }
0x1249   : > { %v18645_v40 = vadd.f32 %v10457_v34, %v14373_v37  ;;  %v19918_v34 = vld [vmem:[#allocation93_spill] sm:$0xff] }
0x124b   : > { %v10788_v3 = vsel %vm1367_vm2, %v18645_v40, -inf  ;;  %v18666_v63 = vpop.eup %13652 }
0x124c   : > { %10789 = vmax.xlane.f32.xlu0 %v10788_v3 }
0x124f   : > { %v10507_v16 = vpop.f32.mrf.mxu2 }
0x1250   : > { %v10459_v23 = vpop.f32.mrf.mxu3 }
0x1251   : > { %v9779_v44 = vpop.f32.mrf.mxu1 }
0x1252   : > { %v18656_v50 = vadd.f32 %v9779_v44, %v19918_v34 }
0x1254   : > { %19919 = vst [vmem:[#allocation74_spill] sm:$0xff] %v18656_v50  ;;  %10792 = vmax.xlane.f32.xlu0 %v10791_v6 }
0x1255   : > { %12784 = vmatmul.msk.bf16.gmra.mxu1 %vm452_vm0, %v19624_v52  ;;  %12825 = vmatmul.msk.bf16.vlgmr.msra.gmra.mxu3 %vm452_vm0, %v10236_v39 }
0x1257   : > { %v10537_v39 = vpop.f32.mrf.mxu2 }
0x1258   : > { %v10489_v3 = vpop.f32.mrf.mxu3 }
0x1259   : > { %v18662_v16 = vadd.f32 %v10489_v3, %v14373_v37  ;;  %v9781_v23 = vpop.f32.mrf.mxu1  ;;  %v10941_v3 = vsel %vm1367_vm2, %v18666_v63, 0.0 }
0x125a   : > { %v10757_v23 = vpop.xlane.xlu1 %10756 }
0x125b   : > { %v10794_v25 = vsel %vm1367_vm2, %v18662_v16, -inf }
0x125c   : > { %10795 = vmax.xlane.f32.xlu1 %v10794_v25  ;;  %v10797_v25 = vsel %vm1367_vm2, %v18675_v47, -inf }
0x125f   : > { %v10754_v27 = vpop.xlane.xlu0 %10753 }
0x1260   : > { %v10846_v44 = vsub.f32 %v18550_v28, %v10754_v27  ;;  %v10491_v6 = vpop.f32.mrf.mxu3 }
0x1262   : > { %v10879_v52 = vmul.f32 1.442695, %v10846_v44  ;;  %v9855_v34 = vpop.f32.mrf.mxu1  ;;  %v10847_v44 = vsub.f32 %v18533_v32, %v10757_v23 }
0x1263   : > { %v18670_v24 = vadd.f32 %v9855_v34, %v19920_v59  ;;  %v10539_v34 = vpop.f32.mrf.mxu2 }
0x1264   : > { %13654 = vpow2.f32 %v10879_v52  ;;  %10942 = vadd.xlane.f32.xlu1 %v10941_v3  ;;  %v10881_v61 = vmul.f32 1.442695, %v10847_v44 }
0x1265   : > { %19921 = vst [vmem:[#allocation100_spill] sm:$0xff] %v18670_v24  ;;  %12785 = vmatmul.msk.bf16.gmra.mxu1 %vm452_vm0, %v19626_v7 }
0x1266   : > { %13656 = vpow2.f32 %v10881_v61 }
0x1268   : > { %v10521_v28 = vpop.f32.mrf.mxu3 }
0x1269   : > { %v18687_v59 = vadd.f32 %v10521_v28, %v14373_v37  ;;  %v10763_v28 = vpop.xlane.xlu0 %10762 }
0x126a   : > { %v18681_v27 = vpop.eup %13654  ;;  %v9857_v6 = vpop.f32.mrf.mxu1 }
0x126b   : > { %v10944_v52 = vsel %vm1367_vm2, %v18681_v27, 0.0  ;;  %v10569_v9 = vpop.f32.mrf.mxu2  ;;  %v10800_v23 = vsel %vm1367_vm2, %v18687_v59, -inf  ;;  %v10849_v6 = vsub.f32 %v18558_v17, %v10763_v28 }
0x126c   : > { %10945 = vadd.xlane.f32.xlu2 %v10944_v52  ;;  %10798 = vmax.xlane.f32.xlu1 %v10797_v25  ;;  %v18695_v44 = vpop.eup %13656 }
0x126d   : > { %v10885_v17 = vmul.f32 1.442695, %v10849_v6 }
0x126f   : > { %v10760_v7 = vpop.xlane.xlu2 %10759 }
0x1270   : > { %v10848_v3 = vsub.f32 %v18569_v15, %v10760_v7  ;;  %v10523_v24 = vpop.f32.mrf.mxu3  ;;  %v18706_v7 = vadd.f32 %v10537_v39, %v14373_v37 }
0x1272   : > { %v10883_v20 = vmul.f32 1.442695, %v10848_v3  ;;  %v10125_v57 = vpop.f32.mrf.mxu1  ;;  %v10803_v28 = vsel %vm1367_vm2, %v18706_v7, -inf }
0x1273   : > { %v11133_v32 = vpack.c.bf16 %v10125_v57, %v10125_v57  ;;  %v10571_v34 = vpop.f32.mrf.mxu2 }
0x1274   : > { %13658 = vpow2.f32 %v10883_v20  ;;  %10801 = vmax.xlane.f32.xlu2 %v10800_v23  ;;  %v10947_v20 = vsel %vm1367_vm2, %v18695_v44, 0.0 }
0x1275   : > { %v11169_v25 = vsel %vm1787_vm3, %v11133_v32, 0  ;;  %12786 = vmatmul.msk.bf16.gmra.mxu1 %vm452_vm0, %v19628_v53  ;;  %13660 = vpow2.f32 %v10885_v17 }
0x1276   : > { %11178 = vmatpush.bf16.msrb.mxu2 %v11169_v25 }
0x1278   : > { %v10553_v24 = vpop.f32.mrf.mxu3 }
0x1279   : > { %v18709_v3 = vadd.f32 %v10553_v24, %v14373_v37 }
0x127a   : > { %v18697_v15 = vpop.eup %13658  ;;  %v10127_v57 = vpop.f32.mrf.mxu1 }
0x127b   : > { %v11134_v52 = vpack.c.bf16 %v10127_v57, %v10127_v57  ;;  %v10950_v61 = vsel %vm1367_vm2, %v18697_v15, 0.0  ;;  %v10806_v57 = vsel %vm1367_vm2, %v18709_v3, -inf  ;;  %v10601_v39 = vpop.f32.mrf.mxu2  ;;  %v18719_v6 = vpop.eup %13660 }
0x127c   : > { %10948 = vadd.xlane.f32.xlu2 %v10947_v20  ;;  %10951 = vadd.xlane.f32.xlu0 %v10950_v61 }
0x127d   : > { %v11188_v53 = vsel %vm1787_vm3, %v11134_v52, 0 }
0x127e   : > { %11197 = vmatpush.bf16.msrb.mxu3 %v11188_v53 }
0x127f   : > { %v10766_v32 = vpop.xlane.xlu1 %10765 }
0x1280   : > { %v10850_v23 = vsub.f32 %v18585_v19, %v10766_v32  ;;  %v10555_v25 = vpop.f32.mrf.mxu3  ;;  %v10769_v19 = vpop.xlane.xlu2 %10768 }
0x1281   : > { %v10851_v17 = vsub.f32 %v18574_v8, %v10769_v19 }
0x1282   : > { %v10887_v34 = vmul.f32 1.442695, %v10850_v23  ;;  %v10130_v52 = vpop.f32.mrf.mxu1 }
0x1283   : > { %v11135_v20 = vpack.c.bf16 %v10130_v52, %v10130_v52  ;;  %v10603_v23 = vpop.f32.mrf.mxu2  ;;  %v10889_v8 = vmul.f32 1.442695, %v10851_v17 }
0x1284   : > { %13662 = vpow2.f32 %v10887_v34  ;;  %10804 = vmax.xlane.f32.xlu2 %v10803_v28  ;;  %10807 = vmax.xlane.f32.xlu0 %v10806_v57  ;;  %v10953_v57 = vsel %vm1367_vm2, %v18719_v6, 0.0  ;;  %v18730_v34 = vadd.f32 %v10569_v9, %v14373_v37 }
0x1285   : > { %v11207_v24 = vsel %vm1787_vm3, %v11135_v20, 0  ;;  %12787 = vmatmul.msk.bf16.gmra.mxu1 %vm452_vm0, %v19849_v62  ;;  %13664 = vpow2.f32 %v10889_v8 }
0x1286   : > { %11216 = vmatpush.bf16.msrb.mxu0 %v11207_v24  ;;  %v10809_v23 = vsel %vm1367_vm2, %v18730_v34, -inf }
0x1288   : > { %v10585_v61 = vpop.f32.mrf.mxu3 }
0x1289   : > { %v18733_v52 = vadd.f32 %v10585_v61, %v14373_v37 }
0x128a   : > { %v18721_v53 = vpop.eup %13662  ;;  %v10132_v32 = vpop.f32.mrf.mxu1 }
0x128b   : > { %v11136_v25 = vpack.c.bf16 %v10132_v32, %v10132_v32  ;;  %v10956_v28 = vsel %vm1367_vm2, %v18721_v53, 0.0  ;;  %v10812_v32 = vsel %vm1367_vm2, %v18733_v52, -inf  ;;  %v10633_v9 = vpop.f32.mrf.mxu2  ;;  %v18743_v17 = vpop.eup %13664 }
0x128c   : > { %10957 = vadd.xlane.f32.xlu1 %v10956_v28  ;;  %10954 = vadd.xlane.f32.xlu0 %v10953_v57 }
0x128d   : > { %v11226_v62 = vsel %vm1787_vm3, %v11136_v25, 0 }
0x128e   : > { %11235 = vmatpush.bf16.msrb.mxu1 %v11226_v62 }
0x128f   : > { %v10772_v20 = vpop.xlane.xlu0 %10771 }
0x1290   : > { %v10852_v24 = vsub.f32 %v18604_v54, %v10772_v20  ;;  %v10587_v19 = vpop.f32.mrf.mxu3  ;;  %v10775_v54 = vpop.xlane.xlu1 %10774 }
0x1291   : > { %v10853_v8 = vsub.f32 %v18590_v14, %v10775_v54 }
0x1292   : > { %v10891_v25 = vmul.f32 1.442695, %v10852_v24  ;;  %v10135_v28 = vpop.f32.mrf.mxu1 }
0x1293   : > { %v11137_v57 = vpack.c.bf16 %v10135_v28, %v10135_v28  ;;  %v10635_v19 = vpop.f32.mrf.mxu2  ;;  %v10893_v28 = vmul.f32 1.442695, %v10853_v8 }
0x1294   : > { %13666 = vpow2.f32 %v10891_v25  ;;  %10813 = vmax.xlane.f32.xlu1 %v10812_v32  ;;  %10810 = vmax.xlane.f32.xlu0 %v10809_v23  ;;  %v10959_v23 = vsel %vm1367_vm2, %v18743_v17, 0.0 }
0x1295   : > { %v11245_v61 = vsel %vm1787_vm3, %v11137_v57, 0  ;;  %12788 = vmatmul.msk.bf16.gmra.mxu1 %vm452_vm0, %v19851_v5  ;;  %v18755_v5 = vadd.f32 %v10601_v39, %v14373_v37  ;;  %13668 = vpow2.f32 %v10893_v28 }
0x1296   : > { %11254 = vmatpush.bf16.msra.mxu2 %v11245_v61 }
0x1297   : > { %v10815_v19 = vsel %vm1367_vm2, %v18755_v5, -inf }
0x1298   : > { %v10617_v62 = vpop.f32.mrf.mxu3 }
0x1299   : > { %v18758_v25 = vadd.f32 %v10617_v62, %v14373_v37 }
0x129a   : > { %v18745_v20 = vpop.eup %13666  ;;  %v18748_v24 = vpop.f32.mrf.mxu1 }
0x129b   : > { %v10962_v32 = vsel %vm1367_vm2, %v18745_v20, 0.0  ;;  %v10818_v54 = vsel %vm1367_vm2, %v18758_v25, -inf  ;;  %v10665_v50 = vpop.f32.mrf.mxu2  ;;  %v18768_v8 = vpop.eup %13668 }
0x129c   : > { %10963 = vadd.xlane.f32.xlu2 %v10962_v32  ;;  %10960 = vadd.xlane.f32.xlu1 %v10959_v23 }
0x129f   : > { %v10778_v57 = vpop.xlane.xlu2 %10777 }
0x12a0   : > { %v10854_v14 = vsub.f32 %v18619_v60, %v10778_v57  ;;  %v10619_v61 = vpop.f32.mrf.mxu3  ;;  %v10781_v60 = vpop.xlane.xlu0 %10780 }
0x12a1   : > { %v10855_v28 = vsub.f32 %v18609_v33, %v10781_v60 }
0x12a2   : > { %v10895_v32 = vmul.f32 1.442695, %v10854_v14  ;;  %v10140_v23 = vpop.f32.mrf.mxu1 }
0x12a3   : > { %v11139_v39 = vpack.c.bf16 %v10140_v23, %v10140_v23  ;;  %v10667_v23 = vpop.f32.mrf.mxu2 }
0x12a4   : > { %13670 = vpow2.f32 %v10895_v32  ;;  %10819 = vmax.xlane.f32.xlu2 %v10818_v54  ;;  %10816 = vmax.xlane.f32.xlu1 %v10815_v19  ;;  %v10965_v54 = vsel %vm1367_vm2, %v18768_v8, 0.0 }
0x12a5   : > { %v11283_v62 = vsel %vm1787_vm3, %v11139_v39, 0  ;;  %12789 = vmatmul.msk.bf16.gmra.mxu1 %vm452_vm0, %v19859_v2  ;;  %v18780_v2 = vadd.f32 %v10633_v9, %v14373_v37  ;;  %v10897_v39 = vmul.f32 1.442695, %v10855_v28 }
0x12a6   : > { %11292 = vmatpush.bf16.msra.mxu0 %v11283_v62 }
0x12a7   : > { %v10821_v23 = vsel %vm1367_vm2, %v18780_v2, -inf  ;;  %13672 = vpow2.f32 %v10897_v39 }
0x12a8   : > { %v10649_v57 = vpop.f32.mrf.mxu3 }
0x12a9   : > { %v18783_v32 = vadd.f32 %v10649_v57, %v14373_v37  ;;  %v10787_v57 = vpop.xlane.xlu2 %10786 }
0x12aa   : > { %v18770_v61 = vpop.eup %13670  ;;  %v18773_v14 = vpop.f32.mrf.mxu1 }
0x12ab   : > { %v10968_v19 = vsel %vm1367_vm2, %v18770_v61, 0.0  ;;  %v10824_v56 = vsel %vm1367_vm2, %v18783_v32, -inf  ;;  %v10697_v9 = vpop.f32.mrf.mxu2 }
0x12ac   : > { %10966 = vadd.xlane.f32.xlu2 %v10965_v54  ;;  %10969 = vadd.xlane.f32.xlu0 %v10968_v19 }
0x12af   : > { %v10784_v62 = vpop.xlane.xlu1 %10783 }
0x12b0   : > { %v10856_v33 = vsub.f32 %v18633_v45, %v10784_v62  ;;  %v10651_v60 = vpop.f32.mrf.mxu3  ;;  %v18794_v45 = vpop.eup %13672 }
0x12b1   : > { %v10857_v60 = vsub.f32 %v18624_v55, %v10787_v57 }
0x12b2   : > { %v10899_v54 = vmul.f32 1.442695, %v10856_v33  ;;  %v18790_v19 = vpop.f32.mrf.mxu1 }
0x12b3   : > { %v10699_v39 = vpop.f32.mrf.mxu2 }
0x12b4   : > { %13674 = vpow2.f32 %v10899_v54  ;;  %10822 = vmax.xlane.f32.xlu2 %v10821_v23  ;;  %10825 = vmax.xlane.f32.xlu0 %v10824_v56  ;;  %v10971_v56 = vsel %vm1367_vm2, %v18794_v45, 0.0  ;;  %v10901_v54 = vmul.f32 1.442695, %v10857_v60 }
0x12b5   : > { %12790 = vmatmul.msk.bf16.gmra.mxu1 %vm452_vm0, %v19865_v0  ;;  %v18806_v0 = vadd.f32 %v10665_v50, %v14373_v37 }
0x12b6   : > { %13676 = vpow2.f32 %v10901_v54 }
0x12b7   : > { %v10827_v29 = vsel %vm1367_vm2, %v18806_v0, -inf }
0x12b8   : > { %v10681_v28 = vpop.f32.mrf.mxu3 }
0x12b9   : > { %v18809_v23 = vadd.f32 %v10681_v28, %v14373_v37 }
0x12ba   : > { %v18796_v62 = vpop.eup %13674  ;;  %v18799_v22 = vpop.f32.mrf.mxu1 }
0x12bb   : > { %v10974_v33 = vsel %vm1367_vm2, %v18796_v62, 0.0  ;;  %v10830_v39 = vsel %vm1367_vm2, %v18809_v23, -inf  ;;  %v10729_v50 = vpop.f32.mrf.mxu2 }
0x12bc   : > { %10975 = vadd.xlane.f32.xlu1 %v10974_v33  ;;  %10972 = vadd.xlane.f32.xlu0 %v10971_v56 }
0x12bf   : > { %v10790_v58 = vpop.xlane.xlu0 %10789 }
0x12c0   : > { %v10858_v55 = vsub.f32 %v18645_v40, %v10790_v58  ;;  %v10683_v57 = vpop.f32.mrf.mxu3  ;;  %v18820_v58 = vpop.eup %13676 }
0x12c2   : > { %v10903_v33 = vmul.f32 1.442695, %v10858_v55  ;;  %v18816_v56 = vpop.f32.mrf.mxu1 }
0x12c3   : > { %v10731_v54 = vpop.f32.mrf.mxu2 }
0x12c4   : > { %13678 = vpow2.f32 %v10903_v33  ;;  %10831 = vmax.xlane.f32.xlu1 %v10830_v39  ;;  %10828 = vmax.xlane.f32.xlu0 %v10827_v29  ;;  %v10977_v29 = vsel %vm1367_vm2, %v18820_v58, 0.0 }
0x12c5   : > { %12791 = vmatmul.msk.bf16.gmra.mxu1 %vm452_vm0, %v19873_v11  ;;  %v18832_v11 = vadd.f32 %v10697_v9, %v14373_v37 }
0x12c7   : > { %v10793_v28 = vpop.xlane.xlu0 %10792  ;;  %v10833_v38 = vsel %vm1367_vm2, %v18832_v11, -inf }
0x12c8   : > { %v10713_v40 = vpop.f32.mrf.mxu3  ;;  %v10859_v57 = vsub.f32 %v18650_v26, %v10793_v28 }
0x12c9   : > { %v18835_v39 = vadd.f32 %v10713_v40, %v14373_v37 }
0x12ca   : > { %v18822_v60 = vpop.eup %13678  ;;  %v18825_v48 = vpop.f32.mrf.mxu1  ;;  %v10905_v33 = vmul.f32 1.442695, %v10859_v57 }
0x12cb   : > { %v10980_v55 = vsel %vm1367_vm2, %v18822_v60, 0.0  ;;  %v10836_v54 = vsel %vm1367_vm2, %v18835_v39, -inf }
0x12cc   : > { %10981 = vadd.xlane.f32.xlu2 %v10980_v55  ;;  %10978 = vadd.xlane.f32.xlu1 %v10977_v29  ;;  %13680 = vpow2.f32 %v10905_v33 }
0x12cf   : > { %v10796_v4 = vpop.xlane.xlu1 %10795 }
0x12d0   : > { %v10860_v26 = vsub.f32 %v18662_v16, %v10796_v4  ;;  %v10715_v28 = vpop.f32.mrf.mxu3 }
0x12d2   : > { %v10907_v55 = vmul.f32 1.442695, %v10860_v26  ;;  %v18842_v29 = vpop.f32.mrf.mxu1  ;;  %v18846_v40 = vpop.eup %13680 }
0x12d3   : > { %v10983_v33 = vsel %vm1367_vm2, %v18846_v40, 0.0 }
0x12d4   : > { %13682 = vpow2.f32 %v10907_v55  ;;  %10837 = vmax.xlane.f32.xlu2 %v10836_v54  ;;  %10834 = vmax.xlane.f32.xlu1 %v10833_v38  ;;  %v18859_v38 = vadd.f32 %v10729_v50, %v14373_v37 }
0x12d5   : > { %12792 = vmatmul.msk.bf16.gmra.mxu1 %vm452_vm0, %v19876_v18  ;;  %v11141_v18 = vpack.c.bf16 %v18790_v19, %v18790_v19 }
0x12d7   : > { %v10943_v9 = vpop.xlane.xlu1 %10942  ;;  %v11321_v1 = vsel %vm1787_vm3, %v11141_v18, 0 }
0x12d8   : > { %13684 = vrcp.f32 %v10943_v9  ;;  %v10745_v4 = vpop.f32.mrf.mxu3 }
0x12da   : > { %v18848_v16 = vpop.eup %13682  ;;  %v18850_v57 = vpop.f32.mrf.mxu1 }
0x12db   : > { %v10986_v26 = vsel %vm1367_vm2, %v18848_v16, 0.0 }
0x12dc   : > { %10984 = vadd.xlane.f32.xlu2 %v10983_v33  ;;  %10987 = vadd.xlane.f32.xlu0 %v10986_v26  ;;  %v10839_v33 = vsel %vm1367_vm2, %v18859_v38, -inf }
0x12de   : > { %v13685_v28 = vpop.eup %13684 }
0x12df   : > { %v11069_v54 = vmul.f32 %v13685_v28, %v18666_v63  ;;  %v10799_v55 = vpop.xlane.xlu1 %10798  ;;  %v10946_v9 = vpop.xlane.xlu2 %10945  ;;  %v11138_v63 = vpack.c.bf16 %v18748_v24, %v18748_v24 }
0x12e0   : > { %v10861_v42 = vsub.f32 %v18675_v47, %v10799_v55  ;;  %13686 = vrcp.f32 %v10946_v9  ;;  %v10747_v41 = vpop.f32.mrf.mxu3 }
0x12e1   : > { %v11101_v21 = vpack.c.bf16 %v11069_v54, %v11069_v54  ;;  %v11264_v28 = vsel %vm1787_vm3, %v11138_v63, 0  ;;  %v11143_v63 = vpack.c.bf16 %v18816_v56, %v18816_v56 }
0x12e2   : > { %v10909_v26 = vmul.f32 1.442695, %v10861_v42  ;;  %v18866_v19 = vpop.f32.mrf.mxu1  ;;  %11273 = vmatpush.bf16.msra.mxu3 %v11264_v28 }
0x12e3   : > { %12826 = vmatmul.msk.bf16.vlgmr.msrb.gmra.mxu2 %vm1367_vm2, %v11101_v21 }
0x12e4   : > { %13688 = vpow2.f32 %v10909_v26  ;;  %10840 = vmax.xlane.f32.xlu2 %v10839_v33  ;;  %11330 = vmatpush.bf16.msrb.mxu2 %v11321_v1 }
0x12e5   : > { %12793 = vmatmul.msk.bf16.gmra.mxu1 %vm452_vm0, %v19884_v31  ;;  %v18884_v31 = vadd.f32 %v10745_v4, %v14373_v37  ;;  %v11140_v37 = vpack.c.bf16 %v18773_v14, %v18773_v14  ;;  %v11359_v14 = vsel %vm1787_vm3, %v11143_v63, 0 }
0x12e6   : > { %v13687_v41 = vpop.eup %13686 }
0x12e7   : > { %v11070_v47 = vmul.f32 %v13687_v41, %v18681_v27  ;;  %v10802_v50 = vpop.xlane.xlu2 %10801  ;;  %v10842_v33 = vsel %vm1367_vm2, %v18884_v31, -inf }
0x12e8   : > { %v10862_v18 = vsub.f32 %v18687_v59, %v10802_v50 }
0x12e9   : > { %v11102_v42 = vpack.c.bf16 %v11070_v47, %v11070_v47 }
0x12ea   : > { %v18876_v54 = vpop.eup %13688  ;;  %v10911_v21 = vmul.f32 1.442695, %v10862_v18  ;;  %v18878_v55 = vpop.f32.mrf.mxu1 }
0x12eb   : > { %12827 = vmatmul.msk.bf16.vlgmr.msrb.gmra.mxu3 %vm1367_vm2, %v11102_v42  ;;  %v10989_v1 = vsel %vm1367_vm2, %v18876_v54, 0.0 }
0x12ec   : > { %13690 = vpow2.f32 %v10911_v21  ;;  %10990 = vadd.xlane.f32.xlu0 %v10989_v1 }
0x12ef   : > { %v10952_v27 = vpop.xlane.xlu0 %10951  ;;  %v10949_v59 = vpop.xlane.xlu2 %10948 }
0x12f0   : > { %13692 = vrcp.f32 %v10952_v27  ;;  %v11302_v27 = vsel %vm1787_vm3, %v11140_v37, 0 }
0x12f1   : > { %13694 = vrcp.f32 %v10949_v59  ;;  %11311 = vmatpush.bf16.msra.mxu1 %v11302_v27 }
0x12f2   : > { %v18886_v24 = vpop.eup %13690  ;;  %v18888_v9 = vpop.f32.mrf.mxu1 }
0x12f3   : > { %v10992_v26 = vsel %vm1367_vm2, %v18886_v24, 0.0 }
0x12f4   : > { %10843 = vmax.xlane.f32.xlu0 %v10842_v33  ;;  %10993 = vadd.xlane.f32.xlu1 %v10992_v26 }
0x12f6   : > { %v13693_v4 = vpop.eup %13692 }
0x12f7   : > { %v13695_v41 = vpop.eup %13694  ;;  %v11072_v47 = vmul.f32 %v13693_v4, %v18697_v15  ;;  %v10808_v50 = vpop.xlane.xlu0 %10807 }
0x12f8   : > { %v10805_v18 = vpop.xlane.xlu2 %10804  ;;  %v11071_v42 = vmul.f32 %v13695_v41, %v18695_v44  ;;  %v10864_v28 = vsub.f32 %v18709_v3, %v10808_v50  ;;  %v11142_v41 = vpack.c.bf16 %v18799_v22, %v18799_v22  ;;  %v11145_v50 = vpack.c.bf16 %v18842_v29, %v18842_v29 }
0x12f9   : > { %v10863_v21 = vsub.f32 %v18706_v7, %v10805_v18  ;;  %v11104_v1 = vpack.c.bf16 %v11072_v47, %v11072_v47 }
0x12fa   : > { %v11103_v59 = vpack.c.bf16 %v11071_v42, %v11071_v42  ;;  %v10915_v33 = vmul.f32 1.442695, %v10864_v28  ;;  %v18904_v56 = vpop.f32.mrf.mxu1  ;;  %v11397_v22 = vsel %vm1787_vm3, %v11145_v50, 0  ;;  %v11147_v50 = vpack.c.bf16 %v18866_v19, %v18866_v19 }
0x12fb   : > { %v10913_v26 = vmul.f32 1.442695, %v10863_v21  ;;  %12829 = vmatmul.msk.bf16.vlgmr.msrb.gmra.mxu1 %vm1367_vm2, %v11104_v1 }
0x12fc   : > { %13696 = vpow2.f32 %v10915_v33  ;;  %12828 = vmatmul.msk.bf16.vlgmr.msrb.gmra.mxu0 %vm1367_vm2, %v11103_v59  ;;  %v11340_v33 = vsel %vm1787_vm3, %v11142_v41, 0 }
0x12fd   : > { %13698 = vpow2.f32 %v10913_v26  ;;  %11368 = vmatpush.bf16.msrb.mxu0 %v11359_v14  ;;  %11349 = vmatpush.bf16.msrb.mxu3 %v11340_v33  ;;  %v11435_v33 = vsel %vm1787_vm3, %v11147_v50, 0  ;;  %v11149_v50 = vpack.c.bf16 %v18888_v9, %v18888_v9 }
0x12ff   : > { %v10958_v44 = vpop.xlane.xlu1 %10957  ;;  %v10955_v15 = vpop.xlane.xlu0 %10954 }
0x1300   : > { %13700 = vrcp.f32 %v10958_v44 }
0x1301   : > { %13702 = vrcp.f32 %v10955_v15 }
0x1302   : > { %v18908_v7 = vpop.eup %13696  ;;  %v18910_v3 = vpop.f32.mrf.mxu1 }
0x1303   : > { %v18912_v37 = vpop.eup %13698  ;;  %v10998_v4 = vsel %vm1367_vm2, %v18908_v7, 0.0 }
0x1304   : > { %10999 = vadd.xlane.f32.xlu2 %v10998_v4  ;;  %v10995_v63 = vsel %vm1367_vm2, %v18912_v37, 0.0 }
0x1305   : > { %10996 = vadd.xlane.f32.xlu1 %v10995_v63 }
0x1306   : > { %v13701_v47 = vpop.eup %13700 }
0x1307   : > { %v13703_v18 = vpop.eup %13702  ;;  %v11074_v42 = vmul.f32 %v13701_v47, %v18721_v53  ;;  %v10814_v28 = vpop.xlane.xlu1 %10813  ;;  %v11144_v47 = vpack.c.bf16 %v18825_v48, %v18825_v48 }
0x1308   : > { %v10811_v21 = vpop.xlane.xlu0 %10810  ;;  %v11073_v1 = vmul.f32 %v13703_v18, %v18719_v6  ;;  %v10866_v27 = vsub.f32 %v18733_v52, %v10814_v28 }
0x1309   : > { %v10865_v14 = vsub.f32 %v18730_v34, %v10811_v21  ;;  %v11106_v59 = vpack.c.bf16 %v11074_v42, %v11074_v42  ;;  %v11378_v48 = vsel %vm1787_vm3, %v11144_v47, 0 }
0x130a   : > { %v11105_v26 = vpack.c.bf16 %v11073_v1, %v11073_v1  ;;  %v10919_v44 = vmul.f32 1.442695, %v10866_v27  ;;  %v18928_v29 = vpop.f32.mrf.mxu1  ;;  %11387 = vmatpush.bf16.msrb.mxu1 %v11378_v48 }
0x130b   : > { %v10917_v15 = vmul.f32 1.442695, %v10865_v14  ;;  %12831 = vmatmul.msk.bf16.vlgmr.msra.gmra.mxu3 %vm1367_vm2, %v11106_v59 }
0x130c   : > { %13704 = vpow2.f32 %v10919_v44  ;;  %12830 = vmatmul.msk.bf16.vlgmr.msra.gmra.mxu2 %vm1367_vm2, %v11105_v26 }
0x130d   : > { %13706 = vpow2.f32 %v10917_v15  ;;  %11406 = vmatpush.bf16.msra.mxu2 %v11397_v22 }
0x130f   : > { %v10961_v6 = vpop.xlane.xlu1 %10960  ;;  %v10964_v53 = vpop.xlane.xlu2 %10963 }
0x1310   : > { %13708 = vrcp.f32 %v10961_v6 }
0x1311   : > { %13710 = vrcp.f32 %v10964_v53 }
0x1312   : > { %v18932_v34 = vpop.eup %13704  ;;  %v18934_v52 = vpop.f32.mrf.mxu1 }
0x1313   : > { %v18936_v4 = vpop.eup %13706  ;;  %v11004_v63 = vsel %vm1367_vm2, %v18932_v34, 0.0 }
0x1314   : > { %v11001_v41 = vsel %vm1367_vm2, %v18936_v4, 0.0  ;;  %11005 = vadd.xlane.f32.xlu1 %v11004_v63 }
0x1315   : > { %11002 = vadd.xlane.f32.xlu0 %v11001_v41  ;;  %v11146_v41 = vpack.c.bf16 %v18850_v57, %v18850_v57  ;;  %v11473_v57 = vsel %vm1787_vm3, %v11149_v50, 0 }
0x1316   : > { %v13709_v18 = vpop.eup %13708 }
0x1317   : > { %v13711_v42 = vpop.eup %13710  ;;  %v11075_v28 = vmul.f32 %v13709_v18, %v18743_v17  ;;  %v10817_v21 = vpop.xlane.xlu1 %10816 }
0x1318   : > { %v10820_v1 = vpop.xlane.xlu2 %10819  ;;  %v11076_v27 = vmul.f32 %v13711_v42, %v18745_v20  ;;  %v10867_v14 = vsub.f32 %v18755_v5, %v10817_v21 }
0x1319   : > { %v10868_v59 = vsub.f32 %v18758_v25, %v10820_v1  ;;  %v11107_v22 = vpack.c.bf16 %v11075_v28, %v11075_v28 }
0x131a   : > { %v11108_v26 = vpack.c.bf16 %v11076_v27, %v11076_v27  ;;  %v10921_v19 = vmul.f32 1.442695, %v10867_v14  ;;  %v18952_v15 = vpop.f32.mrf.mxu1 }
0x131b   : > { %v10923_v44 = vmul.f32 1.442695, %v10868_v59  ;;  %12832 = vmatmul.msk.bf16.vlgmr.msra.gmra.mxu0 %vm1367_vm2, %v11107_v22 }
0x131c   : > { %13712 = vpow2.f32 %v10921_v19  ;;  %12833 = vmatmul.msk.bf16.vlgmr.msra.gmra.mxu1 %vm1367_vm2, %v11108_v26  ;;  %11444 = vmatpush.bf16.msra.mxu0 %v11435_v33  ;;  %v11416_v33 = vsel %vm1787_vm3, %v11146_v41, 0 }
0x131d   : > { %13714 = vpow2.f32 %v10923_v44  ;;  %11425 = vmatpush.bf16.msra.mxu3 %v11416_v33 }
0x131f   : > { %v10970_v17 = vpop.xlane.xlu0 %10969 }
0x1320   : > { %v10967_v20 = vpop.xlane.xlu2 %10966  ;;  %13716 = vrcp.f32 %v10970_v17 }
0x1321   : > { %13718 = vrcp.f32 %v10967_v20  ;;  %v11148_v20 = vpack.c.bf16 %v18878_v55, %v18878_v55 }
0x1322   : > { %v18956_v5 = vpop.eup %13712  ;;  %v18958_v25 = vpop.f32.mrf.mxu1 }
0x1323   : > { %v18960_v6 = vpop.eup %13714  ;;  %v11007_v53 = vsel %vm1367_vm2, %v18956_v5, 0.0 }
0x1324   : > { %11008 = vadd.xlane.f32.xlu2 %v11007_v53  ;;  %v11010_v63 = vsel %vm1367_vm2, %v18960_v6, 0.0 }
0x1325   : > { %11011 = vadd.xlane.f32.xlu0 %v11010_v63  ;;  %v11151_v63 = vpack.c.bf16 %v18910_v3, %v18910_v3 }
0x1326   : > { %v13717_v47 = vpop.eup %13716 }
0x1327   : > { %v13719_v18 = vpop.eup %13718  ;;  %v11078_v42 = vmul.f32 %v13717_v47, %v18770_v61  ;;  %v10826_v28 = vpop.xlane.xlu0 %10825  ;;  %v11511_v55 = vsel %vm1787_vm3, %v11151_v63, 0 }
0x1328   : > { %v10823_v21 = vpop.xlane.xlu2 %10822  ;;  %v11077_v1 = vmul.f32 %v13719_v18, %v18768_v8  ;;  %v10870_v27 = vsub.f32 %v18783_v32, %v10826_v28 }
0x1329   : > { %v10869_v14 = vsub.f32 %v18780_v2, %v10823_v21  ;;  %v11110_v59 = vpack.c.bf16 %v11078_v42, %v11078_v42 }
0x132a   : > { %v11109_v22 = vpack.c.bf16 %v11077_v1, %v11077_v1  ;;  %v10927_v48 = vmul.f32 1.442695, %v10870_v27  ;;  %v18976_v9 = vpop.f32.mrf.mxu1  ;;  %v11454_v27 = vsel %vm1787_vm3, %v11148_v20, 0 }
0x132b   : > { %v10925_v26 = vmul.f32 1.442695, %v10869_v14  ;;  %12835 = vmatmul.msk.bf16.vlgmr.msrb.gmra.mxu3 %vm1367_vm2, %v11110_v59  ;;  %11463 = vmatpush.bf16.msra.mxu1 %v11454_v27 }
0x132c   : > { %13720 = vpow2.f32 %v10927_v48  ;;  %12834 = vmatmul.msk.bf16.vlgmr.msrb.gmra.mxu2 %vm1367_vm2, %v11109_v22 }
0x132d   : > { %13722 = vpow2.f32 %v10925_v26  ;;  %11482 = vmatpush.bf16.msrb.mxu2 %v11473_v57  ;;  %v11153_v26 = vpack.c.bf16 %v18934_v52, %v18934_v52 }
0x132f   : > { %v10976_v8 = vpop.xlane.xlu1 %10975  ;;  %v10973_v61 = vpop.xlane.xlu0 %10972 }
0x1330   : > { %13724 = vrcp.f32 %v10976_v8 }
0x1331   : > { %13726 = vrcp.f32 %v10973_v61 }
0x1332   : > { %v18980_v2 = vpop.eup %13720  ;;  %v18982_v32 = vpop.f32.mrf.mxu1 }
0x1333   : > { %v18984_v19 = vpop.eup %13722  ;;  %v11016_v44 = vsel %vm1367_vm2, %v18980_v2, 0.0 }
0x1334   : > { %11017 = vadd.xlane.f32.xlu2 %v11016_v44  ;;  %v11013_v17 = vsel %vm1367_vm2, %v18984_v19, 0.0 }
0x1335   : > { %11014 = vadd.xlane.f32.xlu1 %v11013_v17 }
0x1336   : > { %v13725_v53 = vpop.eup %13724 }
0x1337   : > { %v13727_v41 = vpop.eup %13726  ;;  %v11080_v47 = vmul.f32 %v13725_v53, %v18796_v62  ;;  %v10832_v50 = vpop.xlane.xlu1 %10831 }
0x1338   : > { %v10829_v18 = vpop.xlane.xlu0 %10828  ;;  %v11079_v42 = vmul.f32 %v13727_v41, %v18794_v45  ;;  %v10872_v28 = vsub.f32 %v18809_v23, %v10832_v50 }
0x1339   : > { %v10871_v21 = vsub.f32 %v18806_v0, %v10829_v18  ;;  %v11112_v1 = vpack.c.bf16 %v11080_v47, %v11080_v47  ;;  %v11549_v47 = vsel %vm1787_vm3, %v11153_v26, 0 }
0x133a   : > { %v11111_v14 = vpack.c.bf16 %v11079_v42, %v11079_v42  ;;  %v10931_v59 = vmul.f32 1.442695, %v10872_v28  ;;  %v19000_v3 = vpop.f32.mrf.mxu1 }
0x133b   : > { %v10929_v33 = vmul.f32 1.442695, %v10871_v21  ;;  %12837 = vmatmul.msk.bf16.vlgmr.msrb.gmra.mxu1 %vm1367_vm2, %v11112_v1 }
0x133c   : > { %13728 = vpow2.f32 %v10931_v59  ;;  %12836 = vmatmul.msk.bf16.vlgmr.msrb.gmra.mxu0 %vm1367_vm2, %v11111_v14  ;;  %v11155_v59 = vpack.c.bf16 %v18958_v25, %v18958_v25 }
0x133d   : > { %13730 = vpow2.f32 %v10929_v33  ;;  %11520 = vmatpush.bf16.msrb.mxu0 %v11511_v55 }
0x133f   : > { %v10979_v45 = vpop.xlane.xlu1 %10978  ;;  %v10982_v62 = vpop.xlane.xlu2 %10981 }
0x1340   : > { %13732 = vrcp.f32 %v10979_v45 }
0x1341   : > { %13734 = vrcp.f32 %v10982_v62 }
0x1342   : > { %v19004_v0 = vpop.eup %13728  ;;  %v19006_v23 = vpop.f32.mrf.mxu1 }
0x1343   : > { %v19008_v57 = vpop.eup %13730  ;;  %v11022_v22 = vsel %vm1367_vm2, %v19004_v0, 0.0 }
0x1344   : > { %v11019_v48 = vsel %vm1367_vm2, %v19008_v57, 0.0  ;;  %11023 = vadd.xlane.f32.xlu1 %v11022_v22 }
0x1345   : > { %11020 = vadd.xlane.f32.xlu0 %v11019_v48 }
0x1346   : > { %v13733_v8 = vpop.eup %13732 }
0x1347   : > { %v13735_v61 = vpop.eup %13734  ;;  %v11081_v44 = vmul.f32 %v13733_v8, %v18820_v58  ;;  %v10835_v17 = vpop.xlane.xlu1 %10834  ;;  %v11150_v58 = vpack.c.bf16 %v18904_v56, %v18904_v56  ;;  %v11587_v8 = vsel %vm1787_vm3, %v11155_v59, 0 }
0x1348   : > { %v10838_v20 = vpop.xlane.xlu2 %10837  ;;  %v11082_v53 = vmul.f32 %v13735_v61, %v18822_v60  ;;  %v10873_v63 = vsub.f32 %v18832_v11, %v10835_v17 }
0x1349   : > { %v10874_v41 = vsub.f32 %v18835_v39, %v10838_v20  ;;  %v11113_v50 = vpack.c.bf16 %v11081_v44, %v11081_v44  ;;  %v11492_v39 = vsel %vm1787_vm3, %v11150_v58, 0 }
0x134a   : > { %v11114_v18 = vpack.c.bf16 %v11082_v53, %v11082_v53  ;;  %v10933_v42 = vmul.f32 1.442695, %v10873_v63  ;;  %v19021_v52 = vpop.f32.mrf.mxu1  ;;  %11501 = vmatpush.bf16.msrb.mxu3 %v11492_v39  ;;  %v11157_v63 = vpack.c.bf16 %v18982_v32, %v18982_v32 }
0x134b   : > { %v10935_v28 = vmul.f32 1.442695, %v10874_v41  ;;  %12838 = vmatmul.msk.bf16.vlgmr.msra.gmra.mxu2 %vm1367_vm2, %v11113_v50 }
0x134c   : > { %13736 = vpow2.f32 %v10933_v42  ;;  %12839 = vmatmul.msk.bf16.vlgmr.msra.gmra.mxu3 %vm1367_vm2, %v11114_v18  ;;  %11558 = vmatpush.bf16.msra.mxu2 %v11549_v47  ;;  %v19922_v18 = vld [vmem:[#allocation89_spill] sm:$0xff] }
0x134d   : > { %13738 = vpow2.f32 %v10935_v28 }
0x134f   : > { %v10988_v60 = vpop.xlane.xlu0 %10987 }
0x1350   : > { %v10985_v11 = vpop.xlane.xlu2 %10984  ;;  %13740 = vrcp.f32 %v10988_v60 }
0x1351   : > { %13742 = vrcp.f32 %v10985_v11  ;;  %v11625_v11 = vsel %vm1787_vm3, %v11157_v63, 0 }
0x1352   : > { %v19028_v21 = vpop.eup %13736  ;;  %v19030_v1 = vpop.f32.mrf.mxu1 }
0x1353   : > { %v19032_v27 = vpop.eup %13738  ;;  %v11025_v55 = vsel %vm1367_vm2, %v19028_v21, 0.0 }
0x1354   : > { %11026 = vadd.xlane.f32.xlu2 %v11025_v55  ;;  %v11028_v56 = vsel %vm1367_vm2, %v19032_v27, 0.0 }
0x1355   : > { %11029 = vadd.xlane.f32.xlu0 %v11028_v56 }
0x1356   : > { %v13741_v14 = vpop.eup %13740 }
0x1357   : > { %v13743_v33 = vpop.eup %13742  ;;  %v11084_v45 = vmul.f32 %v13741_v14, %v18848_v16  ;;  %v11152_v16 = vpack.c.bf16 %v18928_v29, %v18928_v29  ;;  %v19062_v29 = vld [vmem:[%s19300_s3] ss:$0 sm:$0xff] }
0x1358   : > { %v10841_v62 = vpop.xlane.xlu2 %10840  ;;  %v11083_v22 = vmul.f32 %v13743_v33, %v18846_v40 }
0x1359   : > { %v10875_v48 = vsub.f32 %v18859_v38, %v10841_v62  ;;  %v11116_v26 = vpack.c.bf16 %v11084_v45, %v11084_v45  ;;  %v11530_v40 = vsel %vm1787_vm3, %v11152_v16, 0 }
0x135a   : > { %v11115_v61 = vpack.c.bf16 %v11083_v22, %v11083_v22  ;;  %v19044_v17 = vpop.f32.mrf.mxu1  ;;  %11539 = vmatpush.bf16.msrb.mxu1 %v11530_v40 }
0x135b   : > { %v10937_v44 = vmul.f32 1.442695, %v10875_v48  ;;  %12841 = vmatmul.msk.bf16.vlgmr.msra.gmra.mxu1 %vm1367_vm2, %v11116_v26 }
0x135c   : > { %12840 = vmatmul.msk.bf16.vlgmr.msra.gmra.mxu0 %vm1367_vm2, %v11115_v61 }
0x135d   : > { %13744 = vpow2.f32 %v10937_v44  ;;  %11596 = vmatpush.bf16.msra.mxu0 %v11587_v8 }
0x135f   : > { %v10991_v25 = vpop.xlane.xlu0 %10990 }
0x1360   : > { %13746 = vrcp.f32 %v10991_v25 }
0x1362   : > { %v19055_v53 = vpop.f32.mrf.mxu1 }
0x1363   : > { %v19051_v38 = vpop.eup %13744 }
0x1364   : > { %v11031_v20 = vsel %vm1367_vm2, %v19051_v38, 0.0 }
0x1365   : > { %11032 = vadd.xlane.f32.xlu1 %v11031_v20 }
0x1366   : > { %v13747_v41 = vpop.eup %13746  ;;  %v11180_v47 = vpop.f32.mrf.mxu2 }
0x1367   : > { %v11085_v50 = vmul.f32 %v13747_v41, %v18876_v54  ;;  %v11773_v42 = vadd.f32 %v11180_v47, %v19922_v18  ;;  %v10844_v28 = vpop.xlane.xlu0 %10843  ;;  %v10994_v58 = vpop.xlane.xlu1 %10993  ;;  %v11154_v54 = vpack.c.bf16 %v18952_v15, %v18952_v15  ;;  %v11156_v41 = vpack.c.bf16 %v18976_v9, %v18976_v9 }
0x1368   : > { %v10876_v60 = vsub.f32 %v18884_v31, %v10844_v28  ;;  %13748 = vrcp.f32 %v10994_v58  ;;  %v11158_v31 = vpack.c.bf16 %v19000_v3, %v19000_v3  ;;  %v11160_v47 = vpack.c.bf16 %v19021_v52, %v19021_v52 }
0x1369   : > { %v11117_v39 = vpack.c.bf16 %v11085_v50, %v11085_v50  ;;  %v11809_v32 = vadd.f32 %v19062_v29, %v11773_v42  ;;  %v11568_v8 = vsel %vm1787_vm3, %v11154_v54, 0  ;;  %v11159_v18 = vpack.c.bf16 %v19006_v23, %v19006_v23 }
0x136a   : > { %v10939_v55 = vmul.f32 1.442695, %v10876_v60  ;;  %v19080_v56 = vpop.f32.mrf.mxu1  ;;  %v11644_v22 = vsel %vm1787_vm3, %v11158_v31, 0  ;;  %11577 = vmatpush.bf16.msra.mxu3 %v11568_v8  ;;  %v11682_v58 = vsel %vm1787_vm3, %v11160_v47, 0  ;;  %v11606_v52 = vsel %vm1787_vm3, %v11156_v41, 0 }
0x136b   : > { %11841 = vst.msk [vmem:[%s19071_s30] sm:$0xff] %vm452_vm0, %v11809_v32  ;;  %12842 = vmatmul.msk.bf16.vlgmr.msrb.gmra.mxu2 %vm1367_vm2, %v11117_v39  ;;  %11615 = vmatpush.bf16.msra.mxu1 %v11606_v52  ;;  %v11164_v41 = vpack.c.bf16 %v19080_v56, %v19080_v56 }
0x136c   : > { %13750 = vpow2.f32 %v10939_v55  ;;  %11634 = vmatpush.bf16.msrb.mxu2 %v11625_v11  ;;  %v11663_v11 = vsel %vm1787_vm3, %v11159_v18, 0  ;;  %v11161_v55 = vpack.c.bf16 %v19030_v1, %v19030_v1 }
0x136e   : > { %v13749_v14 = vpop.eup %13748  ;;  %v11182_v59 = vpop.f32.mrf.mxu2  ;;  %v11701_v8 = vsel %vm1787_vm3, %v11161_v55, 0 }
0x136f   : > { %v11199_v33 = vpop.f32.mrf.mxu3  ;;  %v11086_v45 = vmul.f32 %v13749_v14, %v18886_v24 }
0x1370   : > { %v11774_v62 = vadd.f32 %v11199_v33, %v18500_v49 }
0x1371   : > { %v11118_v48 = vpack.c.bf16 %v11086_v45, %v11086_v45 }
0x1372   : > { %v11810_v26 = vadd.f32 %v19062_v29, %v11774_v62  ;;  %v19087_v15 = vpop.eup %13750  ;;  %v19923_v62 = vld [vmem:[#allocation90_spill] sm:$0xff] }
0x1373   : > { %12843 = vmatmul.msk.bf16.vlgmr.msrb.gmra.mxu3 %vm1367_vm2, %v11118_v48  ;;  %v11034_v3 = vsel %vm1367_vm2, %v19087_v15, 0.0 }
0x1374   : > { %11842 = vst.msk [vmem:[%s19071_s30 + $0x8] sm:$0xff] %vm452_vm0, %v11810_v26  ;;  %11035 = vadd.xlane.f32.xlu2 %v11034_v3  ;;  %11653 = vmatpush.bf16.msrb.mxu3 %v11644_v22 }
0x1377   : > { %v11201_v49 = vpop.f32.mrf.mxu3  ;;  %v11000_v24 = vpop.xlane.xlu2 %10999 }
0x1378   : > { %v10997_v61 = vpop.xlane.xlu1 %10996  ;;  %13752 = vrcp.f32 %v11000_v24  ;;  %v11237_v44 = vpop.f32.mrf.mxu1 }
0x1379   : > { %13754 = vrcp.f32 %v10997_v61  ;;  %v11218_v16 = vpop.f32.mrf.mxu0  ;;  %v11776_v25 = vadd.f32 %v11237_v44, %v18341_v10 }
0x137a   : > { %v11775_v40 = vadd.f32 %v11218_v16, %v18296_v43 }
0x137b   : > { %v11812_v20 = vadd.f32 %v19062_v29, %v11776_v25 }
0x137c   : > { %v11811_v63 = vadd.f32 %v19062_v29, %v11775_v40 }
0x137d   : > { %11844 = vst.msk [vmem:[%s19071_s30 + $0x18] sm:$0xff] %vm452_vm0, %v11812_v20  ;;  %v11163_v20 = vpack.c.bf16 %v19055_v53, %v19055_v53  ;;  %v11758_v53 = vsel %vm1787_vm3, %v11164_v41, 0 }
0x137e   : > { %v13753_v50 = vpop.eup %13752  ;;  %11843 = vst.msk [vmem:[%s19071_s30 + $0x10] sm:$0xff] %vm452_vm0, %v11811_v63 }
0x137f   : > { %v13755_v10 = vpop.eup %13754  ;;  %v11088_v43 = vmul.f32 %v13753_v50, %v18908_v7  ;;  %v11739_v18 = vsel %vm1787_vm3, %v11163_v20, 0 }
0x1380   : > { %v11087_v42 = vmul.f32 %v13755_v10, %v18912_v37  ;;  %v11239_v28 = vpop.f32.mrf.mxu1  ;;  %v11162_v37 = vpack.c.bf16 %v19044_v17, %v19044_v17 }
0x1381   : > { %v11120_v9 = vpack.c.bf16 %v11088_v43, %v11088_v43  ;;  %v11220_v60 = vpop.f32.mrf.mxu0 }
0x1382   : > { %v11119_v39 = vpack.c.bf16 %v11087_v42, %v11087_v42  ;;  %v11720_v48 = vsel %vm1787_vm3, %v11162_v37, 0 }
0x1383   : > { %12845 = vmatmul.msk.bf16.vlgmr.msrb.gmra.mxu1 %vm1367_vm2, %v11120_v9 }
0x1384   : > { %12844 = vmatmul.msk.bf16.vlgmr.msrb.gmra.mxu0 %vm1367_vm2, %v11119_v39  ;;  %11691 = vmatpush.bf16.msrb.mxu1 %v11682_v58  ;;  %v19924_v39 = vld [vmem:[#allocation92_spill] sm:$0xff] }
0x1385   : > { %11672 = vmatpush.bf16.msrb.mxu0 %v11663_v11 }
0x1387   : > { %v11006_v7 = vpop.xlane.xlu1 %11005 }
0x1388   : > { %v11003_v23 = vpop.xlane.xlu0 %11002  ;;  %13756 = vrcp.f32 %v11006_v7 }
0x1389   : > { %13758 = vrcp.f32 %v11003_v23 }
0x138e   : > { %v13757_v32 = vpop.eup %13756  ;;  %v11275_v54 = vpop.f32.mrf.mxu3 }
0x138f   : > { %v13759_v31 = vpop.eup %13758  ;;  %v11090_v14 = vmul.f32 %v13757_v32, %v18932_v34  ;;  %v11256_v59 = vpop.f32.mrf.mxu2  ;;  %v11778_v33 = vadd.f32 %v11275_v54, %v18522_v36 }
0x1390   : > { %v11089_v45 = vmul.f32 %v13759_v31, %v18936_v4  ;;  %v11777_v22 = vadd.f32 %v11256_v59, %v19923_v62 }
0x1391   : > { %v11122_v17 = vpack.c.bf16 %v11090_v14, %v11090_v14  ;;  %v11814_v26 = vadd.f32 %v19062_v29, %v11778_v33 }
0x1392   : > { %v11121_v1 = vpack.c.bf16 %v11089_v45, %v11089_v45  ;;  %v11813_v3 = vadd.f32 %v19062_v29, %v11777_v22 }
0x1393   : > { %11846 = vst.msk [vmem:[%s19071_s30 + $0x28] sm:$0xff] %vm452_vm0, %v11814_v26  ;;  %12847 = vmatmul.msk.bf16.vlgmr.msra.gmra.mxu3 %vm1367_vm2, %v11122_v17 }
0x1394   : > { %11845 = vst.msk [vmem:[%s19071_s30 + $0x20] sm:$0xff] %vm452_vm0, %v11813_v3  ;;  %12846 = vmatmul.msk.bf16.vlgmr.msra.gmra.mxu2 %vm1367_vm2, %v11121_v1  ;;  %11729 = vmatpush.bf16.msra.mxu3 %v11720_v48 }
0x1395   : > { %11710 = vmatpush.bf16.msra.mxu2 %v11701_v8 }
0x1396   : > { %v11277_v36 = vpop.f32.mrf.mxu3 }
0x1397   : > { %v11258_v34 = vpop.f32.mrf.mxu2  ;;  %v11009_v4 = vpop.xlane.xlu2 %11008 }
0x1398   : > { %v11012_v49 = vpop.xlane.xlu0 %11011  ;;  %13760 = vrcp.f32 %v11009_v4  ;;  %v11294_v24 = vpop.f32.mrf.mxu0 }
0x1399   : > { %13762 = vrcp.f32 %v11012_v49  ;;  %v11779_v61 = vadd.f32 %v11294_v24, %v18346_v51  ;;  %v11313_v44 = vpop.f32.mrf.mxu1 }
0x139a   : > { %v11780_v16 = vadd.f32 %v11313_v44, %v18354_v13  ;;  %v19925_v44 = vld [vmem:[#allocation73_spill] sm:$0xff] }
0x139b   : > { %v11815_v25 = vadd.f32 %v19062_v29, %v11779_v61 }
0x139c   : > { %v11816_v40 = vadd.f32 %v19062_v29, %v11780_v16 }
0x139d   : > { %11847 = vst.msk [vmem:[%s19071_s30 + $0x30] sm:$0xff] %vm452_vm0, %v11815_v25 }
0x139e   : > { %v13761_v63 = vpop.eup %13760  ;;  %11848 = vst.msk [vmem:[%s19071_s30 + $0x38] sm:$0xff] %vm452_vm0, %v11816_v40 }
0x139f   : > { %v13763_v47 = vpop.eup %13762  ;;  %v11091_v51 = vmul.f32 %v13761_v63, %v18956_v5 }
0x13a0   : > { %v11092_v13 = vmul.f32 %v13763_v47, %v18960_v6  ;;  %v11296_v50 = vpop.f32.mrf.mxu0 }
0x13a1   : > { %v11123_v10 = vpack.c.bf16 %v11091_v51, %v11091_v51  ;;  %v11315_v43 = vpop.f32.mrf.mxu1  ;;  %v19926_v51 = vld [vmem:[#allocation12_spill] sm:$0xff]  ;;  %v19927_v50 = vld [vmem:[#allocation13_spill] sm:$0xff] }
0x13a2   : > { %v11124_v42 = vpack.c.bf16 %v11092_v13, %v11092_v13 }
0x13a3   : > { %12848 = vmatmul.msk.bf16.vlgmr.msra.gmra.mxu0 %vm1367_vm2, %v11123_v10 }
0x13a4   : > { %12849 = vmatmul.msk.bf16.vlgmr.msra.gmra.mxu1 %vm1367_vm2, %v11124_v42  ;;  %11748 = vmatpush.bf16.msra.mxu0 %v11739_v18 }
0x13a5   : > { %11767 = vmatpush.bf16.msra.mxu1 %v11758_v53 }
0x13a7   : > { %v11018_v56 = vpop.xlane.xlu2 %11017 }
0x13a8   : > { %v11015_v28 = vpop.xlane.xlu1 %11014  ;;  %13764 = vrcp.f32 %v11018_v56 }
0x13a9   : > { %13766 = vrcp.f32 %v11015_v28 }
0x13ae   : > { %v13765_v5 = vpop.eup %13764  ;;  %v11351_v6 = vpop.f32.mrf.mxu3 }
0x13af   : > { %v13767_v58 = vpop.eup %13766  ;;  %v11094_v9 = vmul.f32 %v13765_v5, %v18980_v2  ;;  %v11332_v60 = vpop.f32.mrf.mxu2  ;;  %v11782_v52 = vadd.f32 %v11351_v6, %v18541_v12 }
0x13b0   : > { %v11093_v11 = vmul.f32 %v13767_v58, %v18984_v19  ;;  %v11781_v7 = vadd.f32 %v11332_v60, %v19924_v39 }
0x13b1   : > { %v11126_v23 = vpack.c.bf16 %v11094_v9, %v11094_v9  ;;  %v11818_v37 = vadd.f32 %v19062_v29, %v11782_v52  ;;  %v19928_v52 = vld [vmem:[#allocation120_spill] sm:$0xff] }
0x13b2   : > { %v11125_v32 = vpack.c.bf16 %v11093_v11, %v11093_v11  ;;  %v11817_v55 = vadd.f32 %v19062_v29, %v11781_v7 }
0x13b3   : > { %11850 = vst.msk [vmem:[%s19071_s30 + $0x48] sm:$0xff] %vm452_vm0, %v11818_v37  ;;  %12851 = vmatmul.msk.bf16.vlgmr.msrb.gmra.mxu3 %vm1367_vm2, %v11126_v23  ;;  %v19929_v37 = vld [vmem:[#allocation99_spill] sm:$0xff] }
0x13b4   : > { %11849 = vst.msk [vmem:[%s19071_s30 + $0x40] sm:$0xff] %vm452_vm0, %v11817_v55  ;;  %12850 = vmatmul.msk.bf16.vlgmr.msrb.gmra.mxu2 %vm1367_vm2, %v11125_v32 }
0x13b6   : > { %v11353_v12 = vpop.f32.mrf.mxu3 }
0x13b7   : > { %v11334_v2 = vpop.f32.mrf.mxu2  ;;  %v11024_v19 = vpop.xlane.xlu1 %11023 }
0x13b8   : > { %v11021_v54 = vpop.xlane.xlu0 %11020  ;;  %13768 = vrcp.f32 %v11024_v19  ;;  %v11389_v31 = vpop.f32.mrf.mxu1  ;;  %v19930_v19 = vld [vmem:[#allocation70_spill] sm:$0xff] }
0x13b9   : > { %13770 = vrcp.f32 %v11021_v54  ;;  %v11370_v14 = vpop.f32.mrf.mxu0  ;;  %v11784_v59 = vadd.f32 %v11389_v31, %v18378_v35  ;;  %v19931_v31 = vld [vmem:[#allocation14_spill] sm:$0xff] }
0x13ba   : > { %v11783_v33 = vadd.f32 %v11370_v14, %v18360_v30 }
0x13bb   : > { %v11820_v45 = vadd.f32 %v19062_v29, %v11784_v59 }
0x13bc   : > { %v11819_v62 = vadd.f32 %v19062_v29, %v11783_v33 }
0x13bd   : > { %11852 = vst.msk [vmem:[%s19071_s30 + $0x58] sm:$0xff] %vm452_vm0, %v11820_v45 }
0x13be   : > { %v13769_v22 = vpop.eup %13768  ;;  %11851 = vst.msk [vmem:[%s19071_s30 + $0x50] sm:$0xff] %vm452_vm0, %v11819_v62 }
0x13bf   : > { %v13771_v48 = vpop.eup %13770  ;;  %v11096_v17 = vmul.f32 %v13769_v22, %v19004_v0 }
0x13c0   : > { %v11095_v26 = vmul.f32 %v13771_v48, %v19008_v57  ;;  %v11391_v8 = vpop.f32.mrf.mxu1 }
0x13c1   : > { %v11128_v1 = vpack.c.bf16 %v11096_v17, %v11096_v17  ;;  %v11372_v3 = vpop.f32.mrf.mxu0  ;;  %v19932_v17 = vld [vmem:[#allocation76_spill] sm:$0xff]  ;;  %v19933_v8 = vld [vmem:[#allocation66_spill] sm:$0xff] }
0x13c2   : > { %v11127_v35 = vpack.c.bf16 %v11095_v26, %v11095_v26 }
0x13c3   : > { %12853 = vmatmul.msk.bf16.vlgmr.msrb.gmra.mxu1 %vm1367_vm2, %v11128_v1 }
0x13c4   : > { %12852 = vmatmul.msk.bf16.vlgmr.msrb.gmra.mxu0 %vm1367_vm2, %v11127_v35 }
0x13c7   : > { %v11027_v30 = vpop.xlane.xlu2 %11026 }
0x13c8   : > { %v11030_v36 = vpop.xlane.xlu0 %11029  ;;  %13772 = vrcp.f32 %v11027_v30 }
0x13c9   : > { %13774 = vrcp.f32 %v11030_v36 }
0x13ce   : > { %v13773_v34 = vpop.eup %13772  ;;  %v11408_v4 = vpop.f32.mrf.mxu2 }
0x13cf   : > { %v13775_v49 = vpop.eup %13774  ;;  %v11097_v0 = vmul.f32 %v13773_v34, %v19028_v21  ;;  %v11785_v57 = vadd.f32 %v11408_v4, %v18143_v46  ;;  %v11427_v24 = vpop.f32.mrf.mxu3  ;;  %v19934_v4 = vld [vmem:[#allocation15_spill] sm:$0xff] }
0x13d0   : > { %v11098_v61 = vmul.f32 %v13775_v49, %v19032_v27  ;;  %v11786_v16 = vadd.f32 %v11427_v24, %v19925_v44 }
0x13d1   : > { %v11129_v25 = vpack.c.bf16 %v11097_v0, %v11097_v0  ;;  %v11821_v40 = vadd.f32 %v19062_v29, %v11785_v57  ;;  %v19935_v57 = vld [vmem:[#allocation16_spill] sm:$0xff] }
0x13d2   : > { %v11130_v20 = vpack.c.bf16 %v11098_v61, %v11098_v61  ;;  %v11822_v63 = vadd.f32 %v19062_v29, %v11786_v16 }
0x13d3   : > { %11853 = vst.msk [vmem:[%s19071_s30 + $0x60] sm:$0xff] %vm452_vm0, %v11821_v40  ;;  %12854 = vmatmul.msk.bf16.vlgmr.msra.gmra.mxu2 %vm1367_vm2, %v11129_v25 }
0x13d4   : > { %11854 = vst.msk [vmem:[%s19071_s30 + $0x68] sm:$0xff] %vm452_vm0, %v11822_v63  ;;  %12855 = vmatmul.msk.bf16.vlgmr.msra.gmra.mxu3 %vm1367_vm2, %v11130_v20  ;;  %v19936_v63 = vld [vmem:[#allocation74_spill] sm:$0xff] }
0x13d6   : > { %v11410_v46 = vpop.f32.mrf.mxu2 }
0x13d7   : > { %v11429_v21 = vpop.f32.mrf.mxu3 }
0x13d8   : > { %v11033_v27 = vpop.xlane.xlu1 %11032  ;;  %v11465_v41 = vpop.f32.mrf.mxu1  ;;  %v19937_v21 = vld [vmem:[#allocation68_spill] sm:$0xff] }
0x13d9   : > { %13776 = vrcp.f32 %v11033_v27  ;;  %v11446_v47 = vpop.f32.mrf.mxu0  ;;  %v11788_v13 = vadd.f32 %v11465_v41, %v19926_v51 }
0x13da   : > { %v11787_v18 = vadd.f32 %v11446_v47, %v19927_v50 }
0x13db   : > { %v11824_v10 = vadd.f32 %v19062_v29, %v11788_v13 }
0x13dc   : > { %v11823_v43 = vadd.f32 %v19062_v29, %v11787_v18 }
0x13dd   : > { %11856 = vst.msk [vmem:[%s19071_s30 + $0x78] sm:$0xff] %vm452_vm0, %v11824_v10  ;;  %v19938_v10 = vld [vmem:[#allocation17_spill] sm:$0xff] }
0x13de   : > { %11855 = vst.msk [vmem:[%s19071_s30 + $0x70] sm:$0xff] %vm452_vm0, %v11823_v43 }
0x13df   : > { %v13777_v53 = vpop.eup %13776 }
0x13e0   : > { %v11099_v42 = vmul.f32 %v13777_v53, %v19051_v38  ;;  %v11467_v56 = vpop.f32.mrf.mxu1  ;;  %v19939_v53 = vld [vmem:[#allocation72_spill] sm:$0xff] }
0x13e1   : > { %v11448_v5 = vpop.f32.mrf.mxu0 }
0x13e2   : > { %v11131_v28 = vpack.c.bf16 %v11099_v42, %v11099_v42 }
0x13e4   : > { %12856 = vmatmul.msk.bf16.vlgmr.msra.gmra.mxu0 %vm1367_vm2, %v11131_v28 }
0x13e7   : > { %v11036_v6 = vpop.xlane.xlu2 %11035 }
0x13e8   : > { %13778 = vrcp.f32 %v11036_v6 }
0x13ee   : > { %v13779_v58 = vpop.eup %13778  ;;  %v11484_v9 = vpop.f32.mrf.mxu2 }
0x13ef   : > { %v11100_v60 = vmul.f32 %v13779_v58, %v19087_v15  ;;  %v11789_v11 = vadd.f32 %v11484_v9, %v19928_v52  ;;  %v19940_v9 = vld [vmem:[#allocation97_spill] sm:$0xff] }
0x13f1   : > { %v11132_v39 = vpack.c.bf16 %v11100_v60, %v11100_v60  ;;  %v11825_v7 = vadd.f32 %v19062_v29, %v11789_v11  ;;  %v19941_v11 = vld [vmem:[#allocation100_spill] sm:$0xff] }
0x13f3   : > { %11857 = vst.msk [vmem:[%s19071_s30 + $0x80] sm:$0xff] %vm452_vm0, %v11825_v7  ;;  %12857 = vmatmul.msk.bf16.vlgmr.msra.gmra.mxu1 %vm1367_vm2, %v11132_v39 }
0x13f6   : > { %v11486_v38 = vpop.f32.mrf.mxu2  ;;  %v11503_v23 = vpop.f32.mrf.mxu3 }
0x13f7   : > { %v11790_v32 = vadd.f32 %v11503_v23, %v19929_v37 }
0x13f9   : > { %v11826_v55 = vadd.f32 %v19062_v29, %v11790_v32 }
0x13fb   : > { %11858 = vst.msk [vmem:[%s19071_s30 + $0x88] sm:$0xff] %vm452_vm0, %v11826_v55  ;;  %v19942_v55 = vld [vmem:[#allocation98_spill] sm:$0xff] }
0x13fe   : > { %v11505_v15 = vpop.f32.mrf.mxu3 }
0x1400   : > { %v11541_v12 = vpop.f32.mrf.mxu1 }
0x1401   : > { %v11522_v2 = vpop.f32.mrf.mxu0  ;;  %v11792_v54 = vadd.f32 %v11541_v12, %v19930_v19 }
0x1402   : > { %v11791_v14 = vadd.f32 %v11522_v2, %v19931_v31 }
0x1403   : > { %v11828_v59 = vadd.f32 %v19062_v29, %v11792_v54  ;;  %v19943_v54 = vld [vmem:[#allocation71_spill] sm:$0xff] }
0x1404   : > { %v11827_v33 = vadd.f32 %v19062_v29, %v11791_v14 }
0x1405   : > { %11860 = vst.msk [vmem:[%s19071_s30 + $0x98] sm:$0xff] %vm452_vm0, %v11828_v59 }
0x1406   : > { %11859 = vst.msk [vmem:[%s19071_s30 + $0x90] sm:$0xff] %vm452_vm0, %v11827_v33 }
0x1408   : > { %v11543_v45 = vpop.f32.mrf.mxu1 }
0x1409   : > { %v11524_v62 = vpop.f32.mrf.mxu0 }
0x1416   : > { %v11579_v22 = vpop.f32.mrf.mxu3 }
0x1417   : > { %v11560_v48 = vpop.f32.mrf.mxu2  ;;  %v11794_v26 = vadd.f32 %v11579_v22, %v19932_v17 }
0x1418   : > { %v11793_v1 = vadd.f32 %v11560_v48, %v19933_v8 }
0x1419   : > { %v11830_v3 = vadd.f32 %v19062_v29, %v11794_v26 }
0x141a   : > { %v11829_v35 = vadd.f32 %v19062_v29, %v11793_v1 }
0x141b   : > { %11862 = vst.msk [vmem:[%s19071_s30 + $0xa8] sm:$0xff] %vm452_vm0, %v11830_v3 }
0x141c   : > { %11861 = vst.msk [vmem:[%s19071_s30 + $0xa0] sm:$0xff] %vm452_vm0, %v11829_v35 }
0x141e   : > { %v11581_v30 = vpop.f32.mrf.mxu3 }
0x141f   : > { %v11562_v36 = vpop.f32.mrf.mxu2 }
0x1420   : > { %v11598_v34 = vpop.f32.mrf.mxu0 }
0x1421   : > { %v11795_v49 = vadd.f32 %v11598_v34, %v19934_v4  ;;  %v11617_v0 = vpop.f32.mrf.mxu1 }
0x1422   : > { %v11796_v24 = vadd.f32 %v11617_v0, %v19935_v57 }
0x1423   : > { %v11831_v61 = vadd.f32 %v19062_v29, %v11795_v49 }
0x1424   : > { %v11832_v44 = vadd.f32 %v19062_v29, %v11796_v24 }
0x1425   : > { %11863 = vst.msk [vmem:[%s19071_s30 + $0xb0] sm:$0xff] %vm452_vm0, %v11831_v61 }
0x1426   : > { %11864 = vst.msk [vmem:[%s19071_s30 + $0xb8] sm:$0xff] %vm452_vm0, %v11832_v44 }
0x1428   : > { %v11600_v16 = vpop.f32.mrf.mxu0 }
0x1429   : > { %v11619_v25 = vpop.f32.mrf.mxu1 }
0x1436   : > { %v11655_v40 = vpop.f32.mrf.mxu3 }
0x1437   : > { %v11636_v20 = vpop.f32.mrf.mxu2  ;;  %v11798_v46 = vadd.f32 %v11655_v40, %v19936_v63 }
0x1438   : > { %v11797_v27 = vadd.f32 %v11636_v20, %v19937_v21 }
0x1439   : > { %v11834_v41 = vadd.f32 %v19062_v29, %v11798_v46 }
0x143a   : > { %v11833_v47 = vadd.f32 %v19062_v29, %v11797_v27 }
0x143b   : > { %11866 = vst.msk [vmem:[%s19071_s30 + $0xc8] sm:$0xff] %vm452_vm0, %v11834_v41 }
0x143c   : > { %11865 = vst.msk [vmem:[%s19071_s30 + $0xc0] sm:$0xff] %vm452_vm0, %v11833_v47 }
0x143e   : > { %v11657_v51 = vpop.f32.mrf.mxu3 }
0x143f   : > { %v11638_v13 = vpop.f32.mrf.mxu2 }
0x1440   : > { %v11693_v50 = vpop.f32.mrf.mxu1 }
0x1441   : > { %v11674_v18 = vpop.f32.mrf.mxu0  ;;  %v11800_v43 = vadd.f32 %v11693_v50, %v19938_v10 }
0x1442   : > { %v11799_v42 = vadd.f32 %v11674_v18, %v19939_v53 }
0x1443   : > { %v11836_v56 = vadd.f32 %v19062_v29, %v11800_v43 }
0x1444   : > { %v11835_v28 = vadd.f32 %v19062_v29, %v11799_v42 }
0x1445   : > { %11868 = vst.msk [vmem:[%s19071_s30 + $0xd8] sm:$0xff] %vm452_vm0, %v11836_v56 }
0x1446   : > { %11867 = vst.msk [vmem:[%s19071_s30 + $0xd0] sm:$0xff] %vm452_vm0, %v11835_v28 }
0x1448   : > { %v11695_v5 = vpop.f32.mrf.mxu1 }
0x1449   : > { %v11676_v6 = vpop.f32.mrf.mxu0 }
0x1456   : > { %v11712_v58 = vpop.f32.mrf.mxu2 }
0x1457   : > { %v11801_v60 = vadd.f32 %v11712_v58, %v19940_v9  ;;  %v11731_v52 = vpop.f32.mrf.mxu3 }
0x1458   : > { %v11802_v39 = vadd.f32 %v11731_v52, %v19941_v11 }
0x1459   : > { %v11837_v7 = vadd.f32 %v19062_v29, %v11801_v60 }
0x145a   : > { %v11838_v38 = vadd.f32 %v19062_v29, %v11802_v39 }
0x145b   : > { %11869 = vst.msk [vmem:[%s19071_s30 + $0xe0] sm:$0xff] %vm452_vm0, %v11837_v7 }
0x145c   : > { %11870 = vst.msk [vmem:[%s19071_s30 + $0xe8] sm:$0xff] %vm452_vm0, %v11838_v38 }
0x145e   : > { %v11714_v23 = vpop.f32.mrf.mxu2 }
0x145f   : > { %v11733_v37 = vpop.f32.mrf.mxu3 }
0x1461   : > { %v11750_v32 = vpop.f32.mrf.mxu0 }
0x1462   : > { %v11803_v15 = vadd.f32 %v11750_v32, %v19942_v55 }
0x1464   : > { %v11839_v12 = vadd.f32 %v19062_v29, %v11803_v15 }
0x1466   : > { %11871 = vst.msk [vmem:[%s19071_s30 + $0xf0] sm:$0xff] %vm452_vm0, %v11839_v12 }
0x1469   : > { %v11752_v2 = vpop.f32.mrf.mxu0 }
0x1470   : > { %v11769_v19 = vpop.f32.mrf.mxu1 }
0x1471   : > { %v11804_v31 = vadd.f32 %v11769_v19, %v19943_v54 }
0x1473   : > { %v11840_v14 = vadd.f32 %v19062_v29, %v11804_v31 }
0x1475   : > { %11872 = vst.msk [vmem:[%s19071_s30 + $0xf8] sm:$0xff] %vm452_vm0, %v11840_v14 }
0x1476   : > { %13897 = shalt.err (!%p13894_p10)
}
0x1477   : > { %s13949_s28 = smov 128   ;;  %s13950_s21 = smov 8  }
0x1478   : > { %12947 = dma.vmem_to_hbm [thread:$0]  (%p14042_p3), %s11887_s12, 4096, %s11889_s23, %s11874_s24, %s13949_s28, %s13949_s28, %s13950_s21   ;;  %v11771_v29 = vpop.f32.mrf.mxu1 }
0x1479 PF: > { %s11903_s26 = sand.u32 1, %s13928_s15   ;;  %p19944_p12 = scmp.ge.s32.totalorder %s13940_s18, 2 }
0x147a   : > { %s11904_s30 = scalar_lea.sflag [#allocation4], %s11903_s26 }
0x147b   : > { %p12961_p13 = pnand %p19944_p12, %p14011_p6 }
0x147d   : > { %p12962_p0 = pneg %p12961_p13 }
0x147f   : > { %13923 = dma.done.wait (%p12962_p0), %s11904_s30, 4096  }
0x1480   : > { %13925 = vsyncadd (%p12962_p0), %s11904_s30, 4294963200  ;;  %p18_p5 = scmp.ge.s32.totalorder %s14032_s10, 4   ;;  %s19945_s15 = smov %s13932_s16 }
0x1481   : > { %s19946_s16 = smov %s13936_s17  ;;  %s19947_s17 = smov %s14048_s14 }
0x1482   : > { %s19948_s18 = smov %s14032_s10  ;;  %20 = sbr.rel (!%p18_p5) target bundleno = 6 (0x6), region = 99 }
0x1487   :  { %11910 = vsyncpa [#allocation3], 1 }
0x1488   :  { %11912 = vsyncpa [#allocation3 + $0x1], 1 }
0x1489   :  { %11913 = vsyncpa [#allocation6], 1 }
0x148a   :  { %11914 = vsyncpa [#allocation4], 1 }
0x148b   :  { %11916 = vsyncpa [#allocation4 + $0x1], 1 }

</bundles_post_ra>
